<compile_context>
chip_gen: v7x
topology: tpu7x:2x2x1
jax: 0.10.0
libtpu: 0.0.40
codegen_flags: <defaults>
</compile_context>

<pallas_src>
import functools

import jax
import jax.numpy as jnp
from jax.experimental import pallas as pl
from jax.experimental.pallas import tpu as pltpu


# ---------------------------------------------------------------------------
# Kernels
# ---------------------------------------------------------------------------
def _fused_level_kernel_flat(x_ref, dww_ref, w1_ref, scale_ref, bias_ref,
                             out_ref, *, channels):
    """Lane-dense fused level: dw3x3 -> 1x1 -> BN affine -> ReLU, one strip.

    x_ref    : (H+2, (W+2)*C) zero-padded image (act dtype), (W, C) flattened
                              into the lane axis; resident across strips.
    dww_ref  : (9, LT)        depthwise taps, tap-major; LT = 128 when C | 128
                              (pattern period C, tiled in-kernel), else W*C.
    w1_ref   : (KN, KN)       bf16 1x1 weights; block-diagonal with KN//C
                              copies of w1 when KN = 128, else w1 itself.
    scale_ref: (1, KN)        f32 BN scale (per out-channel, lane-tiled).
    bias_ref : (1, KN)        f32 BN shift (per out-channel, lane-tiled).
    out_ref  : (TH, W*C)      one lane-dense output row strip (act dtype).
    """
    TH, WC = out_ref.shape
    C = channels
    W = WC // C
    KN = w1_ref.shape[0]
    LT = dww_ref.shape[1]

    # Broadcast the 9 per-channel taps across the W*C lane axis once, hoisted
    # out of the stencil loop.  When LT == 128 the pattern period C divides
    # 128, so whole-vreg tiling + a trailing slice reproduces tap[l % C].
    dww_t = dww_ref[...]
    if LT == WC:
        dww = dww_t
    elif LT > WC:
        dww = dww_t[:, :WC]
    else:
        reps = -(-WC // LT)
        dww = jnp.tile(dww_t, (1, reps))[:, :WC]

    row0 = pl.multiple_of(pl.program_id(1) * TH, TH)

    # Depthwise 3x3 stencil.  Only 3 lane-offset window loads (one per dw tap
    # column); the dh shifts are cheap sublane slices of the same window.
    # Products run in the activation dtype (packed bf16 VALU on v6e/v7x),
    # accumulation stays f32.
    acc = jnp.zeros((TH, WC), jnp.float32)
    for dw in range(3):
        win = x_ref[pl.ds(row0, TH + 2), pl.ds(dw * C, WC)]   # (TH+2, WC)
        for dh in range(3):
            acc = acc + win[dh:dh + TH, :] * dww[3 * dh + dw]

    # 1x1 conv + BN affine + ReLU.  Fast path: lane-preserving reshape to
    # (-1, KN) rows and a (KN, KN) block-diag RHS so the MXU runs at native
    # K = N = 128 with no cross-lane scatter.  Fallback keeps the old
    # per-channel (C, C) matmul for tiny/odd lane widths.
    if KN % 128 == 0 and WC % KN == 0:
        m = (TH * WC) // KN
        lhs = acc.reshape(m, KN).astype(jnp.bfloat16)
        y = jnp.dot(lhs, w1_ref[...], preferred_element_type=jnp.float32)
        y = jnp.maximum(y * scale_ref[...] + bias_ref[...], 0.0)
    else:
        lhs = acc.reshape(TH * W, C).astype(jnp.bfloat16)
        y = jnp.dot(lhs, w1_ref[:C, :C], preferred_element_type=jnp.float32)
        y = jnp.maximum(y * scale_ref[:, :C] + bias_ref[:, :C], 0.0)
    out_ref[...] = y.reshape(TH, WC).astype(out_ref.dtype)


def _fused_level_kernel_nhwc(x_ref, dww_ref, w1_ref, scale_ref, bias_ref,
                             out_ref):
    """Portable NHWC fallback (C in the lane dim; masked stores)."""
    TH, W, C = out_ref.shape
    row0 = pl.multiple_of(pl.program_id(1) * TH, TH)
    xs = x_ref[pl.ds(row0, TH + 2), :, :]          # (TH+2, W+2, C)
    dww = dww_ref[...]                             # (3, 3, C)

    acc = jnp.zeros((TH, W, C), jnp.float32)
    for dh in range(3):
        for dw in range(3):
            acc = acc + xs[dh:dh + TH, dw:dw + W, :] * dww[dh, dw, :]

    lhs = acc.reshape(TH * W, C).astype(jnp.bfloat16)
    y = jnp.dot(lhs, w1_ref[...], preferred_element_type=jnp.float32)
    y = jnp.maximum(y * scale_ref[...] + bias_ref[...], 0.0)
    out_ref[...] = y.reshape(TH, W, C).astype(out_ref.dtype)


# ---------------------------------------------------------------------------
# Wrappers
# ---------------------------------------------------------------------------
def _strip_rows(h, wc, sub):
    """Output row-strip height.  Bigger strips (target 32-64 rows) amortize
    the ~0.35us per-grid-step overhead and give the MXU a longer M; strips
    smaller than H must keep the (sub, 128) tile constraint on the output
    block (sub = 16 for bf16 activations, 8 for f32)."""
    if h <= 64 or wc % 128 != 0:
        return h
    for th in range(64, 0, -sub):
        if h % th == 0:
            return th
    return h


def fused_dwconv_convbnrelu(x, p, *, flat=True):
    """Fused dw3x3 -> 1x1 conv -> BN(eval) affine -> ReLU.  x: (N,H,W,C)."""
    N, H, W, C = x.shape
    WC = W * C
    sub = 16 if x.dtype == jnp.bfloat16 else 8
    th = _strip_rows(H, WC, sub)
    grid = (N, H // th)

    itemsize = jnp.dtype(x.dtype).itemsize
    vmem_est = (2 * (H + 2) * (W + 2) * C * itemsize      # resident padded img
                + 2 * th * WC * itemsize                  # output strip
                + 2 * (128 * 128 * 2 + 9 * 128 * itemsize + 2 * 128 * 4)
                + (1 << 20))
    cparams = pltpu.CompilerParams(
        # Batch axis "parallel", strip axis "arbitrary": on v7x the megacore
        # split happens along batch so each core holds one padded image, not
        # two copies of the same one.
        dimension_semantics=("parallel", "arbitrary"),
        vmem_limit_bytes=int(min(64 << 20, max(32 << 20, vmem_est))))

    # Zero pad=1 for the 3x3 stencil, done in XLA where it fuses with the
    # preceding upsample+add elementwise fusion.
    # TODO(synk): fuse the halo pad (and the 2x bilinear upsample+add) into
    # the kernel to remove one HBM round trip per level.
    xp = jnp.pad(x, ((0, 0), (1, 1), (1, 1), (0, 0)))

    if flat:
        xpf = xp.reshape(N, H + 2, (W + 2) * C)
        # Tiny tap constant: (9, 128) when C | 128 (lane l holds tap[l % C]),
        # else the full (9, W*C) tiling; broadcast the rest in-kernel.
        if 128 % C == 0:
            dww = jnp.tile(p["dw_w"].reshape(9, C), (1, 128 // C))
        else:
            dww = jnp.tile(p["dw_w"].reshape(9, C), (1, W))
        dww = dww.astype(x.dtype)

        kernel = functools.partial(_fused_level_kernel_flat, channels=C)
        out = pl.pallas_call(
            kernel,
            out_shape=jax.ShapeDtypeStruct((N, H, WC), x.dtype),
            grid_spec=pltpu.PrefetchScalarGridSpec(
                num_scalar_prefetch=0,
                grid=grid,
                in_specs=[
                    pl.BlockSpec((None, H + 2, (W + 2) * C),
                                 lambda n, h: (n, 0, 0)),
                    pl.BlockSpec(dww.shape, lambda n, h: (0, 0)),
                    pl.BlockSpec(p["w1d"].shape, lambda n, h: (0, 0)),
                    pl.BlockSpec(p["scale"].shape, lambda n, h: (0, 0)),
                    pl.BlockSpec(p["bias"].shape, lambda n, h: (0, 0)),
                ],
                out_specs=pl.BlockSpec((None, th, WC),
                                       lambda n, h: (n, h, 0)),
            ),
            compiler_params=cparams,
        )(xpf, dww, p["w1d"], p["scale"], p["bias"])
        return out.reshape(N, H, W, C)

    # NHWC fallback path.
    dww = p["dw_w"].astype(x.dtype)
    w1 = p["w1d"][:C, :C]
    scale = p["scale"][:, :C]
    bias = p["bias"][:, :C]
    out = pl.pallas_call(
        _fused_level_kernel_nhwc,
        out_shape=jax.ShapeDtypeStruct((N, H, W, C), x.dtype),
        grid_spec=pltpu.PrefetchScalarGridSpec(
            num_scalar_prefetch=0,
            grid=grid,
            in_specs=[
                pl.BlockSpec((None, H + 2, W + 2, C),
                             lambda n, h: (n, 0, 0, 0)),
                pl.BlockSpec((3, 3, C), lambda n, h: (0, 0, 0)),
                pl.BlockSpec((C, C), lambda n, h: (0, 0)),
                pl.BlockSpec((1, C), lambda n, h: (0, 0)),
                pl.BlockSpec((1, C), lambda n, h: (0, 0)),
            ],
            out_specs=pl.BlockSpec((None, th, W, C),
                                   lambda n, h: (n, h, 0, 0)),
        ),
        compiler_params=cparams,
    )(xp, dww, w1, scale, bias)
    return out


_FLAT_OK = None


def flat_layout_supported():
    """Probe (eagerly, outside jit) whether Mosaic lowers the lane-dense
    kernel (unaligned lane-offset window loads, block-diag matmul reshape and
    the sub-128-lane fallback path); otherwise fall back to the NHWC kernel.
    Result is cached."""
    global _FLAT_OK
    if _FLAT_OK is None:
        try:
            c = 32
            p = {"dw_w": jnp.zeros((3, 3, c), jnp.float32),
                 "w1d": jnp.zeros((128, 128), jnp.bfloat16),
                 "scale": jnp.ones((1, 128), jnp.float32),
                 "bias": jnp.zeros((1, 128), jnp.float32)}
            for s in (16, 2):          # fast path (WC%128==0) and tiny path
                x = jnp.zeros((1, s, s, c), jnp.bfloat16)
                jax.block_until_ready(
                    fused_dwconv_convbnrelu(x, p, flat=True))
            _FLAT_OK = True
        except Exception:
            _FLAT_OK = False
    return _FLAT_OK


# ---------------------------------------------------------------------------
# FPN glue + parameters
# ---------------------------------------------------------------------------
def _upsample_add(x, y):
    """F.upsample(x, size=y[H,W], mode='bilinear') + y  (NHWC, half-pixel
    centers == align_corners=False, matching F.interpolate's default;
    antialias is a no-op for pure upsampling)."""
    _, H, W, C = y.shape
    xu = jax.image.resize(x, (x.shape[0], H, W, C), method="bilinear")
    return xu + y


def init_level_params(key, planes, dtype=jnp.float32):
    """Parameters for one (dwconv3x3 + Conv_BN_ReLU 1x1) level, eval-mode BN
    kept as an f32 post-matmul affine (not folded into the bf16 weight)."""
    C = planes
    k_dw, k_pw, k_g, k_b, k_m, k_v = jax.random.split(key, 6)

    # nn.Conv2d(planes, planes, 3, groups=planes, bias=False): (C, 1, 3, 3)
    dw = jax.random.normal(k_dw, (C, 1, 3, 3), dtype) * 0.1
    dw_w = jnp.transpose(dw[:, 0, :, :], (1, 2, 0))              # (3, 3, C)

    # Conv_BN_ReLU: 1x1 conv (C_out, C_in, 1, 1) + BatchNorm2d (eval stats)
    pw = jax.random.normal(k_pw, (C, C, 1, 1), dtype) * 0.1
    gamma = 1.0 + 0.1 * jax.random.normal(k_g, (C,), dtype)
    beta = 0.1 * jax.random.normal(k_b, (C,), dtype)
    mean = 0.1 * jax.random.normal(k_m, (C,), dtype)
    var = jnp.abs(jax.random.normal(k_v, (C,), dtype)) + 0.5
    eps = 1e-5
    scale = (gamma / jnp.sqrt(var + eps)).astype(jnp.float32)    # (C,)
    shift = (beta - mean * scale).astype(jnp.float32)            # (C,)

    # 1x1 weight as (C_in, C_out), bf16.  BN scale applied post-matmul in f32.
    w1f = jnp.transpose(pw[:, :, 0, 0], (1, 0)).astype(jnp.float32)

    if 128 % C == 0:
        # Block-diagonal MXU RHS: 128//C copies of w1 so the matmul runs at
        # native K = N = 128 on lane-preserving (-1, 128) rows.
        reps = 128 // C
        w1d = jnp.kron(jnp.eye(reps, dtype=jnp.float32), w1f)     # (128, 128)
        scale_t = jnp.tile(scale, (reps,))
        shift_t = jnp.tile(shift, (reps,))
    else:
        w1d, scale_t, shift_t = w1f, scale, shift

    return {"dw_w": dw_w.astype(jnp.float32),
            "w1d": w1d.astype(jnp.bfloat16),
            "scale": scale_t[None, :],
            "bias": shift_t[None, :]}


def light_fpn_forward(f1, f2, f3, f4, params, flat=True,
                      act_dtype=jnp.bfloat16):
    """All tensors NHWC.  Mirrors Light_FPN.forward (raw f4 feeds f3; f4's own
    smoothing is applied last).  Activations carried in bf16."""
    f1, f2, f3, f4 = [x.astype(act_dtype) for x in (f1, f2, f3, f4)]

    def level(x, p):
        return fused_dwconv_convbnrelu(x, p, flat=flat)

    f3 = level(_upsample_add(f4, f3), params["l3"])
    f2 = level(_upsample_add(f3, f2), params["l2"])
    f1 = level(_upsample_add(f2, f1), params["l1"])
    f4 = level(f4, params["l4"])
    return f1, f2, f3, f4


# ---------------------------------------------------------------------------
# Pure-JAX reference (mirrors kernel dtypes) for a numeric self-check.
# ---------------------------------------------------------------------------
def _level_ref(x, p):
    N, H, W, C = x.shape
    xp = jnp.pad(x, ((0, 0), (1, 1), (1, 1), (0, 0)))
    dww = p["dw_w"].astype(x.dtype)
    acc = jnp.zeros((N, H, W, C), jnp.float32)
    for dh in range(3):
        for dw in range(3):
            acc = acc + xp[:, dh:dh + H, dw:dw + W, :] * dww[dh, dw, :]
    y = jnp.dot(acc.reshape(-1, C).astype(jnp.bfloat16), p["w1d"][:C, :C],
                preferred_element_type=jnp.float32)
    y = jnp.maximum(y * p["scale"][:, :C] + p["bias"][:, :C], 0.0)
    return y.reshape(N, H, W, C).astype(x.dtype)


def light_fpn_forward_ref(f1, f2, f3, f4, params, act_dtype=jnp.bfloat16):
    f1, f2, f3, f4 = [x.astype(act_dtype) for x in (f1, f2, f3, f4)]
    f3 = _level_ref(_upsample_add(f4, f3), params["l3"])
    f2 = _level_ref(_upsample_add(f3, f2), params["l2"])
    f1 = _level_ref(_upsample_add(f2, f1), params["l1"])
    f4 = _level_ref(f4, params["l4"])
    return f1, f2, f3, f4


if __name__ == "__main__":
    key = jax.random.PRNGKey(0)
    k_in, k_p = jax.random.split(key)

    N, C = 2, 32                       # batch, planes (= out_channels)
    sizes = [16, 8, 4, 2]              # f1 .. f4 spatial sizes

    # PyTorch-convention NCHW inputs, then -> NHWC for the kernels.
    keys_in = jax.random.split(k_in, 4)
    feats_nchw = [jax.random.normal(keys_in[i], (N, C, s, s), jnp.float32)
                  for i, s in enumerate(sizes)]
    f1, f2, f3, f4 = [jnp.transpose(f, (0, 2, 3, 1)) for f in feats_nchw]

    keys_p = jax.random.split(k_p, 4)
    params = {f"l{i + 1}": init_level_params(keys_p[i], C) for i in range(4)}

    flat = flat_layout_supported()     # resolved eagerly, outside jit

    fwd = jax.jit(functools.partial(light_fpn_forward, params=params,
                                    flat=flat))
    outs = fwd(f1, f2, f3, f4)
    jax.block_until_ready(outs)

    for o, s in zip(outs, sizes):
        assert o.shape == (N, s, s, C), o.shape

    refs = light_fpn_forward_ref(f1, f2, f3, f4, params)
    jax.block_until_ready(refs)
    for o, r in zip(outs, refs):
        err = float(jnp.max(jnp.abs(o.astype(jnp.float32) -
                                    r.astype(jnp.float32))))
        assert err < 3e-2, f"kernel/reference mismatch: max abs err {err}"

    print("KERNEL_OK")
</pallas_src>

<mosaic_0001>
module attributes {stable_mosaic.version = 11 : i64} {
  func.func @_fused_level_kernel_flat(%arg0: i32, %arg1: i32, %arg2: memref<1x18x576xbf16, #tpu.memory_space<vmem>>, %arg3: memref<9x128xbf16, #tpu.memory_space<vmem>>, %arg4: memref<128x128xbf16, #tpu.memory_space<vmem>>, %arg5: memref<1x128xf32, #tpu.memory_space<vmem>>, %arg6: memref<1x128xf32, #tpu.memory_space<vmem>>, %arg7: memref<1x16x512xbf16, #tpu.memory_space<vmem>>) attributes {dimension_semantics = [#tpu.dimension_semantics<parallel>, #tpu.dimension_semantics<arbitrary>], iteration_bounds = array<i64: 1, 1>, scalar_prefetch = 0 : i64, scratch_operands = 0 : i64, tpu.core_type = #tpu.core_type<tc>, window_params = [{transform_indices = @transform_0, window_bounds = array<i64: 1, 18, 576>}, {pipeline_mode = #tpu.pipeline_mode<synchronous>, transform_indices = @transform_1, window_bounds = array<i64: 9, 128>}, {pipeline_mode = #tpu.pipeline_mode<synchronous>, transform_indices = @transform_2, window_bounds = array<i64: 128, 128>}, {pipeline_mode = #tpu.pipeline_mode<synchronous>, transform_indices = @transform_3, window_bounds = array<i64: 1, 128>}, {pipeline_mode = #tpu.pipeline_mode<synchronous>, transform_indices = @transform_4, window_bounds = array<i64: 1, 128>}, {transform_indices = @transform_5, window_bounds = array<i64: 1, 16, 512>}]} {
    %c0 = arith.constant 0 : index
    %c0_0 = arith.constant 0 : index
    %0 = vector.load %arg3[%c0, %c0_0] : memref<9x128xbf16, #tpu.memory_space<vmem>>, vector<9x128xbf16>
    %1 = tpu.concatenate %0, %0, %0, %0 in 1 : vector<9x128xbf16>, vector<9x128xbf16>, vector<9x128xbf16>, vector<9x128xbf16> -> vector<9x512xbf16>
    %c16_i32 = arith.constant 16 : i32
    %2 = arith.muli %arg1, %c16_i32 : i32
    %3 = tpu.assume_multiple %2, 16 : i32
    %cst = arith.constant 0.000000e+00 : f32
    %4 = vector.broadcast %cst : f32 to vector<16x512xf32>
    %c0_1 = arith.constant 0 : index
    %5 = arith.index_cast %3 : i32 to index
    %c0_2 = arith.constant 0 : index
    %6 = vector.load %arg2[%c0_1, %5, %c0_2] : memref<1x18x576xbf16, #tpu.memory_space<vmem>>, vector<1x18x512xbf16>
    %7 = vector.shape_cast %6 : vector<1x18x512xbf16> to vector<18x512xbf16>
    %8 = vector.extract_strided_slice %7 {offsets = [0, 0], sizes = [16, 512], strides = [1, 1]} : vector<18x512xbf16> to vector<16x512xbf16>
    %9 = vector.extract_strided_slice %1 {offsets = [0, 0], sizes = [1, 512], strides = [1, 1]} : vector<9x512xbf16> to vector<1x512xbf16>
    %10 = vector.shape_cast %9 : vector<1x512xbf16> to vector<512xbf16>
    %11 = vector.shape_cast %10 : vector<512xbf16> to vector<1x512xbf16>
    %12 = vector.broadcast %11 : vector<1x512xbf16> to vector<16x512xbf16>
    %13 = arith.mulf %8, %12 : vector<16x512xbf16>
    %14 = arith.extf %13 : vector<16x512xbf16> to vector<16x512xf32>
    %15 = arith.addf %4, %14 : vector<16x512xf32>
    %16 = vector.extract_strided_slice %7 {offsets = [1, 0], sizes = [16, 512], strides = [1, 1]} : vector<18x512xbf16> to vector<16x512xbf16>
    %17 = vector.extract_strided_slice %1 {offsets = [3, 0], sizes = [1, 512], strides = [1, 1]} : vector<9x512xbf16> to vector<1x512xbf16>
    %18 = vector.shape_cast %17 : vector<1x512xbf16> to vector<512xbf16>
    %19 = vector.shape_cast %18 : vector<512xbf16> to vector<1x512xbf16>
    %20 = vector.broadcast %19 : vector<1x512xbf16> to vector<16x512xbf16>
    %21 = arith.mulf %16, %20 : vector<16x512xbf16>
    %22 = arith.extf %21 : vector<16x512xbf16> to vector<16x512xf32>
    %23 = arith.addf %15, %22 : vector<16x512xf32>
    %24 = vector.extract_strided_slice %7 {offsets = [2, 0], sizes = [16, 512], strides = [1, 1]} : vector<18x512xbf16> to vector<16x512xbf16>
    %25 = vector.extract_strided_slice %1 {offsets = [6, 0], sizes = [1, 512], strides = [1, 1]} : vector<9x512xbf16> to vector<1x512xbf16>
    %26 = vector.shape_cast %25 : vector<1x512xbf16> to vector<512xbf16>
    %27 = vector.shape_cast %26 : vector<512xbf16> to vector<1x512xbf16>
    %28 = vector.broadcast %27 : vector<1x512xbf16> to vector<16x512xbf16>
    %29 = arith.mulf %24, %28 : vector<16x512xbf16>
    %30 = arith.extf %29 : vector<16x512xbf16> to vector<16x512xf32>
    %31 = arith.addf %23, %30 : vector<16x512xf32>
    %c0_3 = arith.constant 0 : index
    %32 = arith.index_cast %3 : i32 to index
    %c32 = arith.constant 32 : index
    %33 = vector.load %arg2[%c0_3, %32, %c32] : memref<1x18x576xbf16, #tpu.memory_space<vmem>>, vector<1x18x512xbf16>
    %34 = vector.shape_cast %33 : vector<1x18x512xbf16> to vector<18x512xbf16>
    %35 = vector.extract_strided_slice %34 {offsets = [0, 0], sizes = [16, 512], strides = [1, 1]} : vector<18x512xbf16> to vector<16x512xbf16>
    %36 = vector.extract_strided_slice %1 {offsets = [1, 0], sizes = [1, 512], strides = [1, 1]} : vector<9x512xbf16> to vector<1x512xbf16>
    %37 = vector.shape_cast %36 : vector<1x512xbf16> to vector<512xbf16>
    %38 = vector.shape_cast %37 : vector<512xbf16> to vector<1x512xbf16>
    %39 = vector.broadcast %38 : vector<1x512xbf16> to vector<16x512xbf16>
    %40 = arith.mulf %35, %39 : vector<16x512xbf16>
    %41 = arith.extf %40 : vector<16x512xbf16> to vector<16x512xf32>
    %42 = arith.addf %31, %41 : vector<16x512xf32>
    %43 = vector.extract_strided_slice %34 {offsets = [1, 0], sizes = [16, 512], strides = [1, 1]} : vector<18x512xbf16> to vector<16x512xbf16>
    %44 = vector.extract_strided_slice %1 {offsets = [4, 0], sizes = [1, 512], strides = [1, 1]} : vector<9x512xbf16> to vector<1x512xbf16>
    %45 = vector.shape_cast %44 : vector<1x512xbf16> to vector<512xbf16>
    %46 = vector.shape_cast %45 : vector<512xbf16> to vector<1x512xbf16>
    %47 = vector.broadcast %46 : vector<1x512xbf16> to vector<16x512xbf16>
    %48 = arith.mulf %43, %47 : vector<16x512xbf16>
    %49 = arith.extf %48 : vector<16x512xbf16> to vector<16x512xf32>
    %50 = arith.addf %42, %49 : vector<16x512xf32>
    %51 = vector.extract_strided_slice %34 {offsets = [2, 0], sizes = [16, 512], strides = [1, 1]} : vector<18x512xbf16> to vector<16x512xbf16>
    %52 = vector.extract_strided_slice %1 {offsets = [7, 0], sizes = [1, 512], strides = [1, 1]} : vector<9x512xbf16> to vector<1x512xbf16>
    %53 = vector.shape_cast %52 : vector<1x512xbf16> to vector<512xbf16>
    %54 = vector.shape_cast %53 : vector<512xbf16> to vector<1x512xbf16>
    %55 = vector.broadcast %54 : vector<1x512xbf16> to vector<16x512xbf16>
    %56 = arith.mulf %51, %55 : vector<16x512xbf16>
    %57 = arith.extf %56 : vector<16x512xbf16> to vector<16x512xf32>
    %58 = arith.addf %50, %57 : vector<16x512xf32>
    %c0_4 = arith.constant 0 : index
    %59 = arith.index_cast %3 : i32 to index
    %c64 = arith.constant 64 : index
    %60 = vector.load %arg2[%c0_4, %59, %c64] : memref<1x18x576xbf16, #tpu.memory_space<vmem>>, vector<1x18x512xbf16>
    %61 = vector.shape_cast %60 : vector<1x18x512xbf16> to vector<18x512xbf16>
    %62 = vector.extract_strided_slice %61 {offsets = [0, 0], sizes = [16, 512], strides = [1, 1]} : vector<18x512xbf16> to vector<16x512xbf16>
    %63 = vector.extract_strided_slice %1 {offsets = [2, 0], sizes = [1, 512], strides = [1, 1]} : vector<9x512xbf16> to vector<1x512xbf16>
    %64 = vector.shape_cast %63 : vector<1x512xbf16> to vector<512xbf16>
    %65 = vector.shape_cast %64 : vector<512xbf16> to vector<1x512xbf16>
    %66 = vector.broadcast %65 : vector<1x512xbf16> to vector<16x512xbf16>
    %67 = arith.mulf %62, %66 : vector<16x512xbf16>
    %68 = arith.extf %67 : vector<16x512xbf16> to vector<16x512xf32>
    %69 = arith.addf %58, %68 : vector<16x512xf32>
    %70 = vector.extract_strided_slice %61 {offsets = [1, 0], sizes = [16, 512], strides = [1, 1]} : vector<18x512xbf16> to vector<16x512xbf16>
    %71 = vector.extract_strided_slice %1 {offsets = [5, 0], sizes = [1, 512], strides = [1, 1]} : vector<9x512xbf16> to vector<1x512xbf16>
    %72 = vector.shape_cast %71 : vector<1x512xbf16> to vector<512xbf16>
    %73 = vector.shape_cast %72 : vector<512xbf16> to vector<1x512xbf16>
    %74 = vector.broadcast %73 : vector<1x512xbf16> to vector<16x512xbf16>
    %75 = arith.mulf %70, %74 : vector<16x512xbf16>
    %76 = arith.extf %75 : vector<16x512xbf16> to vector<16x512xf32>
    %77 = arith.addf %69, %76 : vector<16x512xf32>
    %78 = vector.extract_strided_slice %61 {offsets = [2, 0], sizes = [16, 512], strides = [1, 1]} : vector<18x512xbf16> to vector<16x512xbf16>
    %79 = vector.extract_strided_slice %1 {offsets = [8, 0], sizes = [1, 512], strides = [1, 1]} : vector<9x512xbf16> to vector<1x512xbf16>
    %80 = vector.shape_cast %79 : vector<1x512xbf16> to vector<512xbf16>
    %81 = vector.shape_cast %80 : vector<512xbf16> to vector<1x512xbf16>
    %82 = vector.broadcast %81 : vector<1x512xbf16> to vector<16x512xbf16>
    %83 = arith.mulf %78, %82 : vector<16x512xbf16>
    %84 = arith.extf %83 : vector<16x512xbf16> to vector<16x512xf32>
    %85 = arith.addf %77, %84 : vector<16x512xf32>
    %86 = vector.shape_cast %85 : vector<16x512xf32> to vector<64x128xf32>
    %87 = arith.truncf %86 : vector<64x128xf32> to vector<64x128xbf16>
    %c0_5 = arith.constant 0 : index
    %c0_6 = arith.constant 0 : index
    %88 = vector.load %arg4[%c0_5, %c0_6] : memref<128x128xbf16, #tpu.memory_space<vmem>>, vector<128x128xbf16>
    %cst_7 = arith.constant dense<0.000000e+00> : vector<64x128xf32>
    %89 = tpu.matmul %87, %88, %cst_7 {dimension_numbers = #tpu.dot_dimension_numbers<[1], [0], [0], [1], [0, 0, 1, 1], [], []>} : vector<64x128xbf16>, vector<128x128xbf16>, vector<64x128xf32> -> vector<64x128xf32>
    %c0_8 = arith.constant 0 : index
    %c0_9 = arith.constant 0 : index
    %90 = vector.load %arg5[%c0_8, %c0_9] : memref<1x128xf32, #tpu.memory_space<vmem>>, vector<1x128xf32>
    %91 = vector.broadcast %90 : vector<1x128xf32> to vector<64x128xf32>
    %92 = arith.mulf %89, %91 : vector<64x128xf32>
    %c0_10 = arith.constant 0 : index
    %c0_11 = arith.constant 0 : index
    %93 = vector.load %arg6[%c0_10, %c0_11] : memref<1x128xf32, #tpu.memory_space<vmem>>, vector<1x128xf32>
    %94 = vector.broadcast %93 : vector<1x128xf32> to vector<64x128xf32>
    %95 = arith.addf %92, %94 : vector<64x128xf32>
    %cst_12 = arith.constant 0.000000e+00 : f32
    %96 = vector.broadcast %cst_12 : f32 to vector<64x128xf32>
    %97 = arith.maximumf %95, %96 : vector<64x128xf32>
    %98 = vector.shape_cast %97 : vector<64x128xf32> to vector<16x512xf32>
    %99 = arith.truncf %98 : vector<16x512xf32> to vector<16x512xbf16>
    %c0_13 = arith.constant 0 : index
    %c0_14 = arith.constant 0 : index
    %c0_15 = arith.constant 0 : index
    %100 = vector.load %arg7[%c0_13, %c0_14, %c0_15] : memref<1x16x512xbf16, #tpu.memory_space<vmem>>, vector<1x16x512xbf16>
    %101 = vector.shape_cast %100 : vector<1x16x512xbf16> to vector<16x512xbf16>
    %102 = vector.shape_cast %99 : vector<16x512xbf16> to vector<1x16x512xbf16>
    tpu.vector_store %arg7[%c0_13, %c0_14, %c0_15], %102 {strides = array<i32>} : memref<1x16x512xbf16, #tpu.memory_space<vmem>>, vector<1x16x512xbf16>,
    return
  }
  func.func @transform_0(%arg0: i32, %arg1: i32) -> (i32, i32, i32) {
    %c0_i32 = arith.constant 0 : i32
    %c0_i32_0 = arith.constant 0 : i32
    %c0_i32_1 = arith.constant 0 : i32
    return %arg0, %c0_i32, %c0_i32_0 : i32, i32, i32
  }
  func.func @transform_1(%arg0: i32, %arg1: i32) -> (i32, i32) {
    %c0_i32 = arith.constant 0 : i32
    %c0_i32_0 = arith.constant 0 : i32
    %c0_i32_1 = arith.constant 0 : i32
    return %c0_i32, %c0_i32_0 : i32, i32
  }
  func.func @transform_2(%arg0: i32, %arg1: i32) -> (i32, i32) {
    %c0_i32 = arith.constant 0 : i32
    %c0_i32_0 = arith.constant 0 : i32
    %c0_i32_1 = arith.constant 0 : i32
    return %c0_i32, %c0_i32_0 : i32, i32
  }
  func.func @transform_3(%arg0: i32, %arg1: i32) -> (i32, i32) {
    %c0_i32 = arith.constant 0 : i32
    %c0_i32_0 = arith.constant 0 : i32
    %c0_i32_1 = arith.constant 0 : i32
    return %c0_i32, %c0_i32_0 : i32, i32
  }
  func.func @transform_4(%arg0: i32, %arg1: i32) -> (i32, i32) {
    %c0_i32 = arith.constant 0 : i32
    %c0_i32_0 = arith.constant 0 : i32
    %c0_i32_1 = arith.constant 0 : i32
    return %c0_i32, %c0_i32_0 : i32, i32
  }
  func.func @transform_5(%arg0: i32, %arg1: i32) -> (i32, i32, i32) {
    %c0_i32 = arith.constant 0 : i32
    %c0_i32_0 = arith.constant 0 : i32
    return %arg0, %arg1, %c0_i32 : i32, i32, i32
  }
}

module attributes {stable_mosaic.version = 11 : i64} {
  func.func @_fused_level_kernel_nhwc(%arg0: i32, %arg1: i32, %arg2: memref<1x4x4x32xbf16, #tpu.memory_space<vmem>>, %arg3: memref<3x3x32xbf16, #tpu.memory_space<vmem>>, %arg4: memref<32x32xbf16, #tpu.memory_space<vmem>>, %arg5: memref<1x32xf32, #tpu.memory_space<vmem>>, %arg6: memref<1x32xf32, #tpu.memory_space<vmem>>, %arg7: memref<1x2x2x32xbf16, #tpu.memory_space<vmem>>) attributes {dimension_semantics = [#tpu.dimension_semantics<parallel>, #tpu.dimension_semantics<arbitrary>], iteration_bounds = array<i64: 2, 1>, scalar_prefetch = 0 : i64, scratch_operands = 0 : i64, tpu.core_type = #tpu.core_type<tc>, window_params = [{transform_indices = @transform_0, window_bounds = array<i64: 1, 4, 4, 32>}, {pipeline_mode = #tpu.pipeline_mode<synchronous>, transform_indices = @transform_1, window_bounds = array<i64: 3, 3, 32>}, {pipeline_mode = #tpu.pipeline_mode<synchronous>, transform_indices = @transform_2, window_bounds = array<i64: 32, 32>}, {pipeline_mode = #tpu.pipeline_mode<synchronous>, transform_indices = @transform_3, window_bounds = array<i64: 1, 32>}, {pipeline_mode = #tpu.pipeline_mode<synchronous>, transform_indices = @transform_4, window_bounds = array<i64: 1, 32>}, {transform_indices = @transform_5, window_bounds = array<i64: 1, 2, 2, 32>}]} {
    %c2_i32 = arith.constant 2 : i32
    %0 = arith.muli %arg1, %c2_i32 : i32
    %1 = tpu.assume_multiple %0, 2 : i32
    %c0 = arith.constant 0 : index
    %2 = arith.index_cast %1 : i32 to index
    %c0_0 = arith.constant 0 : index
    %c0_1 = arith.constant 0 : index
    %3 = vector.load %arg2[%c0, %2, %c0_0, %c0_1] : memref<1x4x4x32xbf16, #tpu.memory_space<vmem>>, vector<1x4x4x32xbf16>
    %4 = vector.shape_cast %3 : vector<1x4x4x32xbf16> to vector<4x4x32xbf16>
    %c0_2 = arith.constant 0 : index
    %c0_3 = arith.constant 0 : index
    %c0_4 = arith.constant 0 : index
    %5 = vector.load %arg3[%c0_2, %c0_3, %c0_4] : memref<3x3x32xbf16, #tpu.memory_space<vmem>>, vector<3x3x32xbf16>
    %cst = arith.constant 0.000000e+00 : f32
    %6 = vector.broadcast %cst : f32 to vector<2x2x32xf32>
    %7 = vector.extract_strided_slice %4 {offsets = [0, 0, 0], sizes = [2, 2, 32], strides = [1, 1, 1]} : vector<4x4x32xbf16> to vector<2x2x32xbf16>
    %8 = vector.extract_strided_slice %5 {offsets = [0, 0, 0], sizes = [1, 1, 32], strides = [1, 1, 1]} : vector<3x3x32xbf16> to vector<1x1x32xbf16>
    %9 = vector.shape_cast %8 : vector<1x1x32xbf16> to vector<32xbf16>
    %10 = vector.shape_cast %9 : vector<32xbf16> to vector<1x1x32xbf16>
    %11 = vector.broadcast %10 : vector<1x1x32xbf16> to vector<2x2x32xbf16>
    %12 = arith.mulf %7, %11 : vector<2x2x32xbf16>
    %13 = arith.extf %12 : vector<2x2x32xbf16> to vector<2x2x32xf32>
    %14 = arith.addf %6, %13 : vector<2x2x32xf32>
    %15 = vector.extract_strided_slice %4 {offsets = [0, 1, 0], sizes = [2, 2, 32], strides = [1, 1, 1]} : vector<4x4x32xbf16> to vector<2x2x32xbf16>
    %16 = vector.extract_strided_slice %5 {offsets = [0, 1, 0], sizes = [1, 1, 32], strides = [1, 1, 1]} : vector<3x3x32xbf16> to vector<1x1x32xbf16>
    %17 = vector.shape_cast %16 : vector<1x1x32xbf16> to vector<32xbf16>
    %18 = vector.shape_cast %17 : vector<32xbf16> to vector<1x1x32xbf16>
    %19 = vector.broadcast %18 : vector<1x1x32xbf16> to vector<2x2x32xbf16>
    %20 = arith.mulf %15, %19 : vector<2x2x32xbf16>
    %21 = arith.extf %20 : vector<2x2x32xbf16> to vector<2x2x32xf32>
    %22 = arith.addf %14, %21 : vector<2x2x32xf32>
    %23 = vector.extract_strided_slice %4 {offsets = [0, 2, 0], sizes = [2, 2, 32], strides = [1, 1, 1]} : vector<4x4x32xbf16> to vector<2x2x32xbf16>
    %24 = vector.extract_strided_slice %5 {offsets = [0, 2, 0], sizes = [1, 1, 32], strides = [1, 1, 1]} : vector<3x3x32xbf16> to vector<1x1x32xbf16>
    %25 = vector.shape_cast %24 : vector<1x1x32xbf16> to vector<32xbf16>
    %26 = vector.shape_cast %25 : vector<32xbf16> to vector<1x1x32xbf16>
    %27 = vector.broadcast %26 : vector<1x1x32xbf16> to vector<2x2x32xbf16>
    %28 = arith.mulf %23, %27 : vector<2x2x32xbf16>
    %29 = arith.extf %28 : vector<2x2x32xbf16> to vector<2x2x32xf32>
    %30 = arith.addf %22, %29 : vector<2x2x32xf32>
    %31 = vector.extract_strided_slice %4 {offsets = [1, 0, 0], sizes = [2, 2, 32], strides = [1, 1, 1]} : vector<4x4x32xbf16> to vector<2x2x32xbf16>
    %32 = vector.extract_strided_slice %5 {offsets = [1, 0, 0], sizes = [1, 1, 32], strides = [1, 1, 1]} : vector<3x3x32xbf16> to vector<1x1x32xbf16>
    %33 = vector.shape_cast %32 : vector<1x1x32xbf16> to vector<32xbf16>
    %34 = vector.shape_cast %33 : vector<32xbf16> to vector<1x1x32xbf16>
    %35 = vector.broadcast %34 : vector<1x1x32xbf16> to vector<2x2x32xbf16>
    %36 = arith.mulf %31, %35 : vector<2x2x32xbf16>
    %37 = arith.extf %36 : vector<2x2x32xbf16> to vector<2x2x32xf32>
    %38 = arith.addf %30, %37 : vector<2x2x32xf32>
    %39 = vector.extract_strided_slice %4 {offsets = [1, 1, 0], sizes = [2, 2, 32], strides = [1, 1, 1]} : vector<4x4x32xbf16> to vector<2x2x32xbf16>
    %40 = vector.extract_strided_slice %5 {offsets = [1, 1, 0], sizes = [1, 1, 32], strides = [1, 1, 1]} : vector<3x3x32xbf16> to vector<1x1x32xbf16>
    %41 = vector.shape_cast %40 : vector<1x1x32xbf16> to vector<32xbf16>
    %42 = vector.shape_cast %41 : vector<32xbf16> to vector<1x1x32xbf16>
    %43 = vector.broadcast %42 : vector<1x1x32xbf16> to vector<2x2x32xbf16>
    %44 = arith.mulf %39, %43 : vector<2x2x32xbf16>
    %45 = arith.extf %44 : vector<2x2x32xbf16> to vector<2x2x32xf32>
    %46 = arith.addf %38, %45 : vector<2x2x32xf32>
    %47 = vector.extract_strided_slice %4 {offsets = [1, 2, 0], sizes = [2, 2, 32], strides = [1, 1, 1]} : vector<4x4x32xbf16> to vector<2x2x32xbf16>
    %48 = vector.extract_strided_slice %5 {offsets = [1, 2, 0], sizes = [1, 1, 32], strides = [1, 1, 1]} : vector<3x3x32xbf16> to vector<1x1x32xbf16>
    %49 = vector.shape_cast %48 : vector<1x1x32xbf16> to vector<32xbf16>
    %50 = vector.shape_cast %49 : vector<32xbf16> to vector<1x1x32xbf16>
    %51 = vector.broadcast %50 : vector<1x1x32xbf16> to vector<2x2x32xbf16>
    %52 = arith.mulf %47, %51 : vector<2x2x32xbf16>
    %53 = arith.extf %52 : vector<2x2x32xbf16> to vector<2x2x32xf32>
    %54 = arith.addf %46, %53 : vector<2x2x32xf32>
    %55 = vector.extract_strided_slice %4 {offsets = [2, 0, 0], sizes = [2, 2, 32], strides = [1, 1, 1]} : vector<4x4x32xbf16> to vector<2x2x32xbf16>
    %56 = vector.extract_strided_slice %5 {offsets = [2, 0, 0], sizes = [1, 1, 32], strides = [1, 1, 1]} : vector<3x3x32xbf16> to vector<1x1x32xbf16>
    %57 = vector.shape_cast %56 : vector<1x1x32xbf16> to vector<32xbf16>
    %58 = vector.shape_cast %57 : vector<32xbf16> to vector<1x1x32xbf16>
    %59 = vector.broadcast %58 : vector<1x1x32xbf16> to vector<2x2x32xbf16>
    %60 = arith.mulf %55, %59 : vector<2x2x32xbf16>
    %61 = arith.extf %60 : vector<2x2x32xbf16> to vector<2x2x32xf32>
    %62 = arith.addf %54, %61 : vector<2x2x32xf32>
    %63 = vector.extract_strided_slice %4 {offsets = [2, 1, 0], sizes = [2, 2, 32], strides = [1, 1, 1]} : vector<4x4x32xbf16> to vector<2x2x32xbf16>
    %64 = vector.extract_strided_slice %5 {offsets = [2, 1, 0], sizes = [1, 1, 32], strides = [1, 1, 1]} : vector<3x3x32xbf16> to vector<1x1x32xbf16>
    %65 = vector.shape_cast %64 : vector<1x1x32xbf16> to vector<32xbf16>
    %66 = vector.shape_cast %65 : vector<32xbf16> to vector<1x1x32xbf16>
    %67 = vector.broadcast %66 : vector<1x1x32xbf16> to vector<2x2x32xbf16>
    %68 = arith.mulf %63, %67 : vector<2x2x32xbf16>
    %69 = arith.extf %68 : vector<2x2x32xbf16> to vector<2x2x32xf32>
    %70 = arith.addf %62, %69 : vector<2x2x32xf32>
    %71 = vector.extract_strided_slice %4 {offsets = [2, 2, 0], sizes = [2, 2, 32], strides = [1, 1, 1]} : vector<4x4x32xbf16> to vector<2x2x32xbf16>
    %72 = vector.extract_strided_slice %5 {offsets = [2, 2, 0], sizes = [1, 1, 32], strides = [1, 1, 1]} : vector<3x3x32xbf16> to vector<1x1x32xbf16>
    %73 = vector.shape_cast %72 : vector<1x1x32xbf16> to vector<32xbf16>
    %74 = vector.shape_cast %73 : vector<32xbf16> to vector<1x1x32xbf16>
    %75 = vector.broadcast %74 : vector<1x1x32xbf16> to vector<2x2x32xbf16>
    %76 = arith.mulf %71, %75 : vector<2x2x32xbf16>
    %77 = arith.extf %76 : vector<2x2x32xbf16> to vector<2x2x32xf32>
    %78 = arith.addf %70, %77 : vector<2x2x32xf32>
    %79 = vector.shape_cast %78 : vector<2x2x32xf32> to vector<4x32xf32>
    %80 = arith.truncf %79 : vector<4x32xf32> to vector<4x32xbf16>
    %c0_5 = arith.constant 0 : index
    %c0_6 = arith.constant 0 : index
    %81 = vector.load %arg4[%c0_5, %c0_6] : memref<32x32xbf16, #tpu.memory_space<vmem>>, vector<32x32xbf16>
    %cst_7 = arith.constant dense<0.000000e+00> : vector<4x32xf32>
    %82 = tpu.matmul %80, %81, %cst_7 {dimension_numbers = #tpu.dot_dimension_numbers<[1], [0], [0], [1], [0, 0, 1, 1], [], []>} : vector<4x32xbf16>, vector<32x32xbf16>, vector<4x32xf32> -> vector<4x32xf32>
    %c0_8 = arith.constant 0 : index
    %c0_9 = arith.constant 0 : index
    %83 = vector.load %arg5[%c0_8, %c0_9] : memref<1x32xf32, #tpu.memory_space<vmem>>, vector<1x32xf32>
    %84 = vector.broadcast %83 : vector<1x32xf32> to vector<4x32xf32>
    %85 = arith.mulf %82, %84 : vector<4x32xf32>
    %c0_10 = arith.constant 0 : index
    %c0_11 = arith.constant 0 : index
    %86 = vector.load %arg6[%c0_10, %c0_11] : memref<1x32xf32, #tpu.memory_space<vmem>>, vector<1x32xf32>
    %87 = vector.broadcast %86 : vector<1x32xf32> to vector<4x32xf32>
    %88 = arith.addf %85, %87 : vector<4x32xf32>
    %cst_12 = arith.constant 0.000000e+00 : f32
    %89 = vector.broadcast %cst_12 : f32 to vector<4x32xf32>
    %90 = arith.maximumf %88, %89 : vector<4x32xf32>
    %91 = vector.shape_cast %90 : vector<4x32xf32> to vector<2x2x32xf32>
    %92 = arith.truncf %91 : vector<2x2x32xf32> to vector<2x2x32xbf16>
    %c0_13 = arith.constant 0 : index
    %c0_14 = arith.constant 0 : index
    %c0_15 = arith.constant 0 : index
    %c0_16 = arith.constant 0 : index
    %93 = vector.load %arg7[%c0_13, %c0_14, %c0_15, %c0_16] : memref<1x2x2x32xbf16, #tpu.memory_space<vmem>>, vector<1x2x2x32xbf16>
    %94 = vector.shape_cast %93 : vector<1x2x2x32xbf16> to vector<2x2x32xbf16>
    %95 = vector.shape_cast %92 : vector<2x2x32xbf16> to vector<1x2x2x32xbf16>
    tpu.vector_store %arg7[%c0_13, %c0_14, %c0_15, %c0_16], %95 {strides = array<i32>} : memref<1x2x2x32xbf16, #tpu.memory_space<vmem>>, vector<1x2x2x32xbf16>,
    return
  }
  func.func @transform_0(%arg0: i32, %arg1: i32) -> (i32, i32, i32, i32) {
    %c0_i32 = arith.constant 0 : i32
    %c0_i32_0 = arith.constant 0 : i32
    %c0_i32_1 = arith.constant 0 : i32
    %c0_i32_2 = arith.constant 0 : i32
    return %arg0, %c0_i32, %c0_i32_0, %c0_i32_1 : i32, i32, i32, i32
  }
  func.func @transform_1(%arg0: i32, %arg1: i32) -> (i32, i32, i32) {
    %c0_i32 = arith.constant 0 : i32
    %c0_i32_0 = arith.constant 0 : i32
    %c0_i32_1 = arith.constant 0 : i32
    %c0_i32_2 = arith.constant 0 : i32
    return %c0_i32, %c0_i32_0, %c0_i32_1 : i32, i32, i32
  }
  func.func @transform_2(%arg0: i32, %arg1: i32) -> (i32, i32) {
    %c0_i32 = arith.constant 0 : i32
    %c0_i32_0 = arith.constant 0 : i32
    %c0_i32_1 = arith.constant 0 : i32
    return %c0_i32, %c0_i32_0 : i32, i32
  }
  func.func @transform_3(%arg0: i32, %arg1: i32) -> (i32, i32) {
    %c0_i32 = arith.constant 0 : i32
    %c0_i32_0 = arith.constant 0 : i32
    %c0_i32_1 = arith.constant 0 : i32
    return %c0_i32, %c0_i32_0 : i32, i32
  }
  func.func @transform_4(%arg0: i32, %arg1: i32) -> (i32, i32) {
    %c0_i32 = arith.constant 0 : i32
    %c0_i32_0 = arith.constant 0 : i32
    %c0_i32_1 = arith.constant 0 : i32
    return %c0_i32, %c0_i32_0 : i32, i32
  }
  func.func @transform_5(%arg0: i32, %arg1: i32) -> (i32, i32, i32, i32) {
    %c0_i32 = arith.constant 0 : i32
    %c0_i32_0 = arith.constant 0 : i32
    %c0_i32_1 = arith.constant 0 : i32
    return %arg0, %arg1, %c0_i32, %c0_i32_0 : i32, i32, i32, i32
  }
}

module attributes {stable_mosaic.version = 11 : i64} {
  func.func @_fused_level_kernel_nhwc(%arg0: i32, %arg1: i32, %arg2: memref<1x6x6x32xbf16, #tpu.memory_space<vmem>>, %arg3: memref<3x3x32xbf16, #tpu.memory_space<vmem>>, %arg4: memref<32x32xbf16, #tpu.memory_space<vmem>>, %arg5: memref<1x32xf32, #tpu.memory_space<vmem>>, %arg6: memref<1x32xf32, #tpu.memory_space<vmem>>, %arg7: memref<1x4x4x32xbf16, #tpu.memory_space<vmem>>) attributes {dimension_semantics = [#tpu.dimension_semantics<parallel>, #tpu.dimension_semantics<arbitrary>], iteration_bounds = array<i64: 2, 1>, scalar_prefetch = 0 : i64, scratch_operands = 0 : i64, tpu.core_type = #tpu.core_type<tc>, window_params = [{transform_indices = @transform_0, window_bounds = array<i64: 1, 6, 6, 32>}, {pipeline_mode = #tpu.pipeline_mode<synchronous>, transform_indices = @transform_1, window_bounds = array<i64: 3, 3, 32>}, {pipeline_mode = #tpu.pipeline_mode<synchronous>, transform_indices = @transform_2, window_bounds = array<i64: 32, 32>}, {pipeline_mode = #tpu.pipeline_mode<synchronous>, transform_indices = @transform_3, window_bounds = array<i64: 1, 32>}, {pipeline_mode = #tpu.pipeline_mode<synchronous>, transform_indices = @transform_4, window_bounds = array<i64: 1, 32>}, {transform_indices = @transform_5, window_bounds = array<i64: 1, 4, 4, 32>}]} {
    %c4_i32 = arith.constant 4 : i32
    %0 = arith.muli %arg1, %c4_i32 : i32
    %1 = tpu.assume_multiple %0, 4 : i32
    %c0 = arith.constant 0 : index
    %2 = arith.index_cast %1 : i32 to index
    %c0_0 = arith.constant 0 : index
    %c0_1 = arith.constant 0 : index
    %3 = vector.load %arg2[%c0, %2, %c0_0, %c0_1] : memref<1x6x6x32xbf16, #tpu.memory_space<vmem>>, vector<1x6x6x32xbf16>
    %4 = vector.shape_cast %3 : vector<1x6x6x32xbf16> to vector<6x6x32xbf16>
    %c0_2 = arith.constant 0 : index
    %c0_3 = arith.constant 0 : index
    %c0_4 = arith.constant 0 : index
    %5 = vector.load %arg3[%c0_2, %c0_3, %c0_4] : memref<3x3x32xbf16, #tpu.memory_space<vmem>>, vector<3x3x32xbf16>
    %cst = arith.constant 0.000000e+00 : f32
    %6 = vector.broadcast %cst : f32 to vector<4x4x32xf32>
    %7 = vector.extract_strided_slice %4 {offsets = [0, 0, 0], sizes = [4, 4, 32], strides = [1, 1, 1]} : vector<6x6x32xbf16> to vector<4x4x32xbf16>
    %8 = vector.extract_strided_slice %5 {offsets = [0, 0, 0], sizes = [1, 1, 32], strides = [1, 1, 1]} : vector<3x3x32xbf16> to vector<1x1x32xbf16>
    %9 = vector.shape_cast %8 : vector<1x1x32xbf16> to vector<32xbf16>
    %10 = vector.shape_cast %9 : vector<32xbf16> to vector<1x1x32xbf16>
    %11 = vector.broadcast %10 : vector<1x1x32xbf16> to vector<4x4x32xbf16>
    %12 = arith.mulf %7, %11 : vector<4x4x32xbf16>
    %13 = arith.extf %12 : vector<4x4x32xbf16> to vector<4x4x32xf32>
    %14 = arith.addf %6, %13 : vector<4x4x32xf32>
    %15 = vector.extract_strided_slice %4 {offsets = [0, 1, 0], sizes = [4, 4, 32], strides = [1, 1, 1]} : vector<6x6x32xbf16> to vector<4x4x32xbf16>
    %16 = vector.extract_strided_slice %5 {offsets = [0, 1, 0], sizes = [1, 1, 32], strides = [1, 1, 1]} : vector<3x3x32xbf16> to vector<1x1x32xbf16>
    %17 = vector.shape_cast %16 : vector<1x1x32xbf16> to vector<32xbf16>
    %18 = vector.shape_cast %17 : vector<32xbf16> to vector<1x1x32xbf16>
    %19 = vector.broadcast %18 : vector<1x1x32xbf16> to vector<4x4x32xbf16>
    %20 = arith.mulf %15, %19 : vector<4x4x32xbf16>
    %21 = arith.extf %20 : vector<4x4x32xbf16> to vector<4x4x32xf32>
    %22 = arith.addf %14, %21 : vector<4x4x32xf32>
    %23 = vector.extract_strided_slice %4 {offsets = [0, 2, 0], sizes = [4, 4, 32], strides = [1, 1, 1]} : vector<6x6x32xbf16> to vector<4x4x32xbf16>
    %24 = vector.extract_strided_slice %5 {offsets = [0, 2, 0], sizes = [1, 1, 32], strides = [1, 1, 1]} : vector<3x3x32xbf16> to vector<1x1x32xbf16>
    %25 = vector.shape_cast %24 : vector<1x1x32xbf16> to vector<32xbf16>
    %26 = vector.shape_cast %25 : vector<32xbf16> to vector<1x1x32xbf16>
    %27 = vector.broadcast %26 : vector<1x1x32xbf16> to vector<4x4x32xbf16>
    %28 = arith.mulf %23, %27 : vector<4x4x32xbf16>
    %29 = arith.extf %28 : vector<4x4x32xbf16> to vector<4x4x32xf32>
    %30 = arith.addf %22, %29 : vector<4x4x32xf32>
    %31 = vector.extract_strided_slice %4 {offsets = [1, 0, 0], sizes = [4, 4, 32], strides = [1, 1, 1]} : vector<6x6x32xbf16> to vector<4x4x32xbf16>
    %32 = vector.extract_strided_slice %5 {offsets = [1, 0, 0], sizes = [1, 1, 32], strides = [1, 1, 1]} : vector<3x3x32xbf16> to vector<1x1x32xbf16>
    %33 = vector.shape_cast %32 : vector<1x1x32xbf16> to vector<32xbf16>
    %34 = vector.shape_cast %33 : vector<32xbf16> to vector<1x1x32xbf16>
    %35 = vector.broadcast %34 : vector<1x1x32xbf16> to vector<4x4x32xbf16>
    %36 = arith.mulf %31, %35 : vector<4x4x32xbf16>
    %37 = arith.extf %36 : vector<4x4x32xbf16> to vector<4x4x32xf32>
    %38 = arith.addf %30, %37 : vector<4x4x32xf32>
    %39 = vector.extract_strided_slice %4 {offsets = [1, 1, 0], sizes = [4, 4, 32], strides = [1, 1, 1]} : vector<6x6x32xbf16> to vector<4x4x32xbf16>
    %40 = vector.extract_strided_slice %5 {offsets = [1, 1, 0], sizes = [1, 1, 32], strides = [1, 1, 1]} : vector<3x3x32xbf16> to vector<1x1x32xbf16>
    %41 = vector.shape_cast %40 : vector<1x1x32xbf16> to vector<32xbf16>
    %42 = vector.shape_cast %41 : vector<32xbf16> to vector<1x1x32xbf16>
    %43 = vector.broadcast %42 : vector<1x1x32xbf16> to vector<4x4x32xbf16>
    %44 = arith.mulf %39, %43 : vector<4x4x32xbf16>
    %45 = arith.extf %44 : vector<4x4x32xbf16> to vector<4x4x32xf32>
    %46 = arith.addf %38, %45 : vector<4x4x32xf32>
    %47 = vector.extract_strided_slice %4 {offsets = [1, 2, 0], sizes = [4, 4, 32], strides = [1, 1, 1]} : vector<6x6x32xbf16> to vector<4x4x32xbf16>
    %48 = vector.extract_strided_slice %5 {offsets = [1, 2, 0], sizes = [1, 1, 32], strides = [1, 1, 1]} : vector<3x3x32xbf16> to vector<1x1x32xbf16>
    %49 = vector.shape_cast %48 : vector<1x1x32xbf16> to vector<32xbf16>
    %50 = vector.shape_cast %49 : vector<32xbf16> to vector<1x1x32xbf16>
    %51 = vector.broadcast %50 : vector<1x1x32xbf16> to vector<4x4x32xbf16>
    %52 = arith.mulf %47, %51 : vector<4x4x32xbf16>
    %53 = arith.extf %52 : vector<4x4x32xbf16> to vector<4x4x32xf32>
    %54 = arith.addf %46, %53 : vector<4x4x32xf32>
    %55 = vector.extract_strided_slice %4 {offsets = [2, 0, 0], sizes = [4, 4, 32], strides = [1, 1, 1]} : vector<6x6x32xbf16> to vector<4x4x32xbf16>
    %56 = vector.extract_strided_slice %5 {offsets = [2, 0, 0], sizes = [1, 1, 32], strides = [1, 1, 1]} : vector<3x3x32xbf16> to vector<1x1x32xbf16>
    %57 = vector.shape_cast %56 : vector<1x1x32xbf16> to vector<32xbf16>
    %58 = vector.shape_cast %57 : vector<32xbf16> to vector<1x1x32xbf16>
    %59 = vector.broadcast %58 : vector<1x1x32xbf16> to vector<4x4x32xbf16>
    %60 = arith.mulf %55, %59 : vector<4x4x32xbf16>
    %61 = arith.extf %60 : vector<4x4x32xbf16> to vector<4x4x32xf32>
    %62 = arith.addf %54, %61 : vector<4x4x32xf32>
    %63 = vector.extract_strided_slice %4 {offsets = [2, 1, 0], sizes = [4, 4, 32], strides = [1, 1, 1]} : vector<6x6x32xbf16> to vector<4x4x32xbf16>
    %64 = vector.extract_strided_slice %5 {offsets = [2, 1, 0], sizes = [1, 1, 32], strides = [1, 1, 1]} : vector<3x3x32xbf16> to vector<1x1x32xbf16>
    %65 = vector.shape_cast %64 : vector<1x1x32xbf16> to vector<32xbf16>
    %66 = vector.shape_cast %65 : vector<32xbf16> to vector<1x1x32xbf16>
    %67 = vector.broadcast %66 : vector<1x1x32xbf16> to vector<4x4x32xbf16>
    %68 = arith.mulf %63, %67 : vector<4x4x32xbf16>
    %69 = arith.extf %68 : vector<4x4x32xbf16> to vector<4x4x32xf32>
    %70 = arith.addf %62, %69 : vector<4x4x32xf32>
    %71 = vector.extract_strided_slice %4 {offsets = [2, 2, 0], sizes = [4, 4, 32], strides = [1, 1, 1]} : vector<6x6x32xbf16> to vector<4x4x32xbf16>
    %72 = vector.extract_strided_slice %5 {offsets = [2, 2, 0], sizes = [1, 1, 32], strides = [1, 1, 1]} : vector<3x3x32xbf16> to vector<1x1x32xbf16>
    %73 = vector.shape_cast %72 : vector<1x1x32xbf16> to vector<32xbf16>
    %74 = vector.shape_cast %73 : vector<32xbf16> to vector<1x1x32xbf16>
    %75 = vector.broadcast %74 : vector<1x1x32xbf16> to vector<4x4x32xbf16>
    %76 = arith.mulf %71, %75 : vector<4x4x32xbf16>
    %77 = arith.extf %76 : vector<4x4x32xbf16> to vector<4x4x32xf32>
    %78 = arith.addf %70, %77 : vector<4x4x32xf32>
    %79 = vector.shape_cast %78 : vector<4x4x32xf32> to vector<16x32xf32>
    %80 = arith.truncf %79 : vector<16x32xf32> to vector<16x32xbf16>
    %c0_5 = arith.constant 0 : index
    %c0_6 = arith.constant 0 : index
    %81 = vector.load %arg4[%c0_5, %c0_6] : memref<32x32xbf16, #tpu.memory_space<vmem>>, vector<32x32xbf16>
    %cst_7 = arith.constant dense<0.000000e+00> : vector<16x32xf32>
    %82 = tpu.matmul %80, %81, %cst_7 {dimension_numbers = #tpu.dot_dimension_numbers<[1], [0], [0], [1], [0, 0, 1, 1], [], []>} : vector<16x32xbf16>, vector<32x32xbf16>, vector<16x32xf32> -> vector<16x32xf32>
    %c0_8 = arith.constant 0 : index
    %c0_9 = arith.constant 0 : index
    %83 = vector.load %arg5[%c0_8, %c0_9] : memref<1x32xf32, #tpu.memory_space<vmem>>, vector<1x32xf32>
    %84 = vector.broadcast %83 : vector<1x32xf32> to vector<16x32xf32>
    %85 = arith.mulf %82, %84 : vector<16x32xf32>
    %c0_10 = arith.constant 0 : index
    %c0_11 = arith.constant 0 : index
    %86 = vector.load %arg6[%c0_10, %c0_11] : memref<1x32xf32, #tpu.memory_space<vmem>>, vector<1x32xf32>
    %87 = vector.broadcast %86 : vector<1x32xf32> to vector<16x32xf32>
    %88 = arith.addf %85, %87 : vector<16x32xf32>
    %cst_12 = arith.constant 0.000000e+00 : f32
    %89 = vector.broadcast %cst_12 : f32 to vector<16x32xf32>
    %90 = arith.maximumf %88, %89 : vector<16x32xf32>
    %91 = vector.shape_cast %90 : vector<16x32xf32> to vector<4x4x32xf32>
    %92 = arith.truncf %91 : vector<4x4x32xf32> to vector<4x4x32xbf16>
    %c0_13 = arith.constant 0 : index
    %c0_14 = arith.constant 0 : index
    %c0_15 = arith.constant 0 : index
    %c0_16 = arith.constant 0 : index
    %93 = vector.load %arg7[%c0_13, %c0_14, %c0_15, %c0_16] : memref<1x4x4x32xbf16, #tpu.memory_space<vmem>>, vector<1x4x4x32xbf16>
    %94 = vector.shape_cast %93 : vector<1x4x4x32xbf16> to vector<4x4x32xbf16>
    %95 = vector.shape_cast %92 : vector<4x4x32xbf16> to vector<1x4x4x32xbf16>
    tpu.vector_store %arg7[%c0_13, %c0_14, %c0_15, %c0_16], %95 {strides = array<i32>} : memref<1x4x4x32xbf16, #tpu.memory_space<vmem>>, vector<1x4x4x32xbf16>,
    return
  }
  func.func @transform_0(%arg0: i32, %arg1: i32) -> (i32, i32, i32, i32) {
    %c0_i32 = arith.constant 0 : i32
    %c0_i32_0 = arith.constant 0 : i32
    %c0_i32_1 = arith.constant 0 : i32
    %c0_i32_2 = arith.constant 0 : i32
    return %arg0, %c0_i32, %c0_i32_0, %c0_i32_1 : i32, i32, i32, i32
  }
  func.func @transform_1(%arg0: i32, %arg1: i32) -> (i32, i32, i32) {
    %c0_i32 = arith.constant 0 : i32
    %c0_i32_0 = arith.constant 0 : i32
    %c0_i32_1 = arith.constant 0 : i32
    %c0_i32_2 = arith.constant 0 : i32
    return %c0_i32, %c0_i32_0, %c0_i32_1 : i32, i32, i32
  }
  func.func @transform_2(%arg0: i32, %arg1: i32) -> (i32, i32) {
    %c0_i32 = arith.constant 0 : i32
    %c0_i32_0 = arith.constant 0 : i32
    %c0_i32_1 = arith.constant 0 : i32
    return %c0_i32, %c0_i32_0 : i32, i32
  }
  func.func @transform_3(%arg0: i32, %arg1: i32) -> (i32, i32) {
    %c0_i32 = arith.constant 0 : i32
    %c0_i32_0 = arith.constant 0 : i32
    %c0_i32_1 = arith.constant 0 : i32
    return %c0_i32, %c0_i32_0 : i32, i32
  }
  func.func @transform_4(%arg0: i32, %arg1: i32) -> (i32, i32) {
    %c0_i32 = arith.constant 0 : i32
    %c0_i32_0 = arith.constant 0 : i32
    %c0_i32_1 = arith.constant 0 : i32
    return %c0_i32, %c0_i32_0 : i32, i32
  }
  func.func @transform_5(%arg0: i32, %arg1: i32) -> (i32, i32, i32, i32) {
    %c0_i32 = arith.constant 0 : i32
    %c0_i32_0 = arith.constant 0 : i32
    %c0_i32_1 = arith.constant 0 : i32
    return %arg0, %arg1, %c0_i32, %c0_i32_0 : i32, i32, i32, i32
  }
}

module attributes {stable_mosaic.version = 11 : i64} {
  func.func @_fused_level_kernel_nhwc(%arg0: i32, %arg1: i32, %arg2: memref<1x10x10x32xbf16, #tpu.memory_space<vmem>>, %arg3: memref<3x3x32xbf16, #tpu.memory_space<vmem>>, %arg4: memref<32x32xbf16, #tpu.memory_space<vmem>>, %arg5: memref<1x32xf32, #tpu.memory_space<vmem>>, %arg6: memref<1x32xf32, #tpu.memory_space<vmem>>, %arg7: memref<1x8x8x32xbf16, #tpu.memory_space<vmem>>) attributes {dimension_semantics = [#tpu.dimension_semantics<parallel>, #tpu.dimension_semantics<arbitrary>], iteration_bounds = array<i64: 2, 1>, scalar_prefetch = 0 : i64, scratch_operands = 0 : i64, tpu.core_type = #tpu.core_type<tc>, window_params = [{transform_indices = @transform_0, window_bounds = array<i64: 1, 10, 10, 32>}, {pipeline_mode = #tpu.pipeline_mode<synchronous>, transform_indices = @transform_1, window_bounds = array<i64: 3, 3, 32>}, {pipeline_mode = #tpu.pipeline_mode<synchronous>, transform_indices = @transform_2, window_bounds = array<i64: 32, 32>}, {pipeline_mode = #tpu.pipeline_mode<synchronous>, transform_indices = @transform_3, window_bounds = array<i64: 1, 32>}, {pipeline_mode = #tpu.pipeline_mode<synchronous>, transform_indices = @transform_4, window_bounds = array<i64: 1, 32>}, {transform_indices = @transform_5, window_bounds = array<i64: 1, 8, 8, 32>}]} {
    %c8_i32 = arith.constant 8 : i32
    %0 = arith.muli %arg1, %c8_i32 : i32
    %1 = tpu.assume_multiple %0, 8 : i32
    %c0 = arith.constant 0 : index
    %2 = arith.index_cast %1 : i32 to index
    %c0_0 = arith.constant 0 : index
    %c0_1 = arith.constant 0 : index
    %3 = vector.load %arg2[%c0, %2, %c0_0, %c0_1] : memref<1x10x10x32xbf16, #tpu.memory_space<vmem>>, vector<1x10x10x32xbf16>
    %4 = vector.shape_cast %3 : vector<1x10x10x32xbf16> to vector<10x10x32xbf16>
    %c0_2 = arith.constant 0 : index
    %c0_3 = arith.constant 0 : index
    %c0_4 = arith.constant 0 : index
    %5 = vector.load %arg3[%c0_2, %c0_3, %c0_4] : memref<3x3x32xbf16, #tpu.memory_space<vmem>>, vector<3x3x32xbf16>
    %cst = arith.constant 0.000000e+00 : f32
    %6 = vector.broadcast %cst : f32 to vector<8x8x32xf32>
    %7 = vector.extract_strided_slice %4 {offsets = [0, 0, 0], sizes = [8, 8, 32], strides = [1, 1, 1]} : vector<10x10x32xbf16> to vector<8x8x32xbf16>
    %8 = vector.extract_strided_slice %5 {offsets = [0, 0, 0], sizes = [1, 1, 32], strides = [1, 1, 1]} : vector<3x3x32xbf16> to vector<1x1x32xbf16>
    %9 = vector.shape_cast %8 : vector<1x1x32xbf16> to vector<32xbf16>
    %10 = vector.shape_cast %9 : vector<32xbf16> to vector<1x1x32xbf16>
    %11 = vector.broadcast %10 : vector<1x1x32xbf16> to vector<8x8x32xbf16>
    %12 = arith.mulf %7, %11 : vector<8x8x32xbf16>
    %13 = arith.extf %12 : vector<8x8x32xbf16> to vector<8x8x32xf32>
    %14 = arith.addf %6, %13 : vector<8x8x32xf32>
    %15 = vector.extract_strided_slice %4 {offsets = [0, 1, 0], sizes = [8, 8, 32], strides = [1, 1, 1]} : vector<10x10x32xbf16> to vector<8x8x32xbf16>
    %16 = vector.extract_strided_slice %5 {offsets = [0, 1, 0], sizes = [1, 1, 32], strides = [1, 1, 1]} : vector<3x3x32xbf16> to vector<1x1x32xbf16>
    %17 = vector.shape_cast %16 : vector<1x1x32xbf16> to vector<32xbf16>
    %18 = vector.shape_cast %17 : vector<32xbf16> to vector<1x1x32xbf16>
    %19 = vector.broadcast %18 : vector<1x1x32xbf16> to vector<8x8x32xbf16>
    %20 = arith.mulf %15, %19 : vector<8x8x32xbf16>
    %21 = arith.extf %20 : vector<8x8x32xbf16> to vector<8x8x32xf32>
    %22 = arith.addf %14, %21 : vector<8x8x32xf32>
    %23 = vector.extract_strided_slice %4 {offsets = [0, 2, 0], sizes = [8, 8, 32], strides = [1, 1, 1]} : vector<10x10x32xbf16> to vector<8x8x32xbf16>
    %24 = vector.extract_strided_slice %5 {offsets = [0, 2, 0], sizes = [1, 1, 32], strides = [1, 1, 1]} : vector<3x3x32xbf16> to vector<1x1x32xbf16>
    %25 = vector.shape_cast %24 : vector<1x1x32xbf16> to vector<32xbf16>
    %26 = vector.shape_cast %25 : vector<32xbf16> to vector<1x1x32xbf16>
    %27 = vector.broadcast %26 : vector<1x1x32xbf16> to vector<8x8x32xbf16>
    %28 = arith.mulf %23, %27 : vector<8x8x32xbf16>
    %29 = arith.extf %28 : vector<8x8x32xbf16> to vector<8x8x32xf32>
    %30 = arith.addf %22, %29 : vector<8x8x32xf32>
    %31 = vector.extract_strided_slice %4 {offsets = [1, 0, 0], sizes = [8, 8, 32], strides = [1, 1, 1]} : vector<10x10x32xbf16> to vector<8x8x32xbf16>
    %32 = vector.extract_strided_slice %5 {offsets = [1, 0, 0], sizes = [1, 1, 32], strides = [1, 1, 1]} : vector<3x3x32xbf16> to vector<1x1x32xbf16>
    %33 = vector.shape_cast %32 : vector<1x1x32xbf16> to vector<32xbf16>
    %34 = vector.shape_cast %33 : vector<32xbf16> to vector<1x1x32xbf16>
    %35 = vector.broadcast %34 : vector<1x1x32xbf16> to vector<8x8x32xbf16>
    %36 = arith.mulf %31, %35 : vector<8x8x32xbf16>
    %37 = arith.extf %36 : vector<8x8x32xbf16> to vector<8x8x32xf32>
    %38 = arith.addf %30, %37 : vector<8x8x32xf32>
    %39 = vector.extract_strided_slice %4 {offsets = [1, 1, 0], sizes = [8, 8, 32], strides = [1, 1, 1]} : vector<10x10x32xbf16> to vector<8x8x32xbf16>
    %40 = vector.extract_strided_slice %5 {offsets = [1, 1, 0], sizes = [1, 1, 32], strides = [1, 1, 1]} : vector<3x3x32xbf16> to vector<1x1x32xbf16>
    %41 = vector.shape_cast %40 : vector<1x1x32xbf16> to vector<32xbf16>
    %42 = vector.shape_cast %41 : vector<32xbf16> to vector<1x1x32xbf16>
    %43 = vector.broadcast %42 : vector<1x1x32xbf16> to vector<8x8x32xbf16>
    %44 = arith.mulf %39, %43 : vector<8x8x32xbf16>
    %45 = arith.extf %44 : vector<8x8x32xbf16> to vector<8x8x32xf32>
    %46 = arith.addf %38, %45 : vector<8x8x32xf32>
    %47 = vector.extract_strided_slice %4 {offsets = [1, 2, 0], sizes = [8, 8, 32], strides = [1, 1, 1]} : vector<10x10x32xbf16> to vector<8x8x32xbf16>
    %48 = vector.extract_strided_slice %5 {offsets = [1, 2, 0], sizes = [1, 1, 32], strides = [1, 1, 1]} : vector<3x3x32xbf16> to vector<1x1x32xbf16>
    %49 = vector.shape_cast %48 : vector<1x1x32xbf16> to vector<32xbf16>
    %50 = vector.shape_cast %49 : vector<32xbf16> to vector<1x1x32xbf16>
    %51 = vector.broadcast %50 : vector<1x1x32xbf16> to vector<8x8x32xbf16>
    %52 = arith.mulf %47, %51 : vector<8x8x32xbf16>
    %53 = arith.extf %52 : vector<8x8x32xbf16> to vector<8x8x32xf32>
    %54 = arith.addf %46, %53 : vector<8x8x32xf32>
    %55 = vector.extract_strided_slice %4 {offsets = [2, 0, 0], sizes = [8, 8, 32], strides = [1, 1, 1]} : vector<10x10x32xbf16> to vector<8x8x32xbf16>
    %56 = vector.extract_strided_slice %5 {offsets = [2, 0, 0], sizes = [1, 1, 32], strides = [1, 1, 1]} : vector<3x3x32xbf16> to vector<1x1x32xbf16>
    %57 = vector.shape_cast %56 : vector<1x1x32xbf16> to vector<32xbf16>
    %58 = vector.shape_cast %57 : vector<32xbf16> to vector<1x1x32xbf16>
    %59 = vector.broadcast %58 : vector<1x1x32xbf16> to vector<8x8x32xbf16>
    %60 = arith.mulf %55, %59 : vector<8x8x32xbf16>
    %61 = arith.extf %60 : vector<8x8x32xbf16> to vector<8x8x32xf32>
    %62 = arith.addf %54, %61 : vector<8x8x32xf32>
    %63 = vector.extract_strided_slice %4 {offsets = [2, 1, 0], sizes = [8, 8, 32], strides = [1, 1, 1]} : vector<10x10x32xbf16> to vector<8x8x32xbf16>
    %64 = vector.extract_strided_slice %5 {offsets = [2, 1, 0], sizes = [1, 1, 32], strides = [1, 1, 1]} : vector<3x3x32xbf16> to vector<1x1x32xbf16>
    %65 = vector.shape_cast %64 : vector<1x1x32xbf16> to vector<32xbf16>
    %66 = vector.shape_cast %65 : vector<32xbf16> to vector<1x1x32xbf16>
    %67 = vector.broadcast %66 : vector<1x1x32xbf16> to vector<8x8x32xbf16>
    %68 = arith.mulf %63, %67 : vector<8x8x32xbf16>
    %69 = arith.extf %68 : vector<8x8x32xbf16> to vector<8x8x32xf32>
    %70 = arith.addf %62, %69 : vector<8x8x32xf32>
    %71 = vector.extract_strided_slice %4 {offsets = [2, 2, 0], sizes = [8, 8, 32], strides = [1, 1, 1]} : vector<10x10x32xbf16> to vector<8x8x32xbf16>
    %72 = vector.extract_strided_slice %5 {offsets = [2, 2, 0], sizes = [1, 1, 32], strides = [1, 1, 1]} : vector<3x3x32xbf16> to vector<1x1x32xbf16>
    %73 = vector.shape_cast %72 : vector<1x1x32xbf16> to vector<32xbf16>
    %74 = vector.shape_cast %73 : vector<32xbf16> to vector<1x1x32xbf16>
    %75 = vector.broadcast %74 : vector<1x1x32xbf16> to vector<8x8x32xbf16>
    %76 = arith.mulf %71, %75 : vector<8x8x32xbf16>
    %77 = arith.extf %76 : vector<8x8x32xbf16> to vector<8x8x32xf32>
    %78 = arith.addf %70, %77 : vector<8x8x32xf32>
    %79 = vector.shape_cast %78 : vector<8x8x32xf32> to vector<64x32xf32>
    %80 = arith.truncf %79 : vector<64x32xf32> to vector<64x32xbf16>
    %c0_5 = arith.constant 0 : index
    %c0_6 = arith.constant 0 : index
    %81 = vector.load %arg4[%c0_5, %c0_6] : memref<32x32xbf16, #tpu.memory_space<vmem>>, vector<32x32xbf16>
    %cst_7 = arith.constant dense<0.000000e+00> : vector<64x32xf32>
    %82 = tpu.matmul %80, %81, %cst_7 {dimension_numbers = #tpu.dot_dimension_numbers<[1], [0], [0], [1], [0, 0, 1, 1], [], []>} : vector<64x32xbf16>, vector<32x32xbf16>, vector<64x32xf32> -> vector<64x32xf32>
    %c0_8 = arith.constant 0 : index
    %c0_9 = arith.constant 0 : index
    %83 = vector.load %arg5[%c0_8, %c0_9] : memref<1x32xf32, #tpu.memory_space<vmem>>, vector<1x32xf32>
    %84 = vector.broadcast %83 : vector<1x32xf32> to vector<64x32xf32>
    %85 = arith.mulf %82, %84 : vector<64x32xf32>
    %c0_10 = arith.constant 0 : index
    %c0_11 = arith.constant 0 : index
    %86 = vector.load %arg6[%c0_10, %c0_11] : memref<1x32xf32, #tpu.memory_space<vmem>>, vector<1x32xf32>
    %87 = vector.broadcast %86 : vector<1x32xf32> to vector<64x32xf32>
    %88 = arith.addf %85, %87 : vector<64x32xf32>
    %cst_12 = arith.constant 0.000000e+00 : f32
    %89 = vector.broadcast %cst_12 : f32 to vector<64x32xf32>
    %90 = arith.maximumf %88, %89 : vector<64x32xf32>
    %91 = vector.shape_cast %90 : vector<64x32xf32> to vector<8x8x32xf32>
    %92 = arith.truncf %91 : vector<8x8x32xf32> to vector<8x8x32xbf16>
    %c0_13 = arith.constant 0 : index
    %c0_14 = arith.constant 0 : index
    %c0_15 = arith.constant 0 : index
    %c0_16 = arith.constant 0 : index
    %93 = vector.load %arg7[%c0_13, %c0_14, %c0_15, %c0_16] : memref<1x8x8x32xbf16, #tpu.memory_space<vmem>>, vector<1x8x8x32xbf16>
    %94 = vector.shape_cast %93 : vector<1x8x8x32xbf16> to vector<8x8x32xbf16>
    %95 = vector.shape_cast %92 : vector<8x8x32xbf16> to vector<1x8x8x32xbf16>
    tpu.vector_store %arg7[%c0_13, %c0_14, %c0_15, %c0_16], %95 {strides = array<i32>} : memref<1x8x8x32xbf16, #tpu.memory_space<vmem>>, vector<1x8x8x32xbf16>,
    return
  }
  func.func @transform_0(%arg0: i32, %arg1: i32) -> (i32, i32, i32, i32) {
    %c0_i32 = arith.constant 0 : i32
    %c0_i32_0 = arith.constant 0 : i32
    %c0_i32_1 = arith.constant 0 : i32
    %c0_i32_2 = arith.constant 0 : i32
    return %arg0, %c0_i32, %c0_i32_0, %c0_i32_1 : i32, i32, i32, i32
  }
  func.func @transform_1(%arg0: i32, %arg1: i32) -> (i32, i32, i32) {
    %c0_i32 = arith.constant 0 : i32
    %c0_i32_0 = arith.constant 0 : i32
    %c0_i32_1 = arith.constant 0 : i32
    %c0_i32_2 = arith.constant 0 : i32
    return %c0_i32, %c0_i32_0, %c0_i32_1 : i32, i32, i32
  }
  func.func @transform_2(%arg0: i32, %arg1: i32) -> (i32, i32) {
    %c0_i32 = arith.constant 0 : i32
    %c0_i32_0 = arith.constant 0 : i32
    %c0_i32_1 = arith.constant 0 : i32
    return %c0_i32, %c0_i32_0 : i32, i32
  }
  func.func @transform_3(%arg0: i32, %arg1: i32) -> (i32, i32) {
    %c0_i32 = arith.constant 0 : i32
    %c0_i32_0 = arith.constant 0 : i32
    %c0_i32_1 = arith.constant 0 : i32
    return %c0_i32, %c0_i32_0 : i32, i32
  }
  func.func @transform_4(%arg0: i32, %arg1: i32) -> (i32, i32) {
    %c0_i32 = arith.constant 0 : i32
    %c0_i32_0 = arith.constant 0 : i32
    %c0_i32_1 = arith.constant 0 : i32
    return %c0_i32, %c0_i32_0 : i32, i32
  }
  func.func @transform_5(%arg0: i32, %arg1: i32) -> (i32, i32, i32, i32) {
    %c0_i32 = arith.constant 0 : i32
    %c0_i32_0 = arith.constant 0 : i32
    %c0_i32_1 = arith.constant 0 : i32
    return %arg0, %arg1, %c0_i32, %c0_i32_0 : i32, i32, i32, i32
  }
}

module attributes {stable_mosaic.version = 11 : i64} {
  func.func @_fused_level_kernel_nhwc(%arg0: i32, %arg1: i32, %arg2: memref<1x18x18x32xbf16, #tpu.memory_space<vmem>>, %arg3: memref<3x3x32xbf16, #tpu.memory_space<vmem>>, %arg4: memref<32x32xbf16, #tpu.memory_space<vmem>>, %arg5: memref<1x32xf32, #tpu.memory_space<vmem>>, %arg6: memref<1x32xf32, #tpu.memory_space<vmem>>, %arg7: memref<1x16x16x32xbf16, #tpu.memory_space<vmem>>) attributes {dimension_semantics = [#tpu.dimension_semantics<parallel>, #tpu.dimension_semantics<arbitrary>], iteration_bounds = array<i64: 2, 1>, scalar_prefetch = 0 : i64, scratch_operands = 0 : i64, tpu.core_type = #tpu.core_type<tc>, window_params = [{transform_indices = @transform_0, window_bounds = array<i64: 1, 18, 18, 32>}, {pipeline_mode = #tpu.pipeline_mode<synchronous>, transform_indices = @transform_1, window_bounds = array<i64: 3, 3, 32>}, {pipeline_mode = #tpu.pipeline_mode<synchronous>, transform_indices = @transform_2, window_bounds = array<i64: 32, 32>}, {pipeline_mode = #tpu.pipeline_mode<synchronous>, transform_indices = @transform_3, window_bounds = array<i64: 1, 32>}, {pipeline_mode = #tpu.pipeline_mode<synchronous>, transform_indices = @transform_4, window_bounds = array<i64: 1, 32>}, {transform_indices = @transform_5, window_bounds = array<i64: 1, 16, 16, 32>}]} {
    %c16_i32 = arith.constant 16 : i32
    %0 = arith.muli %arg1, %c16_i32 : i32
    %1 = tpu.assume_multiple %0, 16 : i32
    %c0 = arith.constant 0 : index
    %2 = arith.index_cast %1 : i32 to index
    %c0_0 = arith.constant 0 : index
    %c0_1 = arith.constant 0 : index
    %3 = vector.load %arg2[%c0, %2, %c0_0, %c0_1] : memref<1x18x18x32xbf16, #tpu.memory_space<vmem>>, vector<1x18x18x32xbf16>
    %4 = vector.shape_cast %3 : vector<1x18x18x32xbf16> to vector<18x18x32xbf16>
    %c0_2 = arith.constant 0 : index
    %c0_3 = arith.constant 0 : index
    %c0_4 = arith.constant 0 : index
    %5 = vector.load %arg3[%c0_2, %c0_3, %c0_4] : memref<3x3x32xbf16, #tpu.memory_space<vmem>>, vector<3x3x32xbf16>
    %cst = arith.constant 0.000000e+00 : f32
    %6 = vector.broadcast %cst : f32 to vector<16x16x32xf32>
    %7 = vector.extract_strided_slice %4 {offsets = [0, 0, 0], sizes = [16, 16, 32], strides = [1, 1, 1]} : vector<18x18x32xbf16> to vector<16x16x32xbf16>
    %8 = vector.extract_strided_slice %5 {offsets = [0, 0, 0], sizes = [1, 1, 32], strides = [1, 1, 1]} : vector<3x3x32xbf16> to vector<1x1x32xbf16>
    %9 = vector.shape_cast %8 : vector<1x1x32xbf16> to vector<32xbf16>
    %10 = vector.shape_cast %9 : vector<32xbf16> to vector<1x1x32xbf16>
    %11 = vector.broadcast %10 : vector<1x1x32xbf16> to vector<16x16x32xbf16>
    %12 = arith.mulf %7, %11 : vector<16x16x32xbf16>
    %13 = arith.extf %12 : vector<16x16x32xbf16> to vector<16x16x32xf32>
    %14 = arith.addf %6, %13 : vector<16x16x32xf32>
    %15 = vector.extract_strided_slice %4 {offsets = [0, 1, 0], sizes = [16, 16, 32], strides = [1, 1, 1]} : vector<18x18x32xbf16> to vector<16x16x32xbf16>
    %16 = vector.extract_strided_slice %5 {offsets = [0, 1, 0], sizes = [1, 1, 32], strides = [1, 1, 1]} : vector<3x3x32xbf16> to vector<1x1x32xbf16>
    %17 = vector.shape_cast %16 : vector<1x1x32xbf16> to vector<32xbf16>
    %18 = vector.shape_cast %17 : vector<32xbf16> to vector<1x1x32xbf16>
    %19 = vector.broadcast %18 : vector<1x1x32xbf16> to vector<16x16x32xbf16>
    %20 = arith.mulf %15, %19 : vector<16x16x32xbf16>
    %21 = arith.extf %20 : vector<16x16x32xbf16> to vector<16x16x32xf32>
    %22 = arith.addf %14, %21 : vector<16x16x32xf32>
    %23 = vector.extract_strided_slice %4 {offsets = [0, 2, 0], sizes = [16, 16, 32], strides = [1, 1, 1]} : vector<18x18x32xbf16> to vector<16x16x32xbf16>
    %24 = vector.extract_strided_slice %5 {offsets = [0, 2, 0], sizes = [1, 1, 32], strides = [1, 1, 1]} : vector<3x3x32xbf16> to vector<1x1x32xbf16>
    %25 = vector.shape_cast %24 : vector<1x1x32xbf16> to vector<32xbf16>
    %26 = vector.shape_cast %25 : vector<32xbf16> to vector<1x1x32xbf16>
    %27 = vector.broadcast %26 : vector<1x1x32xbf16> to vector<16x16x32xbf16>
    %28 = arith.mulf %23, %27 : vector<16x16x32xbf16>
    %29 = arith.extf %28 : vector<16x16x32xbf16> to vector<16x16x32xf32>
    %30 = arith.addf %22, %29 : vector<16x16x32xf32>
    %31 = vector.extract_strided_slice %4 {offsets = [1, 0, 0], sizes = [16, 16, 32], strides = [1, 1, 1]} : vector<18x18x32xbf16> to vector<16x16x32xbf16>
    %32 = vector.extract_strided_slice %5 {offsets = [1, 0, 0], sizes = [1, 1, 32], strides = [1, 1, 1]} : vector<3x3x32xbf16> to vector<1x1x32xbf16>
    %33 = vector.shape_cast %32 : vector<1x1x32xbf16> to vector<32xbf16>
    %34 = vector.shape_cast %33 : vector<32xbf16> to vector<1x1x32xbf16>
    %35 = vector.broadcast %34 : vector<1x1x32xbf16> to vector<16x16x32xbf16>
    %36 = arith.mulf %31, %35 : vector<16x16x32xbf16>
    %37 = arith.extf %36 : vector<16x16x32xbf16> to vector<16x16x32xf32>
    %38 = arith.addf %30, %37 : vector<16x16x32xf32>
    %39 = vector.extract_strided_slice %4 {offsets = [1, 1, 0], sizes = [16, 16, 32], strides = [1, 1, 1]} : vector<18x18x32xbf16> to vector<16x16x32xbf16>
    %40 = vector.extract_strided_slice %5 {offsets = [1, 1, 0], sizes = [1, 1, 32], strides = [1, 1, 1]} : vector<3x3x32xbf16> to vector<1x1x32xbf16>
    %41 = vector.shape_cast %40 : vector<1x1x32xbf16> to vector<32xbf16>
    %42 = vector.shape_cast %41 : vector<32xbf16> to vector<1x1x32xbf16>
    %43 = vector.broadcast %42 : vector<1x1x32xbf16> to vector<16x16x32xbf16>
    %44 = arith.mulf %39, %43 : vector<16x16x32xbf16>
    %45 = arith.extf %44 : vector<16x16x32xbf16> to vector<16x16x32xf32>
    %46 = arith.addf %38, %45 : vector<16x16x32xf32>
    %47 = vector.extract_strided_slice %4 {offsets = [1, 2, 0], sizes = [16, 16, 32], strides = [1, 1, 1]} : vector<18x18x32xbf16> to vector<16x16x32xbf16>
    %48 = vector.extract_strided_slice %5 {offsets = [1, 2, 0], sizes = [1, 1, 32], strides = [1, 1, 1]} : vector<3x3x32xbf16> to vector<1x1x32xbf16>
    %49 = vector.shape_cast %48 : vector<1x1x32xbf16> to vector<32xbf16>
    %50 = vector.shape_cast %49 : vector<32xbf16> to vector<1x1x32xbf16>
    %51 = vector.broadcast %50 : vector<1x1x32xbf16> to vector<16x16x32xbf16>
    %52 = arith.mulf %47, %51 : vector<16x16x32xbf16>
    %53 = arith.extf %52 : vector<16x16x32xbf16> to vector<16x16x32xf32>
    %54 = arith.addf %46, %53 : vector<16x16x32xf32>
    %55 = vector.extract_strided_slice %4 {offsets = [2, 0, 0], sizes = [16, 16, 32], strides = [1, 1, 1]} : vector<18x18x32xbf16> to vector<16x16x32xbf16>
    %56 = vector.extract_strided_slice %5 {offsets = [2, 0, 0], sizes = [1, 1, 32], strides = [1, 1, 1]} : vector<3x3x32xbf16> to vector<1x1x32xbf16>
    %57 = vector.shape_cast %56 : vector<1x1x32xbf16> to vector<32xbf16>
    %58 = vector.shape_cast %57 : vector<32xbf16> to vector<1x1x32xbf16>
    %59 = vector.broadcast %58 : vector<1x1x32xbf16> to vector<16x16x32xbf16>
    %60 = arith.mulf %55, %59 : vector<16x16x32xbf16>
    %61 = arith.extf %60 : vector<16x16x32xbf16> to vector<16x16x32xf32>
    %62 = arith.addf %54, %61 : vector<16x16x32xf32>
    %63 = vector.extract_strided_slice %4 {offsets = [2, 1, 0], sizes = [16, 16, 32], strides = [1, 1, 1]} : vector<18x18x32xbf16> to vector<16x16x32xbf16>
    %64 = vector.extract_strided_slice %5 {offsets = [2, 1, 0], sizes = [1, 1, 32], strides = [1, 1, 1]} : vector<3x3x32xbf16> to vector<1x1x32xbf16>
    %65 = vector.shape_cast %64 : vector<1x1x32xbf16> to vector<32xbf16>
    %66 = vector.shape_cast %65 : vector<32xbf16> to vector<1x1x32xbf16>
    %67 = vector.broadcast %66 : vector<1x1x32xbf16> to vector<16x16x32xbf16>
    %68 = arith.mulf %63, %67 : vector<16x16x32xbf16>
    %69 = arith.extf %68 : vector<16x16x32xbf16> to vector<16x16x32xf32>
    %70 = arith.addf %62, %69 : vector<16x16x32xf32>
    %71 = vector.extract_strided_slice %4 {offsets = [2, 2, 0], sizes = [16, 16, 32], strides = [1, 1, 1]} : vector<18x18x32xbf16> to vector<16x16x32xbf16>
    %72 = vector.extract_strided_slice %5 {offsets = [2, 2, 0], sizes = [1, 1, 32], strides = [1, 1, 1]} : vector<3x3x32xbf16> to vector<1x1x32xbf16>
    %73 = vector.shape_cast %72 : vector<1x1x32xbf16> to vector<32xbf16>
    %74 = vector.shape_cast %73 : vector<32xbf16> to vector<1x1x32xbf16>
    %75 = vector.broadcast %74 : vector<1x1x32xbf16> to vector<16x16x32xbf16>
    %76 = arith.mulf %71, %75 : vector<16x16x32xbf16>
    %77 = arith.extf %76 : vector<16x16x32xbf16> to vector<16x16x32xf32>
    %78 = arith.addf %70, %77 : vector<16x16x32xf32>
    %79 = vector.shape_cast %78 : vector<16x16x32xf32> to vector<256x32xf32>
    %80 = arith.truncf %79 : vector<256x32xf32> to vector<256x32xbf16>
    %c0_5 = arith.constant 0 : index
    %c0_6 = arith.constant 0 : index
    %81 = vector.load %arg4[%c0_5, %c0_6] : memref<32x32xbf16, #tpu.memory_space<vmem>>, vector<32x32xbf16>
    %cst_7 = arith.constant dense<0.000000e+00> : vector<256x32xf32>
    %82 = tpu.matmul %80, %81, %cst_7 {dimension_numbers = #tpu.dot_dimension_numbers<[1], [0], [0], [1], [0, 0, 1, 1], [], []>} : vector<256x32xbf16>, vector<32x32xbf16>, vector<256x32xf32> -> vector<256x32xf32>
    %c0_8 = arith.constant 0 : index
    %c0_9 = arith.constant 0 : index
    %83 = vector.load %arg5[%c0_8, %c0_9] : memref<1x32xf32, #tpu.memory_space<vmem>>, vector<1x32xf32>
    %84 = vector.broadcast %83 : vector<1x32xf32> to vector<256x32xf32>
    %85 = arith.mulf %82, %84 : vector<256x32xf32>
    %c0_10 = arith.constant 0 : index
    %c0_11 = arith.constant 0 : index
    %86 = vector.load %arg6[%c0_10, %c0_11] : memref<1x32xf32, #tpu.memory_space<vmem>>, vector<1x32xf32>
    %87 = vector.broadcast %86 : vector<1x32xf32> to vector<256x32xf32>
    %88 = arith.addf %85, %87 : vector<256x32xf32>
    %cst_12 = arith.constant 0.000000e+00 : f32
    %89 = vector.broadcast %cst_12 : f32 to vector<256x32xf32>
    %90 = arith.maximumf %88, %89 : vector<256x32xf32>
    %91 = vector.shape_cast %90 : vector<256x32xf32> to vector<16x16x32xf32>
    %92 = arith.truncf %91 : vector<16x16x32xf32> to vector<16x16x32xbf16>
    %c0_13 = arith.constant 0 : index
    %c0_14 = arith.constant 0 : index
    %c0_15 = arith.constant 0 : index
    %c0_16 = arith.constant 0 : index
    %93 = vector.load %arg7[%c0_13, %c0_14, %c0_15, %c0_16] : memref<1x16x16x32xbf16, #tpu.memory_space<vmem>>, vector<1x16x16x32xbf16>
    %94 = vector.shape_cast %93 : vector<1x16x16x32xbf16> to vector<16x16x32xbf16>
    %95 = vector.shape_cast %92 : vector<16x16x32xbf16> to vector<1x16x16x32xbf16>
    tpu.vector_store %arg7[%c0_13, %c0_14, %c0_15, %c0_16], %95 {strides = array<i32>} : memref<1x16x16x32xbf16, #tpu.memory_space<vmem>>, vector<1x16x16x32xbf16>,
    return
  }
  func.func @transform_0(%arg0: i32, %arg1: i32) -> (i32, i32, i32, i32) {
    %c0_i32 = arith.constant 0 : i32
    %c0_i32_0 = arith.constant 0 : i32
    %c0_i32_1 = arith.constant 0 : i32
    %c0_i32_2 = arith.constant 0 : i32
    return %arg0, %c0_i32, %c0_i32_0, %c0_i32_1 : i32, i32, i32, i32
  }
  func.func @transform_1(%arg0: i32, %arg1: i32) -> (i32, i32, i32) {
    %c0_i32 = arith.constant 0 : i32
    %c0_i32_0 = arith.constant 0 : i32
    %c0_i32_1 = arith.constant 0 : i32
    %c0_i32_2 = arith.constant 0 : i32
    return %c0_i32, %c0_i32_0, %c0_i32_1 : i32, i32, i32
  }
  func.func @transform_2(%arg0: i32, %arg1: i32) -> (i32, i32) {
    %c0_i32 = arith.constant 0 : i32
    %c0_i32_0 = arith.constant 0 : i32
    %c0_i32_1 = arith.constant 0 : i32
    return %c0_i32, %c0_i32_0 : i32, i32
  }
  func.func @transform_3(%arg0: i32, %arg1: i32) -> (i32, i32) {
    %c0_i32 = arith.constant 0 : i32
    %c0_i32_0 = arith.constant 0 : i32
    %c0_i32_1 = arith.constant 0 : i32
    return %c0_i32, %c0_i32_0 : i32, i32
  }
  func.func @transform_4(%arg0: i32, %arg1: i32) -> (i32, i32) {
    %c0_i32 = arith.constant 0 : i32
    %c0_i32_0 = arith.constant 0 : i32
    %c0_i32_1 = arith.constant 0 : i32
    return %c0_i32, %c0_i32_0 : i32, i32
  }
  func.func @transform_5(%arg0: i32, %arg1: i32) -> (i32, i32, i32, i32) {
    %c0_i32 = arith.constant 0 : i32
    %c0_i32_0 = arith.constant 0 : i32
    %c0_i32_1 = arith.constant 0 : i32
    return %arg0, %arg1, %c0_i32, %c0_i32_0 : i32, i32, i32, i32
  }
}

</mosaic_0001>

<bundles_post_ra>
// kernel: tpu_custom_call.1
= control target key start
LH: loop header
LB: loop body
LE: loop exit
PB: predicated region body
PF: predicated region fallthrough
CT: control target
= control target key end

     0   :  { %10 = vsyncpa [#allocation3], 0  ;;  %s2411_s0 = inlined_call_operand.hbm [shape: bf16[1,18,576], index: 0, kind: input, shape index: {}]   ;;  %s2412_s1 = inlined_call_operand.hbm [shape: bf16[9,128], index: 1, kind: input, shape index: {}]   ;;  %s2413_s2 = inlined_call_operand.hbm [shape: bf16[128,128], index: 2, kind: input, shape index: {}]   ;;  %s2414_s3 = inlined_call_operand.vmem [shape: f32[1,128], index: 3, kind: input, shape index: {}]   ;;  %s2415_s4 = inlined_call_operand.vmem [shape: f32[1,128], index: 4, kind: input, shape index: {}]   ;;  %s2416_s5 = inlined_call_operand.hbm [shape: bf16[1,16,512], index: 5, kind: output, shape index: {}]  }
   0x1   :  { %11 = vsyncpa [#allocation6], 0 }
   0x2   :  { %12 = vsyncpa [#allocation4], 0  ;;  %s1778_s18 = smov [#allocation5]   ;;  %s1684_s22 = scalar_lea.hbm %s2412_s1, 128 }
   0x3   :  { %s30_s19 = sshll.u32 %s1778_s18, 4  ;;  %p1685_p0 = scmp.ne.s32.totalorder %s2412_s1, %s1684_s22  ;;  %s31_s19 = int_to_ptr.vmem [resolvable:$true] %s30_s19 }
   0x4   :  { %p1688_p1 = scmp.lt.u32.totalorder %s1684_s22, %s2412_s1 }
   0x6   :  { %p1690_p2 = pnand %p1688_p1, %p1685_p0 }
   0x8   :  { %1693 = shalt.err (!%p1690_p2)
}
   0x9   :  { %s1694_s27 = scalar_lea.vmem %s31_s19, 128  ;;  %p1699_p4 = scmp.lt.s32.totalorder %s31_s19, %s31_s19 }
   0xa   :  { %p1695_p3 = scmp.ne.s32.totalorder %s31_s19, %s1694_s27  ;;  %p1700_p5 = scmp.lt.s32.totalorder %s1694_s27, %s1694_s27 }
   0xc   :  { %p1701_p6 = por %p1700_p5, %p1699_p4 }
   0xe   :  { %p1702_p7 = pnand %p1701_p6, %p1695_p3 }
  0x10   :  { %1705 = shalt.err (!%p1702_p7)
}
  0x11   :  { %s1779_s28 = smov 64   ;;  %s1780_s29 = smov 4  }
  0x12   :  { %36 = dma.hbm_to_vmem [thread:$0]  %s2412_s1, 128, %s31_s19, [#allocation6], %s1779_s28, %s1779_s28, %s1780_s29  }
  0x13   :  { %s1781_s7 = smov [#allocation2]   ;;  %s1706_s11 = scalar_lea.hbm %s2411_s0, 960 }
  0x14   :  { %s18_s8 = sshll.u32 %s1781_s7, 4  ;;  %p1707_p8 = scmp.ne.s32.totalorder %s2411_s0, %s1706_s11  ;;  %s19_s8 = int_to_ptr.vmem [resolvable:$true] %s18_s8 }
  0x15   :  { %p1710_p9 = scmp.lt.u32.totalorder %s1706_s11, %s2411_s0 }
  0x17   :  { %p1712_p10 = pnand %p1710_p9, %p1707_p8 }
  0x19   :  { %1715 = shalt.err (!%p1712_p10)
}
  0x1a   :  { %s1716_s16 = scalar_lea.vmem %s19_s8, 960  ;;  %p1721_p12 = scmp.lt.s32.totalorder %s19_s8, %s19_s8 }
  0x1b   :  { %p1717_p11 = scmp.ne.s32.totalorder %s19_s8, %s1716_s16  ;;  %p1722_p13 = scmp.lt.s32.totalorder %s1716_s16, %s1716_s16 }
  0x1d   :  { %p1723_p0 = por %p1722_p13, %p1721_p12 }
  0x1f   :  { %p1724_p1 = pnand %p1723_p0, %p1717_p11 }
  0x21   :  { %1727 = shalt.err (!%p1724_p1)
}
  0x22   :  { %s1782_s1 = smov 320   ;;  %s1783_s17 = smov 20  }
  0x23   :  { %24 = dma.hbm_to_vmem [thread:$0]  %s2411_s0, 960, %s19_s8, [#allocation3], %s1782_s1, %s1782_s1, %s1783_s17  }
  0x24   :  { %s1784_s20 = smov [#allocation7]   ;;  %s1728_s24 = scalar_lea.hbm %s2413_s2, 1024 }
  0x25   :  { %s42_s21 = sshll.u32 %s1784_s20, 4  ;;  %p1729_p2 = scmp.ne.s32.totalorder %s2413_s2, %s1728_s24  ;;  %s43_s21 = int_to_ptr.vmem [resolvable:$true] %s42_s21 }
  0x26   :  { %p1732_p3 = scmp.lt.u32.totalorder %s1728_s24, %s2413_s2 }
  0x28   :  { %p1734_p4 = pnand %p1732_p3, %p1729_p2 }
  0x2a   :  { %1737 = shalt.err (!%p1734_p4)
}
  0x2b   :  { %s1738_s6 = scalar_lea.vmem %s43_s21, 1024  ;;  %p1743_p6 = scmp.lt.s32.totalorder %s43_s21, %s43_s21 }
  0x2c   :  { %p1739_p5 = scmp.ne.s32.totalorder %s43_s21, %s1738_s6  ;;  %p1744_p7 = scmp.lt.s32.totalorder %s1738_s6, %s1738_s6 }
  0x2e   :  { %p1745_p8 = por %p1744_p7, %p1743_p6 }
  0x30   :  { %p1746_p9 = pnand %p1745_p8, %p1739_p5 }
  0x32   :  { %1749 = shalt.err (!%p1746_p9)
}
  0x33   :  { %48 = dma.hbm_to_vmem [thread:$0]  %s2413_s2, 1024, %s43_s21, [#allocation6], %s1779_s28, %s1779_s28, %s1780_s29  }
  0x34   :  { %1772 = dma.done.wait [#allocation3], 960  }
  0x35   :  { %1773 = vsyncadd [#allocation3], 4294966336 }
  0x36   :  { %1774 = dma.done.wait [#allocation6], 1152  }
  0x37   :  { %1775 = vsyncadd [#allocation6], 4294966144  ;;  %v85_v0 = vlaneseq  ;;  %v1675_v3 = vld [vmem:[#allocation5] sm:$0x1f]   ;;  %s1785_s2 = smov 32   ;;  %vm279_vm0 = vcmask 261120  }
  0x38   :  { %v83_v4 = vpack.i.b16 %v1675_v3, %v1675_v3  ;;  %v113_v6 = vshrl.u32 %v1675_v3, 16  ;;  %v1875_v26 = vld [vmem:[#allocation2] sm:$0xff]  ;;  %v1877_v27 = vld [vmem:[#allocation2 + $0x10] sm:$0xf]  ;;  %v1881_v29 = vld [vmem:[#allocation2 + $0x38] sm:$0x1] }
  0x39   :  { %v1865_v1 = vshrl.u32 %v85_v0, 7  ;;  %v1879_v28 = vld [vmem:[#allocation2 + $0x24] sm:$0xf]  ;;  %v1883_v31 = vld [vmem:[#allocation2 + $0x8] sm:$0xff]  ;;  %v1885_v32 = vld [vmem:[#allocation2 + $0x14] sm:$0xff]  ;;  %vm606_vm1 = vcmask 523264  }
  0x3a   :  { %v114_v10 = vpack.i.b16 %v113_v6, %v113_v6  ;;  %v1887_v33 = vld [vmem:[#allocation2 + $0x1c] sm:$0xff]  ;;  %v1897_v38 = vld [vmem:[#allocation2 + $0x28] sm:$0x11]  ;;  %v1899_v39 = vld [vmem:[#allocation2 + $0x30] sm:$0x11]  ;;  %vm154_vm2 = vcmask 1046528  }
  0x3b   :  { %v356_v2 = vsub.s32 2, %v1865_v1  ;;  %v87_v5 = vsub.s32 0, %v1865_v1  ;;  %v118_v7 = vsub.s32 1, %v1865_v1  ;;  %v193_v8 = vsub.s32 3, %v1865_v1  ;;  %s1786_s29 = smov 96  }
  0x3c   :  { %v804_v13 = vsub.s32 4, %v1865_v1  ;;  %vm229_vm3 = vcmask 1045504   ;;  %vm329_vm4 = vcmask 785408  }
  0x3d   :  { %v357_v9 = vrot.slane %v83_v4, %v356_v2  ;;  %v88_v11 = vrot.slane %v83_v4, %v87_v5  ;;  %v194_v12 = vrot.slane %v83_v4, %v193_v8  ;;  %v272_v15 = vrot.slane %v114_v10, %v87_v5 }
  0x3e   :  { %v119_v16 = vrot.slane %v114_v10, %v118_v7  ;;  %v478_v17 = vrot.slane %v114_v10, %v193_v8  ;;  %v684_v18 = vrot.slane %v114_v10, %v356_v2  ;;  %v599_v20 = vrot.slane %v83_v4, %v118_v7 }
  0x3f   :  { %v1435_v14 = vcombine.low %v357_v9, %v357_v9  ;;  %v1434_v19 = vcombine.low %v272_v15, %v272_v15  ;;  %v805_v23 = vrot.slane %v83_v4, %v804_v13  ;;  %v1891_v35 = vcombine.low %v88_v11, %v88_v11 }
  0x40   :  { %v1436_v21 = vcombine.low %v478_v17, %v478_v17  ;;  %v1438_v22 = vcombine.low %v684_v18, %v684_v18  ;;  %v1437_v24 = vcombine.low %v599_v20, %v599_v20  ;;  %v1893_v36 = vcombine.low %v119_v16, %v119_v16 }
  0x41   :  { %361 = vrot.lane.b32.xlu0 %v1435_v14, %s1785_s2  ;;  %v1439_v25 = vcombine.low %v805_v23, %v805_v23  ;;  %v1895_v37 = vcombine.low %v194_v12, %v194_v12 }
  0x42   :  { %482 = vrot.lane.b32.xlu1 %v1436_v21, %s1785_s2 }
  0x45   :  { %276 = vrot.lane.b32.xlu0 %v1434_v19, %s1785_s2 }
  0x46   :  { %688 = vrot.lane.b32.xlu1 %v1438_v22, %s1779_s28 }
  0x49   :  { %603 = vrot.lane.b32.xlu0 %v1437_v24, %s1779_s28 }
  0x4a   :  { %809 = vrot.lane.b32.xlu1 %v1439_v25, %s1779_s28 }
  0xb3   :  { %v362_v30 = vpop.permute.xlu0 %361 }
  0xb4   :  { %v1889_v34 = vrot.slane %v362_v30, 4  ;;  %v483_v44 = vpop.permute.xlu1 %482 }
  0xb5   :  { %v1929_v53 = vrot.slane %v483_v44, 4 }
  0xb6   :  { %v364_v40 = vsel %vm279_vm0, %v1889_v34, %v362_v30  ;;  %v369_v41 = vmul.bf16 %v1889_v34, %v1877_v27 }
  0xb7   :  { %v1910_v45 = vmul.bf16 %v364_v40, %v1875_v26  ;;  %v1913_v46 = vmul.bf16 %v364_v40, %v1883_v31  ;;  %v1916_v47 = vmul.bf16 %v364_v40, %v1885_v32  ;;  %v1919_v48 = vmul.bf16 %v364_v40, %v1887_v33  ;;  %v277_v49 = vpop.permute.xlu0 %276 }
  0xb8   :  { %v1922_v50 = vmul.bf16 %v364_v40, %v1897_v38  ;;  %v1925_v51 = vmul.bf16 %v364_v40, %v1899_v39  ;;  %v1927_v52 = vrot.slane %v277_v49, 4  ;;  %v485_v61 = vsel %vm279_vm0, %v1929_v53, %v483_v44  ;;  %v689_v12 = vpop.permute.xlu1 %688 }
  0xb9   :  { %v378_v54 = vunpack.c.l.bf16 %v1913_v46  ;;  %v379_v55 = vunpack.c.h.bf16 %v1913_v46  ;;  %v383_v56 = vunpack.c.l.bf16 %v1919_v48  ;;  %v384_v57 = vunpack.c.h.bf16 %v1919_v48 }
  0xba   :  { %v280_v58 = vsel %vm279_vm0, %v1927_v52, %v277_v49  ;;  %v285_v59 = vmul.bf16 %v1927_v52, %v1877_v27  ;;  %v288_v60 = vmul.bf16 %v1927_v52, %v1879_v28  ;;  %v1950_v5 = vmul.bf16 %v485_v61, %v1875_v26 }
  0xbb   :  { %v283_v62 = vmul.bf16 %v280_v58, %v1875_v26  ;;  %v284_v63 = vmul.bf16 %v280_v58, %v1883_v31  ;;  %v1946_v0 = vmul.bf16 %v280_v58, %v1885_v32  ;;  %v287_v2 = vmul.bf16 %v280_v58, %v1887_v33  ;;  %v604_v3 = vpop.permute.xlu0 %603 }
  0xbc   :  { %v605_v4 = vrot.slane %v604_v3, 4  ;;  %v1953_v6 = vmul.bf16 %v485_v61, %v1883_v31  ;;  %v1958_v8 = vmul.bf16 %v485_v61, %v1885_v32  ;;  %v1961_v9 = vmul.bf16 %v485_v61, %v1887_v33  ;;  %v810_v43 = vpop.permute.xlu1 %809 }
  0xbd   :  { %v1966_v11 = vmul.bf16 %v485_v61, %v1897_v38  ;;  %v1971_v15 = vmul.bf16 %v485_v61, %v1899_v39  ;;  %v289_v22 = vunpack.c.l.bf16 %v283_v62  ;;  %v290_v23 = vunpack.c.h.bf16 %v283_v62 }
  0xbe   :  { %v607_v13 = vsel %vm606_vm1, %v605_v4, %v604_v3  ;;  %v612_v14 = vmul.bf16 %v605_v4, %v1877_v27  ;;  %v615_v24 = vmul.bf16 %v605_v4, %v1879_v28  ;;  %v293_v62 = vunpack.c.l.bf16 %v285_v59 }
  0xbf   :  { %v611_v17 = vmul.bf16 %v607_v13, %v1883_v31  ;;  %v610_v18 = vmul.bf16 %v607_v13, %v1875_v26  ;;  %v613_v19 = vmul.bf16 %v607_v13, %v1885_v32  ;;  %v614_v20 = vmul.bf16 %v607_v13, %v1887_v33 }
  0xc0   :  { %v620_v21 = vunpack.c.l.bf16 %v612_v14  ;;  %v1550_v61 = vpack.i.bf16 %v290_v23, %v289_v22  ;;  %v625_v7 = vunpack.c.l.bf16 %v615_v24  ;;  %v1980_v14 = vrot.slane %v689_v12, 4 }
  0xc1   :  { %v618_v25 = vunpack.c.l.bf16 %v611_v17  ;;  %v619_v30 = vunpack.c.h.bf16 %v611_v17  ;;  %v616_v40 = vunpack.c.l.bf16 %v610_v18  ;;  %v617_v44 = vunpack.c.h.bf16 %v610_v18 }
  0xc2   :  { %v622_v49 = vunpack.c.h.bf16 %v613_v19  ;;  %v623_v52 = vunpack.c.l.bf16 %v614_v20  ;;  %v621_v58 = vunpack.c.l.bf16 %v613_v19  ;;  %v624_v10 = vunpack.c.h.bf16 %v614_v20 }
  0xc3   :  { %v1530_v3 = vpack.i.bf16 %v619_v30, %v618_v25  ;;  %v1525_v16 = vpack.i.bf16 %v617_v44, %v616_v40  ;;  %v294_v17 = vunpack.c.l.bf16 %v1946_v0  ;;  %v291_v18 = vunpack.c.l.bf16 %v284_v63 }
  0xc4   :  { %v1540_v13 = vpack.i.bf16 %v623_v52, %v622_v49  ;;  %v1535_v42 = vpack.i.bf16 %v621_v58, %v620_v21  ;;  %v1545_v4 = vpack.i.bf16 %v625_v7, %v624_v10  ;;  %v292_v19 = vunpack.c.h.bf16 %v284_v63 }
  0xc5   :  { %1531 = vrot.lane.b32.xlu0 %v1530_v3, %s1779_s28  ;;  %1526 = vrot.lane.b32.xlu1 %v1525_v16, %s1779_s28  ;;  %v1987_v22 = vsel %vm606_vm1, %v1980_v14, %v689_v12  ;;  %v1989_v20 = vrot.slane %v810_v43, 4  ;;  %v297_v23 = vunpack.c.h.bf16 %v287_v2  ;;  %v298_v21 = vunpack.c.l.bf16 %v288_v60 }
  0xc6   :  { %v1560_v24 = vpack.i.bf16 %v294_v17, %v293_v62  ;;  %v1555_v25 = vpack.i.bf16 %v292_v19, %v291_v18  ;;  %v295_v59 = vunpack.c.h.bf16 %v1946_v0  ;;  %v296_v30 = vunpack.c.l.bf16 %v287_v2 }
  0xc7   :  { %v1994_v7 = vsel %vm606_vm1, %v1989_v20, %v810_v43  ;;  %v1570_v10 = vpack.i.bf16 %v298_v21, %v297_v23  ;;  %v412_v63 = vrot.slane %v378_v54, 1  ;;  %v413_v12 = vrot.slane %v383_v56, 1 }
  0xc8   :  { %v1565_v60 = vpack.i.bf16 %v296_v30, %v295_v59  ;;  %v415_v0 = vrot.slane %v379_v55, 1  ;;  %v416_v2 = vrot.slane %v384_v57, 1  ;;  %v376_v43 = vunpack.c.l.bf16 %v1910_v45 }
  0xc9   :  { %1541 = vrot.lane.b32.xlu0 %v1540_v13, %s1779_s28  ;;  %1536 = vrot.lane.b32.xlu1 %v1535_v42, %s1779_s28  ;;  %v2008_v16 = vsel %vm154_vm2, %v412_v63, %v413_v12  ;;  %v377_v54 = vunpack.c.h.bf16 %v1910_v45  ;;  %v381_v56 = vunpack.c.l.bf16 %v1916_v47  ;;  %v382_v40 = vunpack.c.h.bf16 %v1916_v47 }
  0xca   :  { %v2014_v42 = vsel %vm154_vm2, %v415_v0, %v416_v2  ;;  %v406_v44 = vrot.slane %v376_v43, 1  ;;  %v387_v46 = vunpack.c.h.bf16 %v1922_v50  ;;  %v388_v48 = vunpack.c.l.bf16 %v1925_v51 }
  0xcb   :  { %v1580_v55 = vpack.i.bf16 %v2014_v42, %v2008_v16  ;;  %v407_v57 = vrot.slane %v381_v56, 1  ;;  %v409_v49 = vrot.slane %v377_v54, 1  ;;  %v410_v52 = vrot.slane %v382_v40, 1 }
  0xcc   :  { %v423_v45 = vrot.slane %v387_v46, 1  ;;  %v425_v47 = vrot.slane %v388_v48, 1  ;;  %v380_v58 = vunpack.c.l.bf16 %v369_v41  ;;  %v2417_v3 = vmul.bf16 %v1889_v34, %v1879_v28 }
  0xcd   :  { %1551 = vrot.lane.b32.xlu0 %v1550_v61, %s1786_s29  ;;  %1546 = vrot.lane.b32.xlu1 %v1545_v4, %s1779_s28  ;;  %v408_v62 = vsel %vm154_vm2, %v406_v44, %v407_v57  ;;  %v411_v17 = vsel %vm154_vm2, %v409_v49, %v410_v52  ;;  %v386_v18 = vunpack.c.l.bf16 %v1922_v50  ;;  %v816_v61 = vmul.bf16 %v1994_v7, %v1883_v31 }
  0xce   :  { %v385_v13 = vunpack.c.l.bf16 %v2417_v3  ;;  %v1575_v4 = vpack.i.bf16 %v411_v17, %v408_v62  ;;  %v424_v19 = vsel %vm154_vm2, %v410_v52, %v423_v45  ;;  %v426_v23 = vsel %vm154_vm2, %v413_v12, %v425_v47 }
  0xcf   :  { %v418_v41 = vrot.slane %v380_v58, 1  ;;  %v1590_v21 = vpack.i.bf16 %v426_v23, %v424_v19  ;;  %v421_v30 = vrot.slane %v386_v18, 1  ;;  %v819_v63 = vmul.bf16 %v1994_v7, %v1887_v33 }
  0xd0   :  { %v419_v59 = vrot.slane %v385_v13, 1  ;;  %v826_v50 = vunpack.c.l.bf16 %v816_v61  ;;  %v827_v0 = vunpack.c.h.bf16 %v816_v61  ;;  %v389_v43 = vunpack.c.h.bf16 %v1925_v51 }
  0xd1   :  { %1561 = vrot.lane.b32.xlu0 %v1560_v24, %s1786_s29  ;;  %1556 = vrot.lane.b32.xlu1 %v1555_v25, %s1786_s29  ;;  %v2418_v16 = vmul.bf16 %v1889_v34, %v1881_v29  ;;  %v422_v56 = vsel %vm154_vm2, %v407_v57, %v421_v30  ;;  %v831_v40 = vunpack.c.l.bf16 %v819_v63  ;;  %v832_v42 = vunpack.c.h.bf16 %v819_v63 }
  0xd2   :  { %v420_v12 = vsel %vm154_vm2, %v418_v41, %v419_v59  ;;  %v860_v46 = vrot.slane %v826_v50, 2  ;;  %v863_v48 = vrot.slane %v827_v0, 2  ;;  %v427_v24 = vrot.slane %v389_v43, 1 }
  0xd3   :  { %v390_v54 = vunpack.c.l.bf16 %v2418_v16  ;;  %v1585_v44 = vpack.i.bf16 %v422_v56, %v420_v12  ;;  %v2045_v49 = vrot.slane %v831_v40, 2  ;;  %v2047_v25 = vrot.slane %v832_v42, 2  ;;  %v1676_v56 = vld [vmem:[#allocation7] sm:$0xff]  }
  0xd4   :  { %v497_v51 = vunpack.c.l.bf16 %v1950_v5  ;;  %v428_v34 = vsel %vm154_vm2, %v416_v2, %v427_v24  ;;  %v498_v57 = vunpack.c.h.bf16 %v1950_v5  ;;  %v502_v45 = vunpack.c.l.bf16 %v1958_v8  ;;  %1470 = vmatprep.subr.bf16.mxu0 %v1676_v56  ;;  %1494 = vmatprep.subr.bf16.mxu1 %v1676_v56 }
  0xd5   :  { %v429_v52 = vrot.slane %v390_v54, 1  ;;  %1571 = vrot.lane.b32.xlu0 %v1570_v10, %s1786_s29  ;;  %1566 = vrot.lane.b32.xlu1 %v1565_v60, %s1786_s29  ;;  %v503_v47 = vunpack.c.h.bf16 %v1958_v8  ;;  %v862_v58 = vsel %vm229_vm3, %v860_v46, %v2045_v49  ;;  %v865_v3 = vsel %vm229_vm3, %v863_v48, %v2047_v25 }
  0xd6   :  { %v527_v62 = vrot.slane %v497_v51, 2  ;;  %v1605_v10 = vpack.i.bf16 %v865_v3, %v862_v58  ;;  %v528_v60 = vrot.slane %v502_v45, 2  ;;  %v530_v18 = vrot.slane %v498_v57, 2  ;;  %1471 = vmatpush3.bf16.msra.mxu0 %v1676_v56  ;;  %1502 = vmatpush3.bf16.msra.mxu1 %v1676_v56 }
  0xd7   :  { %v430_v13 = vsel %vm154_vm2, %v419_v59, %v429_v52  ;;  %v2061_v2 = vrot.slane %v503_v47, 2  ;;  %v815_v5 = vmul.bf16 %v1994_v7, %v1875_v26  ;;  %v818_v8 = vmul.bf16 %v1994_v7, %v1885_v32 }
  0xd8   :  { %v1595_v17 = vpack.i.bf16 %v430_v13, %v428_v34  ;;  %v2419_v61 = vmul.bf16 %v1929_v53, %v1877_v27  ;;  %v2073_v23 = vsel %vm229_vm3, %v527_v62, %v528_v60  ;;  %v2420_v41 = vmul.bf16 %v1929_v53, %v1879_v28 }
  0xd9   :  { %1581 = vrot.lane.b32.xlu0 %v1580_v55, %s1786_s29  ;;  %1576 = vrot.lane.b32.xlu1 %v1575_v4, %s1786_s29  ;;  %v507_v30 = vunpack.c.l.bf16 %v1966_v11  ;;  %v817_v63 = vmul.bf16 %v1989_v20, %v1877_v27  ;;  %v532_v50 = vsel %vm229_vm3, %v530_v18, %v2061_v2  ;;  %v824_v0 = vunpack.c.l.bf16 %v815_v5 }
  0xda   :  { %v501_v19 = vunpack.c.l.bf16 %v2419_v61  ;;  %v506_v59 = vunpack.c.l.bf16 %v2420_v41  ;;  %v825_v43 = vunpack.c.h.bf16 %v815_v5  ;;  %v829_v55 = vunpack.c.l.bf16 %v818_v8 }
  0xdb   :  { %v1615_v4 = vpack.i.bf16 %v532_v50, %v2073_v23  ;;  %v830_v16 = vunpack.c.h.bf16 %v818_v8  ;;  %v854_v40 = vrot.slane %v824_v0, 2  ;;  %v542_v48 = vrot.slane %v507_v30, 2 }
  0xdc   :  { %v539_v54 = vrot.slane %v501_v19, 2  ;;  %v540_v12 = vrot.slane %v506_v59, 2  ;;  %v855_v42 = vrot.slane %v829_v55, 2  ;;  %v857_v46 = vrot.slane %v825_v43, 2  ;;  %v1678_v55 = vld [vmem:[#allocation7 + $0x10] sm:$0xff]  }
  0xdd   :  { %1591 = vrot.lane.b32.xlu0 %v1590_v21, %s1786_s29  ;;  %1586 = vrot.lane.b32.xlu1 %v1585_v44, %s1786_s29  ;;  %v2086_v24 = vrot.slane %v830_v16, 2  ;;  %v820_v51 = vmul.bf16 %v1989_v20, %v1879_v28  ;;  %v2095_v34 = vmul.bf16 %v1994_v7, %v1897_v38  ;;  %v543_v45 = vsel %vm229_vm3, %v528_v60, %v542_v48  ;;  %v1677_v44 = vld [vmem:[#allocation7 + $0x8] sm:$0xff]  }
  0xde   :  { %v2089_v52 = vsel %vm229_vm3, %v539_v54, %v540_v12  ;;  %v856_v57 = vsel %vm229_vm3, %v854_v40, %v855_v42  ;;  %v828_v47 = vunpack.c.l.bf16 %v817_v63  ;;  %v505_v21 = vunpack.c.h.bf16 %v1961_v9  ;;  %1472 = vmatprep.subr.bf16.mxu0 %v1677_v44  ;;  %1495 = vmatprep.subr.bf16.mxu1 %v1677_v44 }
  0xdf   :  { %v859_v58 = vsel %vm229_vm3, %v857_v46, %v2086_v24  ;;  %v1625_v3 = vpack.i.bf16 %v543_v45, %v2089_v52  ;;  %v2103_v13 = vunpack.c.l.bf16 %v820_v51  ;;  %v834_v62 = vunpack.c.l.bf16 %v2095_v34  ;;  %1473 = vmatpush3.bf16.msra.mxu0 %v1677_v44  ;;  %1503 = vmatpush3.bf16.msra.mxu1 %v1677_v44 }
  0xe0   :  { %v1600_v18 = vpack.i.bf16 %v859_v58, %v856_v57  ;;  %v866_v5 = vrot.slane %v828_v47, 2  ;;  %v510_v60 = vunpack.c.h.bf16 %v1971_v15  ;;  %v2421_v8 = vmul.bf16 %v1929_v53, %v1881_v29  ;;  %1474 = vmatprep.subr.bf16.mxu0 %v1678_v55  ;;  %1496 = vmatprep.subr.bf16.mxu1 %v1678_v55 }
  0xe1   :  { %1606 = vrot.lane.b32.xlu0 %v1605_v10, %s1779_s28  ;;  %1596 = vrot.lane.b32.xlu1 %v1595_v17, %s1786_s29  ;;  %v867_v19 = vrot.slane %v2103_v13, 2  ;;  %v869_v23 = vrot.slane %v834_v62, 2  ;;  %v537_v41 = vrot.slane %v505_v21, 2  ;;  %v499_v59 = vunpack.c.l.bf16 %v1953_v6 }
  0xe2   :  { %v511_v61 = vunpack.c.l.bf16 %v2421_v8  ;;  %v548_v30 = vrot.slane %v510_v60, 2  ;;  %v500_v50 = vunpack.c.h.bf16 %v1953_v6  ;;  %v504_v0 = vunpack.c.l.bf16 %v1961_v9  ;;  %v1679_v60 = vld [vmem:[#allocation7 + $0x18] sm:$0xff]  }
  0xe3   :  { %v868_v53 = vsel %vm229_vm3, %v866_v5, %v867_v19  ;;  %v870_v10 = vsel %vm229_vm3, %v855_v42, %v869_v23  ;;  %v533_v43 = vrot.slane %v499_v59, 2  ;;  %v694_v17 = vmul.bf16 %v1987_v22, %v1875_v26  ;;  %1475 = vmatpush3.bf16.msra.mxu0 %v1678_v55  ;;  %1504 = vmatpush3.bf16.msra.mxu1 %v1678_v55 }
  0xe4   :  { %v550_v63 = vrot.slane %v511_v61, 2  ;;  %v1610_v16 = vpack.i.bf16 %v870_v10, %v868_v53  ;;  %v549_v54 = vsel %vm229_vm3, %v537_v41, %v548_v30  ;;  %v534_v56 = vrot.slane %v504_v0, 2  ;;  %1476 = vmatprep.subr.bf16.mxu0 %v1679_v60  ;;  %1497 = vmatprep.subr.bf16.mxu1 %v1679_v60 }
  0xe5   :  { %1616 = vrot.lane.b32.xlu0 %v1615_v4, %s1786_s29  ;;  %1601 = vrot.lane.b32.xlu1 %v1600_v18, %s1779_s28  ;;  %v536_v40 = vrot.slane %v500_v50, 2  ;;  %v697_v42 = vmul.bf16 %v1987_v22, %v1885_v32  ;;  %v703_v46 = vunpack.c.l.bf16 %v694_v17  ;;  %v704_v52 = vunpack.c.h.bf16 %v694_v17 }
  0xe6   :  { %v551_v6 = vsel %vm229_vm3, %v540_v12, %v550_v63  ;;  %v535_v48 = vsel %vm229_vm3, %v533_v43, %v534_v56  ;;  %v508_v51 = vunpack.c.h.bf16 %v1966_v11  ;;  %v509_v57 = vunpack.c.l.bf16 %v1971_v15 }
  0xe7   :  { %v1635_v9 = vpack.i.bf16 %v551_v6, %v549_v54  ;;  %v538_v12 = vsel %vm229_vm3, %v536_v40, %v537_v41  ;;  %v708_v4 = vunpack.c.l.bf16 %v697_v42  ;;  %v709_v45 = vunpack.c.h.bf16 %v697_v42  ;;  %1477 = vmatpush3.bf16.msra.mxu0 %v1679_v60  ;;  %1505 = vmatpush3.bf16.msra.mxu1 %v1679_v60 }
  0xe8   :  { %v733_v47 = vrot.slane %v703_v46, 1  ;;  %v1620_v21 = vpack.i.bf16 %v538_v12, %v535_v48  ;;  %v736_v44 = vrot.slane %v704_v52, 1  ;;  %v544_v58 = vrot.slane %v508_v51, 2  ;;  %v1680_v46 = vld [vmem:[#allocation7 + $0x20] sm:$0xff]  }
  0xe9   :  { %v546_v62 = vrot.slane %v509_v57, 2  ;;  %1626 = vrot.lane.b32.xlu0 %v1625_v3, %s1786_s29  ;;  %1611 = vrot.lane.b32.xlu1 %v1610_v16, %s1779_s28  ;;  %v734_v11 = vrot.slane %v708_v4, 1  ;;  %v2134_v18 = vrot.slane %v709_v45, 1  ;;  %v696_v15 = vmul.bf16 %v1980_v14, %v1877_v27  ;;  %v1681_v57 = vld [vmem:[#allocation7 + $0x28] sm:$0xff]  }
  0xea   :  { %v699_v5 = vmul.bf16 %v1980_v14, %v1879_v28  ;;  %v545_v8 = vsel %vm229_vm3, %v2061_v2, %v544_v58  ;;  %v700_v3 = vmul.bf16 %v1987_v22, %v1897_v38  ;;  %v695_v23 = vmul.bf16 %v1987_v22, %v1883_v31  ;;  %1478 = vmatprep.subr.bf16.mxu0 %v1680_v46 }
  0xeb   :  { %v547_v61 = vsel %vm229_vm3, %v534_v56, %v546_v62  ;;  %v735_v41 = vsel %vm154_vm2, %v733_v47, %v734_v11  ;;  %v738_v27 = vsel %vm154_vm2, %v736_v44, %v2134_v18  ;;  %v707_v30 = vunpack.c.l.bf16 %v696_v15  ;;  %1498 = vmatprep.subr.bf16.mxu1 %v1680_v46  ;;  %1479 = vmatpush3.bf16.msra.mxu0 %v1680_v46 }
  0xec   :  { %v1630_v59 = vpack.i.bf16 %v547_v61, %v545_v8  ;;  %v1640_v28 = vpack.i.bf16 %v738_v27, %v735_v41  ;;  %v712_v63 = vunpack.c.l.bf16 %v699_v5  ;;  %v713_v2 = vunpack.c.l.bf16 %v700_v3  ;;  %1506 = vmatpush3.bf16.msra.mxu1 %v1680_v46  ;;  %1480 = vmatprep.subr.bf16.mxu0 %v1681_v57 }
  0xed   :  { %v698_v50 = vmul.bf16 %v1987_v22, %v1887_v33  ;;  %1636 = vrot.lane.b32.xlu0 %v1635_v9, %s1786_s29  ;;  %1621 = vrot.lane.b32.xlu1 %v1620_v21, %s1786_s29  ;;  %v745_v0 = vrot.slane %v707_v30, 1  ;;  %v705_v53 = vunpack.c.l.bf16 %v695_v23  ;;  %v706_v10 = vunpack.c.h.bf16 %v695_v23 }
  0xee   :  { %v701_v43 = vmul.bf16 %v1987_v22, %v1899_v39  ;;  %v746_v17 = vrot.slane %v712_v63, 1  ;;  %v748_v55 = vrot.slane %v713_v2, 1  ;;  %v702_v40 = vmul.bf16 %v1980_v14, %v1881_v29  ;;  %1499 = vmatprep.subr.bf16.mxu1 %v1681_v57 }
  0xef   :  { %v710_v16 = vunpack.c.l.bf16 %v698_v50  ;;  %v711_v54 = vunpack.c.h.bf16 %v698_v50  ;;  %v739_v6 = vrot.slane %v705_v53, 1  ;;  %v742_v56 = vrot.slane %v706_v10, 1  ;;  %1481 = vmatpush3.bf16.msra.mxu0 %v1681_v57  ;;  %v1683_v53 = vld [vmem:[#allocation7 + $0x38] sm:$0xff]  }
  0xf0   :  { %v716_v42 = vunpack.c.h.bf16 %v701_v43  ;;  %v747_v9 = vsel %vm154_vm2, %v745_v0, %v746_v17  ;;  %v749_v48 = vsel %vm154_vm2, %v734_v11, %v748_v55  ;;  %v717_v12 = vunpack.c.l.bf16 %v702_v40  ;;  %1507 = vmatpush3.bf16.msra.mxu1 %v1681_v57 }
  0xf1   :  { %v740_v52 = vrot.slane %v710_v16, 1  ;;  %v743_v51 = vrot.slane %v711_v54, 1  ;;  %1641 = vrot.lane.b32.xlu0 %v1640_v28, %s1779_s28  ;;  %1631 = vrot.lane.b32.xlu1 %v1630_v59, %s1786_s29  ;;  %v1650_v22 = vpack.i.bf16 %v749_v48, %v747_v9  ;;  %v714_v45 = vunpack.c.h.bf16 %v700_v3 }
  0xf2   :  { %v754_v4 = vrot.slane %v716_v42, 1  ;;  %v715_v21 = vunpack.c.l.bf16 %v701_v43  ;;  %v822_v44 = vmul.bf16 %v1994_v7, %v1899_v39  ;;  %v756_v11 = vrot.slane %v717_v12, 1 }
  0xf3   :  { %v741_v47 = vsel %vm154_vm2, %v739_v6, %v740_v52  ;;  %v744_v14 = vsel %vm154_vm2, %v742_v56, %v743_v51  ;;  %v750_v15 = vrot.slane %v714_v45, 1  ;;  %v835_v60 = vunpack.c.h.bf16 %v2095_v34 }
  0xf4   :  { %v1645_v58 = vpack.i.bf16 %v744_v14, %v741_v47  ;;  %v755_v62 = vsel %vm154_vm2, %v743_v51, %v754_v4  ;;  %v752_v5 = vrot.slane %v715_v21, 1  ;;  %v836_v8 = vunpack.c.l.bf16 %v822_v44 }
  0xf5   :  { %v823_v61 = vmul.bf16 %v1989_v20, %v1881_v29  ;;  %1651 = vrot.lane.b32.xlu0 %v1650_v22, %s1779_s28  ;;  %v757_v7 = vsel %vm154_vm2, %v746_v17, %v756_v11  ;;  %v751_v3 = vsel %vm154_vm2, %v2134_v18, %v750_v15  ;;  %v837_v23 = vunpack.c.h.bf16 %v822_v44  ;;  %v1682_v20 = vld [vmem:[#allocation7 + $0x30] sm:$0xff]  }
  0xf6   :  { %1646 = vrot.lane.b32.xlu1 %v1645_v58, %s1779_s28  ;;  %v124_v41 = vmul.bf16 %v1893_v36, %v1875_v26  ;;  %v1660_v34 = vpack.i.bf16 %v757_v7, %v755_v62  ;;  %v753_v27 = vsel %vm154_vm2, %v740_v52, %v752_v5  ;;  %v871_v59 = vrot.slane %v835_v60, 2  ;;  %1482 = vmatprep.subr.bf16.mxu0 %v1682_v20 }
  0xf7   :  { %v873_v29 = vrot.slane %v836_v8, 2  ;;  %v1655_v30 = vpack.i.bf16 %v753_v27, %v751_v3  ;;  %v838_v28 = vunpack.c.l.bf16 %v823_v61  ;;  %v875_v63 = vrot.slane %v837_v23, 2  ;;  %1500 = vmatprep.subr.bf16.mxu1 %v1682_v20  ;;  %1483 = vmatpush3.bf16.msra.mxu0 %v1682_v20 }
  0xf8   :  { %v126_v2 = vmul.bf16 %v1893_v36, %v1885_v32  ;;  %v872_v18 = vsel %vm229_vm3, %v2086_v24, %v871_v59  ;;  %v130_v0 = vunpack.c.l.bf16 %v124_v41  ;;  %v93_v24 = vmul.bf16 %v1891_v35, %v1875_v26  ;;  %1508 = vmatpush3.bf16.msra.mxu1 %v1682_v20  ;;  %1484 = vmatprep.subr.bf16.mxu0 %v1683_v53 }
  0xf9   :  { %v874_v50 = vsel %vm229_vm3, %v2045_v49, %v873_v29  ;;  %1661 = vrot.lane.b32.xlu0 %v1660_v34, %s1779_s28  ;;  %v876_v43 = vsel %vm229_vm3, %v2047_v25, %v875_v63  ;;  %v877_v17 = vrot.slane %v838_v28, 2  ;;  %v199_v49 = vmul.bf16 %v1895_v37, %v1875_v26  ;;  %1501 = vmatprep.subr.bf16.mxu1 %v1683_v53 }
  0xfa   :  { %1656 = vrot.lane.b32.xlu1 %v1655_v30, %s1779_s28  ;;  %v1665_v10 = vpack.i.bf16 %v874_v50, %v872_v18  ;;  %v134_v55 = vunpack.c.l.bf16 %v126_v2  ;;  %v155_v16 = vrot.slane %v130_v0, 1  ;;  %v201_v54 = vmul.bf16 %v1895_v37, %v1885_v32 }
  0xfb   :  { %v878_v6 = vsel %vm229_vm3, %v867_v19, %v877_v17  ;;  %v125_v25 = vmul.bf16 %v1893_v36, %v1883_v31  ;;  %v127_v40 = vmul.bf16 %v1893_v36, %v1887_v33  ;;  %v97_v46 = vunpack.c.l.bf16 %v93_v24  ;;  %1485 = vmatpush3.bf16.msra.mxu0 %v1683_v53 }
  0xfc   :  { %v2197_v56 = vrot.slane %v134_v55, 1  ;;  %v1670_v42 = vpack.i.bf16 %v878_v6, %v876_v43  ;;  %v205_v26 = vunpack.c.l.bf16 %v199_v49  ;;  %v209_v9 = vunpack.c.l.bf16 %v201_v54  ;;  %1509 = vmatpush3.bf16.msra.mxu1 %v1683_v53 }
  0xfd   :  { %1666 = vrot.lane.b32.xlu0 %v1665_v10, %s1779_s28  ;;  %v131_v19 = vunpack.c.h.bf16 %v124_v41  ;;  %v132_v48 = vunpack.c.l.bf16 %v125_v25  ;;  %v133_v52 = vunpack.c.h.bf16 %v125_v25  ;;  %v135_v12 = vunpack.c.h.bf16 %v126_v2 }
  0xfe   :  { %v157_v13 = vsel %vm154_vm2, %v155_v16, %v2197_v56  ;;  %1671 = vrot.lane.b32.xlu1 %v1670_v42, %s1779_s28  ;;  %v230_v57 = vrot.slane %v205_v26, 2  ;;  %v2207_v22 = vrot.slane %v209_v9, 2  ;;  %v136_v4 = vunpack.c.l.bf16 %v127_v40 }
  0xff   :  { %v183_v51 = vadd.f32 %v157_v13, %v97_v46  ;;  %v137_v45 = vunpack.c.h.bf16 %v127_v40  ;;  %v158_v47 = vrot.slane %v131_v19, 1  ;;  %v161_v14 = vrot.slane %v132_v48, 1 }
 0x100   :  { %v232_v21 = vsel %vm229_vm3, %v230_v57, %v2207_v22  ;;  %v159_v44 = vrot.slane %v135_v12, 1  ;;  %v164_v58 = vrot.slane %v133_v52, 1  ;;  %v94_v62 = vmul.bf16 %v1891_v35, %v1883_v31 }
 0x101   :  { %v2213_v11 = vadd.f32 %v232_v21, %v183_v51  ;;  %v162_v15 = vrot.slane %v136_v4, 1  ;;  %v165_v5 = vrot.slane %v137_v45, 1  ;;  %v98_v60 = vunpack.c.h.bf16 %v93_v24 }
 0x102   :  { %v160_v8 = vsel %vm154_vm2, %v158_v47, %v159_v44  ;;  %v99_v61 = vunpack.c.l.bf16 %v94_v62  ;;  %v100_v7 = vunpack.c.h.bf16 %v94_v62  ;;  %v200_v3 = vmul.bf16 %v1895_v37, %v1883_v31 }
 0x103   :  { %v163_v23 = vsel %vm154_vm2, %v161_v14, %v162_v15  ;;  %v166_v41 = vsel %vm154_vm2, %v164_v58, %v165_v5  ;;  %v184_v34 = vadd.f32 %v160_v8, %v98_v60  ;;  %v202_v27 = vmul.bf16 %v1895_v37, %v1887_v33 }
 0x104   :  { %v185_v59 = vadd.f32 %v163_v23, %v99_v61  ;;  %v186_v29 = vadd.f32 %v166_v41, %v100_v7  ;;  %v206_v20 = vunpack.c.h.bf16 %v199_v49  ;;  %v207_v30 = vunpack.c.l.bf16 %v200_v3 }
 0x105   :  { %v208_v28 = vunpack.c.h.bf16 %v200_v3  ;;  %v210_v63 = vunpack.c.h.bf16 %v201_v54  ;;  %v211_v2 = vunpack.c.l.bf16 %v202_v27  ;;  %v212_v18 = vunpack.c.h.bf16 %v202_v27 }
 0x106   :  { %v233_v50 = vrot.slane %v206_v20, 2  ;;  %v236_v0 = vrot.slane %v207_v30, 2  ;;  %v129_v31 = vmul.bf16 %v1893_v36, %v1899_v39  ;;  %v96_v53 = vmul.bf16 %v1891_v35, %v1887_v33 }
 0x107   :  { %v234_v10 = vrot.slane %v210_v63, 2  ;;  %v237_v43 = vrot.slane %v211_v2, 2  ;;  %v239_v17 = vrot.slane %v208_v28, 2  ;;  %v240_v55 = vrot.slane %v212_v18, 2 }
 0x108   :  { %v141_v16 = vunpack.c.h.bf16 %v129_v31  ;;  %v104_v24 = vunpack.c.h.bf16 %v96_v53  ;;  %v204_v49 = vmul.bf16 %v1895_v37, %v1899_v39  ;;  %v128_v54 = vmul.bf16 %v1893_v36, %v1897_v38 }
 0x109   :  { %v235_v6 = vsel %vm229_vm3, %v233_v50, %v234_v10  ;;  %v238_v25 = vsel %vm229_vm3, %v236_v0, %v237_v43  ;;  %v241_v40 = vsel %vm229_vm3, %v239_v17, %v240_v55  ;;  %v140_v42 = vunpack.c.l.bf16 %v129_v31 }
 0x10a   :  { %v2233_v33 = vadd.f32 %v235_v6, %v184_v34  ;;  %v2235_v46 = vadd.f32 %v238_v25, %v185_v59  ;;  %v2237_v26 = vadd.f32 %v241_v40, %v186_v29  ;;  %v173_v9 = vrot.slane %v141_v16, 1 }
 0x10b   :  { %v216_v13 = vunpack.c.h.bf16 %v204_v49  ;;  %v138_v19 = vunpack.c.l.bf16 %v128_v54  ;;  %v139_v39 = vunpack.c.h.bf16 %v128_v54  ;;  %v171_v48 = vrot.slane %v140_v42, 1 }
 0x10c   :  { %v174_v36 = vsel %vm154_vm2, %v165_v5, %v173_v9  ;;  %v95_v52 = vmul.bf16 %v1891_v35, %v1885_v32  ;;  %v103_v51 = vunpack.c.l.bf16 %v96_v53  ;;  %v203_v57 = vmul.bf16 %v1895_v37, %v1897_v38 }
 0x10d   :  { %v190_v12 = vadd.f32 %v174_v36, %v104_v24  ;;  %v248_v4 = vrot.slane %v216_v13, 2  ;;  %v167_v45 = vrot.slane %v138_v19, 1  ;;  %v169_v47 = vrot.slane %v139_v39, 1 }
 0x10e   :  { %v172_v14 = vsel %vm154_vm2, %v162_v15, %v171_v48  ;;  %v101_v21 = vunpack.c.l.bf16 %v95_v52  ;;  %v102_v58 = vunpack.c.h.bf16 %v95_v52  ;;  %v213_v62 = vunpack.c.l.bf16 %v203_v57 }
 0x10f   :  { %v249_v60 = vsel %vm229_vm3, %v240_v55, %v248_v4  ;;  %v168_v5 = vsel %vm154_vm2, %v2197_v56, %v167_v45  ;;  %v170_v32 = vsel %vm154_vm2, %v159_v44, %v169_v47  ;;  %v189_v35 = vadd.f32 %v172_v14, %v103_v51 }
 0x110   :  { %v2249_v8 = vadd.f32 %v249_v60, %v190_v12  ;;  %v187_v37 = vadd.f32 %v168_v5, %v101_v21  ;;  %v188_v38 = vadd.f32 %v170_v32, %v102_v58  ;;  %v214_v61 = vunpack.c.h.bf16 %v203_v57 }
 0x111   :  { %v215_v7 = vunpack.c.l.bf16 %v204_v49  ;;  %v242_v3 = vrot.slane %v213_v62, 2  ;;  %v1787_v18 = vmov 1983009808   ;;  %v1788_v31 = vmov 1966171168  }
 0x112   :  { %v244_v23 = vrot.slane %v214_v61, 2  ;;  %v936_v50 = vunpack.c.l.s4 %v1787_v18  ;;  %v1012_v53 = vunpack.c.l.s4 %v1788_v31 }
 0x113   :  { %v243_v15 = vsel %vm229_vm3, %v2207_v22, %v242_v3  ;;  %v246_v41 = vrot.slane %v215_v7, 2 }
 0x114   :  { %v245_v34 = vsel %vm229_vm3, %v234_v10, %v244_v23  ;;  %v2254_v27 = vadd.f32 %v243_v15, %v187_v37  ;;  %v937_v10 = vunpack.c.0.s8 %v936_v50 }
 0x115   :  { %v247_v56 = vsel %vm229_vm3, %v237_v43, %v246_v41  ;;  %v2257_v44 = vadd.f32 %v245_v34, %v188_v38  ;;  %v1013_v43 = vunpack.c.0.s8 %v1012_v53 }
 0x116   :  { %v2259_v59 = vadd.f32 %v247_v56, %v189_v35  ;;  %v2262_v16 = vsub.s32 %v937_v10, %v1865_v1 }
 0x117   :  { %v2269_v42 = vsub.s32 %v1013_v43, %v1865_v1 }
 0x137   :  { %v1532_v29 = vpop.permute.xlu0 %1531  ;;  %v1527_v20 = vpop.permute.xlu1 %1526 }
 0x138   :  { %v1534_v24 = vunpack.i.h.bf16 %v1532_v29  ;;  %v1533_v49 = vunpack.i.l.bf16 %v1532_v29  ;;  %v1529_v25 = vunpack.i.h.bf16 %v1527_v20  ;;  %v1528_v40 = vunpack.i.l.bf16 %v1527_v20 }
 0x13a   :  { %v2272_v57 = vsel %vm606_vm1, %v1533_v49, %v1534_v24  ;;  %v2275_v21 = vsel %vm606_vm1, %v1529_v25, %v1533_v49  ;;  %v2278_v5 = vsel %vm606_vm1, %v1528_v40, %v1529_v25 }
 0x13b   :  { %v1542_v30 = vpop.permute.xlu0 %1541  ;;  %v1537_v28 = vpop.permute.xlu1 %1536 }
 0x13c   :  { %v1544_v9 = vunpack.i.h.bf16 %v1542_v30  ;;  %v1543_v13 = vunpack.i.l.bf16 %v1542_v30  ;;  %v1539_v19 = vunpack.i.h.bf16 %v1537_v28  ;;  %v1538_v39 = vunpack.i.l.bf16 %v1537_v28 }
 0x13e   :  { %v2281_v32 = vsel %vm606_vm1, %v1543_v13, %v1544_v9  ;;  %v2284_v35 = vsel %vm606_vm1, %v1539_v19, %v1543_v13  ;;  %v2287_v37 = vsel %vm606_vm1, %v1534_v24, %v1538_v39 }
 0x13f   :  { %v1552_v63 = vpop.permute.xlu0 %1551  ;;  %v1547_v2 = vpop.permute.xlu1 %1546 }
 0x140   :  { %v1554_v48 = vunpack.i.h.bf16 %v1552_v63  ;;  %v1553_v36 = vunpack.i.l.bf16 %v1552_v63  ;;  %v1549_v52 = vunpack.i.h.bf16 %v1547_v2  ;;  %v1548_v51 = vunpack.i.l.bf16 %v1547_v2 }
 0x142   :  { %v330_v38 = vsel %vm329_vm4, %v1553_v36, %v1554_v48  ;;  %v2291_v61 = vsel %vm606_vm1, %v1544_v9, %v1548_v51  ;;  %v2294_v7 = vsel %vm606_vm1, %v1548_v51, %v1549_v52 }
 0x143   :  { %v1562_v22 = vpop.permute.xlu0 %1561  ;;  %v1557_v0 = vpop.permute.xlu1 %1556 }
 0x144   :  { %v1563_v12 = vunpack.i.l.bf16 %v1562_v22  ;;  %v1559_v4 = vunpack.i.h.bf16 %v1557_v0  ;;  %v1558_v45 = vunpack.i.l.bf16 %v1557_v0  ;;  %v1564_v3 = vunpack.i.h.bf16 %v1562_v22 }
 0x145   :  { %v346_v0 = vadd.f32 %v330_v38, %v2213_v11 }
 0x146   :  { %v333_v23 = vsel %vm329_vm4, %v1559_v4, %v1563_v12  ;;  %v331_v15 = vsel %vm329_vm4, %v1554_v48, %v1558_v45  ;;  %v332_v41 = vsel %vm329_vm4, %v1558_v45, %v1559_v4 }
 0x147   :  { %v1572_v17 = vpop.permute.xlu0 %1571  ;;  %v1567_v55 = vpop.permute.xlu1 %1566  ;;  %v347_v31 = vadd.f32 %v331_v15, %v2233_v33  ;;  %v348_v53 = vadd.f32 %v332_v41, %v2235_v46  ;;  %v349_v10 = vadd.f32 %v333_v23, %v2237_v26 }
 0x148   :  { %v1574_v58 = vunpack.i.h.bf16 %v1572_v17  ;;  %v1573_v62 = vunpack.i.l.bf16 %v1572_v17  ;;  %v1568_v60 = vunpack.i.l.bf16 %v1567_v55  ;;  %v1569_v34 = vunpack.i.h.bf16 %v1567_v55 }
 0x14a   :  { %v337_v20 = vsel %vm329_vm4, %v1573_v62, %v1574_v58  ;;  %v334_v30 = vsel %vm329_vm4, %v1564_v3, %v1568_v60  ;;  %v336_v17 = vsel %vm329_vm4, %v1569_v34, %v1573_v62  ;;  %v335_v55 = vsel %vm329_vm4, %v1568_v60, %v1569_v34 }
 0x14b   :  { %v2264_v54 = vpop.permute.xlu0 %1581  ;;  %v2266_v6 = vpop.permute.xlu1 %1576  ;;  %v350_v25 = vadd.f32 %v334_v30, %v2254_v27  ;;  %v352_v4 = vadd.f32 %v336_v17, %v2259_v59 }
 0x14c   :  { %v1584_v28 = vunpack.i.h.bf16 %v2264_v54  ;;  %v1583_v63 = vunpack.i.l.bf16 %v2264_v54  ;;  %v1579_v2 = vunpack.i.h.bf16 %v2266_v6  ;;  %v1578_v18 = vunpack.i.l.bf16 %v2266_v6 }
 0x14d   :  { %v353_v6 = vadd.f32 %v337_v20, %v2249_v8  ;;  %v351_v8 = vadd.f32 %v335_v55, %v2257_v44 }
 0x14e   :  { %v453_v33 = vsel %vm329_vm4, %v1583_v63, %v1584_v28  ;;  %v452_v46 = vsel %vm329_vm4, %v1579_v2, %v1583_v63  ;;  %v451_v26 = vsel %vm329_vm4, %v1578_v18, %v1579_v2 }
 0x14f   :  { %v1592_v47 = vpop.permute.xlu0 %1591  ;;  %v1587_v14 = vpop.permute.xlu1 %1586  ;;  %v469_v45 = vadd.f32 %v453_v33, %v348_v53  ;;  %v467_v58 = vadd.f32 %v451_v26, %v346_v0  ;;  %v468_v62 = vadd.f32 %v452_v46, %v347_v31 }
 0x150   :  { %v1594_v50 = vunpack.i.h.bf16 %v1592_v47  ;;  %v1593_v22 = vunpack.i.l.bf16 %v1592_v47  ;;  %v1589_v43 = vunpack.i.h.bf16 %v1587_v14  ;;  %v1588_v24 = vunpack.i.l.bf16 %v1587_v14 }
 0x152   :  { %v456_v9 = vsel %vm329_vm4, %v1593_v22, %v1594_v50  ;;  %v455_v27 = vsel %vm329_vm4, %v1589_v43, %v1593_v22  ;;  %v454_v36 = vsel %vm329_vm4, %v1584_v28, %v1588_v24 }
 0x153   :  { %v2299_v56 = vpop.permute.xlu0 %1606  ;;  %v1597_v29 = vpop.permute.xlu1 %1596  ;;  %v472_v60 = vadd.f32 %v456_v9, %v351_v8  ;;  %v470_v44 = vadd.f32 %v454_v36, %v349_v10  ;;  %v471_v3 = vadd.f32 %v455_v27, %v350_v25 }
 0x154   :  { %v1599_v40 = vunpack.i.h.bf16 %v1597_v29  ;;  %v1598_v11 = vunpack.i.l.bf16 %v1597_v29  ;;  %v1609_v13 = vunpack.i.h.bf16 %v2299_v56  ;;  %v1608_v19 = vunpack.i.l.bf16 %v2299_v56 }
 0x156   :  { %v457_v47 = vsel %vm329_vm4, %v1594_v50, %v1598_v11  ;;  %v458_v14 = vsel %vm329_vm4, %v1598_v11, %v1599_v40  ;;  %v2330_v23 = vsel %vm606_vm1, %v1608_v19, %v1609_v13 }
 0x157   :  { %v1617_v49 = vpop.permute.xlu0 %1616  ;;  %v1602_v54 = vpop.permute.xlu1 %1601  ;;  %v473_v41 = vadd.f32 %v457_v47, %v352_v4  ;;  %v474_v34 = vadd.f32 %v458_v14, %v353_v6 }
 0x158   :  { %v1619_v39 = vunpack.i.h.bf16 %v1617_v49  ;;  %v1618_v48 = vunpack.i.l.bf16 %v1617_v49  ;;  %v1604_v52 = vunpack.i.h.bf16 %v1602_v54  ;;  %v1603_v38 = vunpack.i.l.bf16 %v1602_v54 }
 0x15a   :  { %v572_v15 = vsel %vm329_vm4, %v1618_v48, %v1619_v39  ;;  %v900_v59 = vsel %vm606_vm1, %v1604_v52, %v1608_v19  ;;  %v899_v50 = vsel %vm606_vm1, %v1603_v38, %v1604_v52 }
 0x15b   :  { %v1627_v51 = vpop.permute.xlu0 %1626  ;;  %v2324_v12 = vpop.permute.xlu1 %1611  ;;  %v588_v18 = vadd.f32 %v572_v15, %v467_v58 }
 0x15c   :  { %v1628_v56 = vunpack.i.l.bf16 %v1627_v51  ;;  %v1629_v22 = vunpack.i.h.bf16 %v1627_v51  ;;  %v1613_v0 = vunpack.i.l.bf16 %v2324_v12  ;;  %v1614_v55 = vunpack.i.h.bf16 %v2324_v12 }
 0x15d   :  { %v673_v9 = vadd.f32 %v2278_v5, %v588_v18 }
 0x15e   :  { %v902_v46 = vsel %vm606_vm1, %v1609_v13, %v1613_v0 }
 0x15f   :  { %v1637_v29 = vpop.permute.xlu0 %1636  ;;  %v1622_v20 = vpop.permute.xlu1 %1621 }
 0x160   :  { %v1639_v30 = vunpack.i.h.bf16 %v1637_v29  ;;  %v1638_v28 = vunpack.i.l.bf16 %v1637_v29  ;;  %v1624_v63 = vunpack.i.h.bf16 %v1622_v20  ;;  %v1623_v2 = vunpack.i.l.bf16 %v1622_v20 }
 0x162   :  { %v579_v31 = vsel %vm329_vm4, %v1638_v28, %v1639_v30  ;;  %v575_v53 = vsel %vm329_vm4, %v1624_v63, %v1628_v56  ;;  %v573_v10 = vsel %vm329_vm4, %v1619_v39, %v1623_v2  ;;  %v574_v17 = vsel %vm329_vm4, %v1623_v2, %v1624_v63 }
 0x163   :  { %v589_v43 = vadd.f32 %v573_v10, %v468_v62  ;;  %v590_v24 = vadd.f32 %v574_v17, %v469_v45  ;;  %v591_v49 = vadd.f32 %v575_v53, %v470_v44  ;;  %v1642_v54 = vpop.permute.xlu0 %1641  ;;  %v1632_v6 = vpop.permute.xlu1 %1631  ;;  %v595_v26 = vadd.f32 %v579_v31, %v474_v34 }
 0x164   :  { %v1644_v25 = vunpack.i.h.bf16 %v1642_v54  ;;  %v1643_v40 = vunpack.i.l.bf16 %v1642_v54  ;;  %v1634_v11 = vunpack.i.h.bf16 %v1632_v6  ;;  %v1633_v33 = vunpack.i.l.bf16 %v1632_v6 }
 0x165   :  { %v674_v19 = vadd.f32 %v2275_v21, %v589_v43  ;;  %v675_v13 = vadd.f32 %v2272_v57, %v590_v24  ;;  %v676_v21 = vadd.f32 %v2287_v37, %v591_v49  ;;  %v680_v44 = vadd.f32 %v2294_v7, %v595_v26 }
 0x166   :  { %v778_v39 = vsel %vm606_vm1, %v1643_v40, %v1644_v25  ;;  %v578_v48 = vsel %vm329_vm4, %v1634_v11, %v1638_v28  ;;  %v576_v8 = vsel %vm329_vm4, %v1629_v22, %v1633_v33  ;;  %v577_v27 = vsel %vm329_vm4, %v1633_v33, %v1634_v11 }
 0x167   :  { %v794_v36 = vadd.f32 %v778_v39, %v673_v9  ;;  %v592_v52 = vadd.f32 %v576_v8, %v471_v3  ;;  %v593_v51 = vadd.f32 %v577_v27, %v472_v60  ;;  %v1652_v4 = vpop.permute.xlu0 %1651  ;;  %v594_v62 = vadd.f32 %v578_v48, %v473_v41 }
 0x168   :  { %v1647_v45 = vpop.permute.xlu1 %1646  ;;  %v1653_v47 = vunpack.i.l.bf16 %v1652_v4  ;;  %v1654_v38 = vunpack.i.h.bf16 %v1652_v4 }
 0x169   :  { %v1649_v14 = vunpack.i.h.bf16 %v1647_v45  ;;  %v1648_v5 = vunpack.i.l.bf16 %v1647_v45  ;;  %v915_v58 = vadd.f32 %v899_v50, %v794_v36  ;;  %v677_v3 = vadd.f32 %v2284_v35, %v592_v52 }
 0x16a   :  { %v678_v37 = vadd.f32 %v2281_v32, %v593_v51  ;;  %v679_v22 = vadd.f32 %v2291_v61, %v594_v62 }
 0x16b   :  { %v781_v15 = vsel %vm606_vm1, %v1649_v14, %v1653_v47  ;;  %v779_v34 = vsel %vm606_vm1, %v1644_v25, %v1648_v5  ;;  %v780_v60 = vsel %vm606_vm1, %v1648_v5, %v1649_v14  ;;  %v1662_v20 = vpop.permute.xlu0 %1661 }
 0x16c   :  { %v795_v56 = vadd.f32 %v779_v34, %v674_v19  ;;  %v796_v57 = vadd.f32 %v780_v60, %v675_v13  ;;  %v797_v29 = vadd.f32 %v781_v15, %v676_v21  ;;  %v1657_v30 = vpop.permute.xlu1 %1656  ;;  %v1664_v28 = vunpack.i.h.bf16 %v1662_v20 }
 0x16d   :  { %v1663_v41 = vunpack.i.l.bf16 %v1662_v20  ;;  %v1659_v63 = vunpack.i.h.bf16 %v1657_v30  ;;  %v1658_v2 = vunpack.i.l.bf16 %v1657_v30 }
 0x16e   :  { %v916_v7 = vadd.f32 %v900_v59, %v795_v56  ;;  %v917_v18 = vadd.f32 %v2330_v23, %v796_v57  ;;  %v918_v50 = vadd.f32 %v902_v46, %v797_v29 }
 0x16f   :  { %v785_v0 = vsel %vm606_vm1, %v1663_v41, %v1664_v28  ;;  %v784_v35 = vsel %vm606_vm1, %v1659_v63, %v1663_v41  ;;  %v782_v31 = vsel %vm606_vm1, %v1654_v38, %v1658_v2  ;;  %v783_v53 = vsel %vm606_vm1, %v1658_v2, %v1659_v63  ;;  %v1667_v24 = vpop.permute.xlu0 %1666 }
 0x170   :  { %v932_v10 = vcombine.high %v915_v58, %v916_v7  ;;  %v934_v32 = vcombine.high %v917_v18, %v918_v50  ;;  %v801_v17 = vadd.f32 %v785_v0, %v680_v44  ;;  %v798_v43 = vadd.f32 %v782_v31, %v677_v3  ;;  %v1672_v6 = vpop.permute.xlu1 %1671 }
 0x171   :  { %v799_v49 = vadd.f32 %v783_v53, %v678_v37  ;;  %v800_v59 = vadd.f32 %v784_v35, %v679_v22  ;;  %v1669_v54 = vunpack.i.h.bf16 %v1667_v24  ;;  %v1668_v23 = vunpack.i.l.bf16 %v1667_v24  ;;  %v1448_v22 = vld [vmem:[%s2414_s3] ss:$0 sm:$0xff]  ;;  %s1790_s3 = smov [#allocation8]  }
 0x172   :  { %v1674_v25 = vunpack.i.h.bf16 %v1672_v6  ;;  %v1673_v61 = vunpack.i.l.bf16 %v1672_v6  ;;  %v931_v40 = vcombine.low %v915_v58, %v916_v7  ;;  %v933_v11 = vcombine.low %v917_v18, %v918_v50  ;;  %v1449_v35 = vld [vmem:[%s2415_s4] ss:$0 sm:$0xff]  ;;  %s1415_s4 = sshll.u32 %s1790_s3, 4  ;;  %s1416_s4 = int_to_ptr.vmem [resolvable:$true] %s1415_s4 }
 0x173   :  { %v903_v33 = vsel %vm606_vm1, %v1614_v55, %v1668_v23  ;;  %v904_v46 = vsel %vm606_vm1, %v1668_v23, %v1669_v54  ;;  %v948_v26 = vrot.slane %v932_v10, %v2262_v16  ;;  %v962_v9 = vrot.slane %v934_v32, %v2262_v16  ;;  %s1750_s11 = scalar_lea.vmem %s1416_s4, 512  ;;  %p1755_p11 = scmp.lt.s32.totalorder %s1416_s4, %s1416_s4 }
 0x174   :  { %v919_v19 = vadd.f32 %v903_v33, %v798_v43  ;;  %v920_v39 = vadd.f32 %v904_v46, %v799_v49  ;;  %v905_v48 = vsel %vm606_vm1, %v1669_v54, %v1673_v61  ;;  %v906_v8 = vsel %vm606_vm1, %v1673_v61, %v1674_v25  ;;  %p1751_p10 = scmp.ne.s32.totalorder %s1416_s4, %s1750_s11  ;;  %p1756_p12 = scmp.lt.s32.totalorder %s1750_s11, %s1750_s11 }
 0x175   :  { %v921_v27 = vadd.f32 %v905_v48, %v800_v59  ;;  %v922_v36 = vadd.f32 %v906_v8, %v801_v17  ;;  %v941_v52 = vrot.slane %v931_v40, %v2262_v16  ;;  %v955_v12 = vrot.slane %v933_v11, %v2262_v16 }
 0x176   :  { %v968_v51 = vcombine.high %v919_v19, %v920_v39  ;;  %v965_v55 = vcombine.low %v948_v26, %v962_v9  ;;  %v966_v4 = vcombine.high %v948_v26, %v962_v9  ;;  %v967_v45 = vcombine.low %v919_v19, %v920_v39  ;;  %p1757_p13 = por %p1756_p12, %p1755_p11 }
 0x177   :  { %v970_v13 = vcombine.high %v921_v27, %v922_v36  ;;  %v963_v47 = vcombine.low %v941_v52, %v955_v12  ;;  %v964_v14 = vcombine.high %v941_v52, %v955_v12  ;;  %v969_v5 = vcombine.low %v921_v27, %v922_v36 }
 0x178   :  { %v1031_v21 = vrot.slane %v965_v55, %v2269_v42  ;;  %v1038_v58 = vrot.slane %v966_v4, %v2269_v42  ;;  %v977_v62 = vrot.slane %v967_v45, %v2262_v16  ;;  %v984_v38 = vrot.slane %v968_v51, %v2262_v16  ;;  %p1758_p0 = pnand %p1757_p13, %p1751_p10 }
 0x179   :  { %v1017_v44 = vrot.slane %v963_v47, %v2269_v42  ;;  %v1024_v15 = vrot.slane %v964_v14, %v2269_v42  ;;  %v991_v34 = vrot.slane %v969_v5, %v2262_v16  ;;  %v998_v60 = vrot.slane %v970_v13, %v2262_v16 }
 0x17a   :  { %v1068_v3 = vpack.c.bf16 %v1038_v58, %v1031_v21  ;;  %v1789_v18 = vmov 1935823168  }
 0x17b   :  { %v1067_v56 = vpack.c.bf16 %v1024_v15, %v1017_v44  ;;  %v999_v57 = vcombine.low %v977_v62, %v991_v34  ;;  %v1000_v29 = vcombine.high %v977_v62, %v991_v34  ;;  %v1001_v20 = vcombine.low %v984_v38, %v998_v60 }
 0x17c   :  { %v1002_v30 = vcombine.high %v984_v38, %v998_v60  ;;  %v1239_v50 = vunpack.c.l.s4 %v1789_v18 }
 0x17d   :  { %1486 = vmatprep.mubr.bf16.mxu0 %v1067_v56  ;;  %v1045_v37 = vrot.slane %v999_v57, %v2269_v42  ;;  %v1052_v28 = vrot.slane %v1000_v29, %v2269_v42  ;;  %v1059_v41 = vrot.slane %v1001_v20, %v2269_v42 }
 0x17e   :  { %1487 = vmatmul.mubr.bf16.vlgmr.msra.gmra.mrb[0].mxu0 %v1068_v3  ;;  %v1066_v63 = vrot.slane %v1002_v30, %v2269_v42  ;;  %v1240_v53 = vunpack.c.0.s8 %v1239_v50 }
 0x17f   :  { %v1069_v2 = vpack.c.bf16 %v1052_v28, %v1045_v37 }
 0x180   :  { %v1070_v7 = vpack.c.bf16 %v1066_v63, %v1059_v41  ;;  %v1243_v6 = vsub.s32 %v1240_v53, %v1865_v1 }
 0x181   :  { %1490 = vmatprep.mubr.bf16.mxu1 %v1069_v2 }
 0x182   :  { %1491 = vmatmul.mubr.bf16.vlgmr.msra.gmra.mrb[0].mxu1 %v1070_v7 }
 0x251   :  { %v1488_v0 = vpop.f32.mrb[0].mxu0 }
 0x252   :  { %v1209_v31 = vmul.f32 %v1488_v0, %v1448_v22  ;;  %v1169_v10 = vpop.f32.mrb[1].mxu0 }
 0x253   :  { %v1207_v32 = vmul.f32 %v1448_v22, %v1169_v10  ;;  %v1489_v42 = vpop.f32.mrb[2].mxu0 }
 0x254   :  { %v1224_v17 = vadd.f32 %v1449_v35, %v1209_v31  ;;  %v1210_v43 = vmul.f32 %v1489_v42, %v1448_v22  ;;  %v1172_v24 = vpop.f32.mrb[3].mxu0 }
 0x255   :  { %v1222_v49 = vadd.f32 %v1449_v35, %v1207_v32  ;;  %v1208_v59 = vmul.f32 %v1448_v22, %v1172_v24  ;;  %v1492_v54 = vpop.f32.mrb[0].mxu1 }
 0x256   :  { %v1232_v23 = vmax.f32 %v1224_v17, 0.0  ;;  %v1225_v25 = vadd.f32 %v1449_v35, %v1210_v43  ;;  %v1213_v61 = vmul.f32 %v1492_v54, %v1448_v22  ;;  %v1185_v40 = vpop.f32.mrb[1].mxu1 }
 0x257   :  { %v1230_v11 = vmax.f32 %v1222_v49, 0.0  ;;  %v1223_v33 = vadd.f32 %v1449_v35, %v1208_v59  ;;  %v1211_v46 = vmul.f32 %v1448_v22, %v1185_v40  ;;  %v1493_v26 = vpop.f32.mrb[2].mxu1 }
 0x258   :  { %v1233_v9 = vmax.f32 %v1225_v25, 0.0  ;;  %v1228_v19 = vadd.f32 %v1449_v35, %v1213_v61  ;;  %v1214_v39 = vmul.f32 %v1493_v26, %v1448_v22  ;;  %v1188_v48 = vpop.f32.mrb[3].mxu1  ;;  %v1258_v52 = vrot.slane %v1232_v23, %v1243_v6 }
 0x259   :  { %v1231_v8 = vmax.f32 %v1223_v33, 0.0  ;;  %v1226_v27 = vadd.f32 %v1449_v35, %v1211_v46  ;;  %v1212_v36 = vmul.f32 %v1448_v22, %v1188_v48  ;;  %v1244_v4 = vrot.slane %v1230_v11, %v1243_v6 }
 0x25a   :  { %v1265_v12 = vrot.slane %v1233_v9, %v1243_v6  ;;  %v1236_v51 = vmax.f32 %v1228_v19, 0.0  ;;  %v1229_v55 = vadd.f32 %v1449_v35, %v1214_v39 }
 0x25b   :  { %v1251_v1 = vrot.slane %v1231_v8, %v1243_v6  ;;  %v1227_v45 = vadd.f32 %v1449_v35, %v1212_v36  ;;  %v1234_v14 = vmax.f32 %v1226_v27, 0.0 }
 0x25c   :  { %v1304_v13 = vcombine.low %v1258_v52, %v1265_v12  ;;  %v1305_v47 = vcombine.high %v1258_v52, %v1265_v12  ;;  %v1237_v5 = vmax.f32 %v1229_v55, 0.0  ;;  %v1286_v15 = vrot.slane %v1236_v51, %v1243_v6 }
 0x25d   :  { %v1302_v21 = vcombine.low %v1244_v4, %v1251_v1  ;;  %v1303_v58 = vcombine.high %v1244_v4, %v1251_v1  ;;  %v1235_v62 = vmax.f32 %v1227_v45, 0.0  ;;  %v1272_v57 = vrot.slane %v1234_v14, %v1243_v6 }
 0x25e   :  { %v1326_v38 = vrot.slane %v1304_v13, %v2262_v16  ;;  %v1333_v44 = vrot.slane %v1305_v47, %v2262_v16  ;;  %v1293_v34 = vrot.slane %v1237_v5, %v1243_v6 }
 0x25f   :  { %v1312_v60 = vrot.slane %v1302_v21, %v2262_v16  ;;  %v1319_v3 = vrot.slane %v1303_v58, %v2262_v16  ;;  %v1279_v56 = vrot.slane %v1235_v62, %v1243_v6 }
 0x260   :  { %v1340_v29 = vcombine.low %v1286_v15, %v1293_v34  ;;  %v1341_v20 = vcombine.high %v1286_v15, %v1293_v34 }
 0x261   :  { %v1334_v30 = vcombine.low %v1312_v60, %v1326_v38  ;;  %v1335_v37 = vcombine.high %v1312_v60, %v1326_v38  ;;  %v1336_v28 = vcombine.low %v1319_v3, %v1333_v44  ;;  %v1337_v41 = vcombine.high %v1319_v3, %v1333_v44 }
 0x262   :  { %v1362_v63 = vrot.slane %v1340_v29, %v2262_v16  ;;  %v1369_v2 = vrot.slane %v1341_v20, %v2262_v16  ;;  %v1338_v7 = vcombine.low %v1272_v57, %v1279_v56  ;;  %v1339_v18 = vcombine.high %v1272_v57, %v1279_v56 }
 0x263   :  { %v1454_v50 = vpack.c.bf16 %v1335_v37, %v1334_v30  ;;  %v1455_v22 = vpack.c.bf16 %v1337_v41, %v1336_v28 }
 0x264   :  { %v1348_v0 = vrot.slane %v1338_v7, %v2262_v16  ;;  %v1355_v35 = vrot.slane %v1339_v18, %v2262_v16 }
 0x265   :  { %1406 = vst [vmem:[#allocation8] sm:$0xff] %v1454_v50  ;;  %1407 = vst [vmem:[#allocation8 + $0x8] sm:$0xff] %v1455_v22 }
 0x266   :  { %v1370_v31 = vcombine.low %v1348_v0, %v1362_v63  ;;  %v1371_v53 = vcombine.high %v1348_v0, %v1362_v63  ;;  %v1372_v10 = vcombine.low %v1355_v35, %v1369_v2  ;;  %v1373_v32 = vcombine.high %v1355_v35, %v1369_v2 }
 0x268   :  { %v1456_v42 = vpack.c.bf16 %v1371_v53, %v1370_v31  ;;  %v1457_v17 = vpack.c.bf16 %v1373_v32, %v1372_v10 }
 0x26a   :  { %1408 = vst [vmem:[#allocation8 + $0x10] sm:$0xff] %v1456_v42  ;;  %1409 = vst [vmem:[#allocation8 + $0x18] sm:$0xff] %v1457_v17 }
 0x26b   :  { %1761 = shalt.err (!%p1758_p0)
}
 0x26c   :  { %s1762_s14 = scalar_lea.hbm %s2416_s5, 512 }
 0x26d   :  { %p1763_p1 = scmp.ne.s32.totalorder %s2416_s5, %s1762_s14  ;;  %p1766_p2 = scmp.lt.u32.totalorder %s1762_s14, %s2416_s5 }
 0x26f   :  { %p1768_p3 = pnand %p1766_p2, %p1763_p1 }
 0x271   :  { %1771 = shalt.err (!%p1768_p3)
}
 0x272   :  { %s1791_s18 = smov 256   ;;  %s1792_s19 = smov 16  }
 0x273   :  { %1421 = dma.vmem_to_hbm [thread:$0]  %s1416_s4, 512, %s2416_s5, [#allocation4], %s1791_s18, %s1791_s18, %s1792_s19  }
 0x274   :  { %1776 = dma.done.wait [#allocation4], 512  }
 0x275   :  { %1777 = vsyncadd [#allocation4], 4294966784 }
 0x276   :  { %1425 = vsyncpa [#allocation3], 1 }
 0x277   :  { %1426 = vsyncpa [#allocation6], 1 }
 0x278   :  { %1427 = vsyncpa [#allocation4], 1 }

// kernel: light_fpn_forward.7
= control target key start
LH: loop header
LB: loop body
LE: loop exit
PB: predicated region body
PF: predicated region fallthrough
CT: control target
= control target key end

     0   :  { %10 = vsyncpa [#allocation3], 0  ;;  %s963_s0 = inlined_call_operand.vmem [shape: bf16[2,4,4,32], index: 0, kind: input, shape index: {}]   ;;  %s964_s1 = inlined_call_operand.vmem [shape: bf16[3,3,32], index: 1, kind: input, shape index: {}]   ;;  %s965_s2 = inlined_call_operand.vmem [shape: bf16[32,32], index: 2, kind: input, shape index: {}]   ;;  %s966_s3 = inlined_call_operand.vmem [shape: f32[1,32], index: 3, kind: input, shape index: {}]   ;;  %s967_s4 = inlined_call_operand.vmem [shape: f32[1,32], index: 4, kind: input, shape index: {}]   ;;  %s968_s5 = inlined_call_operand.hbm [shape: bf16[2,2,2,32], index: 5, kind: output, shape index: {}]  }
   0x1   :  { %12 = vsyncpa [#allocation3 + $0x1], 0  ;;  %s822_s18 = smov 0   ;;  %s824_s19 = smov 0  }
   0x2   :  { %s826_s20 = smov 0   ;;  %s828_s21 = smov 0  }
   0x3   :  { %s830_s22 = smov 0   ;;  %s832_s23 = smov 0  }
   0x4 LB: > { %s601_s24 = sadd.s32 4294967295, %s784_s23   ;;  %s602_s25 = sadd.s32 4294967294, %s784_s23   ;;  %s784_s23 = sphi %s832_s23, %s18_s23   ;;  %s780_s22 = sphi %s830_s22, %s975_s22   ;;  %s776_s21 = sphi %s828_s21, %s974_s21   ;;  %s772_s20 = sphi %s826_s20, %s973_s20   ;;  %s768_s19 = sphi %s824_s19, %s972_s19   ;;  %s764_s18 = sphi %s822_s18, %s971_s18  }
   0x5   : > { %s30_s26 = sadd.s32 1, %s780_s22  ;;  %s149_s27 = sadd.s32 1, %s772_s20 }
   0x6   : > { %p32_p0 = scmp.ge.s32.totalorder %s30_s26, 2  ;;  %p159_p1 = scmp.ne.s32.totalorder %s772_s20, %s768_s19 }
   0x7   : > { %p160_p2 = scmp.eq.s32.totalorder %s601_s24, 1  ;;  %p165_p3 = scmp.ne.s32.totalorder %s768_s19, %s764_s18 }
   0x8   : > { %s977_s26 = smov (%p32_p0, %s30_s26), 0  ;;  %p166_p5 = scmp.eq.s32.totalorder %s602_s25, 1 }
   0x9   : > { %p862_p4 = por %p160_p2, %p159_p1  ;;  %s144_s29 = ssub.s32 %s780_s22, %s977_s26 }
   0xa   : > { %p605_p6 = scmp.ge.s32.totalorder %s784_s23, 1  ;;  %p147_p7 = scmp.eq.s32.totalorder %s144_s29, 0 }
   0xb   : > { %p869_p8 = por %p166_p5, %p165_p3  ;;  %p204_p9 = scmp.lt.s32.totalorder %s784_s23, 3 }
   0xc   : > { %s875_s6 = scalar_select %p147_p7, %s772_s20, %s149_s27  }
   0xd   : > { %p205_p10 = pnand %p605_p6, %p204_p9 }
   0xe   : > { %v704_v0 = vld [vmem:[%s965_s2] sm:$0xff] (!%p205_p10)   ;;  %v252_v1 = vlaneseq (!%p205_p10)  ;;  %v786_v2 = vmov (!%p205_p10), 0.0   ;;  %v705_v3 = vld [vmem:[%s965_s2 + $0x8] sm:$0xff] (!%p205_p10)   ;;  %vm787_vm0 = vmmov (!%p205_p10), 0   ;;  %p232_p11 = scmp.lt.s32.totalorder (!%p205_p10), %s776_s21, 1  ;;  %vm433_vm1 = vcmask (!%p205_p10), 261120  }
   0xf   : > { %208 = sbr.rel (%p205_p10) target bundleno = 294 (0x126), region = 40  ;;  %636 = vmatprep.subr.bf16.mxu0 (!%p205_p10), %v786_v2  ;;  %640 = vmatprep.mubr.msk.bf16.mxu0 (!%p205_p10), %vm787_vm0, %v786_v2  ;;  %v246_v4 = vld [vmem:[%s964_s1] sm:$0x3] (!%p205_p10)  ;;  %v247_v5 = vld [vmem:[%s964_s1 + $0x2] sm:$0x3] (!%p205_p10)  ;;  %s229_s7 = sand.u32 (!%p205_p10), 1, %s768_s19  }
  0x10   : > { %637 = vmatpush3.bf16.msra.mxu0 (!%p205_p10), %v704_v0  ;;  %v890_v6 = vshrl.u32 (!%p205_p10), %v252_v1, 7  ;;  %v248_v7 = vld [vmem:[%s964_s1 + $0x4] sm:$0x3] (!%p205_p10)  ;;  %v250_v8 = vpack.i.b16 (!%p205_p10), %v246_v4, %v246_v4  ;;  %v262_v9 = vshrl.u32 (!%p205_p10), %v246_v4, 16  ;;  %v302_v10 = vpack.i.b16 (!%p205_p10), %v247_v5, %v247_v5  ;;  %s606_s12 = sshll.u32 (!%p205_p10), %s229_s7, 1  ;;  %s632_s13 = sshll.u32 (!%p205_p10), %s776_s21, 5 }
  0x11   : > { %638 = vmatprep.subr.bf16.mxu0 (!%p205_p10), %v786_v2  ;;  %v314_v11 = vshrl.u32 (!%p205_p10), %v247_v5, 16  ;;  %v354_v14 = vpack.i.b16 (!%p205_p10), %v248_v7, %v248_v7  ;;  %v366_v15 = vshrl.u32 (!%p205_p10), %v248_v7, 16  ;;  %s231_s14 = scalar_lea.vmem (!%p205_p10), [#allocation2], %s606_s12  ;;  %vm507_vm2 = vcmask (!%p205_p10), 253952   ;;  %s917_s25 = scalar_lea.sflag (!%p205_p10), [#allocation3], %s229_s7 }
  0x12   : > { %v254_v12 = vsub.s32 (!%p205_p10), 0, %v890_v6  ;;  %v285_v13 = vsub.s32 (!%p205_p10), 1, %v890_v6  ;;  %v263_v16 = vpack.i.b16 (!%p205_p10), %v262_v9, %v262_v9  ;;  %s526_s15 = sshll.u32 (!%p205_p10), %s231_s14, 4  ;;  %s789_s27 = smov (!%p205_p10), [#allocation2]   ;;  %s915_s15 = int_to_ptr.vmem [resolvable:$true] %s526_s15 }
  0x13   : > { %v315_v17 = vpack.i.b16 (!%p205_p10), %v314_v11, %v314_v11  ;;  %v367_v28 = vpack.i.b16 (!%p205_p10), %v366_v15, %v366_v15 }
  0x14   : > { %639 = vmatpush3.bf16.msra.mxu0 (!%p205_p10), %v705_v3  ;;  %v255_v18 = vrot.slane (!%p205_p10), %v250_v8, %v254_v12  ;;  %v286_v19 = vrot.slane (!%p205_p10), %v250_v8, %v285_v13  ;;  %v307_v20 = vrot.slane (!%p205_p10), %v302_v10, %v254_v12  ;;  %v268_v21 = vrot.slane (!%p205_p10), %v263_v16, %v254_v12 }
  0x15   : > { %v338_v22 = vrot.slane (!%p205_p10), %v302_v10, %v285_v13  ;;  %v320_v26 = vrot.slane (!%p205_p10), %v315_v17, %v254_v12  ;;  %v359_v27 = vrot.slane (!%p205_p10), %v354_v14, %v254_v12  ;;  %v390_v29 = vrot.slane (!%p205_p10), %v354_v14, %v285_v13 }
  0x16   : > { %s233_s17 = scalar_select %p232_p11, %s776_s21, 1  ;;  %v372_v8 = vrot.slane %v367_v28, %v254_v12  ;;  %v788_v14 = vmov 1983009808  }
  0x17   : > { %v409_v15 = vunpack.c.l.s4 %v788_v14  ;;  %s706_s21 = scalar_lea.vmem %s915_s15, 32 }
  0x18   : > { %s631_s24 = sshll.u32 %s233_s17, 3  ;;  %p707_p12 = scmp.ne.s32.totalorder %s915_s15, %s706_s21 }
  0x19   : > { %s236_s29 = scalar_lea.vmem %s963_s0, %s631_s24  ;;  %v410_v12 = vunpack.c.0.s8 %v409_v15  ;;  %s913_s24 = scalar_lea.hbm %s968_s5, %s632_s13 }
  0x1a   : > { %v242_v23 = vld [vmem:[%s236_s29] sm:$0x3]  ;;  %v243_v24 = vld [vmem:[%s236_s29 + $0x2] sm:$0x3]  ;;  %v244_v25 = vld [vmem:[%s236_s29 + $0x4] sm:$0x3]  ;;  %p708_p13 = pnand %p707_p12, %p862_p4 }
  0x1b   : > { %v256_v30 = vmul.bf16 %v255_v18, %v242_v23  ;;  %v257_v31 = vmul.bf16 %v255_v18, %v243_v24  ;;  %v269_v32 = vmul.bf16 %v268_v21, %v242_v23  ;;  %v270_v33 = vmul.bf16 %v268_v21, %v243_v24  ;;  %v245_v46 = vld [vmem:[%s236_s29 + $0x6] sm:$0x3]  ;;  %s710_s29 = sshll.u32 %s789_s27, 4  ;;  %s711_s29 = int_to_ptr.vmem [resolvable:$false] %s710_s29 }
  0x1c   : > { %v287_v34 = vmul.bf16 %v286_v19, %v242_v23  ;;  %v288_v35 = vmul.bf16 %v286_v19, %v243_v24  ;;  %v308_v36 = vmul.bf16 %v307_v20, %v243_v24  ;;  %v309_v37 = vmul.bf16 %v307_v20, %v244_v25  ;;  %p709_p0 = pneg %p708_p13  ;;  %s712_s8 = scalar_lea.vmem %s711_s29, 64 }
  0x1d   : > { %v258_v38 = vunpack.c.l.bf16 %v256_v30  ;;  %v259_v39 = vunpack.c.l.bf16 %v257_v31  ;;  %v271_v40 = vunpack.c.l.bf16 %v269_v32  ;;  %v272_v41 = vunpack.c.l.bf16 %v270_v33  ;;  %p713_p1 = scmp.lt.s32.totalorder %s915_s15, %s711_s29  ;;  %p714_p2 = scmp.lt.s32.totalorder %s712_s8, %s706_s21 }
  0x1e   : > { %v289_v42 = vunpack.c.l.bf16 %v287_v34  ;;  %v290_v43 = vunpack.c.l.bf16 %v288_v35  ;;  %v310_v44 = vunpack.c.l.bf16 %v308_v36  ;;  %v311_v45 = vunpack.c.l.bf16 %v309_v37 }
  0x1f   : > { %v609_v47 = vrot.slane %v271_v40, 9  ;;  %v610_v48 = vrot.slane %v272_v41, 9  ;;  %v321_v49 = vmul.bf16 %v320_v26, %v243_v24  ;;  %v322_v50 = vmul.bf16 %v320_v26, %v244_v25  ;;  %v624_v40 = vld [vmem:[%s966_s3] ss:$0 sm:$0xff]  ;;  %p715_p3 = por %p714_p2, %p713_p1 }
  0x20   : > { %v611_v51 = vrot.slane %v289_v42, 10  ;;  %v612_v52 = vrot.slane %v290_v43, 10  ;;  %v339_v53 = vmul.bf16 %v338_v22, %v243_v24  ;;  %v340_v54 = vmul.bf16 %v338_v22, %v244_v25  ;;  %v625_v42 = vld [vmem:[%s967_s4] ss:$0 sm:$0xff] }
  0x21   : > { %v281_v55 = vadd.f32 %v609_v47, %v258_v38  ;;  %v282_v56 = vadd.f32 %v610_v48, %v259_v39  ;;  %v323_v57 = vunpack.c.l.bf16 %v321_v49  ;;  %v324_v58 = vunpack.c.l.bf16 %v322_v50  ;;  %p716_p5 = pnand %p715_p3, %p709_p0 }
  0x22   : > { %v341_v59 = vunpack.c.l.bf16 %v339_v53  ;;  %v342_v60 = vunpack.c.l.bf16 %v340_v54  ;;  %v360_v61 = vmul.bf16 %v359_v27, %v244_v25  ;;  %v361_v62 = vmul.bf16 %v359_v27, %v245_v46 }
  0x23   : > { %v299_v63 = vadd.f32 %v611_v51, %v281_v55  ;;  %v300_v0 = vadd.f32 %v612_v52, %v282_v56  ;;  %v613_v1 = vrot.slane %v323_v57, 9  ;;  %v614_v2 = vrot.slane %v324_v58, 9 }
  0x24   : > { %v615_v3 = vrot.slane %v341_v59, 10  ;;  %v616_v4 = vrot.slane %v342_v60, 10  ;;  %v391_v9 = vmul.bf16 %v390_v29, %v244_v25  ;;  %v362_v10 = vunpack.c.l.bf16 %v360_v61 }
  0x25   : > { %v312_v5 = vadd.f32 %v310_v44, %v299_v63  ;;  %v313_v7 = vadd.f32 %v311_v45, %v300_v0  ;;  %v363_v11 = vunpack.c.l.bf16 %v361_v62  ;;  %v392_v13 = vmul.bf16 %v390_v29, %v245_v46 }
  0x26   : > { %v373_v18 = vmul.bf16 %v372_v8, %v244_v25  ;;  %v374_v19 = vmul.bf16 %v372_v8, %v245_v46  ;;  %v393_v20 = vunpack.c.l.bf16 %v391_v9  ;;  %v413_v25 = vsub.s32 %v410_v12, %v890_v6 }
  0x27   : > { %v333_v16 = vadd.f32 %v613_v1, %v312_v5  ;;  %v334_v17 = vadd.f32 %v614_v2, %v313_v7  ;;  %v394_v21 = vunpack.c.l.bf16 %v392_v13 }
  0x28   : > { %v375_v24 = vunpack.c.l.bf16 %v373_v18  ;;  %v376_v26 = vunpack.c.l.bf16 %v374_v19  ;;  %v619_v27 = vrot.slane %v393_v20, 10 }
  0x29   : > { %v351_v22 = vadd.f32 %v615_v3, %v333_v16  ;;  %v352_v23 = vadd.f32 %v616_v4, %v334_v17  ;;  %v620_v30 = vrot.slane %v394_v21, 10 }
  0x2a   : > { %v617_v32 = vrot.slane %v375_v24, 9  ;;  %v618_v29 = vrot.slane %v376_v26, 9 }
  0x2b   : > { %v364_v28 = vadd.f32 %v362_v10, %v351_v22  ;;  %v365_v31 = vadd.f32 %v363_v11, %v352_v23 }
  0x2d   : > { %v385_v33 = vadd.f32 %v617_v32, %v364_v28  ;;  %v386_v34 = vadd.f32 %v618_v29, %v365_v31 }
  0x2f   : > { %v403_v35 = vadd.f32 %v619_v27, %v385_v33  ;;  %v404_v36 = vadd.f32 %v620_v30, %v386_v34 }
  0x31   : > { %v407_v37 = vcombine.low %v403_v35, %v404_v36 }
  0x33   : > { %v414_v38 = vrot.slane %v407_v37, %v413_v25 }
  0x35   : > { %v416_v39 = vpack.c.bf16 %v414_v38, %v414_v38 }
  0x37   : > { %641 = vmatmul.mubr.msk.bf16.vlgmr.msra.gmra.mrb[0].mxu0 %vm433_vm1, %v416_v39 }
 0x10a   : > { %v471_v41 = vpop.f32.mrb[0].mxu0 }
 0x10b   : > { %v484_v43 = vmul.f32 %v624_v40, %v471_v41  ;;  %v642_v44 = vpop.f32.mrb[1].mxu0 }
 0x10c   : > { %v474_v6 = vpop.f32.mrb[2].mxu0 }
 0x10d   : > { %v492_v45 = vadd.f32 %v625_v42, %v484_v43  ;;  %v643_v46 = vpop.f32.mrb[3].mxu0 }
 0x10f   : > { %v493_v47 = vmax.f32 %v492_v45, 0.0 }
 0x111   : > { %v501_v48 = vrot.slane %v493_v47, %v413_v25 }
 0x113   : > { %v502_v49 = vcombine.high %v501_v48, %v501_v48  ;;  %v505_v50 = vpack.c.bf16 %v501_v48, %v501_v48 }
 0x115   : > { %v506_v51 = vpack.c.bf16 %v502_v49, %v502_v49  ;;  %508 = vst.msk [vmem:[%s231_s14] sm:$0x1] %vm507_vm2, %v505_v50 }
 0x117   : > { %509 = vst.msk [vmem:[%s231_s14 + $0x1] sm:$0x1] %vm507_vm2, %v506_v51 }
 0x118   : > { %719 = shalt.err (!%p716_p5)
}
 0x119   : > { %s720_s7 = scalar_lea.hbm %s913_s24, 32  ;;  %s724_s11 = scalar_lea.hbm %s968_s5, 64 }
 0x11a   : > { %p721_p6 = scmp.ne.s32.totalorder %s913_s24, %s720_s7  ;;  %p725_p10 = scmp.lt.u32.totalorder %s913_s24, %s968_s5 }
 0x11b   : > { %p726_p11 = scmp.lt.u32.totalorder %s724_s11, %s720_s7  ;;  %p728_p13 = scmp.lt.u32.totalorder %s720_s7, %s913_s24 }
 0x11c   : > { %p722_p7 = pnand %p721_p6, %p862_p4 }
 0x11d   : > { %p727_p12 = por %p726_p11, %p725_p10 }
 0x11e   : > { %p723_p9 = pneg %p722_p7 }
 0x11f   : > { %p729_p0 = por %p728_p13, %p727_p12 }
 0x121   : > { %p730_p1 = pnand %p729_p0, %p723_p9 }
 0x123   : > { %733 = shalt.err (!%p730_p1)
}
 0x124   : > { %s790_s14 = smov 16   ;;  %s791_s16 = smov 1  }
 0x125   : > { %644 = dma.vmem_to_hbm [thread:$0]  (%p862_p4), %s915_s15, 32, %s913_s24, %s917_s25, %s790_s14, %s790_s14, %s791_s16  }
 0x126 PF: > { %p650_p2 = scmp.ge.s32.totalorder %s784_s23, 2  ;;  %s541_s17 = sand.u32 1, %s764_s18  }
 0x127   : > { %s542_s21 = scalar_lea.sflag [#allocation3], %s541_s17 }
 0x128   : > { %p647_p3 = pnand %p650_p2, %p869_p8 }
 0x12a   : > { %759 = dma.done.wait (!%p647_p3), %s542_s21, 32  }
 0x12b   : > { %761 = vsyncadd (!%p647_p3), %s542_s21, 4294967264  ;;  %s18_s23 = sadd.s32 1, %s784_s23   ;;  %s971_s18 = smov %s768_s19 }
 0x12c   : > { %p15_p5 = scmp.ge.s32.totalorder %s18_s23, 4   ;;  %s972_s19 = smov %s772_s20 }
 0x12d   : > { %s973_s20 = smov %s875_s6  ;;  %s974_s21 = smov %s780_s22 }
 0x12e   : > { %s975_s22 = smov %s977_s26  ;;  %17 = sbr.rel (!%p15_p5) target bundleno = 4 (0x4), region = 76 }
 0x135   :  { %547 = vsyncpa [#allocation3], 1 }
 0x136   :  { %549 = vsyncpa [#allocation3 + $0x1], 1 }

// kernel: light_fpn_forward.4
= control target key start
LH: loop header
LB: loop body
LE: loop exit
PB: predicated region body
PF: predicated region fallthrough
CT: control target
= control target key end

     0   :  { %s795_s18 = smov 0   ;;  %s797_s19 = smov 0   ;;  %s929_s0 = inlined_call_operand.vmem [shape: bf16[2,6,6,32], index: 0, kind: input, shape index: {}]   ;;  %s930_s1 = inlined_call_operand.vmem [shape: bf16[3,3,32], index: 1, kind: input, shape index: {}]   ;;  %s931_s2 = inlined_call_operand.vmem [shape: bf16[32,32], index: 2, kind: input, shape index: {}]   ;;  %s932_s3 = inlined_call_operand.vmem [shape: f32[1,32], index: 3, kind: input, shape index: {}]   ;;  %s933_s4 = inlined_call_operand.vmem [shape: f32[1,32], index: 4, kind: input, shape index: {}]   ;;  %s934_s5 = inlined_call_operand.vmem [shape: bf16[2,4,4,32], index: 5, kind: output, shape index: {}]  }
   0x1   :  { %s799_s20 = smov 0  }
   0x2 LB: > { %s27_s21 = sadd.s32 1, %s757_s19  ;;  %p687_p0 = scmp.ge.s32.totalorder %s761_s20, 1  ;;  %s761_s20 = sphi %s799_s20, %s15_s20   ;;  %s757_s19 = sphi %s797_s19, %s936_s19   ;;  %s753_s18 = sphi %s795_s18, %s935_s18  }
   0x3   : > { %p29_p1 = scmp.ge.s32.totalorder %s27_s21, 2  ;;  %p201_p2 = scmp.lt.s32.totalorder %s761_s20, 3 }
   0x5   : > { %s938_s21 = smov (%p29_p1, %s27_s21), 0  ;;  %p202_p3 = pnand %p687_p0, %p201_p2 }
   0x6   : > { %v737_v0 = vld [vmem:[%s931_s2] sm:$0xff] (!%p202_p3)   ;;  %v264_v1 = vlaneseq (!%p202_p3)  ;;  %v763_v2 = vmov (!%p202_p3), 0.0   ;;  %v738_v3 = vld [vmem:[%s931_s2 + $0x8] sm:$0xff] (!%p202_p3)   ;;  %vm764_vm0 = vmmov (!%p202_p3), 0   ;;  %p233_p4 = scmp.lt.s32.totalorder (!%p202_p3), %s753_s18, 1  ;;  %vm520_vm1 = vcmask (!%p202_p3), 261120  }
   0x7   : > { %205 = sbr.rel (%p202_p3) target bundleno = 283 (0x11b), region = 40  ;;  %702 = vmatprep.subr.bf16.mxu0 (!%p202_p3), %v763_v2  ;;  %706 = vmatprep.mubr.msk.bf16.mxu0 (!%p202_p3), %vm764_vm0, %v763_v2  ;;  %v258_v4 = vld [vmem:[%s930_s1] sm:$0x3] (!%p202_p3)  ;;  %v259_v5 = vld [vmem:[%s930_s1 + $0x2] sm:$0x3] (!%p202_p3)  ;;  %vm595_vm2 = vcmask (!%p202_p3), 254976  }
   0x8   : > { %703 = vmatpush3.bf16.msra.mxu0 (!%p202_p3), %v737_v0  ;;  %v265_v6 = vshrl.u32 (!%p202_p3), %v264_v1, 7  ;;  %v260_v7 = vld [vmem:[%s930_s1 + $0x4] sm:$0x3] (!%p202_p3)  ;;  %v262_v8 = vpack.i.b16 (!%p202_p3), %v258_v4, %v258_v4  ;;  %v280_v9 = vshrl.u32 (!%p202_p3), %v258_v4, 16  ;;  %v358_v10 = vshrl.u32 (!%p202_p3), %v259_v5, 16 }
   0x9   : > { %704 = vmatprep.subr.bf16.mxu0 (!%p202_p3), %v763_v2  ;;  %v340_v13 = vpack.i.b16 (!%p202_p3), %v259_v5, %v259_v5  ;;  %v436_v14 = vshrl.u32 (!%p202_p3), %v260_v7, 16  ;;  %v418_v17 = vpack.i.b16 (!%p202_p3), %v260_v7, %v260_v7 }
   0xa   : > { %v266_v11 = vsub.s32 (!%p202_p3), 0, %v265_v6  ;;  %v313_v12 = vsub.s32 (!%p202_p3), 1, %v265_v6  ;;  %v281_v15 = vpack.i.b16 (!%p202_p3), %v280_v9, %v280_v9  ;;  %v359_v16 = vpack.i.b16 (!%p202_p3), %v358_v10, %v358_v10 }
   0xb   : > { %v437_v20 = vpack.i.b16 (!%p202_p3), %v436_v14, %v436_v14 }
   0xc   : > { %705 = vmatpush3.bf16.msra.mxu0 (!%p202_p3), %v738_v3  ;;  %v267_v18 = vrot.slane (!%p202_p3), %v262_v8, %v266_v11  ;;  %v286_v19 = vrot.slane (!%p202_p3), %v281_v15, %v266_v11  ;;  %v314_v21 = vrot.slane (!%p202_p3), %v262_v8, %v313_v12  ;;  %v345_v22 = vrot.slane (!%p202_p3), %v340_v13, %v266_v11 }
   0xd   : > { %v836_v23 = vrot.slane (!%p202_p3), %v340_v13, %v313_v12  ;;  %v845_v27 = vrot.slane (!%p202_p3), %v359_v16, %v266_v11  ;;  %v847_v28 = vrot.slane (!%p202_p3), %v418_v17, %v266_v11  ;;  %v849_v29 = vrot.slane (!%p202_p3), %v437_v20, %v266_v11 }
   0xe   : > { %s940_s18 = smov (!%p233_p4, %s753_s18), 1  ;;  %v851_v30 = vrot.slane %v418_v17, %v313_v12 }
   0xf   : > { %s710_s7 = smul.u32 24, %s940_s18  ;;  %s698_s15 = sshll.u32 %s940_s18, 3 }
  0x10   : > { %s246_s22 = scalar_lea.vmem %s934_s5, %s698_s15 }
  0x11   : > { %s834_s10 = scalar_lea.vmem %s929_s0, %s710_s7 }
  0x12   : > { %v252_v24 = vld [vmem:[%s834_s10] sm:$0x7]  ;;  %v840_v25 = vld [vmem:[%s834_s10 + $0x4] sm:$0x7]  ;;  %v843_v26 = vld [vmem:[%s834_s10 + $0x8] sm:$0x7] }
  0x13   : > { %v854_v31 = vld [vmem:[%s834_s10 + $0xc] sm:$0x7]  ;;  %v268_v32 = vmul.bf16 %v267_v18, %v252_v24  ;;  %v269_v33 = vmul.bf16 %v267_v18, %v840_v25  ;;  %v270_v34 = vmul.bf16 %v267_v18, %v843_v26  ;;  %v287_v35 = vmul.bf16 %v286_v19, %v252_v24  ;;  %v866_v56 = vld [vmem:[%s834_s10 + $0x10] sm:$0x7] }
  0x14   : > { %v271_v36 = vmul.bf16 %v267_v18, %v854_v31  ;;  %v288_v37 = vmul.bf16 %v286_v19, %v840_v25  ;;  %v289_v38 = vmul.bf16 %v286_v19, %v843_v26  ;;  %v290_v39 = vmul.bf16 %v286_v19, %v854_v31 }
  0x15   : > { %v272_v40 = vunpack.c.l.bf16 %v268_v32  ;;  %v273_v41 = vunpack.c.l.bf16 %v269_v33  ;;  %v274_v42 = vunpack.c.l.bf16 %v270_v34  ;;  %v291_v43 = vunpack.c.l.bf16 %v287_v35 }
  0x16   : > { %v275_v44 = vunpack.c.l.bf16 %v271_v36  ;;  %v292_v45 = vunpack.c.l.bf16 %v288_v37  ;;  %v293_v46 = vunpack.c.l.bf16 %v289_v38  ;;  %v294_v47 = vunpack.c.l.bf16 %v290_v39 }
  0x17   : > { %v299_v48 = vrot.slane %v291_v43, 1  ;;  %v315_v49 = vmul.bf16 %v314_v21, %v252_v24  ;;  %v316_v50 = vmul.bf16 %v314_v21, %v840_v25  ;;  %v317_v51 = vmul.bf16 %v314_v21, %v843_v26 }
  0x18   : > { %v300_v52 = vrot.slane %v292_v45, 1  ;;  %v301_v53 = vrot.slane %v293_v46, 1  ;;  %v302_v54 = vrot.slane %v294_v47, 1  ;;  %v318_v55 = vmul.bf16 %v314_v21, %v854_v31 }
  0x19   : > { %v307_v57 = vadd.f32 %v299_v48, %v272_v40  ;;  %v319_v58 = vunpack.c.l.bf16 %v315_v49  ;;  %v320_v59 = vunpack.c.l.bf16 %v316_v50  ;;  %v321_v60 = vunpack.c.l.bf16 %v317_v51  ;;  %v257_v48 = vld [vmem:[%s834_s10 + $0x14] sm:$0x7] }
  0x1a   : > { %v308_v61 = vadd.f32 %v300_v52, %v273_v41  ;;  %v309_v62 = vadd.f32 %v301_v53, %v274_v42  ;;  %v310_v63 = vadd.f32 %v302_v54, %v275_v44  ;;  %v322_v0 = vunpack.c.l.bf16 %v318_v55 }
  0x1b   : > { %v327_v1 = vrot.slane %v319_v58, 2  ;;  %v328_v2 = vrot.slane %v320_v59, 2  ;;  %v329_v3 = vrot.slane %v321_v60, 2  ;;  %v346_v4 = vmul.bf16 %v345_v22, %v840_v25 }
  0x1c   : > { %v330_v5 = vrot.slane %v322_v0, 2  ;;  %v347_v6 = vmul.bf16 %v345_v22, %v843_v26  ;;  %v348_v7 = vmul.bf16 %v345_v22, %v854_v31  ;;  %v349_v8 = vmul.bf16 %v345_v22, %v866_v56 }
  0x1d   : > { %v335_v9 = vadd.f32 %v327_v1, %v307_v57  ;;  %v336_v10 = vadd.f32 %v328_v2, %v308_v61  ;;  %v337_v11 = vadd.f32 %v329_v3, %v309_v62  ;;  %v350_v12 = vunpack.c.l.bf16 %v346_v4 }
  0x1e   : > { %v338_v13 = vadd.f32 %v330_v5, %v310_v63  ;;  %v351_v14 = vunpack.c.l.bf16 %v347_v6  ;;  %v352_v15 = vunpack.c.l.bf16 %v348_v7  ;;  %v353_v16 = vunpack.c.l.bf16 %v349_v8 }
  0x1f   : > { %v354_v17 = vadd.f32 %v350_v12, %v335_v9  ;;  %v365_v18 = vmul.bf16 %v845_v27, %v840_v25  ;;  %v366_v19 = vmul.bf16 %v845_v27, %v843_v26  ;;  %v367_v20 = vmul.bf16 %v845_v27, %v854_v31 }
  0x20   : > { %v355_v21 = vadd.f32 %v351_v14, %v336_v10  ;;  %v356_v22 = vadd.f32 %v352_v15, %v337_v11  ;;  %v357_v24 = vadd.f32 %v353_v16, %v338_v13  ;;  %v368_v32 = vmul.bf16 %v845_v27, %v866_v56 }
  0x21   : > { %v369_v33 = vunpack.c.l.bf16 %v365_v18  ;;  %v370_v34 = vunpack.c.l.bf16 %v366_v19  ;;  %v371_v35 = vunpack.c.l.bf16 %v367_v20  ;;  %v393_v36 = vmul.bf16 %v836_v23, %v840_v25 }
  0x22   : > { %v372_v37 = vunpack.c.l.bf16 %v368_v32  ;;  %v394_v38 = vmul.bf16 %v836_v23, %v843_v26  ;;  %v395_v39 = vmul.bf16 %v836_v23, %v854_v31  ;;  %v396_v40 = vmul.bf16 %v836_v23, %v866_v56 }
  0x23   : > { %v377_v41 = vrot.slane %v369_v33, 1  ;;  %v378_v42 = vrot.slane %v370_v34, 1  ;;  %v379_v27 = vrot.slane %v371_v35, 1  ;;  %v397_v43 = vunpack.c.l.bf16 %v393_v36 }
  0x24   : > { %v380_v44 = vrot.slane %v372_v37, 1  ;;  %v398_v45 = vunpack.c.l.bf16 %v394_v38  ;;  %v399_v46 = vunpack.c.l.bf16 %v395_v39  ;;  %v400_v47 = vunpack.c.l.bf16 %v396_v40 }
  0x25   : > { %v385_v25 = vadd.f32 %v377_v41, %v354_v17  ;;  %v386_v49 = vadd.f32 %v378_v42, %v355_v21  ;;  %v387_v50 = vadd.f32 %v379_v27, %v356_v22  ;;  %v405_v51 = vrot.slane %v397_v43, 2 }
  0x26   : > { %v388_v52 = vadd.f32 %v380_v44, %v357_v24  ;;  %v406_v53 = vrot.slane %v398_v45, 2  ;;  %v407_v54 = vrot.slane %v399_v46, 2  ;;  %v408_v55 = vrot.slane %v400_v47, 2  ;;  %v694_v44 = vld [vmem:[%s932_s3] ss:$0 sm:$0xff] }
  0x27   : > { %v413_v57 = vadd.f32 %v405_v51, %v385_v25  ;;  %v424_v23 = vmul.bf16 %v847_v28, %v843_v26  ;;  %v425_v58 = vmul.bf16 %v847_v28, %v854_v31  ;;  %v426_v59 = vmul.bf16 %v847_v28, %v866_v56  ;;  %v695_v46 = vld [vmem:[%s933_s4] ss:$0 sm:$0xff] }
  0x28   : > { %v414_v60 = vadd.f32 %v406_v53, %v386_v49  ;;  %v415_v61 = vadd.f32 %v407_v54, %v387_v50  ;;  %v416_v62 = vadd.f32 %v408_v55, %v388_v52  ;;  %v427_v63 = vmul.bf16 %v847_v28, %v257_v48 }
  0x29   : > { %v428_v0 = vunpack.c.l.bf16 %v424_v23  ;;  %v429_v1 = vunpack.c.l.bf16 %v425_v58  ;;  %v430_v2 = vunpack.c.l.bf16 %v426_v59  ;;  %v443_v3 = vmul.bf16 %v849_v29, %v843_v26 }
  0x2a   : > { %v431_v4 = vunpack.c.l.bf16 %v427_v63  ;;  %v444_v5 = vmul.bf16 %v849_v29, %v854_v31  ;;  %v445_v6 = vmul.bf16 %v849_v29, %v866_v56  ;;  %v446_v7 = vmul.bf16 %v849_v29, %v257_v48 }
  0x2b   : > { %v432_v8 = vadd.f32 %v428_v0, %v413_v57  ;;  %v433_v9 = vadd.f32 %v429_v1, %v414_v60  ;;  %v434_v10 = vadd.f32 %v430_v2, %v415_v61  ;;  %v447_v11 = vunpack.c.l.bf16 %v443_v3 }
  0x2c   : > { %v435_v28 = vadd.f32 %v431_v4, %v416_v62  ;;  %v448_v12 = vunpack.c.l.bf16 %v444_v5  ;;  %v449_v13 = vunpack.c.l.bf16 %v445_v6  ;;  %v450_v14 = vunpack.c.l.bf16 %v446_v7 }
  0x2d   : > { %v455_v15 = vrot.slane %v447_v11, 1  ;;  %v471_v16 = vmul.bf16 %v851_v30, %v843_v26  ;;  %v472_v17 = vmul.bf16 %v851_v30, %v854_v31  ;;  %v473_v18 = vmul.bf16 %v851_v30, %v866_v56 }
  0x2e   : > { %v456_v19 = vrot.slane %v448_v12, 1  ;;  %v457_v29 = vrot.slane %v449_v13, 1  ;;  %v458_v20 = vrot.slane %v450_v14, 1  ;;  %v474_v21 = vmul.bf16 %v851_v30, %v257_v48 }
  0x2f   : > { %v463_v22 = vadd.f32 %v455_v15, %v432_v8  ;;  %v475_v24 = vunpack.c.l.bf16 %v471_v16  ;;  %v476_v32 = vunpack.c.l.bf16 %v472_v17  ;;  %v477_v33 = vunpack.c.l.bf16 %v473_v18 }
  0x30   : > { %v464_v34 = vadd.f32 %v456_v19, %v433_v9  ;;  %v465_v35 = vadd.f32 %v457_v29, %v434_v10  ;;  %v466_v36 = vadd.f32 %v458_v20, %v435_v28  ;;  %v478_v37 = vunpack.c.l.bf16 %v474_v21 }
  0x31   : > { %v483_v26 = vrot.slane %v475_v24, 2  ;;  %v484_v38 = vrot.slane %v476_v32, 2  ;;  %v485_v39 = vrot.slane %v477_v33, 2 }
  0x32   : > { %v486_v31 = vrot.slane %v478_v37, 2 }
  0x33   : > { %v491_v40 = vadd.f32 %v483_v26, %v463_v22  ;;  %v492_v56 = vadd.f32 %v484_v38, %v464_v34  ;;  %v493_v41 = vadd.f32 %v485_v39, %v465_v35 }
  0x34   : > { %v494_v42 = vadd.f32 %v486_v31, %v466_v36 }
  0x35   : > { %v499_v27 = vcombine.low %v491_v40, %v492_v56 }
  0x36   : > { %v500_v43 = vcombine.low %v493_v41, %v494_v42 }
  0x38   : > { %v503_v30 = vpack.c.bf16 %v500_v43, %v499_v27 }
  0x3a   : > { %707 = vmatmul.mubr.msk.bf16.vlgmr.msra.gmra.mrb[0].mxu0 %vm520_vm1, %v503_v30 }
 0x10d   : > { %v558_v45 = vpop.f32.mrb[0].mxu0 }
 0x10e   : > { %v572_v47 = vmul.f32 %v694_v44, %v558_v45  ;;  %v708_v48 = vpop.f32.mrb[1].mxu0 }
 0x10f   : > { %v561_v25 = vpop.f32.mrb[2].mxu0 }
 0x110   : > { %v581_v49 = vadd.f32 %v695_v46, %v572_v47  ;;  %v573_v50 = vmul.f32 %v694_v44, %v561_v25  ;;  %v709_v51 = vpop.f32.mrb[3].mxu0 }
 0x112   : > { %v583_v52 = vmax.f32 %v581_v49, 0.0  ;;  %v582_v53 = vadd.f32 %v695_v46, %v573_v50 }
 0x114   : > { %v587_v54 = vcombine.high %v583_v52, %v583_v52  ;;  %v591_v55 = vpack.c.bf16 %v583_v52, %v583_v52  ;;  %v584_v57 = vmax.f32 %v582_v53, 0.0 }
 0x116   : > { %v592_v23 = vpack.c.bf16 %v587_v54, %v587_v54  ;;  %596 = vst.msk [vmem:[%s246_s22] sm:$0x3] %vm595_vm2, %v591_v55  ;;  %v588_v58 = vcombine.high %v584_v57, %v584_v57  ;;  %v593_v59 = vpack.c.bf16 %v584_v57, %v584_v57 }
 0x118   : > { %597 = vst.msk [vmem:[%s246_s22 + $0x2] sm:$0x3] %vm595_vm2, %v592_v23  ;;  %v594_v60 = vpack.c.bf16 %v588_v58, %v588_v58  ;;  %598 = vst.msk [vmem:[%s246_s22 + $0x4] sm:$0x3] %vm595_vm2, %v593_v59 }
 0x11a   : > { %599 = vst.msk [vmem:[%s246_s22 + $0x6] sm:$0x3] %vm595_vm2, %v594_v60 }
 0x11b PF: > { %s15_s20 = sadd.s32 1, %s761_s20   ;;  %s935_s18 = smov %s757_s19 }
 0x11c   : > { %p12_p5 = scmp.ge.s32.totalorder %s15_s20, 4   ;;  %s936_s19 = smov %s938_s21 }
 0x11e   :  { %14 = sbr.rel (!%p12_p5) target bundleno = 2 (0x2), region = 71 }

// kernel: light_fpn_forward.5
= control target key start
LH: loop header
LB: loop body
LE: loop exit
PB: predicated region body
PF: predicated region fallthrough
CT: control target
= control target key end

     0   :  { %s1320_s18 = smov 0   ;;  %s1322_s19 = smov 0   ;;  %s1790_s0 = inlined_call_operand.vmem [shape: bf16[2,10,10,32], index: 0, kind: input, shape index: {}]   ;;  %s1791_s1 = inlined_call_operand.vmem [shape: bf16[3,3,32], index: 1, kind: input, shape index: {}]   ;;  %s1792_s2 = inlined_call_operand.vmem [shape: bf16[32,32], index: 2, kind: input, shape index: {}]   ;;  %s1793_s3 = inlined_call_operand.vmem [shape: f32[1,32], index: 3, kind: input, shape index: {}]   ;;  %s1794_s4 = inlined_call_operand.vmem [shape: f32[1,32], index: 4, kind: input, shape index: {}]   ;;  %s1795_s5 = inlined_call_operand.vmem [shape: bf16[2,8,8,32], index: 5, kind: output, shape index: {}]  }
   0x1   :  { %s1324_s20 = smov 0  }
   0x2 LB: > { %s27_s21 = sadd.s32 1, %s1284_s19  ;;  %p1196_p0 = scmp.ge.s32.totalorder %s1288_s20, 1  ;;  %s1288_s20 = sphi %s1324_s20, %s15_s20   ;;  %s1284_s19 = sphi %s1322_s19, %s1797_s19   ;;  %s1280_s18 = sphi %s1320_s18, %s1796_s18  }
   0x3   : > { %p29_p1 = scmp.ge.s32.totalorder %s27_s21, 2  ;;  %p201_p2 = scmp.lt.s32.totalorder %s1288_s20, 3 }
   0x5   : > { %s1799_s21 = smov (%p29_p1, %s27_s21), 0  ;;  %p202_p3 = pnand %p1196_p0, %p201_p2 }
   0x6   : > { %v1264_v0 = vld [vmem:[%s1792_s2] sm:$0xff] (!%p202_p3)   ;;  %p233_p4 = scmp.lt.s32.totalorder (!%p202_p3), %s1280_s18, 1  ;;  %v279_v1 = vlaneseq (!%p202_p3)  ;;  %v1265_v2 = vld [vmem:[%s1792_s2 + $0x8] sm:$0xff] (!%p202_p3)   ;;  %vm366_vm0 = vcmask (!%p202_p3), 1046528   ;;  %vm463_vm1 = vcmask (!%p202_p3), 1045504   ;;  %vm976_vm2 = vcmask (!%p202_p3), 261120  }
   0x7   : > { %205 = sbr.rel (%p202_p3) target bundleno = 363 (0x16b), region = 40  ;;  %1223 = vmatprep.subr.bf16.mxu0 (!%p202_p3), %v1264_v0  ;;  %1235 = vmatprep.subr.bf16.mxu1 (!%p202_p3), %v1264_v0  ;;  %v273_v3 = vld [vmem:[%s1791_s1] sm:$0x3] (!%p202_p3)  ;;  %v274_v4 = vld [vmem:[%s1791_s1 + $0x2] sm:$0x3] (!%p202_p3)  ;;  %vm1100_vm3 = vcmask (!%p202_p3), 257024  }
   0x8   : > { %v280_v5 = vshrl.u32 (!%p202_p3), %v279_v1, 7  ;;  %1224 = vmatpush3.bf16.msra.mxu0 (!%p202_p3), %v1264_v0  ;;  %1237 = vmatpush3.bf16.msra.mxu1 (!%p202_p3), %v1264_v0  ;;  %v1355_v6 = vld [vmem:[%s1791_s1 + $0x4] sm:$0x3] (!%p202_p3)  ;;  %v277_v7 = vpack.i.b16 (!%p202_p3), %v273_v3, %v273_v3  ;;  %v307_v8 = vshrl.u32 (!%p202_p3), %v273_v3, 16  ;;  %v505_v9 = vpack.i.b16 (!%p202_p3), %v274_v4, %v274_v4 }
   0x9   : > { %1225 = vmatprep.subr.bf16.mxu0 (!%p202_p3), %v1265_v2  ;;  %1236 = vmatprep.subr.bf16.mxu1 (!%p202_p3), %v1265_v2  ;;  %v535_v12 = vshrl.u32 (!%p202_p3), %v274_v4, 16  ;;  %v1364_v13 = vpack.i.b16 (!%p202_p3), %v1355_v6, %v1355_v6  ;;  %v761_v24 = vshrl.u32 (!%p202_p3), %v1355_v6, 16 }
   0xa   : > { %v1358_v10 = vsub.s32 (!%p202_p3), 0, %v280_v5  ;;  %v1360_v11 = vsub.s32 (!%p202_p3), 1, %v280_v5  ;;  %v308_v14 = vpack.i.b16 (!%p202_p3), %v307_v8, %v307_v8 }
   0xb   : > { %v536_v18 = vpack.i.b16 (!%p202_p3), %v535_v12, %v535_v12 }
   0xc   : > { %v1372_v15 = vrot.slane (!%p202_p3), %v277_v7, %v1358_v10  ;;  %v410_v16 = vrot.slane (!%p202_p3), %v277_v7, %v1360_v11  ;;  %v1376_v17 = vrot.slane (!%p202_p3), %v505_v9, %v1358_v10  ;;  %1226 = vmatpush3.bf16.msra.mxu0 (!%p202_p3), %v1265_v2  ;;  %1238 = vmatpush3.bf16.msra.mxu1 (!%p202_p3), %v1265_v2 }
   0xd   : > { %v313_v21 = vrot.slane (!%p202_p3), %v308_v14, %v1358_v10  ;;  %v637_v22 = vrot.slane (!%p202_p3), %v505_v9, %v1360_v11  ;;  %v1386_v23 = vrot.slane (!%p202_p3), %v1364_v13, %v1358_v10  ;;  %v541_v36 = vrot.slane (!%p202_p3), %v536_v18, %v1358_v10 }
   0xe   : > { %s1801_s18 = smov (!%p233_p4, %s1280_s18), 1  ;;  %v1399_v30 = vcombine.low %v410_v16, %v410_v16  ;;  %v863_v6 = vrot.slane %v1364_v13, %v1360_v11 }
   0xf   : > { %s1239_s7 = smul.u32 80, %s1801_s18  ;;  %v1409_v34 = vcombine.low %v313_v21, %v313_v21  ;;  %v1414_v37 = vcombine.low %v637_v22, %v637_v22  ;;  %v1439_v16 = vcombine.low %v541_v36, %v541_v36  ;;  %s1216_s15 = sshll.u32 %s1801_s18, 5 }
  0x10   : > { %s1763_s22 = scalar_lea.vmem %s1795_s5, %s1216_s15 }
  0x11   : > { %s1369_s10 = scalar_lea.vmem %s1790_s0, %s1239_s7 }
  0x12   : > { %v253_v19 = vld [vmem:[%s1369_s10] sm:$0xf]  ;;  %v1380_v20 = vld [vmem:[%s1369_s10 + $0x8] sm:$0xf]  ;;  %v254_v25 = vld [vmem:[%s1369_s10 + $0x4] sm:$0x1] }
  0x13   : > { %v1391_v26 = vld [vmem:[%s1369_s10 + $0xc] sm:$0x1]  ;;  %v1394_v27 = vld [vmem:[%s1369_s10 + $0x10] sm:$0xf]  ;;  %v283_v28 = vmul.bf16 %v1372_v15, %v253_v19  ;;  %v284_v29 = vmul.bf16 %v1372_v15, %v1380_v20  ;;  %v511_v31 = vmul.bf16 %v1376_v17, %v1380_v20  ;;  %v1404_v32 = vld [vmem:[%s1369_s10 + $0x14] sm:$0x1]  ;;  %v415_v40 = vmul.bf16 %v1399_v30, %v253_v19 }
  0x14   : > { %v1407_v33 = vld [vmem:[%s1369_s10 + $0x1c] sm:$0x1]  ;;  %v512_v35 = vmul.bf16 %v1376_v17, %v1394_v27  ;;  %v416_v41 = vmul.bf16 %v1399_v30, %v254_v25  ;;  %v318_v42 = vmul.bf16 %v1409_v34, %v253_v19  ;;  %v319_v43 = vmul.bf16 %v1409_v34, %v254_v25 }
  0x15   : > { %v291_v38 = vunpack.c.l.bf16 %v283_v28  ;;  %v292_v39 = vunpack.c.l.bf16 %v284_v29  ;;  %v320_v44 = vmul.bf16 %v1409_v34, %v1380_v20  ;;  %v321_v45 = vmul.bf16 %v1409_v34, %v1391_v26 }
  0x16   : > { %v323_v46 = vmul.bf16 %v1409_v34, %v1404_v32  ;;  %v325_v47 = vmul.bf16 %v1409_v34, %v1407_v33  ;;  %v417_v48 = vmul.bf16 %v1399_v30, %v1380_v20  ;;  %v418_v49 = vmul.bf16 %v1399_v30, %v1391_v26 }
  0x17   : > { %v334_v50 = vunpack.c.l.bf16 %v318_v42  ;;  %v335_v51 = vunpack.c.l.bf16 %v319_v43  ;;  %v336_v52 = vunpack.c.l.bf16 %v320_v44  ;;  %v337_v53 = vunpack.c.l.bf16 %v321_v45 }
  0x18   : > { %v1432_v54 = vunpack.c.l.bf16 %v323_v46  ;;  %v1434_v55 = vunpack.c.l.bf16 %v325_v47  ;;  %v431_v56 = vunpack.c.l.bf16 %v415_v40  ;;  %v432_v57 = vunpack.c.l.bf16 %v416_v41 }
  0x19   : > { %v367_v58 = vrot.slane %v334_v50, 1  ;;  %v368_v59 = vrot.slane %v335_v51, 1  ;;  %v370_v60 = vrot.slane %v336_v52, 1  ;;  %v371_v61 = vrot.slane %v337_v53, 1  ;;  %v1461_v52 = vld [vmem:[%s1369_s10 + $0x18] sm:$0xf] }
  0x1a   : > { %v433_v62 = vunpack.c.l.bf16 %v417_v48  ;;  %v434_v63 = vunpack.c.l.bf16 %v418_v49  ;;  %v464_v0 = vrot.slane %v431_v56, 2  ;;  %v465_v1 = vrot.slane %v432_v57, 2 }
  0x1b   : > { %v369_v2 = vsel %vm366_vm0, %v367_v58, %v368_v59  ;;  %v372_v3 = vsel %vm366_vm0, %v370_v60, %v371_v61  ;;  %v519_v4 = vunpack.c.l.bf16 %v511_v31  ;;  %v520_v5 = vunpack.c.l.bf16 %v512_v35 }
  0x1c   : > { %v399_v7 = vadd.f32 %v369_v2, %v291_v38  ;;  %v400_v8 = vadd.f32 %v372_v3, %v292_v39  ;;  %v466_v9 = vsel %vm463_vm1, %v464_v0, %v465_v1  ;;  %v467_v12 = vrot.slane %v433_v62, 2 }
  0x1d   : > { %v468_v14 = vrot.slane %v434_v63, 2  ;;  %v642_v18 = vmul.bf16 %v1414_v37, %v1380_v20  ;;  %v643_v19 = vmul.bf16 %v1414_v37, %v1391_v26  ;;  %v644_v22 = vmul.bf16 %v1414_v37, %v1394_v27  ;;  %v1470_v63 = vld [vmem:[%s1369_s10 + $0x20] sm:$0xf] }
  0x1e   : > { %v496_v21 = vadd.f32 %v466_v9, %v399_v7  ;;  %v645_v25 = vmul.bf16 %v1414_v37, %v1404_v32  ;;  %v737_v28 = vmul.bf16 %v1386_v23, %v1394_v27  ;;  %v546_v31 = vmul.bf16 %v1439_v16, %v1380_v20  ;;  %v1482_v9 = vld [vmem:[%s1369_s10 + $0x28] sm:$0xf] }
  0x1f   : > { %v469_v29 = vsel %vm463_vm1, %v467_v12, %v468_v14  ;;  %v547_v35 = vmul.bf16 %v1439_v16, %v1391_v26  ;;  %v548_v36 = vmul.bf16 %v1439_v16, %v1394_v27  ;;  %v549_v40 = vmul.bf16 %v1439_v16, %v1404_v32 }
  0x20   : > { %v497_v38 = vadd.f32 %v469_v29, %v400_v8  ;;  %v527_v39 = vadd.f32 %v519_v4, %v496_v21  ;;  %v658_v41 = vunpack.c.l.bf16 %v642_v18  ;;  %v562_v42 = vunpack.c.l.bf16 %v546_v31  ;;  %v1476_v4 = vld [vmem:[%s1369_s10 + $0x24] sm:$0x1] }
  0x21   : > { %v563_v43 = vunpack.c.l.bf16 %v547_v35  ;;  %v564_v44 = vunpack.c.l.bf16 %v548_v36  ;;  %v659_v45 = vunpack.c.l.bf16 %v643_v19  ;;  %v565_v47 = vunpack.c.l.bf16 %v549_v40 }
  0x22   : > { %v528_v46 = vadd.f32 %v520_v5, %v497_v38  ;;  %v660_v20 = vunpack.c.l.bf16 %v644_v22  ;;  %v661_v48 = vunpack.c.l.bf16 %v645_v25  ;;  %v594_v26 = vrot.slane %v562_v42, 1 }
  0x23   : > { %v595_v49 = vrot.slane %v563_v43, 1  ;;  %v597_v50 = vrot.slane %v564_v44, 1  ;;  %v690_v51 = vrot.slane %v658_v41, 2  ;;  %v598_v53 = vrot.slane %v565_v47, 1 }
  0x24   : > { %v691_v56 = vrot.slane %v659_v45, 2  ;;  %v693_v57 = vrot.slane %v660_v20, 2  ;;  %v694_v58 = vrot.slane %v661_v48, 2  ;;  %v738_v60 = vmul.bf16 %v1386_v23, %v1461_v52 }
  0x25   : > { %v596_v59 = vsel %vm366_vm0, %v594_v26, %v595_v49  ;;  %v745_v61 = vunpack.c.l.bf16 %v737_v28  ;;  %v762_v62 = vpack.i.b16 %v761_v24, %v761_v24  ;;  %v599_v0 = vsel %vm366_vm0, %v597_v50, %v598_v53  ;;  %v1517_v26 = vld [vmem:[%s1369_s10 + $0x2c] sm:$0x1]  ;;  %v1520_v49 = vld [vmem:[%s1369_s10 + $0x34] sm:$0x1] }
  0x26   : > { %v626_v1 = vadd.f32 %v596_v59, %v527_v39  ;;  %v692_v2 = vsel %vm463_vm1, %v690_v51, %v691_v56  ;;  %v695_v3 = vsel %vm463_vm1, %v693_v57, %v694_v58  ;;  %v627_v5 = vadd.f32 %v599_v0, %v528_v46  ;;  %v1523_v57 = vld [vmem:[%s1369_s10 + $0x3c] sm:$0x1] }
  0x27   : > { %v746_v7 = vunpack.c.l.bf16 %v738_v60  ;;  %v767_v8 = vrot.slane %v762_v62, %v1358_v10  ;;  %v287_v12 = vmul.bf16 %v1372_v15, %v1470_v63  ;;  %v288_v14 = vmul.bf16 %v1372_v15, %v1482_v9 }
  0x28   : > { %v722_v24 = vadd.f32 %v692_v2, %v626_v1  ;;  %v326_v18 = vmul.bf16 %v1409_v34, %v1470_v63  ;;  %v723_v19 = vadd.f32 %v695_v3, %v627_v5  ;;  %v1492_v22 = vcombine.low %v863_v6, %v863_v6 }
  0x29   : > { %v1490_v21 = vcombine.low %v767_v8, %v767_v8  ;;  %v327_v10 = vmul.bf16 %v1409_v34, %v1476_v4  ;;  %v295_v13 = vunpack.c.l.bf16 %v287_v12  ;;  %v1496_v25 = vunpack.c.l.bf16 %v288_v14 }
  0x2a   : > { %v753_v11 = vadd.f32 %v745_v61, %v722_v24  ;;  %v328_v28 = vmul.bf16 %v1409_v34, %v1482_v9  ;;  %v754_v29 = vadd.f32 %v746_v7, %v723_v19  ;;  %v868_v39 = vmul.bf16 %v1492_v22, %v1394_v27 }
  0x2b   : > { %v772_v31 = vmul.bf16 %v1490_v21, %v1394_v27  ;;  %v773_v35 = vmul.bf16 %v1490_v21, %v1404_v32  ;;  %v774_v36 = vmul.bf16 %v1490_v21, %v1461_v52  ;;  %v775_v38 = vmul.bf16 %v1490_v21, %v1407_v33 }
  0x2c   : > { %v869_v40 = vmul.bf16 %v1492_v22, %v1404_v32  ;;  %v870_v41 = vmul.bf16 %v1492_v22, %v1461_v52  ;;  %v871_v45 = vmul.bf16 %v1492_v22, %v1407_v33  ;;  %v884_v47 = vunpack.c.l.bf16 %v868_v39 }
  0x2d   : > { %v788_v42 = vunpack.c.l.bf16 %v772_v31  ;;  %v789_v43 = vunpack.c.l.bf16 %v773_v35  ;;  %v790_v44 = vunpack.c.l.bf16 %v774_v36  ;;  %v791_v46 = vunpack.c.l.bf16 %v775_v38 }
  0x2e   : > { %v885_v20 = vunpack.c.l.bf16 %v869_v40  ;;  %v886_v48 = vunpack.c.l.bf16 %v870_v41  ;;  %v887_v56 = vunpack.c.l.bf16 %v871_v45  ;;  %v916_v59 = vrot.slane %v884_v47, 2 }
  0x2f   : > { %v820_v50 = vrot.slane %v788_v42, 1  ;;  %v821_v51 = vrot.slane %v789_v43, 1  ;;  %v823_v53 = vrot.slane %v790_v44, 1  ;;  %v824_v58 = vrot.slane %v791_v46, 1 }
  0x30   : > { %v917_v60 = vrot.slane %v885_v20, 2  ;;  %v919_v61 = vrot.slane %v886_v48, 2  ;;  %v920_v0 = vrot.slane %v887_v56, 2  ;;  %v329_v1 = vmul.bf16 %v1409_v34, %v1517_v26  ;;  %v1551_v48 = vld [vmem:[%s1369_s10 + $0x30] sm:$0xf] }
  0x31   : > { %v822_v62 = vsel %vm366_vm0, %v820_v50, %v821_v51  ;;  %v331_v2 = vmul.bf16 %v1409_v34, %v1520_v49  ;;  %v825_v3 = vsel %vm366_vm0, %v823_v53, %v824_v58  ;;  %v333_v8 = vmul.bf16 %v1409_v34, %v1523_v57 }
  0x32   : > { %v852_v5 = vadd.f32 %v822_v62, %v753_v11  ;;  %v918_v7 = vsel %vm463_vm1, %v916_v59, %v917_v60  ;;  %v853_v6 = vadd.f32 %v825_v3, %v754_v29  ;;  %v921_v24 = vsel %vm463_vm1, %v919_v61, %v920_v0 }
  0x33   : > { %v342_v12 = vunpack.c.l.bf16 %v326_v18  ;;  %v343_v14 = vunpack.c.l.bf16 %v327_v10  ;;  %v344_v31 = vunpack.c.l.bf16 %v328_v28  ;;  %v345_v35 = vunpack.c.l.bf16 %v329_v1 }
  0x34   : > { %v948_v19 = vadd.f32 %v918_v7, %v852_v5  ;;  %v1535_v36 = vunpack.c.l.bf16 %v331_v2  ;;  %v949_v38 = vadd.f32 %v921_v24, %v853_v6  ;;  %v1537_v39 = vunpack.c.l.bf16 %v333_v8 }
  0x35   : > { %v379_v11 = vrot.slane %v342_v12, 1  ;;  %v380_v40 = vrot.slane %v343_v14, 1  ;;  %v382_v41 = vrot.slane %v344_v31, 1  ;;  %v383_v42 = vrot.slane %v345_v35, 1 }
  0x36   : > { %v423_v29 = vmul.bf16 %v1399_v30, %v1470_v63  ;;  %v424_v18 = vmul.bf16 %v1399_v30, %v1476_v4  ;;  %v956_v10 = vpack.c.bf16 %v949_v38, %v948_v19  ;;  %v425_v43 = vmul.bf16 %v1399_v30, %v1482_v9 }
  0x37   : > { %v381_v28 = vsel %vm366_vm0, %v379_v11, %v380_v40  ;;  %v426_v44 = vmul.bf16 %v1399_v30, %v1517_v26  ;;  %v384_v45 = vsel %vm366_vm0, %v382_v41, %v383_v42  ;;  %v515_v56 = vmul.bf16 %v1376_v17, %v1482_v9 }
  0x38   : > { %v403_v46 = vadd.f32 %v381_v28, %v295_v13  ;;  %v439_v47 = vunpack.c.l.bf16 %v423_v29  ;;  %v440_v20 = vunpack.c.l.bf16 %v424_v18  ;;  %1227 = vmatprep.mubr.msk.bf16.mxu0 %vm976_vm2, %v956_v10  ;;  %v404_v50 = vadd.f32 %v384_v45, %v1496_v25 }
  0x39   : > { %v441_v51 = vunpack.c.l.bf16 %v425_v43  ;;  %v442_v53 = vunpack.c.l.bf16 %v426_v44  ;;  %v516_v60 = vmul.bf16 %v1376_v17, %v1551_v48  ;;  %v554_v13 = vmul.bf16 %v1439_v16, %v1482_v9 }
  0x3a   : > { %v476_v58 = vrot.slane %v439_v47, 2  ;;  %v477_v59 = vrot.slane %v440_v20, 2  ;;  %v523_v0 = vunpack.c.l.bf16 %v515_v56  ;;  %v555_v1 = vmul.bf16 %v1439_v16, %v1517_v26 }
  0x3b   : > { %v479_v61 = vrot.slane %v441_v51, 2  ;;  %v480_v62 = vrot.slane %v442_v53, 2  ;;  %v524_v2 = vunpack.c.l.bf16 %v516_v60  ;;  %v556_v3 = vmul.bf16 %v1439_v16, %v1551_v48 }
  0x3c   : > { %v478_v25 = vsel %vm463_vm1, %v476_v58, %v477_v59  ;;  %v557_v5 = vmul.bf16 %v1439_v16, %v1520_v49  ;;  %v570_v6 = vunpack.c.l.bf16 %v554_v13  ;;  %v571_v24 = vunpack.c.l.bf16 %v555_v1 }
  0x3d   : > { %v481_v7 = vsel %vm463_vm1, %v479_v61, %v480_v62  ;;  %v500_v8 = vadd.f32 %v478_v25, %v403_v46  ;;  %v572_v14 = vunpack.c.l.bf16 %v556_v3  ;;  %v650_v31 = vmul.bf16 %v1414_v37, %v1482_v9 }
  0x3e   : > { %v501_v12 = vadd.f32 %v481_v7, %v404_v50  ;;  %v573_v19 = vunpack.c.l.bf16 %v557_v5  ;;  %v606_v38 = vrot.slane %v570_v6, 1  ;;  %v607_v11 = vrot.slane %v571_v24, 1  ;;  %v1581_v50 = vld [vmem:[%s1369_s10 + $0x38] sm:$0xf] }
  0x3f   : > { %v531_v35 = vadd.f32 %v523_v0, %v500_v8  ;;  %v651_v40 = vmul.bf16 %v1414_v37, %v1517_v26  ;;  %v609_v42 = vrot.slane %v572_v14, 1  ;;  %v652_v18 = vmul.bf16 %v1414_v37, %v1551_v48 }
  0x40   : > { %v532_v41 = vadd.f32 %v524_v2, %v501_v12  ;;  %v610_v29 = vrot.slane %v573_v19, 1  ;;  %v608_v10 = vsel %vm366_vm0, %v606_v38, %v607_v11  ;;  %v653_v28 = vmul.bf16 %v1414_v37, %v1520_v49 }
  0x41   : > { %v666_v43 = vunpack.c.l.bf16 %v650_v31  ;;  %v667_v44 = vunpack.c.l.bf16 %v651_v40  ;;  %v630_v46 = vadd.f32 %v608_v10, %v531_v35  ;;  %v668_v47 = vunpack.c.l.bf16 %v652_v18 }
  0x42   : > { %v611_v45 = vsel %vm366_vm0, %v609_v42, %v610_v29  ;;  %v741_v20 = vmul.bf16 %v1386_v23, %v1551_v48  ;;  %v669_v53 = vunpack.c.l.bf16 %v653_v28  ;;  %v742_v60 = vmul.bf16 %v1386_v23, %v1581_v50 }
  0x43   : > { %v631_v51 = vadd.f32 %v611_v45, %v532_v41  ;;  %v702_v56 = vrot.slane %v666_v43, 2  ;;  %v703_v58 = vrot.slane %v667_v44, 2  ;;  %v705_v59 = vrot.slane %v668_v47, 2 }
  0x44   : > { %v749_v13 = vunpack.c.l.bf16 %v741_v20  ;;  %v780_v61 = vmul.bf16 %v1490_v21, %v1551_v48  ;;  %v706_v0 = vrot.slane %v669_v53, 2  ;;  %v781_v1 = vmul.bf16 %v1490_v21, %v1520_v49 }
  0x45   : > { %v704_v62 = vsel %vm463_vm1, %v702_v56, %v703_v58  ;;  %v782_v25 = vmul.bf16 %v1490_v21, %v1581_v50  ;;  %v750_v3 = vunpack.c.l.bf16 %v742_v60  ;;  %v783_v5 = vmul.bf16 %v1490_v21, %v1523_v57 }
  0x46   : > { %v726_v2 = vadd.f32 %v704_v62, %v630_v46  ;;  %v796_v7 = vunpack.c.l.bf16 %v780_v61  ;;  %v707_v8 = vsel %vm463_vm1, %v705_v59, %v706_v0  ;;  %v797_v6 = vunpack.c.l.bf16 %v781_v1 }
  0x47   : > { %v798_v24 = vunpack.c.l.bf16 %v782_v25  ;;  %v876_v12 = vmul.bf16 %v1492_v22, %v1551_v48  ;;  %v727_v14 = vadd.f32 %v707_v8, %v631_v51  ;;  %v799_v31 = vunpack.c.l.bf16 %v783_v5 }
  0x48   : > { %v757_v19 = vadd.f32 %v749_v13, %v726_v2  ;;  %v832_v35 = vrot.slane %v796_v7, 1  ;;  %v833_v38 = vrot.slane %v797_v6, 1  ;;  %v877_v40 = vmul.bf16 %v1492_v22, %v1520_v49 }
  0x49   : > { %v835_v11 = vrot.slane %v798_v24, 1  ;;  %v878_v41 = vmul.bf16 %v1492_v22, %v1581_v50  ;;  %v758_v42 = vadd.f32 %v750_v3, %v727_v14  ;;  %v836_v29 = vrot.slane %v799_v31, 1 }
  0x4a   : > { %v879_v18 = vmul.bf16 %v1492_v22, %v1523_v57  ;;  %v892_v10 = vunpack.c.l.bf16 %v876_v12  ;;  %v834_v28 = vsel %vm366_vm0, %v832_v35, %v833_v38  ;;  %v893_v43 = vunpack.c.l.bf16 %v877_v40 }
  0x4b   : > { %v894_v44 = vunpack.c.l.bf16 %v878_v41  ;;  %v285_v45 = vmul.bf16 %v1372_v15, %v1394_v27  ;;  %v837_v46 = vsel %vm366_vm0, %v835_v11, %v836_v29  ;;  %v856_v47 = vadd.f32 %v834_v28, %v757_v19 }
  0x4c   : > { %v895_v20 = vunpack.c.l.bf16 %v879_v18  ;;  %v928_v51 = vrot.slane %v892_v10, 2  ;;  %v857_v53 = vadd.f32 %v837_v46, %v758_v42  ;;  %v929_v56 = vrot.slane %v893_v43, 2 }
  0x4d   : > { %v931_v58 = vrot.slane %v894_v44, 2  ;;  %v286_v59 = vmul.bf16 %v1372_v15, %v1461_v52  ;;  %v293_v13 = vunpack.c.l.bf16 %v285_v45  ;;  %v322_v61 = vmul.bf16 %v1409_v34, %v1394_v27 }
  0x4e   : > { %v932_v60 = vrot.slane %v895_v20, 2  ;;  %v324_v62 = vmul.bf16 %v1409_v34, %v1461_v52  ;;  %v930_v0 = vsel %vm463_vm1, %v928_v51, %v929_v56  ;;  %v374_v25 = vrot.slane %v1432_v54, 1 }
  0x4f   : > { %v294_v1 = vunpack.c.l.bf16 %v286_v59  ;;  %v377_v2 = vrot.slane %v1434_v55, 1  ;;  %v952_v5 = vadd.f32 %v930_v0, %v856_v47  ;;  %v338_v7 = vunpack.c.l.bf16 %v322_v61 }
  0x50   : > { %v933_v3 = vsel %vm463_vm1, %v931_v58, %v932_v60  ;;  %v340_v8 = vunpack.c.l.bf16 %v324_v62  ;;  %v419_v24 = vmul.bf16 %v1399_v30, %v1394_v27  ;;  %v420_v12 = vmul.bf16 %v1399_v30, %v1404_v32 }
  0x51   : > { %v953_v6 = vadd.f32 %v933_v3, %v857_v53  ;;  %v421_v14 = vmul.bf16 %v1399_v30, %v1461_v52  ;;  %v373_v19 = vrot.slane %v338_v7, 1  ;;  %v422_v54 = vmul.bf16 %v1399_v30, %v1407_v33 }
  0x52   : > { %v376_v31 = vrot.slane %v340_v8, 1  ;;  %v513_v55 = vmul.bf16 %v1376_v17, %v1461_v52  ;;  %v435_v38 = vunpack.c.l.bf16 %v419_v24  ;;  %v436_v11 = vunpack.c.l.bf16 %v420_v12 }
  0x53   : > { %v958_v35 = vpack.c.bf16 %v953_v6, %v952_v5  ;;  %v437_v40 = vunpack.c.l.bf16 %v421_v14  ;;  %v375_v27 = vsel %vm366_vm0, %v373_v19, %v374_v25  ;;  %v438_v32 = vunpack.c.l.bf16 %v422_v54 }
  0x54   : > { %v378_v41 = vsel %vm366_vm0, %v376_v31, %v377_v2  ;;  %v514_v42 = vmul.bf16 %v1376_v17, %v1470_v63  ;;  %v401_v29 = vadd.f32 %v375_v27, %v293_v13  ;;  %v470_v10 = vrot.slane %v435_v38, 2 }
  0x55   : > { %1231 = vmatprep.mubr.msk.bf16.mxu1 %vm976_vm2, %v958_v35  ;;  %v402_v18 = vadd.f32 %v378_v41, %v294_v1  ;;  %v471_v28 = vrot.slane %v436_v11, 2  ;;  %v473_v43 = vrot.slane %v437_v40, 2  ;;  %v474_v44 = vrot.slane %v438_v32, 2 }
  0x56   : > { %v521_v45 = vunpack.c.l.bf16 %v513_v55  ;;  %v522_v46 = vunpack.c.l.bf16 %v514_v42  ;;  %v550_v20 = vmul.bf16 %v1439_v16, %v1461_v52  ;;  %v551_v51 = vmul.bf16 %v1439_v16, %v1407_v33 }
  0x57   : > { %v472_v47 = vsel %vm463_vm1, %v470_v10, %v471_v28  ;;  %v552_v53 = vmul.bf16 %v1439_v16, %v1470_v63  ;;  %v475_v56 = vsel %vm463_vm1, %v473_v43, %v474_v44  ;;  %v553_v59 = vmul.bf16 %v1439_v16, %v1476_v4 }
  0x58   : > { %v498_v58 = vadd.f32 %v472_v47, %v401_v29  ;;  %v646_v60 = vmul.bf16 %v1414_v37, %v1461_v52  ;;  %v499_v13 = vadd.f32 %v475_v56, %v402_v18  ;;  %v566_v61 = vunpack.c.l.bf16 %v550_v20 }
  0x59   : > { %v567_v62 = vunpack.c.l.bf16 %v551_v51  ;;  %v568_v0 = vunpack.c.l.bf16 %v552_v53  ;;  %v569_v25 = vunpack.c.l.bf16 %v553_v59  ;;  %v647_v2 = vmul.bf16 %v1414_v37, %v1407_v33 }
  0x5a   : > { %v529_v1 = vadd.f32 %v521_v45, %v498_v58  ;;  %v648_v3 = vmul.bf16 %v1414_v37, %v1470_v63  ;;  %v530_v5 = vadd.f32 %v522_v46, %v499_v13  ;;  %v600_v7 = vrot.slane %v566_v61, 1 }
  0x5b   : > { %v601_v8 = vrot.slane %v567_v62, 1  ;;  %v603_v6 = vrot.slane %v568_v0, 1  ;;  %v604_v24 = vrot.slane %v569_v25, 1  ;;  %v649_v52 = vmul.bf16 %v1414_v37, %v1476_v4 }
  0x5c   : > { %v662_v12 = vunpack.c.l.bf16 %v646_v60  ;;  %v663_v14 = vunpack.c.l.bf16 %v647_v2  ;;  %v664_v31 = vunpack.c.l.bf16 %v648_v3  ;;  %v739_v54 = vmul.bf16 %v1386_v23, %v1470_v63 }
  0x5d   : > { %v602_v19 = vsel %vm366_vm0, %v600_v7, %v601_v8  ;;  %v740_v33 = vmul.bf16 %v1386_v23, %v1482_v9  ;;  %v605_v55 = vsel %vm366_vm0, %v603_v6, %v604_v24  ;;  %v665_v38 = vunpack.c.l.bf16 %v649_v52 }
  0x5e   : > { %v628_v35 = vadd.f32 %v602_v19, %v529_v1  ;;  %v696_v11 = vrot.slane %v662_v12, 2  ;;  %v629_v40 = vadd.f32 %v605_v55, %v530_v5  ;;  %v697_v27 = vrot.slane %v663_v14, 2 }
  0x5f   : > { %v699_v41 = vrot.slane %v664_v31, 2  ;;  %v747_v32 = vunpack.c.l.bf16 %v739_v54  ;;  %v700_v42 = vrot.slane %v665_v38, 2  ;;  %v748_v29 = vunpack.c.l.bf16 %v740_v33 }
  0x60   : > { %v776_v18 = vmul.bf16 %v1490_v21, %v1470_v63  ;;  %v777_v10 = vmul.bf16 %v1490_v21, %v1476_v4  ;;  %v698_v28 = vsel %vm463_vm1, %v696_v11, %v697_v27  ;;  %v778_v43 = vmul.bf16 %v1490_v21, %v1482_v9 }
  0x61   : > { %v779_v44 = vmul.bf16 %v1490_v21, %v1517_v26  ;;  %v872_v45 = vmul.bf16 %v1492_v22, %v1470_v63  ;;  %v701_v46 = vsel %vm463_vm1, %v699_v41, %v700_v42  ;;  %v724_v47 = vadd.f32 %v698_v28, %v628_v35 }
  0x62   : > { %v792_v20 = vunpack.c.l.bf16 %v776_v18  ;;  %v793_v51 = vunpack.c.l.bf16 %v777_v10  ;;  %v725_v53 = vadd.f32 %v701_v46, %v629_v40  ;;  %v794_v56 = vunpack.c.l.bf16 %v778_v43 }
  0x63   : > { %v795_v58 = vunpack.c.l.bf16 %v779_v44  ;;  %v873_v59 = vmul.bf16 %v1492_v22, %v1476_v4  ;;  %v755_v60 = vadd.f32 %v747_v32, %v724_v47  ;;  %v874_v62 = vmul.bf16 %v1492_v22, %v1482_v9 }
  0x64   : > { %v826_v13 = vrot.slane %v792_v20, 1  ;;  %v827_v61 = vrot.slane %v793_v51, 1  ;;  %v756_v0 = vadd.f32 %v748_v29, %v725_v53  ;;  %v829_v1 = vrot.slane %v794_v56, 1  ;;  %v1706_v20 = vld [vmem:[%s1369_s10 + $0x44] sm:$0x1] }
  0x65   : > { %v830_v63 = vrot.slane %v795_v58, 1  ;;  %v875_v25 = vmul.bf16 %v1492_v22, %v1517_v26  ;;  %v888_v3 = vunpack.c.l.bf16 %v872_v45  ;;  %v889_v5 = vunpack.c.l.bf16 %v873_v59 }
  0x66   : > { %v828_v2 = vsel %vm366_vm0, %v826_v13, %v827_v61  ;;  %v890_v7 = vunpack.c.l.bf16 %v874_v62  ;;  %v289_v24 = vmul.bf16 %v1372_v15, %v1551_v48  ;;  %v290_v26 = vmul.bf16 %v1372_v15, %v1581_v50  ;;  %v1689_v15 = vld [vmem:[%s1369_s10 + $0x40] sm:$0xf] }
  0x67   : > { %v831_v8 = vsel %vm366_vm0, %v829_v1, %v830_v63  ;;  %v854_v4 = vadd.f32 %v828_v2, %v755_v60  ;;  %v891_v6 = vunpack.c.l.bf16 %v875_v25  ;;  %v922_v9 = vrot.slane %v888_v3, 2 }
  0x68   : > { %v855_v52 = vadd.f32 %v831_v8, %v756_v0  ;;  %v923_v12 = vrot.slane %v889_v5, 2  ;;  %v925_v14 = vrot.slane %v890_v7, 2  ;;  %v297_v31 = vunpack.c.l.bf16 %v289_v24 }
  0x69   : > { %v926_v19 = vrot.slane %v891_v6, 2  ;;  %v330_v54 = vmul.bf16 %v1409_v34, %v1551_v48  ;;  %v332_v55 = vmul.bf16 %v1409_v34, %v1581_v50  ;;  %v386_v35 = vrot.slane %v1535_v36, 1 }
  0x6a   : > { %v924_v33 = vsel %vm463_vm1, %v922_v9, %v923_v12  ;;  %v389_v38 = vrot.slane %v1537_v39, 1  ;;  %v298_v27 = vunpack.c.l.bf16 %v290_v26  ;;  %v427_v29 = vmul.bf16 %v1399_v30, %v1551_v48 }
  0x6b   : > { %v927_v11 = vsel %vm463_vm1, %v925_v14, %v926_v19  ;;  %v950_v40 = vadd.f32 %v924_v33, %v854_v4  ;;  %v346_v41 = vunpack.c.l.bf16 %v330_v54  ;;  %v348_v42 = vunpack.c.l.bf16 %v332_v55 }
  0x6c   : > { %v951_v32 = vadd.f32 %v927_v11, %v855_v52  ;;  %v428_v34 = vmul.bf16 %v1399_v30, %v1520_v49  ;;  %v429_v36 = vmul.bf16 %v1399_v30, %v1581_v50  ;;  %v430_v39 = vmul.bf16 %v1399_v30, %v1523_v57 }
  0x6d   : > { %v385_v18 = vrot.slane %v346_v41, 1  ;;  %v517_v10 = vmul.bf16 %v1376_v17, %v1581_v50  ;;  %v388_v43 = vrot.slane %v348_v42, 1  ;;  %v443_v44 = vunpack.c.l.bf16 %v427_v29 }
  0x6e   : > { %v957_v28 = vpack.c.bf16 %v951_v32, %v950_v40  ;;  %v444_v45 = vunpack.c.l.bf16 %v428_v34  ;;  %v445_v48 = vunpack.c.l.bf16 %v429_v36  ;;  %v446_v47 = vunpack.c.l.bf16 %v430_v39 }
  0x6f   : > { %v387_v46 = vsel %vm366_vm0, %v385_v18, %v386_v35  ;;  %v518_v49 = vmul.bf16 %v1376_v17, %v1689_v15  ;;  %v390_v30 = vsel %vm366_vm0, %v388_v43, %v389_v38  ;;  %v482_v53 = vrot.slane %v443_v44, 2  ;;  %v272_v38 = vld [vmem:[%s1369_s10 + $0x4c] sm:$0x1] }
  0x70   : > { %1228 = vmatmul.mubr.msk.bf16.vlgmr.msra.gmra.mrb[0].mxu0 %vm976_vm2, %v957_v28  ;;  %v405_v51 = vadd.f32 %v387_v46, %v297_v31  ;;  %v483_v56 = vrot.slane %v444_v45, 2  ;;  %v406_v58 = vadd.f32 %v390_v30, %v298_v27  ;;  %v485_v59 = vrot.slane %v445_v48, 2 }
  0x71   : > { %v486_v60 = vrot.slane %v446_v47, 2  ;;  %v525_v13 = vunpack.c.l.bf16 %v517_v10  ;;  %v526_v62 = vunpack.c.l.bf16 %v518_v49  ;;  %v558_v0 = vmul.bf16 %v1439_v16, %v1581_v50 }
  0x72   : > { %v484_v61 = vsel %vm463_vm1, %v482_v53, %v483_v56  ;;  %v559_v17 = vmul.bf16 %v1439_v16, %v1523_v57  ;;  %v560_v25 = vmul.bf16 %v1439_v16, %v1689_v15  ;;  %v561_v2 = vmul.bf16 %v1439_v16, %v1706_v20  ;;  %v271_v16 = vld [vmem:[%s1369_s10 + $0x48] sm:$0xf] }
  0x73   : > { %v487_v1 = vsel %vm463_vm1, %v485_v59, %v486_v60  ;;  %v502_v63 = vadd.f32 %v484_v61, %v405_v51  ;;  %v574_v5 = vunpack.c.l.bf16 %v558_v0  ;;  %v654_v8 = vmul.bf16 %v1414_v37, %v1581_v50 }
  0x74   : > { %v503_v3 = vadd.f32 %v487_v1, %v406_v58  ;;  %v575_v7 = vunpack.c.l.bf16 %v559_v17  ;;  %v576_v6 = vunpack.c.l.bf16 %v560_v25  ;;  %v577_v24 = vunpack.c.l.bf16 %v561_v2 }
  0x75   : > { %v533_v4 = vadd.f32 %v525_v13, %v502_v63  ;;  %v655_v52 = vmul.bf16 %v1414_v37, %v1523_v57  ;;  %v612_v12 = vrot.slane %v574_v5, 1  ;;  %v656_v19 = vmul.bf16 %v1414_v37, %v1689_v15 }
  0x76   : > { %v534_v9 = vadd.f32 %v526_v62, %v503_v3  ;;  %v613_v14 = vrot.slane %v575_v7, 1  ;;  %v615_v26 = vrot.slane %v576_v6, 1  ;;  %v616_v31 = vrot.slane %v577_v24, 1 }
  0x77   : > { %v657_v54 = vmul.bf16 %v1414_v37, %v1706_v20  ;;  %v670_v50 = vunpack.c.l.bf16 %v654_v8  ;;  %v671_v55 = vunpack.c.l.bf16 %v655_v52  ;;  %v672_v35 = vunpack.c.l.bf16 %v656_v19 }
  0x78   : > { %v614_v33 = vsel %vm366_vm0, %v612_v12, %v613_v14  ;;  %v743_v57 = vmul.bf16 %v1386_v23, %v1689_v15  ;;  %v617_v11 = vsel %vm366_vm0, %v615_v26, %v616_v31  ;;  %v744_v34 = vmul.bf16 %v1386_v23, %v271_v16  ;;  %v1213_v14 = vld [vmem:[%s1794_s4] ss:$0 sm:$0xff] }
  0x79   : > { %v632_v40 = vadd.f32 %v614_v33, %v533_v4  ;;  %v673_v27 = vunpack.c.l.bf16 %v657_v54  ;;  %v708_v41 = vrot.slane %v670_v50, 2  ;;  %v633_v32 = vadd.f32 %v617_v11, %v534_v9  ;;  %v1212_v9 = vld [vmem:[%s1793_s3] ss:$0 sm:$0xff] }
  0x7a   : > { %v709_v42 = vrot.slane %v671_v55, 2  ;;  %v711_v29 = vrot.slane %v672_v35, 2  ;;  %v751_v18 = vunpack.c.l.bf16 %v743_v57  ;;  %v784_v36 = vmul.bf16 %v1490_v21, %v1689_v15 }
  0x7b   : > { %v712_v37 = vrot.slane %v673_v27, 2  ;;  %v785_v39 = vmul.bf16 %v1490_v21, %v1706_v20  ;;  %v752_v28 = vunpack.c.l.bf16 %v744_v34  ;;  %v786_v43 = vmul.bf16 %v1490_v21, %v271_v16 }
  0x7c   : > { %v710_v10 = vsel %vm463_vm1, %v708_v41, %v709_v42  ;;  %v787_v44 = vmul.bf16 %v1490_v21, %v272_v38  ;;  %v800_v48 = vunpack.c.l.bf16 %v784_v36  ;;  %v880_v51 = vmul.bf16 %v1492_v22, %v1689_v15 }
  0x7d   : > { %v713_v45 = vsel %vm463_vm1, %v711_v29, %v712_v37  ;;  %v728_v46 = vadd.f32 %v710_v10, %v632_v40  ;;  %v801_v23 = vunpack.c.l.bf16 %v785_v39  ;;  %v802_v49 = vunpack.c.l.bf16 %v786_v43 }
  0x7e   : > { %v729_v47 = vadd.f32 %v713_v45, %v633_v32  ;;  %v803_v30 = vunpack.c.l.bf16 %v787_v44  ;;  %v838_v56 = vrot.slane %v800_v48, 1  ;;  %v881_v59 = vmul.bf16 %v1492_v22, %v1706_v20 }
  0x7f   : > { %v759_v53 = vadd.f32 %v751_v18, %v728_v46  ;;  %v839_v58 = vrot.slane %v801_v23, 1  ;;  %v841_v13 = vrot.slane %v802_v49, 1  ;;  %v882_v61 = vmul.bf16 %v1492_v22, %v271_v16 }
  0x80   : > { %v760_v60 = vadd.f32 %v752_v28, %v729_v47  ;;  %v842_v21 = vrot.slane %v803_v30, 1  ;;  %v883_v0 = vmul.bf16 %v1492_v22, %v272_v38  ;;  %v896_v17 = vunpack.c.l.bf16 %v880_v51 }
  0x81   : > { %v840_v62 = vsel %vm366_vm0, %v838_v56, %v839_v58  ;;  %v897_v1 = vunpack.c.l.bf16 %v881_v59  ;;  %v898_v25 = vunpack.c.l.bf16 %v882_v61 }
  0x82   : > { %v843_v63 = vsel %vm366_vm0, %v841_v13, %v842_v21  ;;  %v858_v15 = vadd.f32 %v840_v62, %v759_v53  ;;  %v899_v2 = vunpack.c.l.bf16 %v883_v0  ;;  %v934_v3 = vrot.slane %v896_v17, 2 }
  0x83   : > { %v935_v5 = vrot.slane %v897_v1, 2  ;;  %v859_v7 = vadd.f32 %v843_v63, %v760_v60  ;;  %v937_v20 = vrot.slane %v898_v25, 2 }
  0x84   : > { %v938_v4 = vrot.slane %v899_v2, 2 }
  0x85   : > { %v936_v8 = vsel %vm463_vm1, %v934_v3, %v935_v5 }
  0x86   : > { %v954_v6 = vadd.f32 %v936_v8, %v858_v15  ;;  %v939_v24 = vsel %vm463_vm1, %v937_v20, %v938_v4 }
  0x87   : > { %v955_v52 = vadd.f32 %v939_v24, %v859_v7 }
  0x89   : > { %v959_v22 = vpack.c.bf16 %v955_v52, %v954_v6 }
  0x8b   : > { %1232 = vmatmul.mubr.msk.bf16.vlgmr.msra.gmra.mrb[0].mxu1 %vm976_vm2, %v959_v22 }
 0x143   : > { %v1229_v12 = vpop.f32.mrb[0].mxu0 }
 0x144   : > { %v1063_v19 = vmul.f32 %v1229_v12, %v1212_v9  ;;  %v1023_v16 = vpop.f32.mrb[1].mxu0 }
 0x145   : > { %v1061_v26 = vmul.f32 %v1212_v9, %v1023_v16  ;;  %v1230_v31 = vpop.f32.mrb[2].mxu0 }
 0x146   : > { %v1078_v54 = vadd.f32 %v1213_v14, %v1063_v19  ;;  %v1064_v50 = vmul.f32 %v1230_v31, %v1212_v9  ;;  %v1026_v33 = vpop.f32.mrb[3].mxu0 }
 0x147   : > { %v1076_v55 = vadd.f32 %v1213_v14, %v1061_v26  ;;  %v1062_v35 = vmul.f32 %v1212_v9, %v1026_v33 }
 0x148   : > { %v1086_v57 = vmax.f32 %v1078_v54, 0.0  ;;  %v1079_v38 = vadd.f32 %v1213_v14, %v1064_v50 }
 0x149   : > { %v1084_v11 = vmax.f32 %v1076_v55, 0.0  ;;  %v1077_v40 = vadd.f32 %v1213_v14, %v1062_v35 }
 0x14a   : > { %v1094_v27 = vpack.c.bf16 %v1086_v57, %v1086_v57  ;;  %v1087_v41 = vmax.f32 %v1079_v38, 0.0 }
 0x14b   : > { %v1092_v32 = vpack.c.bf16 %v1084_v11, %v1084_v11  ;;  %v1085_v42 = vmax.f32 %v1077_v40, 0.0 }
 0x14c   : > { %1103 = vst.msk [vmem:[%s1763_s22 + $0x8] sm:$0xf] %vm1100_vm3, %v1094_v27  ;;  %v1095_v29 = vpack.c.bf16 %v1087_v41, %v1087_v41 }
 0x14d   : > { %1101 = vst.msk [vmem:[%s1763_s22] sm:$0xf] %vm1100_vm3, %v1092_v32  ;;  %v1093_v34 = vpack.c.bf16 %v1085_v42, %v1085_v42 }
 0x14e   : > { %1104 = vst.msk [vmem:[%s1763_s22 + $0xc] sm:$0xf] %vm1100_vm3, %v1095_v29 }
 0x14f   : > { %1102 = vst.msk [vmem:[%s1763_s22 + $0x4] sm:$0xf] %vm1100_vm3, %v1093_v34 }
 0x15e   : > { %v1233_v37 = vpop.f32.mrb[0].mxu1 }
 0x15f   : > { %v1067_v18 = vmul.f32 %v1233_v37, %v1212_v9  ;;  %v1039_v36 = vpop.f32.mrb[1].mxu1 }
 0x160   : > { %v1065_v39 = vmul.f32 %v1212_v9, %v1039_v36  ;;  %v1234_v10 = vpop.f32.mrb[2].mxu1 }
 0x161   : > { %v1082_v28 = vadd.f32 %v1213_v14, %v1067_v18  ;;  %v1068_v43 = vmul.f32 %v1234_v10, %v1212_v9  ;;  %v1042_v44 = vpop.f32.mrb[3].mxu1 }
 0x162   : > { %v1080_v45 = vadd.f32 %v1213_v14, %v1065_v39  ;;  %v1066_v46 = vmul.f32 %v1212_v9, %v1042_v44 }
 0x163   : > { %v1090_v48 = vmax.f32 %v1082_v28, 0.0  ;;  %v1083_v23 = vadd.f32 %v1213_v14, %v1068_v43 }
 0x164   : > { %v1088_v47 = vmax.f32 %v1080_v45, 0.0  ;;  %v1081_v49 = vadd.f32 %v1213_v14, %v1066_v46 }
 0x165   : > { %v1098_v30 = vpack.c.bf16 %v1090_v48, %v1090_v48  ;;  %v1091_v51 = vmax.f32 %v1083_v23, 0.0 }
 0x166   : > { %v1096_v53 = vpack.c.bf16 %v1088_v47, %v1088_v47  ;;  %v1089_v56 = vmax.f32 %v1081_v49, 0.0 }
 0x167   : > { %1107 = vst.msk [vmem:[%s1763_s22 + $0x18] sm:$0xf] %vm1100_vm3, %v1098_v30  ;;  %v1099_v58 = vpack.c.bf16 %v1091_v51, %v1091_v51 }
 0x168   : > { %1105 = vst.msk [vmem:[%s1763_s22 + $0x10] sm:$0xf] %vm1100_vm3, %v1096_v53  ;;  %v1097_v59 = vpack.c.bf16 %v1089_v56, %v1089_v56 }
 0x169   : > { %1108 = vst.msk [vmem:[%s1763_s22 + $0x1c] sm:$0xf] %vm1100_vm3, %v1099_v58 }
 0x16a   : > { %1106 = vst.msk [vmem:[%s1763_s22 + $0x14] sm:$0xf] %vm1100_vm3, %v1097_v59 }
 0x16b PF: > { %s15_s20 = sadd.s32 1, %s1288_s20   ;;  %s1796_s18 = smov %s1284_s19 }
 0x16c   : > { %p12_p5 = scmp.ge.s32.totalorder %s15_s20, 4   ;;  %s1797_s19 = smov %s1799_s21 }
 0x16e   :  { %14 = sbr.rel (!%p12_p5) target bundleno = 2 (0x2), region = 71 }

// kernel: light_fpn_forward.6
= control target key start
LH: loop header
LB: loop body
LE: loop exit
PB: predicated region body
PF: predicated region fallthrough
CT: control target
= control target key end

     0   :  { %10 = vsyncpa [#allocation3], 0  ;;  %s4816_s0 = inlined_call_operand.vmem [shape: bf16[2,18,18,32], index: 0, kind: input, shape index: {}]   ;;  %s4817_s1 = inlined_call_operand.vmem [shape: bf16[3,3,32], index: 1, kind: input, shape index: {}]   ;;  %s4818_s2 = inlined_call_operand.vmem [shape: bf16[32,32], index: 2, kind: input, shape index: {}]   ;;  %s4819_s3 = inlined_call_operand.vmem [shape: f32[1,32], index: 3, kind: input, shape index: {}]   ;;  %s4820_s4 = inlined_call_operand.vmem [shape: f32[1,32], index: 4, kind: input, shape index: {}]   ;;  %s4821_s5 = inlined_call_operand.hbm [shape: bf16[2,16,16,32], index: 5, kind: output, shape index: {}]  }
   0x1   :  { %12 = vsyncpa [#allocation3 + $0x1], 0  ;;  %s3356_s18 = smov 0   ;;  %s3358_s19 = smov 0  }
   0x2   :  { %s3360_s20 = smov 0   ;;  %s3362_s21 = smov 0  }
   0x3   :  { %s3364_s22 = smov 0   ;;  %s3366_s23 = smov 0  }
   0x4 LB: > { %s3013_s24 = sadd.s32 4294967295, %s3321_s23   ;;  %s3014_s25 = sadd.s32 4294967294, %s3321_s23   ;;  %s3321_s23 = sphi %s3366_s23, %s18_s23   ;;  %s3317_s22 = sphi %s3364_s22, %s4828_s22   ;;  %s3313_s21 = sphi %s3362_s21, %s4827_s21   ;;  %s3309_s20 = sphi %s3360_s20, %s4826_s20   ;;  %s3305_s19 = sphi %s3358_s19, %s4825_s19   ;;  %s3301_s18 = sphi %s3356_s18, %s4824_s18  }
   0x5   : > { %s30_s26 = sadd.s32 1, %s3317_s22  ;;  %s149_s27 = sadd.s32 1, %s3309_s20 }
   0x6   : > { %p32_p0 = scmp.ge.s32.totalorder %s30_s26, 2  ;;  %p159_p1 = scmp.ne.s32.totalorder %s3309_s20, %s3305_s19 }
   0x7   : > { %p160_p2 = scmp.eq.s32.totalorder %s3013_s24, 1  ;;  %p165_p3 = scmp.ne.s32.totalorder %s3305_s19, %s3301_s18 }
   0x8   : > { %s4830_s26 = smov (%p32_p0, %s30_s26), 0  ;;  %p166_p5 = scmp.eq.s32.totalorder %s3014_s25, 1 }
   0x9   : > { %p3396_p4 = por %p160_p2, %p159_p1  ;;  %s144_s29 = ssub.s32 %s3317_s22, %s4830_s26 }
   0xa   : > { %p3017_p6 = scmp.ge.s32.totalorder %s3321_s23, 1  ;;  %p147_p7 = scmp.eq.s32.totalorder %s144_s29, 0 }
   0xb   : > { %p3403_p8 = por %p166_p5, %p165_p3  ;;  %p204_p9 = scmp.lt.s32.totalorder %s3321_s23, 3 }
   0xc   : > { %s3409_s6 = scalar_select %p147_p7, %s3309_s20, %s149_s27  }
   0xd   : > { %p205_p10 = pnand %p3017_p6, %p204_p9 }
   0xe   : > { %v3235_v0 = vld [vmem:[%s4818_s2] sm:$0xff] (!%p205_p10)   ;;  %p232_p11 = scmp.lt.s32.totalorder (!%p205_p10), %s3313_s21, 1  ;;  %v303_v1 = vlaneseq (!%p205_p10)  ;;  %v3236_v2 = vld [vmem:[%s4818_s2 + $0x8] sm:$0xff] (!%p205_p10)   ;;  %vm562_vm0 = vcmask (!%p205_p10), 1046528   ;;  %vm859_vm1 = vcmask (!%p205_p10), 1045504   ;;  %vm2440_vm2 = vcmask (!%p205_p10), 261120  }
   0xf   : > { %208 = sbr.rel (%p205_p10) target bundleno = 653 (0x28d), region = 40  ;;  %3137 = vmatprep.subr.bf16.mxu0 (!%p205_p10), %v3235_v0  ;;  %3173 = vmatprep.subr.bf16.mxu1 (!%p205_p10), %v3235_v0  ;;  %v297_v3 = vld [vmem:[%s4817_s1] sm:$0x3] (!%p205_p10)  ;;  %v298_v4 = vld [vmem:[%s4817_s1 + $0x2] sm:$0x3] (!%p205_p10)  ;;  %s229_s9 = sand.u32 (!%p205_p10), 1, %s3305_s19  }
  0x10   : > { %v304_v5 = vshrl.u32 (!%p205_p10), %v303_v1, 7  ;;  %3138 = vmatpush3.bf16.msra.mxu0 (!%p205_p10), %v3235_v0  ;;  %3175 = vmatpush3.bf16.msra.mxu1 (!%p205_p10), %v3235_v0  ;;  %v299_v6 = vld [vmem:[%s4817_s1 + $0x4] sm:$0x3] (!%p205_p10)  ;;  %v301_v7 = vpack.i.b16 (!%p205_p10), %v297_v3, %v297_v3  ;;  %v407_v8 = vshrl.u32 (!%p205_p10), %v297_v3, 16  ;;  %v1005_v9 = vpack.i.b16 (!%p205_p10), %v298_v4, %v298_v4  ;;  %s3018_s12 = sshll.u32 (!%p205_p10), %s229_s9, 7  ;;  %s3118_s14 = sshll.u32 (!%p205_p10), %s3313_s21, 11 }
  0x11   : > { %3139 = vmatprep.subr.bf16.mxu0 (!%p205_p10), %v3236_v2  ;;  %3174 = vmatprep.subr.bf16.mxu1 (!%p205_p10), %v3236_v2  ;;  %v1111_v12 = vshrl.u32 (!%p205_p10), %v298_v4, 16  ;;  %v3432_v13 = vpack.i.b16 (!%p205_p10), %v299_v6, %v299_v6  ;;  %v1813_v15 = vshrl.u32 (!%p205_p10), %v299_v6, 16  ;;  %vm2888_vm3 = vcmask (!%p205_p10), 257024   ;;  %s4639_s13 = scalar_lea.vmem (!%p205_p10), [#allocation2], %s3018_s12  ;;  %s3323_s27 = smov (!%p205_p10), [#allocation2]  }
  0x12   : > { %v3428_v10 = vsub.s32 (!%p205_p10), 0, %v304_v5  ;;  %v3430_v11 = vsub.s32 (!%p205_p10), 1, %v304_v5  ;;  %v408_v14 = vpack.i.b16 (!%p205_p10), %v407_v8, %v407_v8  ;;  %s2938_s15 = sshll.u32 (!%p205_p10), %s4639_s13, 4  ;;  %s4760_s15 = int_to_ptr.vmem [resolvable:$true] %s2938_s15 }
  0x13   : > { %v1112_v19 = vpack.i.b16 (!%p205_p10), %v1111_v12, %v1111_v12  ;;  %v3468_v35 = vpack.i.b16 (!%p205_p10), %v1813_v15, %v1813_v15  ;;  %s3243_s25 = scalar_lea.vmem (!%p205_p10), %s4760_s15, 2048 }
  0x14   : > { %v306_v16 = vrot.slane (!%p205_p10), %v301_v7, %v3428_v10  ;;  %v710_v17 = vrot.slane (!%p205_p10), %v301_v7, %v3430_v11  ;;  %v1010_v18 = vrot.slane (!%p205_p10), %v1005_v9, %v3428_v10  ;;  %3140 = vmatpush3.bf16.msra.mxu0 (!%p205_p10), %v3236_v2  ;;  %3176 = vmatpush3.bf16.msra.mxu1 (!%p205_p10), %v3236_v2  ;;  %p3244_p12 = scmp.ne.s32.totalorder (!%p205_p10), %s4760_s15, %s3243_s25 }
  0x15   : > { %v413_v21 = vrot.slane (!%p205_p10), %v408_v14, %v3428_v10  ;;  %v1413_v22 = vrot.slane (!%p205_p10), %v1005_v9, %v3430_v11  ;;  %v1712_v23 = vrot.slane (!%p205_p10), %v3432_v13, %v3428_v10  ;;  %v1117_v30 = vrot.slane (!%p205_p10), %v1112_v19, %v3428_v10 }
  0x16   : > { %s233_s11 = scalar_select %p232_p11, %s3313_s21, 1  ;;  %v3452_v27 = vcombine.low %v306_v16, %v306_v16  ;;  %v3454_v28 = vcombine.low %v710_v17, %v710_v17  ;;  %v3456_v29 = vcombine.low %v1010_v18, %v1010_v18 }
  0x17   : > { %v3462_v32 = vcombine.low %v413_v21, %v413_v21  ;;  %v3464_v33 = vcombine.low %v1413_v22, %v1413_v22  ;;  %v3466_v34 = vcombine.low %v1712_v23, %v1712_v23  ;;  %v3505_v16 = vcombine.low %v1117_v30, %v1117_v30  ;;  %s4770_s21 = scalar_lea.sflag [#allocation3], %s229_s9  ;;  %p3245_p13 = pnand %p3244_p12, %p3396_p4 }
  0x18   : > { %s3177_s24 = smul.u32 216, %s233_s11 }
  0x19   : > { %p3246_p0 = pneg %p3245_p13 }
  0x1a   : > { %s3437_s29 = scalar_lea.vmem %s4816_s0, %s3177_s24  ;;  %s4758_s24 = scalar_lea.hbm %s4821_s5, %s3118_s14 }
  0x1b   : > { %v243_v20 = vld [vmem:[%s3437_s29] sm:$0xf]  ;;  %v244_v24 = vld [vmem:[%s3437_s29 + $0x4] sm:$0xf]  ;;  %v245_v25 = vld [vmem:[%s3437_s29 + $0x8] sm:$0x1] }
  0x1c   : > { %v3450_v26 = vld [vmem:[%s3437_s29 + $0x14] sm:$0x1]  ;;  %v3460_v31 = vld [vmem:[%s3437_s29 + $0x20] sm:$0x1]  ;;  %v311_v36 = vmul.bf16 %v3452_v27, %v243_v20  ;;  %v312_v37 = vmul.bf16 %v3452_v27, %v244_v24  ;;  %v715_v38 = vmul.bf16 %v3454_v28, %v243_v20  ;;  %v716_v39 = vmul.bf16 %v3454_v28, %v244_v24  ;;  %v3490_v60 = vld [vmem:[%s3437_s29 + $0xc] sm:$0xf] }
  0x1d   : > { %v418_v40 = vmul.bf16 %v3462_v32, %v243_v20  ;;  %v419_v41 = vmul.bf16 %v3462_v32, %v244_v24  ;;  %v420_v42 = vmul.bf16 %v3462_v32, %v245_v25  ;;  %v423_v43 = vmul.bf16 %v3462_v32, %v3450_v26  ;;  %v3493_v61 = vld [vmem:[%s3437_s29 + $0x10] sm:$0xf] }
  0x1e   : > { %v343_v44 = vunpack.c.l.bf16 %v311_v36  ;;  %v344_v45 = vunpack.c.l.bf16 %v312_v37  ;;  %v426_v46 = vmul.bf16 %v3462_v32, %v3460_v31  ;;  %v717_v47 = vmul.bf16 %v3454_v28, %v245_v25 }
  0x1f   : > { %v466_v48 = vunpack.c.l.bf16 %v418_v40  ;;  %v467_v49 = vunpack.c.l.bf16 %v419_v41  ;;  %v468_v50 = vunpack.c.l.bf16 %v420_v42  ;;  %v3482_v51 = vunpack.c.l.bf16 %v423_v43  ;;  %v3524_v43 = vld [vmem:[%s3437_s29 + $0x1c] sm:$0xf] }
  0x20   : > { %v3484_v52 = vunpack.c.l.bf16 %v426_v46  ;;  %v720_v53 = vmul.bf16 %v3454_v28, %v3450_v26  ;;  %v763_v54 = vunpack.c.l.bf16 %v715_v38  ;;  %v764_v55 = vunpack.c.l.bf16 %v716_v39  ;;  %v3521_v38 = vld [vmem:[%s3437_s29 + $0x18] sm:$0xf] }
  0x21   : > { %v563_v56 = vrot.slane %v466_v48, 1  ;;  %v564_v57 = vrot.slane %v467_v49, 1  ;;  %v566_v58 = vrot.slane %v468_v50, 1  ;;  %v571_v59 = vrot.slane %v3482_v51, 1 }
  0x22   : > { %v765_v62 = vunpack.c.l.bf16 %v717_v47  ;;  %v3495_v63 = vunpack.c.l.bf16 %v720_v53  ;;  %v860_v0 = vrot.slane %v763_v54, 2  ;;  %v861_v1 = vrot.slane %v764_v55, 2 }
  0x23   : > { %v565_v2 = vsel %vm562_vm0, %v563_v56, %v564_v57  ;;  %v567_v3 = vsel %vm562_vm0, %v564_v57, %v566_v58  ;;  %v1015_v4 = vmul.bf16 %v3456_v29, %v3490_v60  ;;  %v1016_v5 = vmul.bf16 %v3456_v29, %v3493_v61  ;;  %v3534_v57 = vld [vmem:[%s3437_s29 + $0x60] sm:$0xf] }
  0x24   : > { %v675_v6 = vadd.f32 %v565_v2, %v343_v44  ;;  %v676_v7 = vadd.f32 %v567_v3, %v344_v45  ;;  %v862_v8 = vsel %vm859_vm1, %v860_v0, %v861_v1  ;;  %v863_v9 = vrot.slane %v765_v62, 2 }
  0x25   : > { %v868_v12 = vrot.slane %v3495_v63, 2  ;;  %v1047_v14 = vunpack.c.l.bf16 %v1015_v4  ;;  %v1048_v15 = vunpack.c.l.bf16 %v1016_v5  ;;  %v1418_v19 = vmul.bf16 %v3464_v33, %v3490_v60 }
  0x26   : > { %v864_v17 = vsel %vm859_vm1, %v861_v1, %v863_v9  ;;  %v972_v18 = vadd.f32 %v862_v8, %v675_v6  ;;  %v1419_v20 = vmul.bf16 %v3464_v33, %v3493_v61  ;;  %v1122_v22 = vmul.bf16 %v3505_v16, %v3490_v60  ;;  %v268_v6 = vld [vmem:[%s3437_s29 + $0x64] sm:$0xf] }
  0x27   : > { %v973_v21 = vadd.f32 %v864_v17, %v676_v7  ;;  %v1123_v23 = vmul.bf16 %v3505_v16, %v3493_v61  ;;  %v1124_v24 = vmul.bf16 %v3505_v16, %v3450_v26  ;;  %v1420_v30 = vmul.bf16 %v3464_v33, %v3450_v26 }
  0x28   : > { %v1079_v25 = vadd.f32 %v1047_v14, %v972_v18  ;;  %v1466_v36 = vunpack.c.l.bf16 %v1418_v19  ;;  %v1467_v37 = vunpack.c.l.bf16 %v1419_v20  ;;  %v1170_v40 = vunpack.c.l.bf16 %v1122_v22 }
  0x29   : > { %v1080_v39 = vadd.f32 %v1048_v15, %v973_v21  ;;  %v1171_v41 = vunpack.c.l.bf16 %v1123_v23  ;;  %v1172_v42 = vunpack.c.l.bf16 %v1124_v24  ;;  %v1468_v44 = vunpack.c.l.bf16 %v1420_v30 }
  0x2a   : > { %v1562_v45 = vrot.slane %v1466_v36, 2  ;;  %v1563_v46 = vrot.slane %v1467_v37, 2  ;;  %v1717_v47 = vmul.bf16 %v3466_v34, %v3521_v38  ;;  %v1266_v48 = vrot.slane %v1170_v40, 1  ;;  %v269_v37 = vld [vmem:[%s3437_s29 + $0x68] sm:$0x1] }
  0x2b   : > { %v1267_v49 = vrot.slane %v1171_v41, 1  ;;  %v1269_v26 = vrot.slane %v1172_v42, 1  ;;  %v1718_v50 = vmul.bf16 %v3466_v34, %v3524_v43  ;;  %v1565_v54 = vrot.slane %v1468_v44, 2 }
  0x2c   : > { %v1564_v53 = vsel %vm859_vm1, %v1562_v45, %v1563_v46  ;;  %v1749_v55 = vunpack.c.l.bf16 %v1717_v47  ;;  %v1819_v56 = vrot.slane %v3468_v35, %v3428_v10  ;;  %v2115_v1 = vrot.slane %v3432_v13, %v3430_v11 }
  0x2d   : > { %v1268_v58 = vsel %vm562_vm0, %v1266_v48, %v1267_v49  ;;  %v1270_v62 = vsel %vm562_vm0, %v1267_v49, %v1269_v26  ;;  %v1750_v0 = vunpack.c.l.bf16 %v1718_v50  ;;  %v1566_v4 = vsel %vm859_vm1, %v1563_v46, %v1565_v54 }
  0x2e   : > { %v1378_v2 = vadd.f32 %v1268_v58, %v1079_v25  ;;  %v1379_v3 = vadd.f32 %v1270_v62, %v1080_v39  ;;  %v3541_v5 = vcombine.low %v1819_v56, %v1819_v56  ;;  %v3544_v7 = vcombine.low %v2115_v1, %v2115_v1  ;;  %v3565_v39 = vld [vmem:[%s3437_s29 + $0x80] sm:$0x1] }
  0x2f   : > { %v327_v10 = vmul.bf16 %v3452_v27, %v3534_v57  ;;  %v328_v35 = vmul.bf16 %v3452_v27, %v268_v6  ;;  %v442_v8 = vmul.bf16 %v3462_v32, %v3534_v57  ;;  %v443_v26 = vmul.bf16 %v3462_v32, %v268_v6 }
  0x30   : > { %v1674_v9 = vadd.f32 %v1564_v53, %v1378_v2  ;;  %v1675_v14 = vadd.f32 %v1566_v4, %v1379_v3  ;;  %v1824_v11 = vmul.bf16 %v3541_v5, %v3521_v38  ;;  %v1825_v13 = vmul.bf16 %v3541_v5, %v3524_v43 }
  0x31   : > { %v1826_v15 = vmul.bf16 %v3541_v5, %v3460_v31  ;;  %v2120_v17 = vmul.bf16 %v3544_v7, %v3521_v38  ;;  %v2121_v18 = vmul.bf16 %v3544_v7, %v3524_v43  ;;  %v2122_v19 = vmul.bf16 %v3544_v7, %v3460_v31 }
  0x32   : > { %v1781_v20 = vadd.f32 %v1749_v55, %v1674_v9  ;;  %v1782_v21 = vadd.f32 %v1750_v0, %v1675_v14  ;;  %v1872_v22 = vunpack.c.l.bf16 %v1824_v11  ;;  %v1873_v23 = vunpack.c.l.bf16 %v1825_v13  ;;  %v3581_v14 = vld [vmem:[%s3437_s29 + $0x6c] sm:$0xf] }
  0x33   : > { %v1874_v24 = vunpack.c.l.bf16 %v1826_v15  ;;  %v2168_v25 = vunpack.c.l.bf16 %v2120_v17  ;;  %v2169_v30 = vunpack.c.l.bf16 %v2121_v18  ;;  %v2170_v36 = vunpack.c.l.bf16 %v2122_v19  ;;  %v3584_v17 = vld [vmem:[%s3437_s29 + $0x70] sm:$0xf] }
  0x34   : > { %v1968_v40 = vrot.slane %v1872_v22, 1  ;;  %v1969_v41 = vrot.slane %v1873_v23, 1  ;;  %v359_v42 = vunpack.c.l.bf16 %v327_v10  ;;  %v360_v44 = vunpack.c.l.bf16 %v328_v35 }
  0x35   : > { %v1971_v45 = vrot.slane %v1874_v24, 1  ;;  %v2264_v46 = vrot.slane %v2168_v25, 2  ;;  %v2265_v47 = vrot.slane %v2169_v30, 2  ;;  %v2267_v48 = vrot.slane %v2170_v36, 2  ;;  %v3595_v36 = vld [vmem:[%s3437_s29 + $0x74] sm:$0x1] }
  0x36   : > { %v1970_v49 = vsel %vm562_vm0, %v1968_v40, %v1969_v41  ;;  %v444_v50 = vmul.bf16 %v3462_v32, %v269_v37  ;;  %v450_v53 = vmul.bf16 %v3462_v32, %v3565_v39  ;;  %v490_v0 = vunpack.c.l.bf16 %v442_v8 }
  0x37   : > { %v1972_v54 = vsel %vm562_vm0, %v1969_v41, %v1971_v45  ;;  %v2080_v55 = vadd.f32 %v1970_v49, %v1781_v20  ;;  %v2266_v56 = vsel %vm859_vm1, %v2264_v46, %v2265_v47  ;;  %v2268_v58 = vsel %vm859_vm1, %v2265_v47, %v2267_v48 }
  0x38   : > { %v2081_v62 = vadd.f32 %v1972_v54, %v1782_v21  ;;  %v491_v1 = vunpack.c.l.bf16 %v443_v26  ;;  %v492_v2 = vunpack.c.l.bf16 %v444_v50  ;;  %v3575_v4 = vunpack.c.l.bf16 %v450_v53 }
  0x39   : > { %v2376_v3 = vadd.f32 %v2266_v56, %v2080_v55  ;;  %v739_v10 = vmul.bf16 %v3454_v28, %v3534_v57  ;;  %v740_v35 = vmul.bf16 %v3454_v28, %v268_v6  ;;  %v603_v11 = vrot.slane %v490_v0, 1 }
  0x3a   : > { %v2377_v9 = vadd.f32 %v2268_v58, %v2081_v62  ;;  %v604_v13 = vrot.slane %v491_v1, 1  ;;  %v606_v15 = vrot.slane %v492_v2, 1  ;;  %v741_v8 = vmul.bf16 %v3454_v28, %v269_v37  ;;  %v3612_v2 = vld [vmem:[%s3437_s29 + $0x78] sm:$0xf] }
  0x3b   : > { %v787_v18 = vunpack.c.l.bf16 %v739_v10  ;;  %v788_v19 = vunpack.c.l.bf16 %v740_v35  ;;  %v1031_v20 = vmul.bf16 %v3456_v29, %v3581_v14  ;;  %v1032_v22 = vmul.bf16 %v3456_v29, %v3584_v17 }
  0x3c   : > { %v2408_v21 = vpack.c.bf16 %v2377_v9, %v2376_v3  ;;  %v605_v57 = vsel %vm562_vm0, %v603_v11, %v604_v13  ;;  %v607_v6 = vsel %vm562_vm0, %v604_v13, %v606_v15  ;;  %v789_v25 = vunpack.c.l.bf16 %v741_v8  ;;  %v3615_v11 = vld [vmem:[%s3437_s29 + $0x7c] sm:$0xf] }
  0x3d   : > { %v691_v23 = vadd.f32 %v605_v57, %v359_v42  ;;  %v692_v24 = vadd.f32 %v607_v6, %v360_v44  ;;  %v900_v30 = vrot.slane %v787_v18, 2  ;;  %v901_v37 = vrot.slane %v788_v19, 2 }
  0x3e   : > { %3141 = vmatprep.mubr.msk.bf16.mxu0 %vm2440_vm2, %v2408_v21  ;;  %v1063_v40 = vunpack.c.l.bf16 %v1031_v20  ;;  %v1064_v41 = vunpack.c.l.bf16 %v1032_v22  ;;  %v1146_v45 = vmul.bf16 %v3505_v16, %v3581_v14  ;;  %v903_v46 = vrot.slane %v789_v25, 2 }
  0x3f   : > { %v1147_v47 = vmul.bf16 %v3505_v16, %v3584_v17  ;;  %v1148_v42 = vmul.bf16 %v3505_v16, %v3595_v36  ;;  %v1442_v44 = vmul.bf16 %v3464_v33, %v3581_v14  ;;  %v902_v48 = vsel %vm859_vm1, %v900_v30, %v901_v37 }
  0x40   : > { %v1194_v49 = vunpack.c.l.bf16 %v1146_v45  ;;  %v1443_v26 = vmul.bf16 %v3464_v33, %v3584_v17  ;;  %v1444_v50 = vmul.bf16 %v3464_v33, %v3595_v36  ;;  %v904_v53 = vsel %vm859_vm1, %v901_v37, %v903_v46 }
  0x41   : > { %v988_v54 = vadd.f32 %v902_v48, %v691_v23  ;;  %v1195_v55 = vunpack.c.l.bf16 %v1147_v47  ;;  %v1196_v56 = vunpack.c.l.bf16 %v1148_v42  ;;  %v989_v58 = vadd.f32 %v904_v53, %v692_v24 }
  0x42   : > { %v1306_v62 = vrot.slane %v1194_v49, 1  ;;  %v1490_v0 = vunpack.c.l.bf16 %v1442_v44  ;;  %v1491_v1 = vunpack.c.l.bf16 %v1443_v26  ;;  %v1492_v9 = vunpack.c.l.bf16 %v1444_v50 }
  0x43   : > { %v1095_v3 = vadd.f32 %v1063_v40, %v988_v54  ;;  %v1307_v10 = vrot.slane %v1195_v55, 1  ;;  %v1309_v35 = vrot.slane %v1196_v56, 1  ;;  %v1096_v13 = vadd.f32 %v1064_v41, %v989_v58 }
  0x44   : > { %v1602_v15 = vrot.slane %v1490_v0, 2  ;;  %v1603_v8 = vrot.slane %v1491_v1, 2  ;;  %v1733_v18 = vmul.bf16 %v3466_v34, %v3612_v2  ;;  %v1605_v21 = vrot.slane %v1492_v9, 2 }
  0x45   : > { %v1308_v19 = vsel %vm562_vm0, %v1306_v62, %v1307_v10  ;;  %v1310_v20 = vsel %vm562_vm0, %v1307_v10, %v1309_v35  ;;  %v1734_v57 = vmul.bf16 %v3466_v34, %v3615_v11  ;;  %v1848_v37 = vmul.bf16 %v3541_v5, %v3612_v2 }
  0x46   : > { %v1394_v6 = vadd.f32 %v1308_v19, %v1095_v3  ;;  %v1395_v22 = vadd.f32 %v1310_v20, %v1096_v13  ;;  %v1604_v23 = vsel %vm859_vm1, %v1602_v15, %v1603_v8  ;;  %v1765_v24 = vunpack.c.l.bf16 %v1733_v18 }
  0x47   : > { %v1606_v25 = vsel %vm859_vm1, %v1603_v8, %v1605_v21  ;;  %v1766_v30 = vunpack.c.l.bf16 %v1734_v57  ;;  %v1849_v40 = vmul.bf16 %v3541_v5, %v3615_v11  ;;  %v1850_v46 = vmul.bf16 %v3541_v5, %v3565_v39 }
  0x48   : > { %v1690_v41 = vadd.f32 %v1604_v23, %v1394_v6  ;;  %v1691_v45 = vadd.f32 %v1606_v25, %v1395_v22  ;;  %v2144_v47 = vmul.bf16 %v3544_v7, %v3612_v2  ;;  %v1896_v42 = vunpack.c.l.bf16 %v1848_v37 }
  0x49   : > { %v1897_v44 = vunpack.c.l.bf16 %v1849_v40  ;;  %v2145_v48 = vmul.bf16 %v3544_v7, %v3615_v11  ;;  %v2146_v49 = vmul.bf16 %v3544_v7, %v3565_v39  ;;  %v1898_v53 = vunpack.c.l.bf16 %v1850_v46 }
  0x4a   : > { %v1797_v26 = vadd.f32 %v1765_v24, %v1690_v41  ;;  %v1798_v50 = vadd.f32 %v1766_v30, %v1691_v45  ;;  %v2192_v54 = vunpack.c.l.bf16 %v2144_v47  ;;  %v2008_v55 = vrot.slane %v1896_v42, 1 }
  0x4b   : > { %v2009_v56 = vrot.slane %v1897_v44, 1  ;;  %v2193_v58 = vunpack.c.l.bf16 %v2145_v48  ;;  %v2194_v62 = vunpack.c.l.bf16 %v2146_v49  ;;  %v2011_v0 = vrot.slane %v1898_v53, 1 }
  0x4c   : > { %v2304_v1 = vrot.slane %v2192_v54, 2  ;;  %v313_v3 = vmul.bf16 %v3452_v27, %v3490_v60  ;;  %v314_v10 = vmul.bf16 %v3452_v27, %v3493_v61  ;;  %v421_v15 = vmul.bf16 %v3462_v32, %v3490_v60 }
  0x4d   : > { %v2010_v35 = vsel %vm562_vm0, %v2008_v55, %v2009_v56  ;;  %v2305_v9 = vrot.slane %v2193_v58, 2  ;;  %v2307_v13 = vrot.slane %v2194_v62, 2  ;;  %v2012_v8 = vsel %vm562_vm0, %v2009_v56, %v2011_v0 }
  0x4e   : > { %v2096_v18 = vadd.f32 %v2010_v35, %v1797_v26  ;;  %v345_v19 = vunpack.c.l.bf16 %v313_v3  ;;  %v346_v20 = vunpack.c.l.bf16 %v314_v10  ;;  %v2097_v21 = vadd.f32 %v2012_v8, %v1798_v50 }
  0x4f   : > { %v2306_v57 = vsel %vm859_vm1, %v2304_v1, %v2305_v9  ;;  %v2308_v6 = vsel %vm859_vm1, %v2305_v9, %v2307_v13  ;;  %v422_v22 = vmul.bf16 %v3462_v32, %v3493_v61  ;;  %v469_v24 = vunpack.c.l.bf16 %v421_v15 }
  0x50   : > { %v2392_v23 = vadd.f32 %v2306_v57, %v2096_v18  ;;  %v718_v25 = vmul.bf16 %v3454_v28, %v3490_v60  ;;  %v719_v30 = vmul.bf16 %v3454_v28, %v3493_v61  ;;  %v2393_v37 = vadd.f32 %v2308_v6, %v2097_v21  ;;  %v3684_v57 = vld [vmem:[%s3437_s29 + $0x28] sm:$0xf] }
  0x51   : > { %v470_v40 = vunpack.c.l.bf16 %v422_v22  ;;  %v1017_v41 = vmul.bf16 %v3456_v29, %v3521_v38  ;;  %v1018_v45 = vmul.bf16 %v3456_v29, %v3524_v43  ;;  %v568_v46 = vrot.slane %v469_v24, 1 }
  0x52   : > { %v766_v47 = vunpack.c.l.bf16 %v718_v25  ;;  %v767_v42 = vunpack.c.l.bf16 %v719_v30  ;;  %v1125_v44 = vmul.bf16 %v3505_v16, %v3521_v38  ;;  %v2416_v48 = vpack.c.bf16 %v2393_v37, %v2392_v23 }
  0x53   : > { %v569_v49 = vrot.slane %v470_v40, 1  ;;  %v1049_v60 = vunpack.c.l.bf16 %v1017_v41  ;;  %v1050_v26 = vunpack.c.l.bf16 %v1018_v45  ;;  %v1126_v53 = vmul.bf16 %v3505_v16, %v3524_v43 }
  0x54   : > { %v865_v50 = vrot.slane %v766_v47, 2  ;;  %v866_v61 = vrot.slane %v767_v42, 2  ;;  %v1127_v54 = vmul.bf16 %v3505_v16, %v3460_v31  ;;  %3157 = vmatprep.mubr.msk.bf16.mxu1 %vm2440_vm2, %v2416_v48  ;;  %v1173_v58 = vunpack.c.l.bf16 %v1125_v44  ;;  %v3691_v42 = vld [vmem:[%s3437_s29 + $0x2c] sm:$0x1] }
  0x55   : > { %v570_v55 = vsel %vm562_vm0, %v568_v46, %v569_v49  ;;  %v572_v56 = vsel %vm562_vm0, %v569_v49, %v571_v59  ;;  %v1421_v62 = vmul.bf16 %v3464_v33, %v3521_v38  ;;  %v1174_v35 = vunpack.c.l.bf16 %v1126_v53  ;;  %v3677_v59 = vld [vmem:[%s3437_s29 + $0x24] sm:$0xf] }
  0x56   : > { %v677_v0 = vadd.f32 %v570_v55, %v345_v19  ;;  %v678_v1 = vadd.f32 %v572_v56, %v346_v20  ;;  %v867_v3 = vsel %vm859_vm1, %v865_v50, %v866_v61  ;;  %v869_v10 = vsel %vm859_vm1, %v866_v61, %v868_v12 }
  0x57   : > { %v1175_v9 = vunpack.c.l.bf16 %v1127_v54  ;;  %v1271_v13 = vrot.slane %v1173_v58, 1  ;;  %v1422_v51 = vmul.bf16 %v3464_v33, %v3524_v43  ;;  %v1423_v18 = vmul.bf16 %v3464_v33, %v3460_v31 }
  0x58   : > { %v974_v15 = vadd.f32 %v867_v3, %v677_v0  ;;  %v975_v8 = vadd.f32 %v869_v10, %v678_v1  ;;  %v1469_v19 = vunpack.c.l.bf16 %v1421_v62  ;;  %v1272_v20 = vrot.slane %v1174_v35, 1 }
  0x59   : > { %v1274_v21 = vrot.slane %v1175_v9, 1  ;;  %v1470_v63 = vunpack.c.l.bf16 %v1422_v51  ;;  %v1719_v12 = vmul.bf16 %v3466_v34, %v3677_v59  ;;  %v1471_v23 = vunpack.c.l.bf16 %v1423_v18 }
  0x5a   : > { %v1081_v6 = vadd.f32 %v1049_v60, %v974_v15  ;;  %v1082_v22 = vadd.f32 %v1050_v26, %v975_v8  ;;  %v1567_v24 = vrot.slane %v1469_v19, 2  ;;  %v1273_v25 = vsel %vm562_vm0, %v1271_v13, %v1272_v20 }
  0x5b   : > { %v1275_v30 = vsel %vm562_vm0, %v1272_v20, %v1274_v21  ;;  %v1568_v37 = vrot.slane %v1470_v63, 2  ;;  %v1720_v40 = vmul.bf16 %v3466_v34, %v3684_v57  ;;  %v1570_v46 = vrot.slane %v1471_v23, 2 }
  0x5c   : > { %v1380_v41 = vadd.f32 %v1273_v25, %v1081_v6  ;;  %v1381_v45 = vadd.f32 %v1275_v30, %v1082_v22  ;;  %v1751_v47 = vunpack.c.l.bf16 %v1719_v12  ;;  %v1827_v49 = vmul.bf16 %v3541_v5, %v3677_v59 }
  0x5d   : > { %v1569_v44 = vsel %vm859_vm1, %v1567_v24, %v1568_v37  ;;  %v1752_v48 = vunpack.c.l.bf16 %v1720_v40  ;;  %v1828_v60 = vmul.bf16 %v3541_v5, %v3684_v57  ;;  %v1571_v26 = vsel %vm859_vm1, %v1568_v37, %v1570_v46 }
  0x5e   : > { %v1676_v50 = vadd.f32 %v1569_v44, %v1380_v41  ;;  %v1829_v61 = vmul.bf16 %v3541_v5, %v3691_v42  ;;  %v2123_v53 = vmul.bf16 %v3544_v7, %v3677_v59  ;;  %v1677_v54 = vadd.f32 %v1571_v26, %v1381_v45 }
  0x5f   : > { %v1875_v55 = vunpack.c.l.bf16 %v1827_v49  ;;  %v1876_v56 = vunpack.c.l.bf16 %v1828_v60  ;;  %v2124_v58 = vmul.bf16 %v3544_v7, %v3684_v57  ;;  %v2125_v1 = vmul.bf16 %v3544_v7, %v3691_v42 }
  0x60   : > { %v1783_v62 = vadd.f32 %v1751_v47, %v1676_v50  ;;  %v1877_v0 = vunpack.c.l.bf16 %v1829_v61  ;;  %v2171_v3 = vunpack.c.l.bf16 %v2123_v53  ;;  %v1784_v10 = vadd.f32 %v1752_v48, %v1677_v54 }
  0x61   : > { %v1973_v35 = vrot.slane %v1875_v55, 1  ;;  %v1974_v9 = vrot.slane %v1876_v56, 1  ;;  %v2172_v13 = vunpack.c.l.bf16 %v2124_v58  ;;  %v2173_v15 = vunpack.c.l.bf16 %v2125_v1 }
  0x62   : > { %v1976_v51 = vrot.slane %v1877_v0, 1  ;;  %v2269_v8 = vrot.slane %v2171_v3, 2  ;;  %v329_v18 = vmul.bf16 %v3452_v27, %v3581_v14  ;;  %v330_v21 = vmul.bf16 %v3452_v27, %v3584_v17 }
  0x63   : > { %v1975_v19 = vsel %vm562_vm0, %v1973_v35, %v1974_v9  ;;  %v2270_v20 = vrot.slane %v2172_v13, 2  ;;  %v445_v63 = vmul.bf16 %v3462_v32, %v3581_v14  ;;  %v2272_v22 = vrot.slane %v2173_v15, 2 }
  0x64   : > { %v1977_v12 = vsel %vm562_vm0, %v1974_v9, %v1976_v51  ;;  %v2082_v6 = vadd.f32 %v1975_v19, %v1783_v62  ;;  %v361_v23 = vunpack.c.l.bf16 %v329_v18  ;;  %v362_v30 = vunpack.c.l.bf16 %v330_v21 }
  0x65   : > { %v2083_v24 = vadd.f32 %v1977_v12, %v1784_v10  ;;  %v2271_v25 = vsel %vm859_vm1, %v2269_v8, %v2270_v20  ;;  %v446_v37 = vmul.bf16 %v3462_v32, %v3584_v17  ;;  %v2273_v40 = vsel %vm859_vm1, %v2270_v20, %v2272_v22 }
  0x66   : > { %v2378_v41 = vadd.f32 %v2271_v25, %v2082_v6  ;;  %v447_v45 = vmul.bf16 %v3462_v32, %v3595_v36  ;;  %v493_v46 = vunpack.c.l.bf16 %v445_v63  ;;  %v742_v48 = vmul.bf16 %v3454_v28, %v3581_v14 }
  0x67   : > { %v2379_v47 = vadd.f32 %v2273_v40, %v2083_v24  ;;  %v494_v44 = vunpack.c.l.bf16 %v446_v37  ;;  %v743_v49 = vmul.bf16 %v3454_v28, %v3584_v17  ;;  %v744_v50 = vmul.bf16 %v3454_v28, %v3595_v36  ;;  %v3749_v40 = vld [vmem:[%s3437_s29 + $0x84] sm:$0xf] }
  0x68   : > { %v495_v60 = vunpack.c.l.bf16 %v447_v45  ;;  %v608_v26 = vrot.slane %v493_v46, 1  ;;  %v1033_v61 = vmul.bf16 %v3456_v29, %v3612_v2  ;;  %v790_v55 = vunpack.c.l.bf16 %v742_v48 }
  0x69   : > { %v2409_v53 = vpack.c.bf16 %v2379_v47, %v2378_v41  ;;  %v609_v54 = vrot.slane %v494_v44, 1  ;;  %v791_v56 = vunpack.c.l.bf16 %v743_v49  ;;  %v792_v62 = vunpack.c.l.bf16 %v744_v50  ;;  %v3752_v41 = vld [vmem:[%s3437_s29 + $0x88] sm:$0xf] }
  0x6a   : > { %v611_v58 = vrot.slane %v495_v60, 1  ;;  %v1034_v14 = vmul.bf16 %v3456_v29, %v3615_v11  ;;  %v1065_v0 = vunpack.c.l.bf16 %v1033_v61  ;;  %v905_v1 = vrot.slane %v790_v55, 2  ;;  %v3763_v55 = vld [vmem:[%s3437_s29 + $0x8c] sm:$0x1] }
  0x6b   : > { %3142 = vmatmul.mubr.msk.bf16.vlgmr.msra.gmra.mrb[0].mxu0 %vm2440_vm2, %v2409_v53  ;;  %v610_v17 = vsel %vm562_vm0, %v608_v26, %v609_v54  ;;  %v906_v3 = vrot.slane %v791_v56, 2  ;;  %v1149_v36 = vmul.bf16 %v3505_v16, %v3612_v2  ;;  %v908_v9 = vrot.slane %v792_v62, 2 }
  0x6c   : > { %v612_v10 = vsel %vm562_vm0, %v609_v54, %v611_v58  ;;  %v693_v35 = vadd.f32 %v610_v17, %v361_v23  ;;  %v1066_v13 = vunpack.c.l.bf16 %v1034_v14  ;;  %v1150_v8 = vmul.bf16 %v3505_v16, %v3615_v11 }
  0x6d   : > { %v694_v51 = vadd.f32 %v612_v10, %v362_v30  ;;  %v907_v15 = vsel %vm859_vm1, %v905_v1, %v906_v3  ;;  %v1151_v18 = vmul.bf16 %v3505_v16, %v3565_v39  ;;  %v909_v19 = vsel %vm859_vm1, %v906_v3, %v908_v9 }
  0x6e   : > { %v990_v20 = vadd.f32 %v907_v15, %v693_v35  ;;  %v1197_v21 = vunpack.c.l.bf16 %v1149_v36  ;;  %v1445_v63 = vmul.bf16 %v3464_v33, %v3612_v2  ;;  %v1198_v6 = vunpack.c.l.bf16 %v1150_v8 }
  0x6f   : > { %v991_v12 = vadd.f32 %v909_v19, %v694_v51  ;;  %v1199_v22 = vunpack.c.l.bf16 %v1151_v18  ;;  %v1446_v23 = vmul.bf16 %v3464_v33, %v3615_v11  ;;  %v1447_v30 = vmul.bf16 %v3464_v33, %v3565_v39 }
  0x70   : > { %v1097_v24 = vadd.f32 %v1065_v0, %v990_v20  ;;  %v1311_v25 = vrot.slane %v1197_v21, 1  ;;  %v1493_v37 = vunpack.c.l.bf16 %v1445_v63  ;;  %v1312_v46 = vrot.slane %v1198_v6, 1 }
  0x71   : > { %v1098_v45 = vadd.f32 %v1066_v13, %v991_v12  ;;  %v1314_v47 = vrot.slane %v1199_v22, 1  ;;  %v1494_v44 = vunpack.c.l.bf16 %v1446_v23  ;;  %v1495_v48 = vunpack.c.l.bf16 %v1447_v30 }
  0x72   : > { %v1607_v49 = vrot.slane %v1493_v37, 2  ;;  %v1735_v60 = vmul.bf16 %v3466_v34, %v3749_v40  ;;  %v1736_v26 = vmul.bf16 %v3466_v34, %v3752_v41  ;;  %v1313_v50 = vsel %vm562_vm0, %v1311_v25, %v1312_v46 }
  0x73   : > { %v1315_v61 = vsel %vm562_vm0, %v1312_v46, %v1314_v47  ;;  %v1608_v53 = vrot.slane %v1494_v44, 2  ;;  %v1851_v54 = vmul.bf16 %v3541_v5, %v3749_v40  ;;  %v1396_v56 = vadd.f32 %v1313_v50, %v1097_v24 }
  0x74   : > { %v1397_v58 = vadd.f32 %v1315_v61, %v1098_v45  ;;  %v1610_v62 = vrot.slane %v1495_v48, 2  ;;  %v1767_v14 = vunpack.c.l.bf16 %v1735_v60  ;;  %v1768_v17 = vunpack.c.l.bf16 %v1736_v26 }
  0x75   : > { %v1609_v0 = vsel %vm859_vm1, %v1607_v49, %v1608_v53  ;;  %v1852_v1 = vmul.bf16 %v3541_v5, %v3752_v41  ;;  %v1853_v3 = vmul.bf16 %v3541_v5, %v3763_v55  ;;  %v1899_v35 = vunpack.c.l.bf16 %v1851_v54 }
  0x76   : > { %v1611_v36 = vsel %vm859_vm1, %v1608_v53, %v1610_v62  ;;  %v1692_v10 = vadd.f32 %v1609_v0, %v1396_v56  ;;  %v2147_v9 = vmul.bf16 %v3544_v7, %v3749_v40  ;;  %v2148_v8 = vmul.bf16 %v3544_v7, %v3752_v41 }
  0x77   : > { %v1693_v13 = vadd.f32 %v1611_v36, %v1397_v58  ;;  %v1900_v51 = vunpack.c.l.bf16 %v1852_v1  ;;  %v1901_v15 = vunpack.c.l.bf16 %v1853_v3  ;;  %v2013_v19 = vrot.slane %v1899_v35, 1 }
  0x78   : > { %v1799_v18 = vadd.f32 %v1767_v14, %v1692_v10  ;;  %v2149_v20 = vmul.bf16 %v3544_v7, %v3763_v55  ;;  %v2195_v21 = vunpack.c.l.bf16 %v2147_v9  ;;  %v2196_v22 = vunpack.c.l.bf16 %v2148_v8 }
  0x79   : > { %v1800_v63 = vadd.f32 %v1768_v17, %v1693_v13  ;;  %v2014_v12 = vrot.slane %v1900_v51, 1  ;;  %v2016_v6 = vrot.slane %v1901_v15, 1  ;;  %v315_v25 = vmul.bf16 %v3452_v27, %v3521_v38 }
  0x7a   : > { %v2197_v23 = vunpack.c.l.bf16 %v2149_v20  ;;  %v2309_v24 = vrot.slane %v2195_v21, 2  ;;  %v316_v30 = vmul.bf16 %v3452_v27, %v3524_v43  ;;  %v2310_v46 = vrot.slane %v2196_v22, 2 }
  0x7b   : > { %v2015_v37 = vsel %vm562_vm0, %v2013_v19, %v2014_v12  ;;  %v2017_v45 = vsel %vm562_vm0, %v2014_v12, %v2016_v6  ;;  %v424_v47 = vmul.bf16 %v3462_v32, %v3521_v38  ;;  %v347_v60 = vunpack.c.l.bf16 %v315_v25 }
  0x7c   : > { %v2098_v44 = vadd.f32 %v2015_v37, %v1799_v18  ;;  %v2099_v48 = vadd.f32 %v2017_v45, %v1800_v63  ;;  %v2312_v49 = vrot.slane %v2197_v23, 2  ;;  %v2311_v26 = vsel %vm859_vm1, %v2309_v24, %v2310_v46 }
  0x7d   : > { %v348_v50 = vunpack.c.l.bf16 %v316_v30  ;;  %v425_v61 = vmul.bf16 %v3462_v32, %v3524_v43  ;;  %v472_v53 = vunpack.c.l.bf16 %v424_v47  ;;  %v576_v58 = vrot.slane %v3484_v52, 1 }
  0x7e   : > { %v2313_v54 = vsel %vm859_vm1, %v2310_v46, %v2312_v49  ;;  %v2394_v56 = vadd.f32 %v2311_v26, %v2098_v44  ;;  %v721_v62 = vmul.bf16 %v3454_v28, %v3521_v38  ;;  %v722_v1 = vmul.bf16 %v3454_v28, %v3524_v43 }
  0x7f   : > { %v2395_v14 = vadd.f32 %v2313_v54, %v2099_v48  ;;  %v473_v0 = vunpack.c.l.bf16 %v425_v61  ;;  %v573_v17 = vrot.slane %v472_v53, 1  ;;  %v723_v3 = vmul.bf16 %v3454_v28, %v3460_v31 }
  0x80   : > { %v769_v36 = vunpack.c.l.bf16 %v721_v62  ;;  %v1019_v10 = vmul.bf16 %v3456_v29, %v3677_v59  ;;  %v1020_v35 = vmul.bf16 %v3456_v29, %v3684_v57  ;;  %v770_v13 = vunpack.c.l.bf16 %v722_v1 }
  0x81   : > { %v2417_v52 = vpack.c.bf16 %v2395_v14, %v2394_v56  ;;  %v574_v9 = vrot.slane %v473_v0, 1  ;;  %v1128_v38 = vmul.bf16 %v3505_v16, %v3677_v59  ;;  %v771_v51 = vunpack.c.l.bf16 %v723_v3  ;;  %v3824_v14 = vld [vmem:[%s3437_s29 + $0x34] sm:$0xf] }
  0x82   : > { %v870_v15 = vrot.slane %v769_v36, 2  ;;  %v1051_v8 = vunpack.c.l.bf16 %v1019_v10  ;;  %v1052_v43 = vunpack.c.l.bf16 %v1020_v35  ;;  %v871_v19 = vrot.slane %v770_v13, 2  ;;  %v3828_v36 = vld [vmem:[%s3437_s29 + $0x38] sm:$0x1] }
  0x83   : > { %3158 = vmatmul.mubr.msk.bf16.vlgmr.msra.gmra.mrb[0].mxu1 %vm2440_vm2, %v2417_v52  ;;  %v575_v31 = vsel %vm562_vm0, %v573_v17, %v574_v9  ;;  %v577_v18 = vsel %vm562_vm0, %v574_v9, %v576_v58  ;;  %v1129_v20 = vmul.bf16 %v3505_v16, %v3684_v57  ;;  %v873_v12 = vrot.slane %v771_v51, 2 }
  0x84   : > { %v679_v21 = vadd.f32 %v575_v31, %v347_v60  ;;  %v680_v63 = vadd.f32 %v577_v18, %v348_v50  ;;  %v1130_v6 = vmul.bf16 %v3505_v16, %v3691_v42  ;;  %v872_v22 = vsel %vm859_vm1, %v870_v15, %v871_v19  ;;  %v3818_v60 = vld [vmem:[%s3437_s29 + $0x30] sm:$0xf] }
  0x85   : > { %v1176_v23 = vunpack.c.l.bf16 %v1128_v38  ;;  %v1177_v24 = vunpack.c.l.bf16 %v1129_v20  ;;  %v1424_v25 = vmul.bf16 %v3464_v33, %v3677_v59  ;;  %v874_v30 = vsel %vm859_vm1, %v871_v19, %v873_v12 }
  0x86   : > { %v976_v37 = vadd.f32 %v872_v22, %v679_v21  ;;  %v1178_v45 = vunpack.c.l.bf16 %v1130_v6  ;;  %v1425_v46 = vmul.bf16 %v3464_v33, %v3684_v57  ;;  %v977_v47 = vadd.f32 %v874_v30, %v680_v63 }
  0x87   : > { %v1276_v44 = vrot.slane %v1176_v23, 1  ;;  %v1277_v48 = vrot.slane %v1177_v24, 1  ;;  %v1426_v49 = vmul.bf16 %v3464_v33, %v3691_v42  ;;  %v1472_v61 = vunpack.c.l.bf16 %v1424_v25 }
  0x88   : > { %v1083_v26 = vadd.f32 %v1051_v8, %v976_v37  ;;  %v1279_v50 = vrot.slane %v1178_v45, 1  ;;  %v1473_v53 = vunpack.c.l.bf16 %v1425_v46  ;;  %v1084_v54 = vadd.f32 %v1052_v43, %v977_v47 }
  0x89   : > { %v1278_v56 = vsel %vm562_vm0, %v1276_v44, %v1277_v48  ;;  %v1474_v58 = vunpack.c.l.bf16 %v1426_v49  ;;  %v1721_v62 = vmul.bf16 %v3466_v34, %v3818_v60  ;;  %v1572_v1 = vrot.slane %v1472_v61, 2 }
  0x8a   : > { %v1280_v0 = vsel %vm562_vm0, %v1277_v48, %v1279_v50  ;;  %v1382_v17 = vadd.f32 %v1278_v56, %v1083_v26  ;;  %v1573_v3 = vrot.slane %v1473_v53, 2  ;;  %v1722_v52 = vmul.bf16 %v3466_v34, %v3824_v14 }
  0x8b   : > { %v1383_v10 = vadd.f32 %v1280_v0, %v1084_v54  ;;  %v1575_v35 = vrot.slane %v1474_v58, 2  ;;  %v1753_v9 = vunpack.c.l.bf16 %v1721_v62  ;;  %v1830_v38 = vmul.bf16 %v3541_v5, %v3818_v60 }
  0x8c   : > { %v1574_v13 = vsel %vm859_vm1, %v1572_v1, %v1573_v3  ;;  %v1831_v51 = vmul.bf16 %v3541_v5, %v3824_v14  ;;  %v1832_v15 = vmul.bf16 %v3541_v5, %v3828_v36  ;;  %v1754_v31 = vunpack.c.l.bf16 %v1722_v52 }
  0x8d   : > { %v1576_v8 = vsel %vm859_vm1, %v1573_v3, %v1575_v35  ;;  %v1678_v43 = vadd.f32 %v1574_v13, %v1382_v17  ;;  %v2126_v18 = vmul.bf16 %v3544_v7, %v3818_v60  ;;  %v1878_v20 = vunpack.c.l.bf16 %v1830_v38 }
  0x8e   : > { %v1679_v19 = vadd.f32 %v1576_v8, %v1383_v10  ;;  %v1879_v21 = vunpack.c.l.bf16 %v1831_v51  ;;  %v1880_v63 = vunpack.c.l.bf16 %v1832_v15  ;;  %v2127_v6 = vmul.bf16 %v3544_v7, %v3824_v14 }
  0x8f   : > { %v1785_v12 = vadd.f32 %v1753_v9, %v1678_v43  ;;  %v2128_v22 = vmul.bf16 %v3544_v7, %v3828_v36  ;;  %v2174_v23 = vunpack.c.l.bf16 %v2126_v18  ;;  %v1978_v25 = vrot.slane %v1878_v20, 1 }
  0x90   : > { %v1786_v24 = vadd.f32 %v1754_v31, %v1679_v19  ;;  %v1979_v30 = vrot.slane %v1879_v21, 1  ;;  %v1981_v37 = vrot.slane %v1880_v63, 1  ;;  %v2175_v45 = vunpack.c.l.bf16 %v2127_v6 }
  0x91   : > { %v2176_v46 = vunpack.c.l.bf16 %v2128_v22  ;;  %v2274_v47 = vrot.slane %v2174_v23, 2  ;;  %v331_v44 = vmul.bf16 %v3452_v27, %v3612_v2  ;;  %v332_v26 = vmul.bf16 %v3452_v27, %v3615_v11 }
  0x92   : > { %v1980_v48 = vsel %vm562_vm0, %v1978_v25, %v1979_v30  ;;  %v1982_v49 = vsel %vm562_vm0, %v1979_v30, %v1981_v37  ;;  %v448_v50 = vmul.bf16 %v3462_v32, %v3612_v2  ;;  %v2275_v54 = vrot.slane %v2175_v45, 2 }
  0x93   : > { %v2084_v61 = vadd.f32 %v1980_v48, %v1785_v12  ;;  %v2085_v53 = vadd.f32 %v1982_v49, %v1786_v24  ;;  %v2277_v56 = vrot.slane %v2176_v46, 2  ;;  %v363_v58 = vunpack.c.l.bf16 %v331_v44 }
  0x94   : > { %v364_v62 = vunpack.c.l.bf16 %v332_v26  ;;  %v449_v0 = vmul.bf16 %v3462_v32, %v3615_v11  ;;  %v496_v17 = vunpack.c.l.bf16 %v448_v50  ;;  %v2276_v1 = vsel %vm859_vm1, %v2274_v47, %v2275_v54 }
  0x95   : > { %v2278_v3 = vsel %vm859_vm1, %v2275_v54, %v2277_v56  ;;  %v616_v10 = vrot.slane %v3575_v4, 1  ;;  %v745_v35 = vmul.bf16 %v3454_v28, %v3612_v2  ;;  %v2380_v52 = vadd.f32 %v2276_v1, %v2084_v61  ;;  %v3887_v54 = vld [vmem:[%s3437_s29 + $0x90] sm:$0xf] }
  0x96   : > { %v2381_v9 = vadd.f32 %v2278_v3, %v2085_v53  ;;  %v497_v13 = vunpack.c.l.bf16 %v449_v0  ;;  %v613_v38 = vrot.slane %v496_v17, 1  ;;  %v746_v51 = vmul.bf16 %v3454_v28, %v3615_v11 }
  0x97   : > { %v747_v15 = vmul.bf16 %v3454_v28, %v3565_v39  ;;  %v793_v8 = vunpack.c.l.bf16 %v745_v35  ;;  %v1035_v43 = vmul.bf16 %v3456_v29, %v3749_v40  ;;  %v1036_v4 = vmul.bf16 %v3456_v29, %v3752_v41  ;;  %v3892_v35 = vld [vmem:[%s3437_s29 + $0x94] sm:$0xf] }
  0x98   : > { %v2410_v31 = vpack.c.bf16 %v2381_v9, %v2380_v52  ;;  %v614_v18 = vrot.slane %v497_v13, 1  ;;  %v1152_v2 = vmul.bf16 %v3505_v16, %v3749_v40  ;;  %v794_v19 = vunpack.c.l.bf16 %v746_v51 }
  0x99   : > { %v795_v20 = vunpack.c.l.bf16 %v747_v15  ;;  %v910_v21 = vrot.slane %v793_v8, 2  ;;  %v1067_v63 = vunpack.c.l.bf16 %v1035_v43  ;;  %v1068_v12 = vunpack.c.l.bf16 %v1036_v4 }
  0x9a   : > { %3145 = vmatprep.mubr.msk.bf16.mxu0 %vm2440_vm2, %v2410_v31  ;;  %v615_v39 = vsel %vm562_vm0, %v613_v38, %v614_v18  ;;  %v617_v11 = vsel %vm562_vm0, %v614_v18, %v616_v10  ;;  %v1153_v6 = vmul.bf16 %v3505_v16, %v3752_v41  ;;  %v911_v24 = vrot.slane %v794_v19, 2  ;;  %v3899_v31 = vld [vmem:[%s3437_s29 + $0x98] sm:$0x1] }
  0x9b   : > { %v695_v22 = vadd.f32 %v615_v39, %v363_v58  ;;  %v696_v23 = vadd.f32 %v617_v11, %v364_v62  ;;  %v913_v25 = vrot.slane %v795_v20, 2  ;;  %v1154_v30 = vmul.bf16 %v3505_v16, %v3763_v55 }
  0x9c   : > { %v1200_v37 = vunpack.c.l.bf16 %v1152_v2  ;;  %v1201_v45 = vunpack.c.l.bf16 %v1153_v6  ;;  %v1448_v46 = vmul.bf16 %v3464_v33, %v3749_v40  ;;  %v912_v47 = vsel %vm859_vm1, %v910_v21, %v911_v24 }
  0x9d   : > { %v914_v44 = vsel %vm859_vm1, %v911_v24, %v913_v25  ;;  %v1449_v48 = vmul.bf16 %v3464_v33, %v3752_v41  ;;  %v1450_v49 = vmul.bf16 %v3464_v33, %v3763_v55  ;;  %v992_v26 = vadd.f32 %v912_v47, %v695_v22 }
  0x9e   : > { %v993_v50 = vadd.f32 %v914_v44, %v696_v23  ;;  %v1202_v61 = vunpack.c.l.bf16 %v1154_v30  ;;  %v1316_v53 = vrot.slane %v1200_v37, 1  ;;  %v1317_v56 = vrot.slane %v1201_v45, 1 }
  0x9f   : > { %v1496_v58 = vunpack.c.l.bf16 %v1448_v46  ;;  %v1497_v62 = vunpack.c.l.bf16 %v1449_v48  ;;  %v1498_v0 = vunpack.c.l.bf16 %v1450_v49  ;;  %v1099_v17 = vadd.f32 %v1067_v63, %v992_v26 }
  0xa0   : > { %v1100_v1 = vadd.f32 %v1068_v12, %v993_v50  ;;  %v1319_v3 = vrot.slane %v1202_v61, 1  ;;  %v1737_v10 = vmul.bf16 %v3466_v34, %v3887_v54  ;;  %v1318_v52 = vsel %vm562_vm0, %v1316_v53, %v1317_v56 }
  0xa1   : > { %v1612_v9 = vrot.slane %v1496_v58, 2  ;;  %v1613_v13 = vrot.slane %v1497_v62, 2  ;;  %v1615_v38 = vrot.slane %v1498_v0, 2  ;;  %v1398_v15 = vadd.f32 %v1318_v52, %v1099_v17 }
  0xa2   : > { %v1320_v51 = vsel %vm562_vm0, %v1317_v56, %v1319_v3  ;;  %v1738_v8 = vmul.bf16 %v3466_v34, %v3892_v35  ;;  %v1769_v43 = vunpack.c.l.bf16 %v1737_v10  ;;  %v1854_v19 = vmul.bf16 %v3541_v5, %v3887_v54 }
  0xa3   : > { %v1399_v18 = vadd.f32 %v1320_v51, %v1100_v1  ;;  %v1614_v4 = vsel %vm859_vm1, %v1612_v9, %v1613_v13  ;;  %v1616_v2 = vsel %vm859_vm1, %v1613_v13, %v1615_v38  ;;  %v1855_v63 = vmul.bf16 %v3541_v5, %v3892_v35 }
  0xa4   : > { %v1694_v20 = vadd.f32 %v1614_v4, %v1398_v15  ;;  %v1770_v21 = vunpack.c.l.bf16 %v1738_v8  ;;  %v1856_v39 = vmul.bf16 %v3541_v5, %v3899_v31  ;;  %v1902_v12 = vunpack.c.l.bf16 %v1854_v19 }
  0xa5   : > { %v1695_v11 = vadd.f32 %v1616_v2, %v1399_v18  ;;  %v2150_v6 = vmul.bf16 %v3544_v7, %v3887_v54  ;;  %v2151_v22 = vmul.bf16 %v3544_v7, %v3892_v35  ;;  %v1903_v24 = vunpack.c.l.bf16 %v1855_v63 }
  0xa6   : > { %v1801_v23 = vadd.f32 %v1769_v43, %v1694_v20  ;;  %v1904_v25 = vunpack.c.l.bf16 %v1856_v39  ;;  %v2152_v30 = vmul.bf16 %v3544_v7, %v3899_v31  ;;  %v2018_v45 = vrot.slane %v1902_v12, 1 }
  0xa7   : > { %v1802_v37 = vadd.f32 %v1770_v21, %v1695_v11  ;;  %v2198_v46 = vunpack.c.l.bf16 %v2150_v6  ;;  %v2199_v47 = vunpack.c.l.bf16 %v2151_v22  ;;  %v2019_v44 = vrot.slane %v1903_v24, 1 }
  0xa8   : > { %v2021_v48 = vrot.slane %v1904_v25, 1  ;;  %v2200_v49 = vunpack.c.l.bf16 %v2152_v30  ;;  %v317_v26 = vmul.bf16 %v3452_v27, %v3677_v59  ;;  %v318_v53 = vmul.bf16 %v3452_v27, %v3684_v57 }
  0xa9   : > { %v2314_v50 = vrot.slane %v2198_v46, 2  ;;  %v2315_v61 = vrot.slane %v2199_v47, 2  ;;  %v427_v56 = vmul.bf16 %v3462_v32, %v3677_v59  ;;  %v2020_v58 = vsel %vm562_vm0, %v2018_v45, %v2019_v44 }
  0xaa   : > { %v2022_v62 = vsel %vm562_vm0, %v2019_v44, %v2021_v48  ;;  %v2317_v0 = vrot.slane %v2200_v49, 2  ;;  %v349_v17 = vunpack.c.l.bf16 %v317_v26  ;;  %v2100_v1 = vadd.f32 %v2020_v58, %v1801_v23 }
  0xab   : > { %v2101_v3 = vadd.f32 %v2022_v62, %v1802_v37  ;;  %v2316_v10 = vsel %vm859_vm1, %v2314_v50, %v2315_v61  ;;  %v350_v52 = vunpack.c.l.bf16 %v318_v53  ;;  %v428_v13 = vmul.bf16 %v3462_v32, %v3684_v57 }
  0xac   : > { %v2318_v9 = vsel %vm859_vm1, %v2315_v61, %v2317_v0  ;;  %v429_v38 = vmul.bf16 %v3462_v32, %v3691_v42  ;;  %v475_v51 = vunpack.c.l.bf16 %v427_v56  ;;  %v2396_v15 = vadd.f32 %v2316_v10, %v2100_v1  ;;  %v3957_v10 = vld [vmem:[%s3437_s29 + $0x3c] sm:$0xf] }
  0xad   : > { %v2397_v8 = vadd.f32 %v2318_v9, %v2101_v3  ;;  %v724_v43 = vmul.bf16 %v3454_v28, %v3677_v59  ;;  %v725_v18 = vmul.bf16 %v3454_v28, %v3684_v57  ;;  %v476_v4 = vunpack.c.l.bf16 %v428_v13 }
  0xae   : > { %v477_v2 = vunpack.c.l.bf16 %v429_v38  ;;  %v578_v19 = vrot.slane %v475_v51, 1  ;;  %v726_v20 = vmul.bf16 %v3454_v28, %v3691_v42  ;;  %v1021_v11 = vmul.bf16 %v3456_v29, %v3818_v60  ;;  %v3960_v51 = vld [vmem:[%s3437_s29 + $0x40] sm:$0xf] }
  0xaf   : > { %v2418_v21 = vpack.c.bf16 %v2397_v8, %v2396_v15  ;;  %v772_v63 = vunpack.c.l.bf16 %v724_v43  ;;  %v773_v39 = vunpack.c.l.bf16 %v725_v18  ;;  %v579_v12 = vrot.slane %v476_v4, 1 }
  0xb0   : > { %v581_v6 = vrot.slane %v477_v2, 1  ;;  %v774_v22 = vunpack.c.l.bf16 %v726_v20  ;;  %v1022_v59 = vmul.bf16 %v3456_v29, %v3824_v14  ;;  %v1053_v24 = vunpack.c.l.bf16 %v1021_v11 }
  0xb1   : > { %3161 = vmatprep.mubr.msk.bf16.mxu1 %vm2440_vm2, %v2418_v21  ;;  %v875_v57 = vrot.slane %v772_v63, 2  ;;  %v876_v23 = vrot.slane %v773_v39, 2  ;;  %v1131_v42 = vmul.bf16 %v3505_v16, %v3818_v60  ;;  %v580_v25 = vsel %vm562_vm0, %v578_v19, %v579_v12 }
  0xb2   : > { %v582_v30 = vsel %vm562_vm0, %v579_v12, %v581_v6  ;;  %v878_v37 = vrot.slane %v774_v22, 2  ;;  %v1054_v45 = vunpack.c.l.bf16 %v1022_v59  ;;  %v681_v46 = vadd.f32 %v580_v25, %v349_v17  ;;  %v3971_v12 = vld [vmem:[%s3437_s29 + $0x44] sm:$0x1] }
  0xb3   : > { %v682_v47 = vadd.f32 %v582_v30, %v350_v52  ;;  %v877_v44 = vsel %vm859_vm1, %v875_v57, %v876_v23  ;;  %v1132_v48 = vmul.bf16 %v3505_v16, %v3824_v14  ;;  %v1133_v26 = vmul.bf16 %v3505_v16, %v3828_v36 }
  0xb4   : > { %v879_v49 = vsel %vm859_vm1, %v876_v23, %v878_v37  ;;  %v1179_v50 = vunpack.c.l.bf16 %v1131_v42  ;;  %v1427_v61 = vmul.bf16 %v3464_v33, %v3818_v60  ;;  %v978_v53 = vadd.f32 %v877_v44, %v681_v46 }
  0xb5   : > { %v979_v56 = vadd.f32 %v879_v49, %v682_v47  ;;  %v1180_v58 = vunpack.c.l.bf16 %v1132_v48  ;;  %v1428_v62 = vmul.bf16 %v3464_v33, %v3824_v14  ;;  %v1181_v0 = vunpack.c.l.bf16 %v1133_v26 }
  0xb6   : > { %v1281_v17 = vrot.slane %v1179_v50, 1  ;;  %v1429_v1 = vmul.bf16 %v3464_v33, %v3828_v36  ;;  %v1475_v3 = vunpack.c.l.bf16 %v1427_v61  ;;  %v1085_v52 = vadd.f32 %v1053_v24, %v978_v53 }
  0xb7   : > { %v1086_v9 = vadd.f32 %v1054_v45, %v979_v56  ;;  %v1282_v13 = vrot.slane %v1180_v58, 1  ;;  %v1476_v38 = vunpack.c.l.bf16 %v1428_v62  ;;  %v1284_v15 = vrot.slane %v1181_v0, 1 }
  0xb8   : > { %v1477_v8 = vunpack.c.l.bf16 %v1429_v1  ;;  %v1577_v43 = vrot.slane %v1475_v3, 2  ;;  %v1723_v18 = vmul.bf16 %v3466_v34, %v3957_v10  ;;  %v1724_v19 = vmul.bf16 %v3466_v34, %v3960_v51 }
  0xb9   : > { %v1283_v4 = vsel %vm562_vm0, %v1281_v17, %v1282_v13  ;;  %v1578_v2 = vrot.slane %v1476_v38, 2  ;;  %v1833_v20 = vmul.bf16 %v3541_v5, %v3957_v10  ;;  %v1285_v21 = vsel %vm562_vm0, %v1282_v13, %v1284_v15 }
  0xba   : > { %v1384_v63 = vadd.f32 %v1283_v4, %v1085_v52  ;;  %v1580_v39 = vrot.slane %v1477_v8, 2  ;;  %v1755_v11 = vunpack.c.l.bf16 %v1723_v18  ;;  %v1385_v6 = vadd.f32 %v1285_v21, %v1086_v9 }
  0xbb   : > { %v1579_v22 = vsel %vm859_vm1, %v1577_v43, %v1578_v2  ;;  %v1756_v59 = vunpack.c.l.bf16 %v1724_v19  ;;  %v1834_v57 = vmul.bf16 %v3541_v5, %v3960_v51  ;;  %v1835_v42 = vmul.bf16 %v3541_v5, %v3971_v12 }
  0xbc   : > { %v1581_v23 = vsel %vm859_vm1, %v1578_v2, %v1580_v39  ;;  %v1680_v24 = vadd.f32 %v1579_v22, %v1384_v63  ;;  %v1881_v25 = vunpack.c.l.bf16 %v1833_v20  ;;  %v2129_v45 = vmul.bf16 %v3544_v7, %v3957_v10 }
  0xbd   : > { %v1681_v30 = vadd.f32 %v1581_v23, %v1385_v6  ;;  %v1882_v37 = vunpack.c.l.bf16 %v1834_v57  ;;  %v2130_v46 = vmul.bf16 %v3544_v7, %v3960_v51  ;;  %v1883_v44 = vunpack.c.l.bf16 %v1835_v42 }
  0xbe   : > { %v1787_v47 = vadd.f32 %v1755_v11, %v1680_v24  ;;  %v1983_v48 = vrot.slane %v1881_v25, 1  ;;  %v2131_v49 = vmul.bf16 %v3544_v7, %v3971_v12  ;;  %v2177_v61 = vunpack.c.l.bf16 %v2129_v45 }
  0xbf   : > { %v1788_v26 = vadd.f32 %v1756_v59, %v1681_v30  ;;  %v1984_v50 = vrot.slane %v1882_v37, 1  ;;  %v2178_v53 = vunpack.c.l.bf16 %v2130_v46  ;;  %v1986_v56 = vrot.slane %v1883_v44, 1 }
  0xc0   : > { %v2179_v58 = vunpack.c.l.bf16 %v2131_v49  ;;  %v333_v62 = vmul.bf16 %v3452_v27, %v3749_v40  ;;  %v334_v0 = vmul.bf16 %v3452_v27, %v3752_v41  ;;  %v2279_v1 = vrot.slane %v2177_v61, 2 }
  0xc1   : > { %v1985_v17 = vsel %vm562_vm0, %v1983_v48, %v1984_v50  ;;  %v2280_v3 = vrot.slane %v2178_v53, 2  ;;  %v451_v52 = vmul.bf16 %v3462_v32, %v3749_v40  ;;  %v1987_v9 = vsel %vm562_vm0, %v1984_v50, %v1986_v56 }
  0xc2   : > { %v2086_v13 = vadd.f32 %v1985_v17, %v1787_v47  ;;  %v2282_v38 = vrot.slane %v2179_v58, 2  ;;  %v365_v15 = vunpack.c.l.bf16 %v333_v62  ;;  %v2087_v8 = vadd.f32 %v1987_v9, %v1788_v26 }
  0xc3   : > { %v2281_v43 = vsel %vm859_vm1, %v2279_v1, %v2280_v3  ;;  %v366_v18 = vunpack.c.l.bf16 %v334_v0  ;;  %v452_v4 = vmul.bf16 %v3462_v32, %v3752_v41  ;;  %v453_v20 = vmul.bf16 %v3462_v32, %v3763_v55 }
  0xc4   : > { %v2283_v2 = vsel %vm859_vm1, %v2280_v3, %v2282_v38  ;;  %v2382_v19 = vadd.f32 %v2281_v43, %v2086_v13  ;;  %v499_v21 = vunpack.c.l.bf16 %v451_v52  ;;  %v748_v11 = vmul.bf16 %v3454_v28, %v3749_v40 }
  0xc5   : > { %v2383_v63 = vadd.f32 %v2283_v2, %v2087_v8  ;;  %v500_v39 = vunpack.c.l.bf16 %v452_v4  ;;  %v749_v6 = vmul.bf16 %v3454_v28, %v3752_v41  ;;  %v501_v22 = vunpack.c.l.bf16 %v453_v20  ;;  %v4030_v4 = vld [vmem:[%s3437_s29 + $0xa0] sm:$0xf] }
  0xc6   : > { %v618_v59 = vrot.slane %v499_v21, 1  ;;  %v750_v57 = vmul.bf16 %v3454_v28, %v3763_v55  ;;  %v1037_v23 = vmul.bf16 %v3456_v29, %v3887_v54  ;;  %v796_v25 = vunpack.c.l.bf16 %v748_v11 }
  0xc7   : > { %v2411_v24 = vpack.c.bf16 %v2383_v63, %v2382_v19  ;;  %v619_v42 = vrot.slane %v500_v39, 1  ;;  %v797_v30 = vunpack.c.l.bf16 %v749_v6  ;;  %v621_v37 = vrot.slane %v501_v22, 1 }
  0xc8   : > { %v798_v45 = vunpack.c.l.bf16 %v750_v57  ;;  %v1038_v40 = vmul.bf16 %v3456_v29, %v3892_v35  ;;  %v1069_v46 = vunpack.c.l.bf16 %v1037_v23  ;;  %v915_v47 = vrot.slane %v796_v25, 2 }
  0xc9   : > { %3146 = vmatmul.mubr.msk.bf16.gmra.mrb[4].mxu0 %vm2440_vm2, %v2411_v24  ;;  %v620_v41 = vsel %vm562_vm0, %v618_v59, %v619_v42  ;;  %v916_v44 = vrot.slane %v797_v30, 2  ;;  %v1155_v55 = vmul.bf16 %v3505_v16, %v3887_v54  ;;  %v622_v48 = vsel %vm562_vm0, %v619_v42, %v621_v37  ;;  %v4041_v24 = vld [vmem:[%s3437_s29 + $0xa4] sm:$0x1] }
  0xca   : > { %v697_v49 = vadd.f32 %v620_v41, %v365_v15  ;;  %v918_v26 = vrot.slane %v798_v45, 2  ;;  %v1070_v50 = vunpack.c.l.bf16 %v1038_v40  ;;  %v698_v61 = vadd.f32 %v622_v48, %v366_v18  ;;  %v4027_v18 = vld [vmem:[%s3437_s29 + $0x9c] sm:$0xf] }
  0xcb   : > { %v917_v53 = vsel %vm859_vm1, %v915_v47, %v916_v44  ;;  %v1156_v56 = vmul.bf16 %v3505_v16, %v3892_v35  ;;  %v1157_v58 = vmul.bf16 %v3505_v16, %v3899_v31  ;;  %v1203_v17 = vunpack.c.l.bf16 %v1155_v55 }
  0xcc   : > { %v919_v62 = vsel %vm859_vm1, %v916_v44, %v918_v26  ;;  %v994_v0 = vadd.f32 %v917_v53, %v697_v49  ;;  %v1451_v1 = vmul.bf16 %v3464_v33, %v3887_v54  ;;  %v1452_v13 = vmul.bf16 %v3464_v33, %v3892_v35 }
  0xcd   : > { %v995_v3 = vadd.f32 %v919_v62, %v698_v61  ;;  %v1204_v52 = vunpack.c.l.bf16 %v1156_v56  ;;  %v1205_v9 = vunpack.c.l.bf16 %v1157_v58  ;;  %v1321_v15 = vrot.slane %v1203_v17, 1 }
  0xce   : > { %v1101_v38 = vadd.f32 %v1069_v46, %v994_v0  ;;  %v1453_v8 = vmul.bf16 %v3464_v33, %v3899_v31  ;;  %v1499_v43 = vunpack.c.l.bf16 %v1451_v1  ;;  %v1500_v21 = vunpack.c.l.bf16 %v1452_v13 }
  0xcf   : > { %v1102_v2 = vadd.f32 %v1070_v50, %v995_v3  ;;  %v1322_v19 = vrot.slane %v1204_v52, 1  ;;  %v1324_v20 = vrot.slane %v1205_v9, 1  ;;  %v1739_v11 = vmul.bf16 %v3466_v34, %v4027_v18 }
  0xd0   : > { %v1501_v63 = vunpack.c.l.bf16 %v1453_v8  ;;  %v1617_v39 = vrot.slane %v1499_v43, 2  ;;  %v1740_v6 = vmul.bf16 %v3466_v34, %v4030_v4  ;;  %v1618_v57 = vrot.slane %v1500_v21, 2 }
  0xd1   : > { %v1323_v22 = vsel %vm562_vm0, %v1321_v15, %v1322_v19  ;;  %v1325_v59 = vsel %vm562_vm0, %v1322_v19, %v1324_v20  ;;  %v1857_v23 = vmul.bf16 %v3541_v5, %v4027_v18  ;;  %v1771_v37 = vunpack.c.l.bf16 %v1739_v11 }
  0xd2   : > { %v1400_v42 = vadd.f32 %v1323_v22, %v1101_v38  ;;  %v1401_v25 = vadd.f32 %v1325_v59, %v1102_v2  ;;  %v1620_v30 = vrot.slane %v1501_v63, 2  ;;  %v1619_v45 = vsel %vm859_vm1, %v1617_v39, %v1618_v57 }
  0xd3   : > { %v1772_v40 = vunpack.c.l.bf16 %v1740_v6  ;;  %v1858_v46 = vmul.bf16 %v3541_v5, %v4030_v4  ;;  %v1859_v41 = vmul.bf16 %v3541_v5, %v4041_v24  ;;  %v1905_v55 = vunpack.c.l.bf16 %v1857_v23 }
  0xd4   : > { %v1621_v47 = vsel %vm859_vm1, %v1618_v57, %v1620_v30  ;;  %v1696_v44 = vadd.f32 %v1619_v45, %v1400_v42  ;;  %v2153_v48 = vmul.bf16 %v3544_v7, %v4027_v18  ;;  %v2154_v61 = vmul.bf16 %v3544_v7, %v4030_v4 }
  0xd5   : > { %v1697_v49 = vadd.f32 %v1621_v47, %v1401_v25  ;;  %v1906_v26 = vunpack.c.l.bf16 %v1858_v46  ;;  %v1907_v50 = vunpack.c.l.bf16 %v1859_v41  ;;  %v2023_v56 = vrot.slane %v1905_v55, 1 }
  0xd6   : > { %v1803_v53 = vadd.f32 %v1771_v37, %v1696_v44  ;;  %v2155_v58 = vmul.bf16 %v3544_v7, %v4041_v24  ;;  %v2201_v62 = vunpack.c.l.bf16 %v2153_v48  ;;  %v2202_v3 = vunpack.c.l.bf16 %v2154_v61 }
  0xd7   : > { %v1804_v0 = vadd.f32 %v1772_v40, %v1697_v49  ;;  %v2024_v17 = vrot.slane %v1906_v26, 1  ;;  %v2026_v1 = vrot.slane %v1907_v50, 1  ;;  %v319_v13 = vmul.bf16 %v3452_v27, %v3818_v60 }
  0xd8   : > { %v2203_v52 = vunpack.c.l.bf16 %v2155_v58  ;;  %v2319_v9 = vrot.slane %v2201_v62, 2  ;;  %v320_v38 = vmul.bf16 %v3452_v27, %v3824_v14  ;;  %v2320_v43 = vrot.slane %v2202_v3, 2 }
  0xd9   : > { %v2025_v15 = vsel %vm562_vm0, %v2023_v56, %v2024_v17  ;;  %v2027_v8 = vsel %vm562_vm0, %v2024_v17, %v2026_v1  ;;  %v430_v2 = vmul.bf16 %v3462_v32, %v3818_v60  ;;  %v351_v63 = vunpack.c.l.bf16 %v319_v13 }
  0xda   : > { %v2102_v19 = vadd.f32 %v2025_v15, %v1803_v53  ;;  %v2103_v20 = vadd.f32 %v2027_v8, %v1804_v0  ;;  %v2322_v21 = vrot.slane %v2203_v52, 2  ;;  %v2321_v39 = vsel %vm859_vm1, %v2319_v9, %v2320_v43 }
  0xdb   : > { %v352_v11 = vunpack.c.l.bf16 %v320_v38  ;;  %v431_v6 = vmul.bf16 %v3462_v32, %v3824_v14  ;;  %v432_v22 = vmul.bf16 %v3462_v32, %v3828_v36  ;;  %v478_v23 = vunpack.c.l.bf16 %v430_v2 }
  0xdc   : > { %v2323_v59 = vsel %vm859_vm1, %v2320_v43, %v2322_v21  ;;  %v2398_v57 = vadd.f32 %v2321_v39, %v2102_v19  ;;  %v727_v42 = vmul.bf16 %v3454_v28, %v3818_v60  ;;  %v728_v45 = vmul.bf16 %v3454_v28, %v3824_v14  ;;  %v4095_v21 = vld [vmem:[%s3437_s29 + $0x48] sm:$0xf] }
  0xdd   : > { %v2399_v25 = vadd.f32 %v2323_v59, %v2103_v20  ;;  %v479_v30 = vunpack.c.l.bf16 %v431_v6  ;;  %v480_v37 = vunpack.c.l.bf16 %v432_v22  ;;  %v583_v40 = vrot.slane %v478_v23, 1  ;;  %v4100_v22 = vld [vmem:[%s3437_s29 + $0x4c] sm:$0xf] }
  0xde   : > { %v729_v46 = vmul.bf16 %v3454_v28, %v3828_v36  ;;  %v775_v41 = vunpack.c.l.bf16 %v727_v42  ;;  %v1023_v47 = vmul.bf16 %v3456_v29, %v3957_v10  ;;  %v776_v49 = vunpack.c.l.bf16 %v728_v45 }
  0xdf   : > { %v2419_v44 = vpack.c.bf16 %v2399_v25, %v2398_v57  ;;  %v584_v55 = vrot.slane %v479_v30, 1  ;;  %v586_v48 = vrot.slane %v480_v37, 1  ;;  %v1024_v50 = vmul.bf16 %v3456_v29, %v3960_v51 }
  0xe0   : > { %v777_v26 = vunpack.c.l.bf16 %v729_v46  ;;  %v880_v60 = vrot.slane %v775_v41, 2  ;;  %v1055_v61 = vunpack.c.l.bf16 %v1023_v47  ;;  %v881_v53 = vrot.slane %v776_v49, 2 }
  0xe1   : > { %3162 = vmatmul.mubr.msk.bf16.gmra.mrb[4].mxu1 %vm2440_vm2, %v2419_v44  ;;  %v585_v14 = vsel %vm562_vm0, %v583_v40, %v584_v55  ;;  %v587_v36 = vsel %vm562_vm0, %v584_v55, %v586_v48  ;;  %v1134_v56 = vmul.bf16 %v3505_v16, %v3957_v10  ;;  %v1056_v17 = vunpack.c.l.bf16 %v1024_v50  ;;  %v4111_v44 = vld [vmem:[%s3437_s29 + $0x50] sm:$0x1] }
  0xe2   : > { %v683_v58 = vadd.f32 %v585_v14, %v351_v63  ;;  %v684_v62 = vadd.f32 %v587_v36, %v352_v11  ;;  %v883_v0 = vrot.slane %v777_v26, 2  ;;  %v882_v1 = vsel %vm859_vm1, %v880_v60, %v881_v53 }
  0xe3   : > { %v1135_v3 = vmul.bf16 %v3505_v16, %v3960_v51  ;;  %v1136_v52 = vmul.bf16 %v3505_v16, %v3971_v12  ;;  %v1182_v9 = vunpack.c.l.bf16 %v1134_v56  ;;  %v1430_v15 = vmul.bf16 %v3464_v33, %v3957_v10 }
  0xe4   : > { %v884_v13 = vsel %vm859_vm1, %v881_v53, %v883_v0  ;;  %v980_v38 = vadd.f32 %v882_v1, %v683_v58  ;;  %v1431_v8 = vmul.bf16 %v3464_v33, %v3960_v51  ;;  %v1432_v39 = vmul.bf16 %v3464_v33, %v3971_v12 }
  0xe5   : > { %v981_v43 = vadd.f32 %v884_v13, %v684_v62  ;;  %v1183_v2 = vunpack.c.l.bf16 %v1135_v3  ;;  %v1184_v19 = vunpack.c.l.bf16 %v1136_v52  ;;  %v1286_v20 = vrot.slane %v1182_v9, 1 }
  0xe6   : > { %v1087_v63 = vadd.f32 %v1055_v61, %v980_v38  ;;  %v1478_v11 = vunpack.c.l.bf16 %v1430_v15  ;;  %v1479_v6 = vunpack.c.l.bf16 %v1431_v8  ;;  %v1725_v42 = vmul.bf16 %v3466_v34, %v4095_v21 }
  0xe7   : > { %v1088_v59 = vadd.f32 %v1056_v17, %v981_v43  ;;  %v1287_v57 = vrot.slane %v1183_v2, 1  ;;  %v1289_v23 = vrot.slane %v1184_v19, 1  ;;  %v1480_v25 = vunpack.c.l.bf16 %v1432_v39 }
  0xe8   : > { %v1582_v30 = vrot.slane %v1478_v11, 2  ;;  %v1583_v37 = vrot.slane %v1479_v6, 2  ;;  %v1726_v45 = vmul.bf16 %v3466_v34, %v4100_v22  ;;  %v1757_v41 = vunpack.c.l.bf16 %v1725_v42 }
  0xe9   : > { %v1288_v40 = vsel %vm562_vm0, %v1286_v20, %v1287_v57  ;;  %v1290_v46 = vsel %vm562_vm0, %v1287_v57, %v1289_v23  ;;  %v1836_v47 = vmul.bf16 %v3541_v5, %v4095_v21  ;;  %v1585_v26 = vrot.slane %v1480_v25, 2 }
  0xea   : > { %v1386_v55 = vadd.f32 %v1288_v40, %v1087_v63  ;;  %v1387_v48 = vadd.f32 %v1290_v46, %v1088_v59  ;;  %v1584_v49 = vsel %vm859_vm1, %v1582_v30, %v1583_v37  ;;  %v1758_v60 = vunpack.c.l.bf16 %v1726_v45 }
  0xeb   : > { %v1837_v50 = vmul.bf16 %v3541_v5, %v4100_v22  ;;  %v1838_v61 = vmul.bf16 %v3541_v5, %v4111_v44  ;;  %v1884_v14 = vunpack.c.l.bf16 %v1836_v47  ;;  %v1586_v36 = vsel %vm859_vm1, %v1583_v37, %v1585_v26 }
  0xec   : > { %v1682_v53 = vadd.f32 %v1584_v49, %v1386_v55  ;;  %v2132_v56 = vmul.bf16 %v3544_v7, %v4095_v21  ;;  %v2133_v58 = vmul.bf16 %v3544_v7, %v4100_v22  ;;  %v1683_v62 = vadd.f32 %v1586_v36, %v1387_v48 }
  0xed   : > { %v1885_v0 = vunpack.c.l.bf16 %v1837_v50  ;;  %v1886_v17 = vunpack.c.l.bf16 %v1838_v61  ;;  %v1988_v1 = vrot.slane %v1884_v14, 1  ;;  %v2134_v52 = vmul.bf16 %v3544_v7, %v4111_v44 }
  0xee   : > { %v1789_v3 = vadd.f32 %v1757_v41, %v1682_v53  ;;  %v2180_v9 = vunpack.c.l.bf16 %v2132_v56  ;;  %v2181_v13 = vunpack.c.l.bf16 %v2133_v58  ;;  %v1790_v38 = vadd.f32 %v1758_v60, %v1683_v62 }
  0xef   : > { %v1989_v15 = vrot.slane %v1885_v0, 1  ;;  %v1991_v8 = vrot.slane %v1886_v17, 1  ;;  %v335_v43 = vmul.bf16 %v3452_v27, %v3887_v54  ;;  %v2182_v2 = vunpack.c.l.bf16 %v2134_v52 }
  0xf0   : > { %v2284_v19 = vrot.slane %v2180_v9, 2  ;;  %v2285_v20 = vrot.slane %v2181_v13, 2  ;;  %v336_v63 = vmul.bf16 %v3452_v27, %v3892_v35  ;;  %v454_v59 = vmul.bf16 %v3462_v32, %v3887_v54 }
  0xf1   : > { %v1990_v39 = vsel %vm562_vm0, %v1988_v1, %v1989_v15  ;;  %v1992_v11 = vsel %vm562_vm0, %v1989_v15, %v1991_v8  ;;  %v367_v6 = vunpack.c.l.bf16 %v335_v43  ;;  %v2287_v25 = vrot.slane %v2182_v2, 2 }
  0xf2   : > { %v2088_v57 = vadd.f32 %v1990_v39, %v1789_v3  ;;  %v2089_v23 = vadd.f32 %v1992_v11, %v1790_v38  ;;  %v2286_v42 = vsel %vm859_vm1, %v2284_v19, %v2285_v20  ;;  %v368_v30 = vunpack.c.l.bf16 %v336_v63 }
  0xf3   : > { %v455_v37 = vmul.bf16 %v3462_v32, %v3892_v35  ;;  %v456_v45 = vmul.bf16 %v3462_v32, %v3899_v31  ;;  %v502_v40 = vunpack.c.l.bf16 %v454_v59  ;;  %v2288_v46 = vsel %vm859_vm1, %v2285_v20, %v2287_v25 }
  0xf4   : > { %v2384_v41 = vadd.f32 %v2286_v42, %v2088_v57  ;;  %v751_v47 = vmul.bf16 %v3454_v28, %v3887_v54  ;;  %v752_v55 = vmul.bf16 %v3454_v28, %v3892_v35  ;;  %v2385_v48 = vadd.f32 %v2288_v46, %v2089_v23  ;;  %v4167_v42 = vld [vmem:[%s3437_s29 + $0xa8] sm:$0xf] }
  0xf5   : > { %v503_v49 = vunpack.c.l.bf16 %v455_v37  ;;  %v504_v26 = vunpack.c.l.bf16 %v456_v45  ;;  %v623_v60 = vrot.slane %v502_v40, 1  ;;  %v753_v50 = vmul.bf16 %v3454_v28, %v3899_v31  ;;  %v4170_v40 = vld [vmem:[%s3437_s29 + $0xac] sm:$0xf] }
  0xf6   : > { %v799_v61 = vunpack.c.l.bf16 %v751_v47  ;;  %v800_v14 = vunpack.c.l.bf16 %v752_v55  ;;  %v1039_v36 = vmul.bf16 %v3456_v29, %v4027_v18  ;;  %v2412_v53 = vpack.c.bf16 %v2385_v48, %v2384_v41 }
  0xf7   : > { %v624_v56 = vrot.slane %v503_v49, 1  ;;  %v626_v58 = vrot.slane %v504_v26, 1  ;;  %v1040_v54 = vmul.bf16 %v3456_v29, %v4030_v4  ;;  %v801_v62 = vunpack.c.l.bf16 %v753_v50 }
  0xf8   : > { %v920_v35 = vrot.slane %v799_v61, 2  ;;  %v921_v0 = vrot.slane %v800_v14, 2  ;;  %v1071_v17 = vunpack.c.l.bf16 %v1039_v36  ;;  %3149 = vmatprep.mubr.msk.bf16.mxu0 %vm2440_vm2, %v2412_v53  ;;  %v1158_v52 = vmul.bf16 %v3505_v16, %v4027_v18  ;;  %v4181_v53 = vld [vmem:[%s3437_s29 + $0xb0] sm:$0x1] }
  0xf9   : > { %v625_v1 = vsel %vm562_vm0, %v623_v60, %v624_v56  ;;  %v627_v31 = vsel %vm562_vm0, %v624_v56, %v626_v58  ;;  %v1072_v3 = vunpack.c.l.bf16 %v1040_v54  ;;  %v923_v15 = vrot.slane %v801_v62, 2 }
  0xfa   : > { %v699_v9 = vadd.f32 %v625_v1, %v367_v6  ;;  %v700_v13 = vadd.f32 %v627_v31, %v368_v30  ;;  %v922_v38 = vsel %vm859_vm1, %v920_v35, %v921_v0  ;;  %v1159_v8 = vmul.bf16 %v3505_v16, %v4030_v4 }
  0xfb   : > { %v1160_v43 = vmul.bf16 %v3505_v16, %v4041_v24  ;;  %v1206_v2 = vunpack.c.l.bf16 %v1158_v52  ;;  %v1454_v19 = vmul.bf16 %v3464_v33, %v4027_v18  ;;  %v924_v20 = vsel %vm859_vm1, %v921_v0, %v923_v15 }
  0xfc   : > { %v996_v63 = vadd.f32 %v922_v38, %v699_v9  ;;  %v1455_v39 = vmul.bf16 %v3464_v33, %v4030_v4  ;;  %v1456_v11 = vmul.bf16 %v3464_v33, %v4041_v24  ;;  %v997_v6 = vadd.f32 %v924_v20, %v700_v13 }
  0xfd   : > { %v1207_v59 = vunpack.c.l.bf16 %v1159_v8  ;;  %v1208_v57 = vunpack.c.l.bf16 %v1160_v43  ;;  %v1326_v23 = vrot.slane %v1206_v2, 1  ;;  %v1502_v30 = vunpack.c.l.bf16 %v1454_v19 }
  0xfe   : > { %v1103_v25 = vadd.f32 %v1071_v17, %v996_v63  ;;  %v1503_v37 = vunpack.c.l.bf16 %v1455_v39  ;;  %v1504_v45 = vunpack.c.l.bf16 %v1456_v11  ;;  %v1104_v46 = vadd.f32 %v1072_v3, %v997_v6 }
  0xff   : > { %v1327_v41 = vrot.slane %v1207_v59, 1  ;;  %v1329_v47 = vrot.slane %v1208_v57, 1  ;;  %v1741_v55 = vmul.bf16 %v3466_v34, %v4167_v42  ;;  %v1622_v48 = vrot.slane %v1502_v30, 2 }
 0x100   : > { %v1623_v49 = vrot.slane %v1503_v37, 2  ;;  %v1625_v26 = vrot.slane %v1504_v45, 2  ;;  %v1742_v60 = vmul.bf16 %v3466_v34, %v4170_v40  ;;  %v1860_v36 = vmul.bf16 %v3541_v5, %v4167_v42 }
 0x101   : > { %v1328_v50 = vsel %vm562_vm0, %v1326_v23, %v1327_v41  ;;  %v1330_v61 = vsel %vm562_vm0, %v1327_v41, %v1329_v47  ;;  %v1773_v14 = vunpack.c.l.bf16 %v1741_v55  ;;  %v1861_v0 = vmul.bf16 %v3541_v5, %v4170_v40 }
 0x102   : > { %v1402_v56 = vadd.f32 %v1328_v50, %v1103_v25  ;;  %v1403_v58 = vadd.f32 %v1330_v61, %v1104_v46  ;;  %v1624_v54 = vsel %vm859_vm1, %v1622_v48, %v1623_v49  ;;  %v1626_v62 = vsel %vm859_vm1, %v1623_v49, %v1625_v26 }
 0x103   : > { %v1774_v35 = vunpack.c.l.bf16 %v1742_v60  ;;  %v1862_v17 = vmul.bf16 %v3541_v5, %v4181_v53  ;;  %v1908_v1 = vunpack.c.l.bf16 %v1860_v36  ;;  %v2156_v52 = vmul.bf16 %v3544_v7, %v4167_v42 }
 0x104   : > { %v1698_v31 = vadd.f32 %v1624_v54, %v1402_v56  ;;  %v1699_v3 = vadd.f32 %v1626_v62, %v1403_v58  ;;  %v2157_v9 = vmul.bf16 %v3544_v7, %v4170_v40  ;;  %v1909_v13 = vunpack.c.l.bf16 %v1861_v0 }
 0x105   : > { %v1910_v38 = vunpack.c.l.bf16 %v1862_v17  ;;  %v2028_v15 = vrot.slane %v1908_v1, 1  ;;  %v2158_v8 = vmul.bf16 %v3544_v7, %v4181_v53  ;;  %v2204_v19 = vunpack.c.l.bf16 %v2156_v52 }
 0x106   : > { %v1805_v43 = vadd.f32 %v1773_v14, %v1698_v31  ;;  %v1806_v2 = vadd.f32 %v1774_v35, %v1699_v3  ;;  %v2205_v20 = vunpack.c.l.bf16 %v2157_v9  ;;  %v2029_v63 = vrot.slane %v1909_v13, 1 }
 0x107   : > { %v2031_v39 = vrot.slane %v1910_v38, 1  ;;  %v2206_v11 = vunpack.c.l.bf16 %v2158_v8  ;;  %v321_v6 = vmul.bf16 %v3452_v27, %v3957_v10  ;;  %v2324_v59 = vrot.slane %v2204_v19, 2 }
 0x108   : > { %v2325_v57 = vrot.slane %v2205_v20, 2  ;;  %v322_v23 = vmul.bf16 %v3452_v27, %v3960_v51  ;;  %v433_v25 = vmul.bf16 %v3462_v32, %v3957_v10  ;;  %v2030_v30 = vsel %vm562_vm0, %v2028_v15, %v2029_v63 }
 0x109   : > { %v2032_v37 = vsel %vm562_vm0, %v2029_v63, %v2031_v39  ;;  %v2327_v45 = vrot.slane %v2206_v11, 2  ;;  %v353_v46 = vunpack.c.l.bf16 %v321_v6  ;;  %v2104_v41 = vadd.f32 %v2030_v30, %v1805_v43 }
 0x10a   : > { %v2105_v47 = vadd.f32 %v2032_v37, %v1806_v2  ;;  %v2326_v55 = vsel %vm859_vm1, %v2324_v59, %v2325_v57  ;;  %v354_v48 = vunpack.c.l.bf16 %v322_v23  ;;  %v434_v26 = vmul.bf16 %v3462_v32, %v3960_v51 }
 0x10b   : > { %v2328_v49 = vsel %vm859_vm1, %v2325_v57, %v2327_v45  ;;  %v435_v60 = vmul.bf16 %v3462_v32, %v3971_v12  ;;  %v481_v50 = vunpack.c.l.bf16 %v433_v25  ;;  %v2400_v61 = vadd.f32 %v2326_v55, %v2104_v41  ;;  %v4237_v55 = vld [vmem:[%s3437_s29 + $0x54] sm:$0xf] }
 0x10c   : > { %v2401_v14 = vadd.f32 %v2328_v49, %v2105_v47  ;;  %v730_v36 = vmul.bf16 %v3454_v28, %v3957_v10  ;;  %v731_v56 = vmul.bf16 %v3454_v28, %v3960_v51  ;;  %v482_v58 = vunpack.c.l.bf16 %v434_v26 }
 0x10d   : > { %v483_v54 = vunpack.c.l.bf16 %v435_v60  ;;  %v588_v62 = vrot.slane %v481_v50, 1  ;;  %v732_v35 = vmul.bf16 %v3454_v28, %v3971_v12  ;;  %v1025_v31 = vmul.bf16 %v3456_v29, %v4095_v21  ;;  %v4240_v50 = vld [vmem:[%s3437_s29 + $0x58] sm:$0xf] }
 0x10e   : > { %v2420_v0 = vpack.c.bf16 %v2401_v14, %v2400_v61  ;;  %v778_v17 = vunpack.c.l.bf16 %v730_v36  ;;  %v779_v1 = vunpack.c.l.bf16 %v731_v56  ;;  %v589_v3 = vrot.slane %v482_v58, 1 }
 0x10f   : > { %v591_v52 = vrot.slane %v483_v54, 1  ;;  %v780_v9 = vunpack.c.l.bf16 %v732_v35  ;;  %v1026_v10 = vmul.bf16 %v3456_v29, %v4100_v22  ;;  %v1057_v38 = vunpack.c.l.bf16 %v1025_v31 }
 0x110   : > { %3165 = vmatprep.mubr.msk.bf16.mxu1 %vm2440_vm2, %v2420_v0  ;;  %v885_v51 = vrot.slane %v778_v17, 2  ;;  %v886_v13 = vrot.slane %v779_v1, 2  ;;  %v1137_v12 = vmul.bf16 %v3505_v16, %v4095_v21  ;;  %v590_v15 = vsel %vm562_vm0, %v588_v62, %v589_v3 }
 0x111   : > { %v592_v8 = vsel %vm562_vm0, %v589_v3, %v591_v52  ;;  %v888_v43 = vrot.slane %v780_v9, 2  ;;  %v1058_v2 = vunpack.c.l.bf16 %v1026_v10  ;;  %v685_v19 = vadd.f32 %v590_v15, %v353_v46  ;;  %v4251_v3 = vld [vmem:[%s3437_s29 + $0x5c] sm:$0x1] }
 0x112   : > { %v686_v20 = vadd.f32 %v592_v8, %v354_v48  ;;  %v887_v63 = vsel %vm859_vm1, %v885_v51, %v886_v13  ;;  %v1138_v39 = vmul.bf16 %v3505_v16, %v4100_v22  ;;  %v1139_v6 = vmul.bf16 %v3505_v16, %v4111_v44 }
 0x113   : > { %v889_v11 = vsel %vm859_vm1, %v886_v13, %v888_v43  ;;  %v1185_v59 = vunpack.c.l.bf16 %v1137_v12  ;;  %v1433_v57 = vmul.bf16 %v3464_v33, %v4095_v21  ;;  %v982_v23 = vadd.f32 %v887_v63, %v685_v19 }
 0x114   : > { %v983_v25 = vadd.f32 %v889_v11, %v686_v20  ;;  %v1186_v30 = vunpack.c.l.bf16 %v1138_v39  ;;  %v1434_v37 = vmul.bf16 %v3464_v33, %v4100_v22  ;;  %v1187_v45 = vunpack.c.l.bf16 %v1139_v6 }
 0x115   : > { %v1291_v46 = vrot.slane %v1185_v59, 1  ;;  %v1435_v41 = vmul.bf16 %v3464_v33, %v4111_v44  ;;  %v1481_v47 = vunpack.c.l.bf16 %v1433_v57  ;;  %v1089_v48 = vadd.f32 %v1057_v38, %v982_v23 }
 0x116   : > { %v1090_v49 = vadd.f32 %v1058_v2, %v983_v25  ;;  %v1292_v26 = vrot.slane %v1186_v30, 1  ;;  %v1482_v60 = vunpack.c.l.bf16 %v1434_v37  ;;  %v1294_v61 = vrot.slane %v1187_v45, 1 }
 0x117   : > { %v1483_v14 = vunpack.c.l.bf16 %v1435_v41  ;;  %v1587_v36 = vrot.slane %v1481_v47, 2  ;;  %v1727_v56 = vmul.bf16 %v3466_v34, %v4237_v55  ;;  %v1728_v62 = vmul.bf16 %v3466_v34, %v4240_v50 }
 0x118   : > { %v1293_v58 = vsel %vm562_vm0, %v1291_v46, %v1292_v26  ;;  %v1588_v54 = vrot.slane %v1482_v60, 2  ;;  %v1839_v35 = vmul.bf16 %v3541_v5, %v4237_v55  ;;  %v1295_v0 = vsel %vm562_vm0, %v1292_v26, %v1294_v61 }
 0x119   : > { %v1388_v17 = vadd.f32 %v1293_v58, %v1089_v48  ;;  %v1590_v1 = vrot.slane %v1483_v14, 2  ;;  %v1759_v31 = vunpack.c.l.bf16 %v1727_v56  ;;  %v1389_v52 = vadd.f32 %v1295_v0, %v1090_v49 }
 0x11a   : > { %v1589_v9 = vsel %vm859_vm1, %v1587_v36, %v1588_v54  ;;  %v1760_v10 = vunpack.c.l.bf16 %v1728_v62  ;;  %v1840_v51 = vmul.bf16 %v3541_v5, %v4240_v50  ;;  %v1841_v12 = vmul.bf16 %v3541_v5, %v4251_v3 }
 0x11b   : > { %v1591_v13 = vsel %vm859_vm1, %v1588_v54, %v1590_v1  ;;  %v1684_v38 = vadd.f32 %v1589_v9, %v1388_v17  ;;  %v1887_v15 = vunpack.c.l.bf16 %v1839_v35  ;;  %v2135_v2 = vmul.bf16 %v3544_v7, %v4237_v55 }
 0x11c   : > { %v1685_v8 = vadd.f32 %v1591_v13, %v1389_v52  ;;  %v1888_v43 = vunpack.c.l.bf16 %v1840_v51  ;;  %v2136_v19 = vmul.bf16 %v3544_v7, %v4240_v50  ;;  %v1889_v63 = vunpack.c.l.bf16 %v1841_v12 }
 0x11d   : > { %v1791_v20 = vadd.f32 %v1759_v31, %v1684_v38  ;;  %v1993_v39 = vrot.slane %v1887_v15, 1  ;;  %v2137_v11 = vmul.bf16 %v3544_v7, %v4251_v3  ;;  %v2183_v57 = vunpack.c.l.bf16 %v2135_v2 }
 0x11e   : > { %v1792_v6 = vadd.f32 %v1760_v10, %v1685_v8  ;;  %v1994_v59 = vrot.slane %v1888_v43, 1  ;;  %v2184_v23 = vunpack.c.l.bf16 %v2136_v19  ;;  %v1996_v25 = vrot.slane %v1889_v63, 1 }
 0x11f   : > { %v2185_v30 = vunpack.c.l.bf16 %v2137_v11  ;;  %v337_v37 = vmul.bf16 %v3452_v27, %v4027_v18  ;;  %v338_v45 = vmul.bf16 %v3452_v27, %v4030_v4  ;;  %v2289_v41 = vrot.slane %v2183_v57, 2 }
 0x120   : > { %v1995_v46 = vsel %vm562_vm0, %v1993_v39, %v1994_v59  ;;  %v2290_v47 = vrot.slane %v2184_v23, 2  ;;  %v457_v48 = vmul.bf16 %v3462_v32, %v4027_v18  ;;  %v1997_v49 = vsel %vm562_vm0, %v1994_v59, %v1996_v25 }
 0x121   : > { %v2090_v26 = vadd.f32 %v1995_v46, %v1791_v20  ;;  %v2292_v60 = vrot.slane %v2185_v30, 2  ;;  %v369_v61 = vunpack.c.l.bf16 %v337_v37  ;;  %v2091_v14 = vadd.f32 %v1997_v49, %v1792_v6 }
 0x122   : > { %v2291_v36 = vsel %vm859_vm1, %v2289_v41, %v2290_v47  ;;  %v370_v56 = vunpack.c.l.bf16 %v338_v45  ;;  %v458_v58 = vmul.bf16 %v3462_v32, %v4030_v4  ;;  %v459_v35 = vmul.bf16 %v3462_v32, %v4041_v24 }
 0x123   : > { %v2293_v54 = vsel %vm859_vm1, %v2290_v47, %v2292_v60  ;;  %v2386_v62 = vadd.f32 %v2291_v36, %v2090_v26  ;;  %v505_v0 = vunpack.c.l.bf16 %v457_v48  ;;  %v754_v31 = vmul.bf16 %v3454_v28, %v4027_v18 }
 0x124   : > { %v2387_v17 = vadd.f32 %v2293_v54, %v2091_v14  ;;  %v506_v1 = vunpack.c.l.bf16 %v458_v58  ;;  %v755_v52 = vmul.bf16 %v3454_v28, %v4030_v4  ;;  %v507_v9 = vunpack.c.l.bf16 %v459_v35  ;;  %v4310_v58 = vld [vmem:[%s3437_s29 + $0xb8] sm:$0xf] }
 0x125   : > { %v628_v10 = vrot.slane %v505_v0, 1  ;;  %v756_v51 = vmul.bf16 %v3454_v28, %v4041_v24  ;;  %v1041_v13 = vmul.bf16 %v3456_v29, %v4167_v42  ;;  %v802_v15 = vunpack.c.l.bf16 %v754_v31 }
 0x126   : > { %v2413_v38 = vpack.c.bf16 %v2387_v17, %v2386_v62  ;;  %v629_v12 = vrot.slane %v506_v1, 1  ;;  %v803_v8 = vunpack.c.l.bf16 %v755_v52  ;;  %v631_v43 = vrot.slane %v507_v9, 1 }
 0x127   : > { %v804_v2 = vunpack.c.l.bf16 %v756_v51  ;;  %v1042_v18 = vmul.bf16 %v3456_v29, %v4170_v40  ;;  %v1073_v19 = vunpack.c.l.bf16 %v1041_v13  ;;  %v925_v20 = vrot.slane %v802_v15, 2 }
 0x128   : > { %3150 = vmatmul.mubr.msk.bf16.gmra.mrb[8].mxu0 %vm2440_vm2, %v2413_v38  ;;  %v630_v4 = vsel %vm562_vm0, %v628_v10, %v629_v12  ;;  %v926_v63 = vrot.slane %v803_v8, 2  ;;  %v1161_v24 = vmul.bf16 %v3505_v16, %v4167_v42  ;;  %v632_v39 = vsel %vm562_vm0, %v629_v12, %v631_v43  ;;  %v4321_v38 = vld [vmem:[%s3437_s29 + $0xbc] sm:$0x1] }
 0x129   : > { %v701_v11 = vadd.f32 %v630_v4, %v369_v61  ;;  %v928_v6 = vrot.slane %v804_v2, 2  ;;  %v1074_v59 = vunpack.c.l.bf16 %v1042_v18  ;;  %v702_v57 = vadd.f32 %v632_v39, %v370_v56  ;;  %v4307_v56 = vld [vmem:[%s3437_s29 + $0xb4] sm:$0xf] }
 0x12a   : > { %v927_v23 = vsel %vm859_vm1, %v925_v20, %v926_v63  ;;  %v1162_v25 = vmul.bf16 %v3505_v16, %v4170_v40  ;;  %v1163_v30 = vmul.bf16 %v3505_v16, %v4181_v53  ;;  %v1209_v46 = vunpack.c.l.bf16 %v1161_v24 }
 0x12b   : > { %v929_v37 = vsel %vm859_vm1, %v926_v63, %v928_v6  ;;  %v998_v45 = vadd.f32 %v927_v23, %v701_v11  ;;  %v1457_v41 = vmul.bf16 %v3464_v33, %v4167_v42  ;;  %v1458_v26 = vmul.bf16 %v3464_v33, %v4170_v40 }
 0x12c   : > { %v999_v47 = vadd.f32 %v929_v37, %v702_v57  ;;  %v1210_v48 = vunpack.c.l.bf16 %v1162_v25  ;;  %v1211_v49 = vunpack.c.l.bf16 %v1163_v30  ;;  %v1331_v61 = vrot.slane %v1209_v46, 1 }
 0x12d   : > { %v1105_v60 = vadd.f32 %v1073_v19, %v998_v45  ;;  %v1459_v14 = vmul.bf16 %v3464_v33, %v4181_v53  ;;  %v1505_v36 = vunpack.c.l.bf16 %v1457_v41  ;;  %v1506_v0 = vunpack.c.l.bf16 %v1458_v26 }
 0x12e   : > { %v1106_v54 = vadd.f32 %v1074_v59, %v999_v47  ;;  %v1332_v62 = vrot.slane %v1210_v48, 1  ;;  %v1334_v35 = vrot.slane %v1211_v49, 1  ;;  %v1743_v31 = vmul.bf16 %v3466_v34, %v4307_v56 }
 0x12f   : > { %v1507_v17 = vunpack.c.l.bf16 %v1459_v14  ;;  %v1627_v1 = vrot.slane %v1505_v36, 2  ;;  %v1744_v52 = vmul.bf16 %v3466_v34, %v4310_v58  ;;  %v1628_v51 = vrot.slane %v1506_v0, 2 }
 0x130   : > { %v1333_v9 = vsel %vm562_vm0, %v1331_v61, %v1332_v62  ;;  %v1335_v10 = vsel %vm562_vm0, %v1332_v62, %v1334_v35  ;;  %v1863_v13 = vmul.bf16 %v3541_v5, %v4307_v56  ;;  %v1775_v43 = vunpack.c.l.bf16 %v1743_v31 }
 0x131   : > { %v1404_v12 = vadd.f32 %v1333_v9, %v1105_v60  ;;  %v1405_v15 = vadd.f32 %v1335_v10, %v1106_v54  ;;  %v1630_v8 = vrot.slane %v1507_v17, 2  ;;  %v1629_v2 = vsel %vm859_vm1, %v1627_v1, %v1628_v51 }
 0x132   : > { %v1776_v18 = vunpack.c.l.bf16 %v1744_v52  ;;  %v1864_v19 = vmul.bf16 %v3541_v5, %v4310_v58  ;;  %v1865_v4 = vmul.bf16 %v3541_v5, %v4321_v38  ;;  %v1911_v24 = vunpack.c.l.bf16 %v1863_v13 }
 0x133   : > { %v1631_v20 = vsel %vm859_vm1, %v1628_v51, %v1630_v8  ;;  %v1700_v63 = vadd.f32 %v1629_v2, %v1404_v12  ;;  %v2159_v39 = vmul.bf16 %v3544_v7, %v4307_v56  ;;  %v2160_v57 = vmul.bf16 %v3544_v7, %v4310_v58 }
 0x134   : > { %v1701_v11 = vadd.f32 %v1631_v20, %v1405_v15  ;;  %v1912_v6 = vunpack.c.l.bf16 %v1864_v19  ;;  %v1913_v59 = vunpack.c.l.bf16 %v1865_v4  ;;  %v2033_v25 = vrot.slane %v1911_v24, 1 }
 0x135   : > { %v1807_v23 = vadd.f32 %v1775_v43, %v1700_v63  ;;  %v2161_v30 = vmul.bf16 %v3544_v7, %v4321_v38  ;;  %v2207_v37 = vunpack.c.l.bf16 %v2159_v39  ;;  %v2208_v47 = vunpack.c.l.bf16 %v2160_v57 }
 0x136   : > { %v1808_v45 = vadd.f32 %v1776_v18, %v1701_v11  ;;  %v2034_v46 = vrot.slane %v1912_v6, 1  ;;  %v2036_v41 = vrot.slane %v1913_v59, 1  ;;  %v323_v26 = vmul.bf16 %v3452_v27, %v4095_v21 }
 0x137   : > { %v2209_v48 = vunpack.c.l.bf16 %v2161_v30  ;;  %v2329_v49 = vrot.slane %v2207_v37, 2  ;;  %v324_v60 = vmul.bf16 %v3452_v27, %v4100_v22  ;;  %v2330_v36 = vrot.slane %v2208_v47, 2 }
 0x138   : > { %v2035_v61 = vsel %vm562_vm0, %v2033_v25, %v2034_v46  ;;  %v2037_v14 = vsel %vm562_vm0, %v2034_v46, %v2036_v41  ;;  %v436_v54 = vmul.bf16 %v3462_v32, %v4095_v21  ;;  %v355_v17 = vunpack.c.l.bf16 %v323_v26 }
 0x139   : > { %v2106_v62 = vadd.f32 %v2035_v61, %v1807_v23  ;;  %v2107_v35 = vadd.f32 %v2037_v14, %v1808_v45  ;;  %v2332_v0 = vrot.slane %v2209_v48, 2  ;;  %v2331_v1 = vsel %vm859_vm1, %v2329_v49, %v2330_v36 }
 0x13a   : > { %v356_v31 = vunpack.c.l.bf16 %v324_v60  ;;  %v437_v52 = vmul.bf16 %v3462_v32, %v4100_v22  ;;  %v438_v9 = vmul.bf16 %v3462_v32, %v4111_v44  ;;  %v484_v13 = vunpack.c.l.bf16 %v436_v54 }
 0x13b   : > { %v2333_v10 = vsel %vm859_vm1, %v2330_v36, %v2332_v0  ;;  %v2402_v51 = vadd.f32 %v2331_v1, %v2106_v62  ;;  %v733_v12 = vmul.bf16 %v3454_v28, %v4095_v21  ;;  %v734_v2 = vmul.bf16 %v3454_v28, %v4100_v22 }
 0x13c   : > { %v2403_v15 = vadd.f32 %v2333_v10, %v2107_v35  ;;  %v485_v8 = vunpack.c.l.bf16 %v437_v52  ;;  %v486_v43 = vunpack.c.l.bf16 %v438_v9  ;;  %v593_v18 = vrot.slane %v484_v13, 1 }
 0x13d   : > { %v735_v19 = vmul.bf16 %v3454_v28, %v4111_v44  ;;  %v781_v4 = vunpack.c.l.bf16 %v733_v12  ;;  %v1027_v20 = vmul.bf16 %v3456_v29, %v4237_v55  ;;  %v782_v11 = vunpack.c.l.bf16 %v734_v2 }
 0x13e   : > { %v2421_v63 = vpack.c.bf16 %v2403_v15, %v2402_v51  ;;  %v594_v24 = vrot.slane %v485_v8, 1  ;;  %v596_v39 = vrot.slane %v486_v43, 1  ;;  %v4357_v6 = vpop.f32.mrb[0].mxu0  ;;  %v1028_v57 = vmul.bf16 %v3456_v29, %v4240_v50  ;;  %v4385_v8 = vld [vmem:[%s3437_s29 + $0x60] sm:$0xf] }
 0x13f   : > { %v783_v21 = vunpack.c.l.bf16 %v735_v19  ;;  %v890_v59 = vrot.slane %v781_v4, 2  ;;  %v1059_v22 = vunpack.c.l.bf16 %v1027_v20  ;;  %v4361_v23 = vpop.f32.mrb[1].mxu0  ;;  %v891_v30 = vrot.slane %v782_v11, 2  ;;  %v4390_v4 = vld [vmem:[%s3437_s29 + $0x64] sm:$0xf] }
 0x140   : > { %3166 = vmatmul.mubr.msk.bf16.gmra.mrb[8].mxu1 %vm2440_vm2, %v2421_v63  ;;  %v595_v44 = vsel %vm562_vm0, %v593_v18, %v594_v24  ;;  %v597_v25 = vsel %vm562_vm0, %v594_v24, %v596_v39  ;;  %v1140_v37 = vmul.bf16 %v3505_v16, %v4237_v55  ;;  %v4368_v45 = vpop.f32.mrb[2].mxu0  ;;  %v1060_v48 = vunpack.c.l.bf16 %v1028_v57 }
 0x141   : > { %v687_v46 = vadd.f32 %v595_v44, %v355_v17  ;;  %v688_v41 = vadd.f32 %v597_v25, %v356_v31  ;;  %v893_v47 = vrot.slane %v783_v21, 2  ;;  %v4370_v49 = vpop.f32.mrb[3].mxu0  ;;  %v892_v26 = vsel %vm859_vm1, %v890_v59, %v891_v30 }
 0x142   : > { %v1141_v60 = vmul.bf16 %v3505_v16, %v4240_v50  ;;  %v1142_v61 = vmul.bf16 %v3505_v16, %v4251_v3  ;;  %v1188_v14 = vunpack.c.l.bf16 %v1140_v37  ;;  %v1436_v62 = vmul.bf16 %v3464_v33, %v4237_v55 }
 0x143   : > { %v894_v36 = vsel %vm859_vm1, %v891_v30, %v893_v47  ;;  %v984_v54 = vadd.f32 %v892_v26, %v687_v46  ;;  %v1437_v35 = vmul.bf16 %v3464_v33, %v4240_v50  ;;  %v1438_v9 = vmul.bf16 %v3464_v33, %v4251_v3  ;;  %v4402_v30 = vld [vmem:[%s3437_s29 + $0x68] sm:$0x1] }
 0x144   : > { %v985_v0 = vadd.f32 %v894_v36, %v688_v41  ;;  %v1189_v17 = vunpack.c.l.bf16 %v1141_v60  ;;  %v1190_v1 = vunpack.c.l.bf16 %v1142_v61  ;;  %v1296_v31 = vrot.slane %v1188_v14, 1 }
 0x145   : > { %v1091_v52 = vadd.f32 %v1059_v22, %v984_v54  ;;  %v1484_v10 = vunpack.c.l.bf16 %v1436_v62  ;;  %v1485_v51 = vunpack.c.l.bf16 %v1437_v35  ;;  %v1729_v43 = vmul.bf16 %v4385_v8, %v3466_v34 }
 0x146   : > { %v1092_v13 = vadd.f32 %v1060_v48, %v985_v0  ;;  %v1297_v12 = vrot.slane %v1189_v17, 1  ;;  %v1299_v15 = vrot.slane %v1190_v1, 1  ;;  %v1486_v2 = vunpack.c.l.bf16 %v1438_v9 }
 0x147   : > { %v1592_v18 = vrot.slane %v1484_v10, 2  ;;  %v1593_v19 = vrot.slane %v1485_v51, 2  ;;  %v1730_v20 = vmul.bf16 %v4390_v4, %v3466_v34  ;;  %v1761_v39 = vunpack.c.l.bf16 %v1729_v43 }
 0x148   : > { %v1298_v63 = vsel %vm562_vm0, %v1296_v31, %v1297_v12  ;;  %v1300_v24 = vsel %vm562_vm0, %v1297_v12, %v1299_v15  ;;  %v1842_v11 = vmul.bf16 %v4385_v8, %v3541_v5  ;;  %v1595_v22 = vrot.slane %v1486_v2, 2 }
 0x149   : > { %v1390_v21 = vadd.f32 %v1298_v63, %v1091_v52  ;;  %v1391_v59 = vadd.f32 %v1300_v24, %v1092_v13  ;;  %v1594_v57 = vsel %vm859_vm1, %v1592_v18, %v1593_v19  ;;  %v1762_v44 = vunpack.c.l.bf16 %v1730_v20 }
 0x14a   : > { %v1843_v25 = vmul.bf16 %v4390_v4, %v3541_v5  ;;  %v1844_v37 = vmul.bf16 %v4402_v30, %v3541_v5  ;;  %v1890_v46 = vunpack.c.l.bf16 %v1842_v11  ;;  %v1596_v41 = vsel %vm859_vm1, %v1593_v19, %v1595_v22 }
 0x14b   : > { %v1686_v47 = vadd.f32 %v1594_v57, %v1390_v21  ;;  %v2138_v48 = vmul.bf16 %v4385_v8, %v3544_v7  ;;  %v2139_v26 = vmul.bf16 %v4390_v4, %v3544_v7  ;;  %v1687_v60 = vadd.f32 %v1596_v41, %v1391_v59 }
 0x14c   : > { %v1891_v61 = vunpack.c.l.bf16 %v1843_v25  ;;  %v1892_v14 = vunpack.c.l.bf16 %v1844_v37  ;;  %v1998_v36 = vrot.slane %v1890_v46, 1  ;;  %v2140_v62 = vmul.bf16 %v4402_v30, %v3544_v7 }
 0x14d   : > { %v1793_v54 = vadd.f32 %v1761_v39, %v1686_v47  ;;  %v2186_v35 = vunpack.c.l.bf16 %v2138_v48  ;;  %v2187_v0 = vunpack.c.l.bf16 %v2139_v26  ;;  %v1794_v17 = vadd.f32 %v1762_v44, %v1687_v60 }
 0x14e   : > { %v1999_v1 = vrot.slane %v1891_v61, 1  ;;  %v2001_v31 = vrot.slane %v1892_v14, 1  ;;  %v339_v52 = vmul.bf16 %v3452_v27, %v4167_v42  ;;  %v2188_v9 = vunpack.c.l.bf16 %v2140_v62 }
 0x14f   : > { %v2294_v10 = vrot.slane %v2186_v35, 2  ;;  %v2295_v51 = vrot.slane %v2187_v0, 2  ;;  %v340_v13 = vmul.bf16 %v3452_v27, %v4170_v40  ;;  %v460_v2 = vmul.bf16 %v3462_v32, %v4167_v42 }
 0x150   : > { %v2000_v12 = vsel %vm562_vm0, %v1998_v36, %v1999_v1  ;;  %v2002_v15 = vsel %vm562_vm0, %v1999_v1, %v2001_v31  ;;  %v371_v43 = vunpack.c.l.bf16 %v339_v52  ;;  %v2297_v63 = vrot.slane %v2188_v9, 2 }
 0x151   : > { %v2092_v18 = vadd.f32 %v2000_v12, %v1793_v54  ;;  %v2093_v19 = vadd.f32 %v2002_v15, %v1794_v17  ;;  %v2296_v20 = vsel %vm859_vm1, %v2294_v10, %v2295_v51  ;;  %v372_v24 = vunpack.c.l.bf16 %v340_v13 }
 0x152   : > { %v461_v39 = vmul.bf16 %v3462_v32, %v4170_v40  ;;  %v462_v11 = vmul.bf16 %v3462_v32, %v4181_v53  ;;  %v508_v21 = vunpack.c.l.bf16 %v460_v2  ;;  %v2298_v59 = vsel %vm859_vm1, %v2295_v51, %v2297_v63 }
 0x153   : > { %v2388_v57 = vadd.f32 %v2296_v20, %v2092_v18  ;;  %v757_v22 = vmul.bf16 %v3454_v28, %v4167_v42  ;;  %v758_v44 = vmul.bf16 %v3454_v28, %v4170_v40  ;;  %v2389_v25 = vadd.f32 %v2298_v59, %v2093_v19 }
 0x154   : > { %v509_v37 = vunpack.c.l.bf16 %v461_v39  ;;  %v510_v46 = vunpack.c.l.bf16 %v462_v11  ;;  %v633_v41 = vrot.slane %v508_v21, 1  ;;  %v759_v47 = vmul.bf16 %v3454_v28, %v4181_v53 }
 0x155   : > { %v805_v48 = vunpack.c.l.bf16 %v757_v22  ;;  %v806_v26 = vunpack.c.l.bf16 %v758_v44  ;;  %v1043_v60 = vmul.bf16 %v3456_v29, %v4307_v56  ;;  %v2414_v61 = vpack.c.bf16 %v2389_v25, %v2388_v57  ;;  %v4463_v22 = vld [vmem:[%s3437_s29 + $0xc0] sm:$0xf] }
 0x156   : > { %v634_v14 = vrot.slane %v509_v37, 1  ;;  %v636_v36 = vrot.slane %v510_v46, 1  ;;  %v1044_v42 = vmul.bf16 %v3456_v29, %v4310_v58  ;;  %v4437_v54 = vpop.f32.mrb[0].mxu1  ;;  %v807_v40 = vunpack.c.l.bf16 %v759_v47 }
 0x157   : > { %v930_v62 = vrot.slane %v805_v48, 2  ;;  %v931_v35 = vrot.slane %v806_v26, 2  ;;  %v1075_v0 = vunpack.c.l.bf16 %v1043_v60  ;;  %v4439_v17 = vpop.f32.mrb[1].mxu1  ;;  %3153 = vmatprep.mubr.msk.bf16.mxu0 %vm2440_vm2, %v2414_v61  ;;  %v1164_v52 = vmul.bf16 %v3505_v16, %v4307_v56 }
 0x158   : > { %v635_v53 = vsel %vm562_vm0, %v633_v41, %v634_v14  ;;  %v637_v1 = vsel %vm562_vm0, %v634_v14, %v636_v36  ;;  %v1076_v31 = vunpack.c.l.bf16 %v1044_v42  ;;  %v4446_v9 = vpop.f32.mrb[2].mxu1  ;;  %v933_v12 = vrot.slane %v807_v40, 2  ;;  %v4466_v41 = vld [vmem:[%s3437_s29 + $0xc4] sm:$0xf] }
 0x159   : > { %v703_v10 = vadd.f32 %v635_v53, %v371_v43  ;;  %v704_v51 = vadd.f32 %v637_v1, %v372_v24  ;;  %v932_v13 = vsel %vm859_vm1, %v930_v62, %v931_v35  ;;  %v4449_v15 = vpop.f32.mrb[3].mxu1  ;;  %v1165_v2 = vmul.bf16 %v3505_v16, %v4310_v58  ;;  %v4477_v53 = vld [vmem:[%s3437_s29 + $0xc8] sm:$0x1] }
 0x15a   : > { %v1166_v18 = vmul.bf16 %v3505_v16, %v4321_v38  ;;  %v1212_v19 = vunpack.c.l.bf16 %v1164_v52  ;;  %v1460_v20 = vmul.bf16 %v3464_v33, %v4307_v56  ;;  %v934_v43 = vsel %vm859_vm1, %v931_v35, %v933_v12 }
 0x15b   : > { %v1000_v63 = vadd.f32 %v932_v13, %v703_v10  ;;  %v1461_v24 = vmul.bf16 %v3464_v33, %v4310_v58  ;;  %v1462_v39 = vmul.bf16 %v3464_v33, %v4321_v38  ;;  %v1001_v11 = vadd.f32 %v934_v43, %v704_v51 }
 0x15c   : > { %v1213_v21 = vunpack.c.l.bf16 %v1165_v2  ;;  %v1214_v59 = vunpack.c.l.bf16 %v1166_v18  ;;  %v1336_v57 = vrot.slane %v1212_v19, 1  ;;  %v1508_v25 = vunpack.c.l.bf16 %v1460_v20 }
 0x15d   : > { %v1107_v44 = vadd.f32 %v1075_v0, %v1000_v63  ;;  %v1509_v37 = vunpack.c.l.bf16 %v1461_v24  ;;  %v1510_v46 = vunpack.c.l.bf16 %v1462_v39  ;;  %v1108_v47 = vadd.f32 %v1076_v31, %v1001_v11 }
 0x15e   : > { %v1337_v48 = vrot.slane %v1213_v21, 1  ;;  %v1339_v26 = vrot.slane %v1214_v59, 1  ;;  %v1745_v60 = vmul.bf16 %v3466_v34, %v4463_v22  ;;  %v1632_v61 = vrot.slane %v1508_v25, 2 }
 0x15f   : > { %v1633_v14 = vrot.slane %v1509_v37, 2  ;;  %v1635_v36 = vrot.slane %v1510_v46, 2  ;;  %v1746_v42 = vmul.bf16 %v3466_v34, %v4466_v41  ;;  %v1866_v0 = vmul.bf16 %v3541_v5, %v4463_v22 }
 0x160   : > { %v1338_v40 = vsel %vm562_vm0, %v1336_v57, %v1337_v48  ;;  %v1340_v62 = vsel %vm562_vm0, %v1337_v48, %v1339_v26  ;;  %v1777_v35 = vunpack.c.l.bf16 %v1745_v60  ;;  %v1867_v13 = vmul.bf16 %v3541_v5, %v4466_v41 }
 0x161   : > { %v1406_v1 = vadd.f32 %v1338_v40, %v1107_v44  ;;  %v1407_v31 = vadd.f32 %v1340_v62, %v1108_v47  ;;  %v1634_v52 = vsel %vm859_vm1, %v1632_v61, %v1633_v14  ;;  %v1636_v10 = vsel %vm859_vm1, %v1633_v14, %v1635_v36 }
 0x162   : > { %v1778_v51 = vunpack.c.l.bf16 %v1746_v42  ;;  %v1868_v12 = vmul.bf16 %v3541_v5, %v4477_v53  ;;  %v1914_v2 = vunpack.c.l.bf16 %v1866_v0  ;;  %v2162_v20 = vmul.bf16 %v3544_v7, %v4463_v22 }
 0x163   : > { %v1702_v18 = vadd.f32 %v1634_v52, %v1406_v1  ;;  %v1703_v19 = vadd.f32 %v1636_v10, %v1407_v31  ;;  %v2163_v43 = vmul.bf16 %v3544_v7, %v4466_v41  ;;  %v1915_v63 = vunpack.c.l.bf16 %v1867_v13 }
 0x164   : > { %v1916_v24 = vunpack.c.l.bf16 %v1868_v12  ;;  %v2038_v39 = vrot.slane %v1914_v2, 1  ;;  %v2164_v11 = vmul.bf16 %v3544_v7, %v4477_v53  ;;  %v2210_v57 = vunpack.c.l.bf16 %v2162_v20 }
 0x165   : > { %v1809_v21 = vadd.f32 %v1777_v35, %v1702_v18  ;;  %v1810_v59 = vadd.f32 %v1778_v51, %v1703_v19  ;;  %v2211_v44 = vunpack.c.l.bf16 %v2163_v43  ;;  %v2039_v25 = vrot.slane %v1915_v63, 1 }
 0x166   : > { %v2041_v37 = vrot.slane %v1916_v24, 1  ;;  %v2212_v46 = vunpack.c.l.bf16 %v2164_v11  ;;  %v325_v47 = vmul.bf16 %v3452_v27, %v4237_v55  ;;  %v2334_v48 = vrot.slane %v2210_v57, 2 }
 0x167   : > { %v2335_v26 = vrot.slane %v2211_v44, 2  ;;  %v326_v60 = vmul.bf16 %v3452_v27, %v4240_v50  ;;  %v439_v61 = vmul.bf16 %v3462_v32, %v4237_v55  ;;  %v2040_v14 = vsel %vm562_vm0, %v2038_v39, %v2039_v25 }
 0x168   : > { %v2042_v36 = vsel %vm562_vm0, %v2039_v25, %v2041_v37  ;;  %v2337_v42 = vrot.slane %v2212_v46, 2  ;;  %v357_v40 = vunpack.c.l.bf16 %v325_v47  ;;  %v2108_v62 = vadd.f32 %v2040_v14, %v1809_v21 }
 0x169   : > { %v2109_v35 = vadd.f32 %v2042_v36, %v1810_v59  ;;  %v2336_v0 = vsel %vm859_vm1, %v2334_v48, %v2335_v26  ;;  %v358_v1 = vunpack.c.l.bf16 %v326_v60  ;;  %v440_v52 = vmul.bf16 %v3462_v32, %v4240_v50 }
 0x16a   : > { %v2338_v31 = vsel %vm859_vm1, %v2335_v26, %v2337_v42  ;;  %v441_v10 = vmul.bf16 %v3462_v32, %v4251_v3  ;;  %v487_v51 = vunpack.c.l.bf16 %v439_v61  ;;  %v2404_v13 = vadd.f32 %v2336_v0, %v2108_v62 }
 0x16b   : > { %v2405_v12 = vadd.f32 %v2338_v31, %v2109_v35  ;;  %v736_v2 = vmul.bf16 %v3454_v28, %v4237_v55  ;;  %v737_v18 = vmul.bf16 %v3454_v28, %v4240_v50  ;;  %v488_v19 = vunpack.c.l.bf16 %v440_v52 }
 0x16c   : > { %v489_v20 = vunpack.c.l.bf16 %v441_v10  ;;  %v598_v43 = vrot.slane %v487_v51, 1  ;;  %v738_v63 = vmul.bf16 %v3454_v28, %v4251_v3  ;;  %v1029_v21 = vmul.bf16 %v4385_v8, %v3456_v29 }
 0x16d   : > { %v2422_v24 = vpack.c.bf16 %v2405_v12, %v2404_v13  ;;  %v784_v39 = vunpack.c.l.bf16 %v736_v2  ;;  %v785_v11 = vunpack.c.l.bf16 %v737_v18  ;;  %v599_v59 = vrot.slane %v488_v19, 1 }
 0x16e   : > { %v601_v57 = vrot.slane %v489_v20, 1  ;;  %v786_v44 = vunpack.c.l.bf16 %v738_v63  ;;  %v1030_v55 = vmul.bf16 %v4390_v4, %v3456_v29  ;;  %v1061_v37 = vunpack.c.l.bf16 %v1029_v21  ;;  %v3241_v21 = vld [vmem:[%s3437_s29 + $0x70] sm:$0xf] }
 0x16f   : > { %3169 = vmatprep.mubr.msk.bf16.mxu1 %vm2440_vm2, %v2422_v24  ;;  %v895_v50 = vrot.slane %v784_v39, 2  ;;  %v896_v25 = vrot.slane %v785_v11, 2  ;;  %v1143_v3 = vmul.bf16 %v4385_v8, %v3505_v16  ;;  %v600_v46 = vsel %vm562_vm0, %v598_v43, %v599_v59  ;;  %v3240_v24 = vld [vmem:[%s3437_s29 + $0x6c] sm:$0xf] }
 0x170   : > { %v602_v47 = vsel %vm562_vm0, %v599_v59, %v601_v57  ;;  %v898_v48 = vrot.slane %v786_v44, 2  ;;  %v1062_v26 = vunpack.c.l.bf16 %v1030_v55  ;;  %v689_v60 = vadd.f32 %v600_v46, %v357_v40 }
 0x171   : > { %v690_v61 = vadd.f32 %v602_v47, %v358_v1  ;;  %v897_v14 = vsel %vm859_vm1, %v895_v50, %v896_v25  ;;  %v1144_v36 = vmul.bf16 %v4390_v4, %v3505_v16  ;;  %v1145_v62 = vmul.bf16 %v4402_v30, %v3505_v16 }
 0x172   : > { %v899_v42 = vsel %vm859_vm1, %v896_v25, %v898_v48  ;;  %v1191_v35 = vunpack.c.l.bf16 %v1143_v3  ;;  %v1439_v0 = vmul.bf16 %v4385_v8, %v3464_v33  ;;  %v986_v31 = vadd.f32 %v897_v14, %v689_v60 }
 0x173   : > { %v987_v52 = vadd.f32 %v899_v42, %v690_v61  ;;  %v1192_v10 = vunpack.c.l.bf16 %v1144_v36  ;;  %v1440_v40 = vmul.bf16 %v4390_v4, %v3464_v33  ;;  %v1193_v1 = vunpack.c.l.bf16 %v1145_v62 }
 0x174   : > { %v1301_v51 = vrot.slane %v1191_v35, 1  ;;  %v1441_v13 = vmul.bf16 %v4402_v30, %v3464_v33  ;;  %v1487_v12 = vunpack.c.l.bf16 %v1439_v0  ;;  %v1093_v2 = vadd.f32 %v1061_v37, %v986_v31 }
 0x175   : > { %v1094_v18 = vadd.f32 %v1062_v26, %v987_v52  ;;  %v1302_v19 = vrot.slane %v1192_v10, 1  ;;  %v1488_v20 = vunpack.c.l.bf16 %v1440_v40  ;;  %v1304_v43 = vrot.slane %v1193_v1, 1  ;;  %v3242_v26 = vld [vmem:[%s3437_s29 + $0x74] sm:$0x1] }
 0x176   : > { %v1489_v8 = vunpack.c.l.bf16 %v1441_v13  ;;  %v1597_v63 = vrot.slane %v1487_v12, 2  ;;  %v1731_v39 = vmul.bf16 %v3240_v24, %v3466_v34  ;;  %v1732_v59 = vmul.bf16 %v3241_v21, %v3466_v34 }
 0x177   : > { %v1303_v4 = vsel %vm562_vm0, %v1301_v51, %v1302_v19  ;;  %v1598_v11 = vrot.slane %v1488_v20, 2  ;;  %v1845_v30 = vmul.bf16 %v3240_v24, %v3541_v5  ;;  %v1305_v57 = vsel %vm562_vm0, %v1302_v19, %v1304_v43 }
 0x178   : > { %v1392_v44 = vadd.f32 %v1303_v4, %v1093_v2  ;;  %v1600_v55 = vrot.slane %v1489_v8, 2  ;;  %v1763_v50 = vunpack.c.l.bf16 %v1731_v39  ;;  %v1393_v25 = vadd.f32 %v1305_v57, %v1094_v18 }
 0x179   : > { %v1599_v37 = vsel %vm859_vm1, %v1597_v63, %v1598_v11  ;;  %v1764_v3 = vunpack.c.l.bf16 %v1732_v59  ;;  %v1846_v46 = vmul.bf16 %v3241_v21, %v3541_v5  ;;  %v1847_v60 = vmul.bf16 %v3242_v26, %v3541_v5 }
 0x17a   : > { %v1601_v47 = vsel %vm859_vm1, %v1598_v11, %v1600_v55  ;;  %v1688_v48 = vadd.f32 %v1599_v37, %v1392_v44  ;;  %v1893_v61 = vunpack.c.l.bf16 %v1845_v30  ;;  %v2141_v42 = vmul.bf16 %v3240_v24, %v3544_v7 }
 0x17b   : > { %v1689_v14 = vadd.f32 %v1601_v47, %v1393_v25  ;;  %v1894_v36 = vunpack.c.l.bf16 %v1846_v46  ;;  %v2142_v62 = vmul.bf16 %v3241_v21, %v3544_v7  ;;  %v1895_v0 = vunpack.c.l.bf16 %v1847_v60 }
 0x17c   : > { %v1795_v35 = vadd.f32 %v1763_v50, %v1688_v48  ;;  %v2003_v31 = vrot.slane %v1893_v61, 1  ;;  %v2143_v52 = vmul.bf16 %v3242_v26, %v3544_v7  ;;  %v2189_v1 = vunpack.c.l.bf16 %v2141_v42 }
 0x17d   : > { %v1796_v10 = vadd.f32 %v1764_v3, %v1689_v14  ;;  %v2004_v40 = vrot.slane %v1894_v36, 1  ;;  %v2190_v51 = vunpack.c.l.bf16 %v2142_v62  ;;  %v2006_v13 = vrot.slane %v1895_v0, 1 }
 0x17e   : > { %v2191_v12 = vunpack.c.l.bf16 %v2143_v52  ;;  %v341_v2 = vmul.bf16 %v3452_v27, %v4307_v56  ;;  %v342_v18 = vmul.bf16 %v3452_v27, %v4310_v58  ;;  %v2299_v20 = vrot.slane %v2189_v1, 2 }
 0x17f   : > { %v2005_v19 = vsel %vm562_vm0, %v2003_v31, %v2004_v40  ;;  %v2300_v43 = vrot.slane %v2190_v51, 2  ;;  %v463_v8 = vmul.bf16 %v3462_v32, %v4307_v56  ;;  %v2007_v63 = vsel %vm562_vm0, %v2004_v40, %v2006_v13 }
 0x180   : > { %v2094_v24 = vadd.f32 %v2005_v19, %v1795_v35  ;;  %v2302_v39 = vrot.slane %v2191_v12, 2  ;;  %v373_v4 = vunpack.c.l.bf16 %v341_v2  ;;  %v2095_v11 = vadd.f32 %v2007_v63, %v1796_v10  ;;  %v294_v19 = vld [vmem:[%s3437_s29 + $0xcc] sm:$0xf] }
 0x181   : > { %v2301_v21 = vsel %vm859_vm1, %v2299_v20, %v2300_v43  ;;  %v374_v59 = vunpack.c.l.bf16 %v342_v18  ;;  %v464_v30 = vmul.bf16 %v3462_v32, %v4310_v58  ;;  %v465_v44 = vmul.bf16 %v3462_v32, %v4321_v38  ;;  %v295_v20 = vld [vmem:[%s3437_s29 + $0xd0] sm:$0xf] }
 0x182   : > { %v2303_v27 = vsel %vm859_vm1, %v2300_v43, %v2302_v39  ;;  %v2390_v57 = vadd.f32 %v2301_v21, %v2094_v24  ;;  %v511_v55 = vunpack.c.l.bf16 %v463_v8  ;;  %v760_v37 = vmul.bf16 %v3454_v28, %v4307_v56 }
 0x183   : > { %v2391_v50 = vadd.f32 %v2303_v27, %v2095_v11  ;;  %v512_v25 = vunpack.c.l.bf16 %v464_v30  ;;  %v761_v3 = vmul.bf16 %v3454_v28, %v4310_v58  ;;  %v513_v46 = vunpack.c.l.bf16 %v465_v44 }
 0x184   : > { %v638_v47 = vrot.slane %v511_v55, 1  ;;  %v762_v48 = vmul.bf16 %v3454_v28, %v4321_v38  ;;  %v1045_v26 = vmul.bf16 %v3456_v29, %v4463_v22  ;;  %v808_v32 = vunpack.c.l.bf16 %v760_v37 }
 0x185   : > { %v2415_v60 = vpack.c.bf16 %v2391_v50, %v2390_v57  ;;  %v639_v61 = vrot.slane %v512_v25, 1  ;;  %v809_v14 = vunpack.c.l.bf16 %v761_v3  ;;  %v641_v36 = vrot.slane %v513_v46, 1  ;;  %v296_v57 = vld [vmem:[%s3437_s29 + $0xd4] sm:$0x1]  ;;  %s3247_s29 = sshll.u32 %s3323_s27, 4  ;;  %s3248_s29 = int_to_ptr.vmem [resolvable:$false] %s3247_s29 }
 0x186   : > { %v810_v42 = vunpack.c.l.bf16 %v762_v48  ;;  %v1046_v56 = vmul.bf16 %v3456_v29, %v4466_v41  ;;  %v1077_v62 = vunpack.c.l.bf16 %v1045_v26  ;;  %v935_v35 = vrot.slane %v808_v32, 2  ;;  %s3249_s7 = scalar_lea.vmem %s3248_s29, 4096  ;;  %p3250_p1 = scmp.lt.s32.totalorder %s4760_s15, %s3248_s29 }
 0x187   : > { %3154 = vmatmul.mubr.msk.bf16.gmra.mrb[12].mxu0 %vm2440_vm2, %v2415_v60  ;;  %v640_v58 = vsel %vm562_vm0, %v638_v47, %v639_v61  ;;  %v936_v28 = vrot.slane %v809_v14, 2  ;;  %v1167_v38 = vmul.bf16 %v3505_v16, %v4463_v22  ;;  %v642_v0 = vsel %vm562_vm0, %v639_v61, %v641_v36  ;;  %p3251_p2 = scmp.lt.s32.totalorder %s3249_s7, %s3243_s25 }
 0x188   : > { %v705_v31 = vadd.f32 %v640_v58, %v373_v4  ;;  %v938_v52 = vrot.slane %v810_v42, 2  ;;  %v1078_v10 = vunpack.c.l.bf16 %v1046_v56  ;;  %v706_v40 = vadd.f32 %v642_v0, %v374_v59 }
 0x189   : > { %v937_v29 = vsel %vm859_vm1, %v935_v35, %v936_v28  ;;  %v1168_v1 = vmul.bf16 %v3505_v16, %v4466_v41  ;;  %v1169_v51 = vmul.bf16 %v3505_v16, %v4477_v53  ;;  %v1215_v2 = vunpack.c.l.bf16 %v1167_v38  ;;  %v4605_v35 = vld [vmem:[%s4819_s3] ss:$0 sm:$0xff]  ;;  %p3252_p3 = por %p3251_p2, %p3250_p1 }
 0x18a   : > { %v939_v13 = vsel %vm859_vm1, %v936_v28, %v938_v52  ;;  %v1002_v12 = vadd.f32 %v937_v29, %v705_v31  ;;  %v1463_v18 = vmul.bf16 %v3464_v33, %v4463_v22  ;;  %v1464_v24 = vmul.bf16 %v3464_v33, %v4466_v41  ;;  %v4612_v29 = vld [vmem:[%s4820_s4] ss:$0 sm:$0xff] }
 0x18b   : > { %v1003_v43 = vadd.f32 %v939_v13, %v706_v40  ;;  %v1216_v8 = vunpack.c.l.bf16 %v1168_v1  ;;  %v1217_v63 = vunpack.c.l.bf16 %v1169_v51  ;;  %v1341_v4 = vrot.slane %v1215_v2, 1  ;;  %p3253_p5 = pnand %p3252_p3, %p3246_p0 }
 0x18c   : > { %v1109_v39 = vadd.f32 %v1077_v62, %v1002_v12  ;;  %v1465_v16 = vmul.bf16 %v3464_v33, %v4477_v53  ;;  %v1511_v11 = vunpack.c.l.bf16 %v1463_v18  ;;  %v1512_v27 = vunpack.c.l.bf16 %v1464_v24 }
 0x18d   : > { %v1110_v21 = vadd.f32 %v1078_v10, %v1003_v43  ;;  %v1342_v59 = vrot.slane %v1216_v8, 1  ;;  %v1344_v30 = vrot.slane %v1217_v63, 1  ;;  %v1747_v55 = vmul.bf16 %v3466_v34, %v294_v19 }
 0x18e   : > { %v1513_v22 = vunpack.c.l.bf16 %v1465_v16  ;;  %v1637_v44 = vrot.slane %v1511_v11, 2  ;;  %v1748_v50 = vmul.bf16 %v3466_v34, %v295_v20  ;;  %v1638_v37 = vrot.slane %v1512_v27, 2 }
 0x18f   : > { %v1343_v25 = vsel %vm562_vm0, %v1341_v4, %v1342_v59  ;;  %v1345_v41 = vsel %vm562_vm0, %v1342_v59, %v1344_v30  ;;  %v1869_v3 = vmul.bf16 %v3541_v5, %v294_v19  ;;  %v1779_v47 = vunpack.c.l.bf16 %v1747_v55 }
 0x190   : > { %v1408_v33 = vadd.f32 %v1343_v25, %v1109_v39  ;;  %v1409_v53 = vadd.f32 %v1345_v41, %v1110_v21  ;;  %v1640_v46 = vrot.slane %v1513_v22, 2  ;;  %v1639_v48 = vsel %vm859_vm1, %v1637_v44, %v1638_v37 }
 0x191   : > { %v1780_v26 = vunpack.c.l.bf16 %v1748_v50  ;;  %v1870_v60 = vmul.bf16 %v3541_v5, %v295_v20  ;;  %v1871_v61 = vmul.bf16 %v3541_v5, %v296_v57  ;;  %v1917_v14 = vunpack.c.l.bf16 %v1869_v3 }
 0x192   : > { %v1641_v34 = vsel %vm859_vm1, %v1638_v37, %v1640_v46  ;;  %v1704_v32 = vadd.f32 %v1639_v48, %v1408_v33  ;;  %v2165_v36 = vmul.bf16 %v3544_v7, %v294_v19  ;;  %v2166_v58 = vmul.bf16 %v3544_v7, %v295_v20 }
 0x193   : > { %v1705_v42 = vadd.f32 %v1641_v34, %v1409_v53  ;;  %v1918_v56 = vunpack.c.l.bf16 %v1870_v60  ;;  %v1919_v62 = vunpack.c.l.bf16 %v1871_v61  ;;  %v2043_v38 = vrot.slane %v1917_v14, 1 }
 0x194   : > { %v1811_v28 = vadd.f32 %v1779_v47, %v1704_v32  ;;  %v2167_v5 = vmul.bf16 %v3544_v7, %v296_v57  ;;  %v2213_v0 = vunpack.c.l.bf16 %v2165_v36  ;;  %v2214_v40 = vunpack.c.l.bf16 %v2166_v58 }
 0x195   : > { %v1812_v31 = vadd.f32 %v1780_v26, %v1705_v42  ;;  %v2044_v52 = vrot.slane %v1918_v56, 1  ;;  %v2046_v10 = vrot.slane %v1919_v62, 1  ;;  %v2659_v13 = vmul.f32 %v4357_v6, %v4605_v35 }
 0x196   : > { %v2215_v1 = vunpack.c.l.bf16 %v2167_v5  ;;  %v2339_v51 = vrot.slane %v2213_v0, 2  ;;  %v2340_v2 = vrot.slane %v2214_v40, 2  ;;  %v2675_v18 = vmul.f32 %v4437_v54, %v4605_v35 }
 0x197   : > { %v2045_v7 = vsel %vm562_vm0, %v2043_v38, %v2044_v52  ;;  %v2047_v12 = vsel %vm562_vm0, %v2044_v52, %v2046_v10  ;;  %v2698_v8 = vadd.f32 %v4612_v29, %v2659_v13  ;;  %v2657_v24 = vmul.f32 %v4605_v35, %v4361_v23 }
 0x198   : > { %v2110_v19 = vadd.f32 %v2045_v7, %v1811_v28  ;;  %v2111_v20 = vadd.f32 %v2047_v12, %v1812_v31  ;;  %v2342_v43 = vrot.slane %v2215_v1, 2  ;;  %v2341_v63 = vsel %vm859_vm1, %v2339_v51, %v2340_v2 }
 0x199   : > { %v2714_v6 = vadd.f32 %v4612_v29, %v2675_v18  ;;  %v2673_v39 = vmul.f32 %v4605_v35, %v4439_v17  ;;  %v2730_v16 = vmax.f32 %v2698_v8, 0.0  ;;  %v2660_v11 = vmul.f32 %v4368_v45, %v4605_v35 }
 0x19a   : > { %v2343_v4 = vsel %vm859_vm1, %v2340_v2, %v2342_v43  ;;  %v2406_v54 = vadd.f32 %v2341_v63, %v2110_v19  ;;  %v2696_v30 = vadd.f32 %v4612_v29, %v2657_v24  ;;  %v2676_v23 = vmul.f32 %v4446_v9, %v4605_v35 }
 0x19b   : > { %v2407_v21 = vadd.f32 %v2343_v4, %v2111_v20  ;;  %v2746_v59 = vmax.f32 %v2714_v6, 0.0  ;;  %v2712_v27 = vadd.f32 %v4612_v29, %v2673_v39  ;;  %v3088_v57 = vpack.c.bf16 %v2730_v16, %v2730_v16 }
 0x19c   : > { %v2699_v22 = vadd.f32 %v4612_v29, %v2660_v11  ;;  %v2658_v17 = vmul.f32 %v4605_v35, %v4370_v49  ;;  %v3147_v44 = vpop.f32.mrb[4].mxu0  ;;  %v2728_v25 = vmax.f32 %v2696_v30, 0.0  ;;  %v2715_v3 = vadd.f32 %v4612_v29, %v2676_v23 }
 0x19d   : > { %v2423_v55 = vpack.c.bf16 %v2407_v21, %v2406_v54  ;;  %v3104_v50 = vpack.c.bf16 %v2746_v59, %v2746_v59  ;;  %v2744_v45 = vmax.f32 %v2712_v27, 0.0  ;;  %v2539_v41 = vpop.f32.mrb[5].mxu0  ;;  %2891 = vst.msk [vmem:[%s4639_s13 + $0x8] sm:$0xf] %vm2888_vm3, %v3088_v57  ;;  %v2674_v49 = vmul.f32 %v4605_v35, %v4449_v15 }
 0x19e   : > { %v2731_v37 = vmax.f32 %v2699_v22, 0.0  ;;  %v2697_v9 = vadd.f32 %v4612_v29, %v2658_v17  ;;  %v3148_v33 = vpop.f32.mrb[6].mxu0  ;;  %v3086_v53 = vpack.c.bf16 %v2728_v25, %v2728_v25  ;;  %v2663_v47 = vmul.f32 %v3147_v44, %v4605_v35 }
 0x19f   : > { %3170 = vmatmul.mubr.msk.bf16.gmra.mrb[12].mxu1 %vm2440_vm2, %v2423_v55  ;;  %2907 = vst.msk [vmem:[%s4639_s13 + $0x48] sm:$0xf] %vm2888_vm3, %v3104_v50  ;;  %v3102_v46 = vpack.c.bf16 %v2744_v45, %v2744_v45  ;;  %v2661_v48 = vmul.f32 %v4605_v35, %v2539_v41  ;;  %v2542_v26 = vpop.f32.mrb[7].mxu0  ;;  %v2747_v61 = vmax.f32 %v2715_v3, 0.0  ;;  %v2713_v32 = vadd.f32 %v4612_v29, %v2674_v49 }
 0x1a0   : > { %v3089_v60 = vpack.c.bf16 %v2731_v37, %v2731_v37  ;;  %v2729_v34 = vmax.f32 %v2697_v9, 0.0  ;;  %2889 = vst.msk [vmem:[%s4639_s13] sm:$0xf] %vm2888_vm3, %v3086_v53  ;;  %v2702_v15 = vadd.f32 %v4612_v29, %v2663_v47  ;;  %v2664_v36 = vmul.f32 %v3148_v33, %v4605_v35 }
 0x1a1   : > { %2905 = vst.msk [vmem:[%s4639_s13 + $0x40] sm:$0xf] %vm2888_vm3, %v3102_v46  ;;  %v2700_v14 = vadd.f32 %v4612_v29, %v2661_v48  ;;  %v2662_v42 = vmul.f32 %v4605_v35, %v2542_v26  ;;  %v3105_v56 = vpack.c.bf16 %v2747_v61, %v2747_v61  ;;  %v2745_v58 = vmax.f32 %v2713_v32, 0.0 }
 0x1a2   : > { %2892 = vst.msk [vmem:[%s4639_s13 + $0xc] sm:$0xf] %vm2888_vm3, %v3089_v60  ;;  %v3087_v62 = vpack.c.bf16 %v2729_v34, %v2729_v34  ;;  %v2734_v28 = vmax.f32 %v2702_v15, 0.0  ;;  %v2703_v5 = vadd.f32 %v4612_v29, %v2664_v36 }
 0x1a3   : > { %v2732_v38 = vmax.f32 %v2700_v14, 0.0  ;;  %v2701_v0 = vadd.f32 %v4612_v29, %v2662_v42  ;;  %2908 = vst.msk [vmem:[%s4639_s13 + $0x4c] sm:$0xf] %vm2888_vm3, %v3105_v56  ;;  %v3103_v31 = vpack.c.bf16 %v2745_v58, %v2745_v58 }
 0x1a4   : > { %2890 = vst.msk [vmem:[%s4639_s13 + $0x4] sm:$0xf] %vm2888_vm3, %v3087_v62  ;;  %v3092_v52 = vpack.c.bf16 %v2734_v28, %v2734_v28  ;;  %v2735_v40 = vmax.f32 %v2703_v5, 0.0 }
 0x1a5   : > { %v3090_v10 = vpack.c.bf16 %v2732_v38, %v2732_v38  ;;  %v2733_v1 = vmax.f32 %v2701_v0, 0.0  ;;  %2906 = vst.msk [vmem:[%s4639_s13 + $0x44] sm:$0xf] %vm2888_vm3, %v3103_v31 }
 0x1a6   : > { %2895 = vst.msk [vmem:[%s4639_s13 + $0x18] sm:$0xf] %vm2888_vm3, %v3092_v52  ;;  %v3093_v51 = vpack.c.bf16 %v2735_v40, %v2735_v40 }
 0x1a7   : > { %2893 = vst.msk [vmem:[%s4639_s13 + $0x10] sm:$0xf] %vm2888_vm3, %v3090_v10  ;;  %v3091_v13 = vpack.c.bf16 %v2733_v1, %v2733_v1 }
 0x1a8   : > { %2896 = vst.msk [vmem:[%s4639_s13 + $0x1c] sm:$0xf] %vm2888_vm3, %v3093_v51 }
 0x1a9   : > { %2894 = vst.msk [vmem:[%s4639_s13 + $0x14] sm:$0xf] %vm2888_vm3, %v3091_v13 }
 0x1b4   : > { %v3163_v7 = vpop.f32.mrb[4].mxu1 }
 0x1b5   : > { %v2679_v12 = vmul.f32 %v3163_v7, %v4605_v35  ;;  %v2603_v2 = vpop.f32.mrb[5].mxu1 }
 0x1b6   : > { %v2677_v18 = vmul.f32 %v4605_v35, %v2603_v2  ;;  %v3164_v19 = vpop.f32.mrb[6].mxu1 }
 0x1b7   : > { %v2718_v20 = vadd.f32 %v4612_v29, %v2679_v12  ;;  %v2680_v43 = vmul.f32 %v3164_v19, %v4605_v35  ;;  %v2606_v8 = vpop.f32.mrb[7].mxu1 }
 0x1b8   : > { %v2716_v63 = vadd.f32 %v4612_v29, %v2677_v18  ;;  %v2678_v6 = vmul.f32 %v4605_v35, %v2606_v8 }
 0x1b9   : > { %v2750_v24 = vmax.f32 %v2718_v20, 0.0  ;;  %v2719_v39 = vadd.f32 %v4612_v29, %v2680_v43 }
 0x1ba   : > { %v2748_v4 = vmax.f32 %v2716_v63, 0.0  ;;  %v2717_v54 = vadd.f32 %v4612_v29, %v2678_v6 }
 0x1bb   : > { %v3108_v16 = vpack.c.bf16 %v2750_v24, %v2750_v24  ;;  %v2751_v11 = vmax.f32 %v2719_v39, 0.0 }
 0x1bc   : > { %v3106_v21 = vpack.c.bf16 %v2748_v4, %v2748_v4  ;;  %v2749_v59 = vmax.f32 %v2717_v54, 0.0 }
 0x1bd   : > { %2911 = vst.msk [vmem:[%s4639_s13 + $0x58] sm:$0xf] %vm2888_vm3, %v3108_v16  ;;  %v3109_v30 = vpack.c.bf16 %v2751_v11, %v2751_v11 }
 0x1be   : > { %2909 = vst.msk [vmem:[%s4639_s13 + $0x50] sm:$0xf] %vm2888_vm3, %v3106_v21  ;;  %v3107_v27 = vpack.c.bf16 %v2749_v59, %v2749_v59 }
 0x1bf   : > { %2912 = vst.msk [vmem:[%s4639_s13 + $0x5c] sm:$0xf] %vm2888_vm3, %v3109_v30 }
 0x1c0   : > { %2910 = vst.msk [vmem:[%s4639_s13 + $0x54] sm:$0xf] %vm2888_vm3, %v3107_v27 }
 0x1fb   : > { %v3151_v57 = vpop.f32.mrb[8].mxu0 }
 0x1fc   : > { %v2667_v22 = vmul.f32 %v3151_v57, %v4605_v35  ;;  %v2555_v23 = vpop.f32.mrb[9].mxu0 }
 0x1fd   : > { %v2665_v17 = vmul.f32 %v4605_v35, %v2555_v23  ;;  %v3152_v44 = vpop.f32.mrb[10].mxu0 }
 0x1fe   : > { %v2706_v55 = vadd.f32 %v4612_v29, %v2667_v22  ;;  %v2668_v50 = vmul.f32 %v3152_v44, %v4605_v35  ;;  %v2558_v25 = vpop.f32.mrb[11].mxu0 }
 0x1ff   : > { %v2704_v45 = vadd.f32 %v4612_v29, %v2665_v17  ;;  %v2666_v41 = vmul.f32 %v4605_v35, %v2558_v25 }
 0x200   : > { %v2738_v37 = vmax.f32 %v2706_v55, 0.0  ;;  %v2707_v3 = vadd.f32 %v4612_v29, %v2668_v50 }
 0x201   : > { %v2736_v9 = vmax.f32 %v2704_v45, 0.0  ;;  %v2705_v49 = vadd.f32 %v4612_v29, %v2666_v41 }
 0x202   : > { %v3096_v33 = vpack.c.bf16 %v2738_v37, %v2738_v37  ;;  %v2739_v53 = vmax.f32 %v2707_v3, 0.0 }
 0x203   : > { %v3094_v46 = vpack.c.bf16 %v2736_v9, %v2736_v9  ;;  %v2737_v47 = vmax.f32 %v2705_v49, 0.0 }
 0x204   : > { %2899 = vst.msk [vmem:[%s4639_s13 + $0x28] sm:$0xf] %vm2888_vm3, %v3096_v33  ;;  %v3097_v48 = vpack.c.bf16 %v2739_v53, %v2739_v53 }
 0x205   : > { %2897 = vst.msk [vmem:[%s4639_s13 + $0x20] sm:$0xf] %vm2888_vm3, %v3094_v46  ;;  %v3095_v26 = vpack.c.bf16 %v2737_v47, %v2737_v47 }
 0x206   : > { %2900 = vst.msk [vmem:[%s4639_s13 + $0x2c] sm:$0xf] %vm2888_vm3, %v3097_v48 }
 0x207   : > { %2898 = vst.msk [vmem:[%s4639_s13 + $0x24] sm:$0xf] %vm2888_vm3, %v3095_v26 }
 0x213   : > { %v3167_v60 = vpop.f32.mrb[8].mxu1 }
 0x214   : > { %v2683_v61 = vmul.f32 %v3167_v60, %v4605_v35  ;;  %v2619_v34 = vpop.f32.mrb[9].mxu1 }
 0x215   : > { %v2681_v32 = vmul.f32 %v4605_v35, %v2619_v34  ;;  %v3168_v15 = vpop.f32.mrb[10].mxu1 }
 0x216   : > { %v2722_v14 = vadd.f32 %v4612_v29, %v2683_v61  ;;  %v2684_v36 = vmul.f32 %v3168_v15, %v4605_v35  ;;  %v2622_v42 = vpop.f32.mrb[11].mxu1 }
 0x217   : > { %v2720_v56 = vadd.f32 %v4612_v29, %v2681_v32  ;;  %v2682_v62 = vmul.f32 %v4605_v35, %v2622_v42 }
 0x218   : > { %v2754_v58 = vmax.f32 %v2722_v14, 0.0  ;;  %v2723_v28 = vadd.f32 %v4612_v29, %v2684_v36 }
 0x219   : > { %v2752_v38 = vmax.f32 %v2720_v56, 0.0  ;;  %v2721_v5 = vadd.f32 %v4612_v29, %v2682_v62 }
 0x21a   : > { %v3112_v0 = vpack.c.bf16 %v2754_v58, %v2754_v58  ;;  %v2755_v31 = vmax.f32 %v2723_v28, 0.0 }
 0x21b   : > { %v3110_v52 = vpack.c.bf16 %v2752_v38, %v2752_v38  ;;  %v2753_v10 = vmax.f32 %v2721_v5, 0.0 }
 0x21c   : > { %2915 = vst.msk [vmem:[%s4639_s13 + $0x68] sm:$0xf] %vm2888_vm3, %v3112_v0  ;;  %v3113_v40 = vpack.c.bf16 %v2755_v31, %v2755_v31 }
 0x21d   : > { %2913 = vst.msk [vmem:[%s4639_s13 + $0x60] sm:$0xf] %vm2888_vm3, %v3110_v52  ;;  %v3111_v1 = vpack.c.bf16 %v2753_v10, %v2753_v10 }
 0x21e   : > { %2916 = vst.msk [vmem:[%s4639_s13 + $0x6c] sm:$0xf] %vm2888_vm3, %v3113_v40 }
 0x21f   : > { %2914 = vst.msk [vmem:[%s4639_s13 + $0x64] sm:$0xf] %vm2888_vm3, %v3111_v1 }
 0x25a   : > { %v3155_v51 = vpop.f32.mrb[12].mxu0 }
 0x25b   : > { %v2671_v13 = vmul.f32 %v3155_v51, %v4605_v35  ;;  %v2571_v7 = vpop.f32.mrb[13].mxu0 }
 0x25c   : > { %v2669_v12 = vmul.f32 %v4605_v35, %v2571_v7  ;;  %v3156_v2 = vpop.f32.mrb[14].mxu0 }
 0x25d   : > { %v2710_v18 = vadd.f32 %v4612_v29, %v2671_v13  ;;  %v2672_v19 = vmul.f32 %v3156_v2, %v4605_v35  ;;  %v2574_v20 = vpop.f32.mrb[15].mxu0 }
 0x25e   : > { %v2708_v43 = vadd.f32 %v4612_v29, %v2669_v12  ;;  %v2670_v8 = vmul.f32 %v4605_v35, %v2574_v20 }
 0x25f   : > { %v2742_v63 = vmax.f32 %v2710_v18, 0.0  ;;  %v2711_v6 = vadd.f32 %v4612_v29, %v2672_v19 }
 0x260   : > { %v2740_v24 = vmax.f32 %v2708_v43, 0.0  ;;  %v2709_v39 = vadd.f32 %v4612_v29, %v2670_v8 }
 0x261   : > { %v3100_v4 = vpack.c.bf16 %v2742_v63, %v2742_v63  ;;  %v2743_v54 = vmax.f32 %v2711_v6, 0.0 }
 0x262   : > { %v3098_v16 = vpack.c.bf16 %v2740_v24, %v2740_v24  ;;  %v2741_v11 = vmax.f32 %v2709_v39, 0.0 }
 0x263   : > { %2903 = vst.msk [vmem:[%s4639_s13 + $0x38] sm:$0xf] %vm2888_vm3, %v3100_v4  ;;  %v3101_v21 = vpack.c.bf16 %v2743_v54, %v2743_v54 }
 0x264   : > { %2901 = vst.msk [vmem:[%s4639_s13 + $0x30] sm:$0xf] %vm2888_vm3, %v3098_v16  ;;  %v3099_v59 = vpack.c.bf16 %v2741_v11, %v2741_v11 }
 0x265   : > { %2904 = vst.msk [vmem:[%s4639_s13 + $0x3c] sm:$0xf] %vm2888_vm3, %v3101_v21 }
 0x266   : > { %2902 = vst.msk [vmem:[%s4639_s13 + $0x34] sm:$0xf] %vm2888_vm3, %v3099_v59 }
 0x272   : > { %v3171_v30 = vpop.f32.mrb[12].mxu1 }
 0x273   : > { %v2687_v27 = vmul.f32 %v3171_v30, %v4605_v35  ;;  %v2635_v57 = vpop.f32.mrb[13].mxu1 }
 0x274   : > { %v2685_v22 = vmul.f32 %v4605_v35, %v2635_v57  ;;  %v3172_v23 = vpop.f32.mrb[14].mxu1 }
 0x275   : > { %v2726_v17 = vadd.f32 %v4612_v29, %v2687_v27  ;;  %v2688_v44 = vmul.f32 %v3172_v23, %v4605_v35  ;;  %v2638_v55 = vpop.f32.mrb[15].mxu1 }
 0x276   : > { %v2724_v50 = vadd.f32 %v4612_v29, %v2685_v22  ;;  %v2686_v25 = vmul.f32 %v4605_v35, %v2638_v55 }
 0x277   : > { %v2758_v45 = vmax.f32 %v2726_v17, 0.0  ;;  %v2727_v41 = vadd.f32 %v4612_v29, %v2688_v44 }
 0x278   : > { %v2756_v37 = vmax.f32 %v2724_v50, 0.0  ;;  %v2725_v3 = vadd.f32 %v4612_v29, %v2686_v25 }
 0x279   : > { %v3116_v9 = vpack.c.bf16 %v2758_v45, %v2758_v45  ;;  %v2759_v49 = vmax.f32 %v2727_v41, 0.0 }
 0x27a   : > { %v3114_v33 = vpack.c.bf16 %v2756_v37, %v2756_v37  ;;  %v2757_v53 = vmax.f32 %v2725_v3, 0.0 }
 0x27b   : > { %2919 = vst.msk [vmem:[%s4639_s13 + $0x78] sm:$0xf] %vm2888_vm3, %v3116_v9  ;;  %v3117_v46 = vpack.c.bf16 %v2759_v49, %v2759_v49 }
 0x27c   : > { %2917 = vst.msk [vmem:[%s4639_s13 + $0x70] sm:$0xf] %vm2888_vm3, %v3114_v33  ;;  %v3115_v35 = vpack.c.bf16 %v2757_v53, %v2757_v53 }
 0x27d   : > { %2920 = vst.msk [vmem:[%s4639_s13 + $0x7c] sm:$0xf] %vm2888_vm3, %v3117_v46 }
 0x27e   : > { %2918 = vst.msk [vmem:[%s4639_s13 + $0x74] sm:$0xf] %vm2888_vm3, %v3115_v35 }
 0x27f   : > { %3256 = shalt.err (!%p3253_p5)
}
 0x280   : > { %s3257_s8 = scalar_lea.hbm %s4758_s24, 2048  ;;  %s3261_s11 = scalar_lea.hbm %s4821_s5, 4096 }
 0x281   : > { %p3258_p6 = scmp.ne.s32.totalorder %s4758_s24, %s3257_s8  ;;  %p3262_p10 = scmp.lt.u32.totalorder %s4758_s24, %s4821_s5 }
 0x282   : > { %p3263_p11 = scmp.lt.u32.totalorder %s3261_s11, %s3257_s8  ;;  %p3265_p13 = scmp.lt.u32.totalorder %s3257_s8, %s4758_s24 }
 0x283   : > { %p3259_p7 = pnand %p3258_p6, %p3396_p4 }
 0x284   : > { %p3264_p12 = por %p3263_p11, %p3262_p10 }
 0x285   : > { %p3260_p9 = pneg %p3259_p7 }
 0x286   : > { %p3266_p0 = por %p3265_p13, %p3264_p12 }
 0x288   : > { %p3267_p1 = pnand %p3266_p0, %p3260_p9 }
 0x28a   : > { %3270 = shalt.err (!%p3267_p1)
}
 0x28b   : > { %s3324_s14 = smov 64   ;;  %s3325_s16 = smov 4  }
 0x28c   : > { %3178 = dma.vmem_to_hbm [thread:$0]  (%p3396_p4), %s4760_s15, 2048, %s4758_s24, %s4770_s21, %s3324_s14, %s3324_s14, %s3325_s16  }
 0x28d PF: > { %p3184_p2 = scmp.ge.s32.totalorder %s3321_s23, 2  ;;  %s2953_s17 = sand.u32 1, %s3301_s18  }
 0x28e   : > { %s2954_s25 = scalar_lea.sflag [#allocation3], %s2953_s17 }
 0x28f   : > { %p3181_p3 = pnand %p3184_p2, %p3403_p8 }
 0x291   : > { %3296 = dma.done.wait (!%p3181_p3), %s2954_s25, 2048  }
 0x292   : > { %3298 = vsyncadd (!%p3181_p3), %s2954_s25, 4294965248  ;;  %s18_s23 = sadd.s32 1, %s3321_s23   ;;  %s4824_s18 = smov %s3305_s19 }
 0x293   : > { %p15_p5 = scmp.ge.s32.totalorder %s18_s23, 4   ;;  %s4825_s19 = smov %s3309_s20 }
 0x294   : > { %s4826_s20 = smov %s3409_s6  ;;  %s4827_s21 = smov %s3317_s22 }
 0x295   : > { %s4828_s22 = smov %s4830_s26  ;;  %17 = sbr.rel (!%p15_p5) target bundleno = 4 (0x4), region = 76 }
 0x29c   :  { %2959 = vsyncpa [#allocation3], 1 }
 0x29d   :  { %2961 = vsyncpa [#allocation3 + $0x1], 1 }

</bundles_post_ra>
